<compile_context>
chip_gen: v6e
topology: v6e:2x2x1
jax: 0.10.0
libtpu: 0.0.40
codegen_flags: <defaults>
</compile_context>

<pallas_src>
import jax
import jax.numpy as jnp
from jax.experimental import pallas as pl
from jax.experimental.pallas import tpu as pltpu

NUM_FEATURES = 2048   # resnet50 fc.in_features
HID1 = 1024
HID2 = 512
NUM_CLASSES = 2
PAD_CLASSES = 128     # lane-dense output width (wrapper slices back to NUM_CLASSES)
MAX_TILE_B = 256      # batch-tile rows per grid step


def head_kernel(x_ref, w1_ref, b1_ref, w2_ref, b2_ref, w3_ref, b3_ref, out_ref):
    # x_ref: [TB, 2048] pooled features (bf16). Weights bf16, biases f32.
    feats = x_ref[...]

    # Linear(2048 -> 1024) + ReLU   (bf16 MXU matmul, f32 accumulate)
    h1 = jnp.dot(feats, w1_ref[...], preferred_element_type=jnp.float32) + b1_ref[...]
    h1 = jnp.maximum(h1, 0.0)
    # Dropout(0.5): identity at inference.
    # TODO(synk): train-mode dropout could use pltpu.prng_seed / pltpu.prng_random_bits.

    # Linear(1024 -> 512) + ReLU
    h2 = jnp.dot(h1.astype(jnp.bfloat16), w2_ref[...],
                 preferred_element_type=jnp.float32) + b2_ref[...]
    h2 = jnp.maximum(h2, 0.0)
    # Dropout(0.4): identity at inference.

    # Linear(512 -> num_classes), padded to 128 output lanes for lane-dense stores.
    logits = jnp.dot(h2.astype(jnp.bfloat16), w3_ref[...],
                     preferred_element_type=jnp.float32) + b3_ref[...]
    out_ref[...] = logits.astype(out_ref.dtype)


def prepare_head_params(w1, b1, w2, b2, w3, b3):
    """One-time (model-load) weight prep: bf16 cast + lane-dense classifier padding.

    Do NOT call this per forward pass — that would re-read/re-write ~15 MiB of weights in
    XLA on every invocation (more HBM traffic than the kernel itself).
    """
    w1b = w1.astype(jnp.bfloat16)
    w2b = w2.astype(jnp.bfloat16)
    # Pad classifier to 128 lanes (zeros in padded columns -> padded logits are exactly 0).
    w3p = (jnp.zeros((HID2, PAD_CLASSES), jnp.float32)
           .at[:, :NUM_CLASSES].set(w3).astype(jnp.bfloat16))
    b3p = jnp.zeros((1, PAD_CLASSES), jnp.float32).at[:, :NUM_CLASSES].set(b3)
    b1f = jnp.asarray(b1, jnp.float32).reshape(1, HID1)
    b2f = jnp.asarray(b2, jnp.float32).reshape(1, HID2)
    return w1b, b1f, w2b, b2f, w3p, b3p


def _global_avg_pool_bf16(feat_nchw):
    B, C, H, W = feat_nchw.shape
    # GAP in f32, emitted as bf16 (halves the pooled-feature DMA into the kernel).
    pooled = jnp.mean(feat_nchw.astype(jnp.float32).reshape(B, C, H * W), axis=-1)
    return pooled.astype(jnp.bfloat16)


def _round_up(x, m):
    return (x + m - 1) // m * m


def signature_decay_head(feat_nchw, head_params):
    """feat_nchw: [B, 2048, H, W] backbone feature map. Returns logits [B, num_classes]."""
    w1b, b1, w2b, b2, w3p, b3p = head_params
    B, C, _, _ = feat_nchw.shape
    assert C == NUM_FEATURES

    # ResNet-50 global average pool done in XLA (no transpose / extra feature-map HBM trip).
    feats = _global_avg_pool_bf16(feat_nchw)                         # bf16 [B, 2048]

    # Sublane-align the batch (multiple of 8 -> unmasked stores) and tile it over a parallel
    # grid so large batches shard across TensorCores; weights are fetched once and stay
    # VMEM-resident across tiles (constant block index).
    tile_b = min(MAX_TILE_B, _round_up(B, 8))
    b_pad = _round_up(B, tile_b)
    if b_pad != B:
        feats = jnp.pad(feats, ((0, b_pad - B), (0, 0)))
    n_tiles = b_pad // tile_b

    def full(arr):
        return pl.BlockSpec(arr.shape, lambda i, _n=arr.ndim: (0,) * _n)

    # TODO(synk): cross-call prefetch (P10) of w1b/w2b/w3p during the backbone would hide
    # the ~5 MiB weight DMA entirely; omitted to keep this call self-contained.
    out_padded = pl.pallas_call(
        head_kernel,
        out_shape=jax.ShapeDtypeStruct((b_pad, PAD_CLASSES), jnp.float32),
        grid=(n_tiles,),
        in_specs=[
            pl.BlockSpec((tile_b, NUM_FEATURES), lambda i: (i, 0)),   # feats: tiled over B
            full(w1b), full(b1),                                      # weights: resident
            full(w2b), full(b2),
            full(w3p), full(b3p),
        ],
        out_specs=pl.BlockSpec((tile_b, PAD_CLASSES), lambda i: (i, 0)),
        compiler_params=pltpu.CompilerParams(
            dimension_semantics=("parallel",),
            vmem_limit_bytes=32 * 1024 * 1024,   # fits v7x's 64 MiB physical VMEM
        ),
    )(feats, w1b, b1, w2b, b2, w3p, b3p)

    return out_padded[:B, :NUM_CLASSES]


def reference_head(feat_nchw, w1, b1, w2, b2, w3, b3):
    """Pure-JAX reference mirroring the kernel math (bf16 weights/activations, f32 acc)."""
    feats = _global_avg_pool_bf16(feat_nchw)
    w1b, w2b, w3b = (w.astype(jnp.bfloat16) for w in (w1, w2, w3))
    h1 = jnp.maximum(jnp.dot(feats, w1b, preferred_element_type=jnp.float32) + b1, 0.0)
    h2 = jnp.maximum(jnp.dot(h1.astype(jnp.bfloat16), w2b,
                             preferred_element_type=jnp.float32) + b2, 0.0)
    return jnp.dot(h2.astype(jnp.bfloat16), w3b,
                   preferred_element_type=jnp.float32) + b3


if __name__ == "__main__":
    key = jax.random.PRNGKey(0)
    k_feat, k1, k2, k3, kb1, kb2, kb3 = jax.random.split(key, 7)

    # Small deterministic "backbone feature map": B=2, C=2048, spatial 4x4.
    B, H, W = 2, 4, 4
    feat = jax.random.normal(k_feat, (B, NUM_FEATURES, H, W), dtype=jnp.float32)

    # Deterministic head parameters (shapes from the module's __init__).
    w1 = jax.random.normal(k1, (NUM_FEATURES, HID1), dtype=jnp.float32) * 0.02
    b1 = jax.random.normal(kb1, (1, HID1), dtype=jnp.float32) * 0.01
    w2 = jax.random.normal(k2, (HID1, HID2), dtype=jnp.float32) * 0.02
    b2 = jax.random.normal(kb2, (1, HID2), dtype=jnp.float32) * 0.01
    w3 = jax.random.normal(k3, (HID2, NUM_CLASSES), dtype=jnp.float32) * 0.02
    b3 = jax.random.normal(kb3, (1, NUM_CLASSES), dtype=jnp.float32) * 0.01

    # One-time weight prep ("model load"), NOT repeated per forward call.
    head_params = jax.block_until_ready(prepare_head_params(w1, b1, w2, b2, w3, b3))

    out = signature_decay_head(feat, head_params)
    out = jax.block_until_ready(out)

    ref = reference_head(feat, w1, b1, w2, b2, w3, b3)
    assert out.shape == (B, NUM_CLASSES)
    assert jnp.allclose(out, ref, atol=2e-3, rtol=2e-3), "Pallas kernel mismatch vs reference"

    print("KERNEL_OK")
</pallas_src>

<mosaic_0001>
module attributes {stable_mosaic.version = 11 : i64} {
  func.func @head_kernel(%arg0: i32, %arg1: memref<8x2048xbf16, #tpu.memory_space<vmem>>, %arg2: memref<2048x1024xbf16, #tpu.memory_space<vmem>>, %arg3: memref<1x1024xf32, #tpu.memory_space<vmem>>, %arg4: memref<1024x512xbf16, #tpu.memory_space<vmem>>, %arg5: memref<1x512xf32, #tpu.memory_space<vmem>>, %arg6: memref<512x128xbf16, #tpu.memory_space<vmem>>, %arg7: memref<1x128xf32, #tpu.memory_space<vmem>>, %arg8: memref<8x128xf32, #tpu.memory_space<vmem>>) attributes {dimension_semantics = [#tpu.dimension_semantics<parallel>], iteration_bounds = array<i64: 1>, scalar_prefetch = 0 : i64, scratch_operands = 0 : i64, tpu.core_type = #tpu.core_type<tc>, window_params = [{transform_indices = @transform_0, window_bounds = array<i64: 8, 2048>}, {pipeline_mode = #tpu.pipeline_mode<synchronous>, transform_indices = @transform_1, window_bounds = array<i64: 2048, 1024>}, {pipeline_mode = #tpu.pipeline_mode<synchronous>, transform_indices = @transform_2, window_bounds = array<i64: 1, 1024>}, {pipeline_mode = #tpu.pipeline_mode<synchronous>, transform_indices = @transform_3, window_bounds = array<i64: 1024, 512>}, {pipeline_mode = #tpu.pipeline_mode<synchronous>, transform_indices = @transform_4, window_bounds = array<i64: 1, 512>}, {pipeline_mode = #tpu.pipeline_mode<synchronous>, transform_indices = @transform_5, window_bounds = array<i64: 512, 128>}, {pipeline_mode = #tpu.pipeline_mode<synchronous>, transform_indices = @transform_6, window_bounds = array<i64: 1, 128>}, {transform_indices = @transform_7, window_bounds = array<i64: 8, 128>}]} {
    %c0 = arith.constant 0 : index
    %c0_0 = arith.constant 0 : index
    %0 = vector.load %arg1[%c0, %c0_0] : memref<8x2048xbf16, #tpu.memory_space<vmem>>, vector<8x2048xbf16>
    %c0_1 = arith.constant 0 : index
    %c0_2 = arith.constant 0 : index
    %1 = vector.load %arg2[%c0_1, %c0_2] : memref<2048x1024xbf16, #tpu.memory_space<vmem>>, vector<2048x1024xbf16>
    %cst = arith.constant dense<0.000000e+00> : vector<8x1024xf32>
    %2 = tpu.matmul %0, %1, %cst {dimension_numbers = #tpu.dot_dimension_numbers<[1], [0], [0], [1], [0, 0, 1, 1], [], []>} : vector<8x2048xbf16>, vector<2048x1024xbf16>, vector<8x1024xf32> -> vector<8x1024xf32>
    %c0_3 = arith.constant 0 : index
    %c0_4 = arith.constant 0 : index
    %3 = vector.load %arg3[%c0_3, %c0_4] : memref<1x1024xf32, #tpu.memory_space<vmem>>, vector<1x1024xf32>
    %4 = vector.broadcast %3 : vector<1x1024xf32> to vector<8x1024xf32>
    %5 = arith.addf %2, %4 : vector<8x1024xf32>
    %cst_5 = arith.constant 0.000000e+00 : f32
    %6 = vector.broadcast %cst_5 : f32 to vector<8x1024xf32>
    %7 = arith.maximumf %5, %6 : vector<8x1024xf32>
    %8 = arith.truncf %7 : vector<8x1024xf32> to vector<8x1024xbf16>
    %c0_6 = arith.constant 0 : index
    %c0_7 = arith.constant 0 : index
    %9 = vector.load %arg4[%c0_6, %c0_7] : memref<1024x512xbf16, #tpu.memory_space<vmem>>, vector<1024x512xbf16>
    %cst_8 = arith.constant dense<0.000000e+00> : vector<8x512xf32>
    %10 = tpu.matmul %8, %9, %cst_8 {dimension_numbers = #tpu.dot_dimension_numbers<[1], [0], [0], [1], [0, 0, 1, 1], [], []>} : vector<8x1024xbf16>, vector<1024x512xbf16>, vector<8x512xf32> -> vector<8x512xf32>
    %c0_9 = arith.constant 0 : index
    %c0_10 = arith.constant 0 : index
    %11 = vector.load %arg5[%c0_9, %c0_10] : memref<1x512xf32, #tpu.memory_space<vmem>>, vector<1x512xf32>
    %12 = vector.broadcast %11 : vector<1x512xf32> to vector<8x512xf32>
    %13 = arith.addf %10, %12 : vector<8x512xf32>
    %cst_11 = arith.constant 0.000000e+00 : f32
    %14 = vector.broadcast %cst_11 : f32 to vector<8x512xf32>
    %15 = arith.maximumf %13, %14 : vector<8x512xf32>
    %16 = arith.truncf %15 : vector<8x512xf32> to vector<8x512xbf16>
    %c0_12 = arith.constant 0 : index
    %c0_13 = arith.constant 0 : index
    %17 = vector.load %arg6[%c0_12, %c0_13] : memref<512x128xbf16, #tpu.memory_space<vmem>>, vector<512x128xbf16>
    %cst_14 = arith.constant dense<0.000000e+00> : vector<8x128xf32>
    %18 = tpu.matmul %16, %17, %cst_14 {dimension_numbers = #tpu.dot_dimension_numbers<[1], [0], [0], [1], [0, 0, 1, 1], [], []>} : vector<8x512xbf16>, vector<512x128xbf16>, vector<8x128xf32> -> vector<8x128xf32>
    %c0_15 = arith.constant 0 : index
    %c0_16 = arith.constant 0 : index
    %19 = vector.load %arg7[%c0_15, %c0_16] : memref<1x128xf32, #tpu.memory_space<vmem>>, vector<1x128xf32>
    %20 = vector.broadcast %19 : vector<1x128xf32> to vector<8x128xf32>
    %21 = arith.addf %18, %20 : vector<8x128xf32>
    %c0_17 = arith.constant 0 : index
    %c0_18 = arith.constant 0 : index
    %22 = vector.load %arg8[%c0_17, %c0_18] : memref<8x128xf32, #tpu.memory_space<vmem>>, vector<8x128xf32>
    tpu.vector_store %arg8[%c0_17, %c0_18], %21 {strides = array<i32>} : memref<8x128xf32, #tpu.memory_space<vmem>>, vector<8x128xf32>,
    return
  }
  func.func @transform_0(%arg0: i32) -> (i32, i32) {
    %c0_i32 = arith.constant 0 : i32
    %c0_i32_0 = arith.constant 0 : i32
    return %arg0, %c0_i32 : i32, i32
  }
  func.func @transform_1(%arg0: i32) -> (i32, i32) {
    %c0_i32 = arith.constant 0 : i32
    %c0_i32_0 = arith.constant 0 : i32
    %c0_i32_1 = arith.constant 0 : i32
    return %c0_i32, %c0_i32_0 : i32, i32
  }
  func.func @transform_2(%arg0: i32) -> (i32, i32) {
    %c0_i32 = arith.constant 0 : i32
    %c0_i32_0 = arith.constant 0 : i32
    %c0_i32_1 = arith.constant 0 : i32
    return %c0_i32, %c0_i32_0 : i32, i32
  }
  func.func @transform_3(%arg0: i32) -> (i32, i32) {
    %c0_i32 = arith.constant 0 : i32
    %c0_i32_0 = arith.constant 0 : i32
    %c0_i32_1 = arith.constant 0 : i32
    return %c0_i32, %c0_i32_0 : i32, i32
  }
  func.func @transform_4(%arg0: i32) -> (i32, i32) {
    %c0_i32 = arith.constant 0 : i32
    %c0_i32_0 = arith.constant 0 : i32
    %c0_i32_1 = arith.constant 0 : i32
    return %c0_i32, %c0_i32_0 : i32, i32
  }
  func.func @transform_5(%arg0: i32) -> (i32, i32) {
    %c0_i32 = arith.constant 0 : i32
    %c0_i32_0 = arith.constant 0 : i32
    %c0_i32_1 = arith.constant 0 : i32
    return %c0_i32, %c0_i32_0 : i32, i32
  }
  func.func @transform_6(%arg0: i32) -> (i32, i32) {
    %c0_i32 = arith.constant 0 : i32
    %c0_i32_0 = arith.constant 0 : i32
    %c0_i32_1 = arith.constant 0 : i32
    return %c0_i32, %c0_i32_0 : i32, i32
  }
  func.func @transform_7(%arg0: i32) -> (i32, i32) {
    %c0_i32 = arith.constant 0 : i32
    %c0_i32_0 = arith.constant 0 : i32
    return %arg0, %c0_i32 : i32, i32
  }
}

</mosaic_0001>

<bundles_post_ra>
// kernel: tpu_custom_call.1
= control target key start
LH: loop header
LB: loop body
LE: loop exit
PB: predicated region body
PF: predicated region fallthrough
CT: control target
= control target key end

     0   :  { %12 = vsyncpa [#allocation3], 0  ;;  %s12326_s0 = inlined_call_operand.hbm [shape: bf16[8,2048], index: 0, kind: input, shape index: {}]   ;;  %s12327_s1 = inlined_call_operand.hbm [shape: bf16[2048,1024], index: 1, kind: input, shape index: {}]   ;;  %s12328_s2 = inlined_call_operand.hbm [shape: f32[1,1024], index: 2, kind: input, shape index: {}]   ;;  %s12329_s3 = inlined_call_operand.hbm [shape: bf16[1024,512], index: 3, kind: input, shape index: {}]   ;;  %s12330_s4 = inlined_call_operand.hbm [shape: f32[1,512], index: 4, kind: input, shape index: {}]   ;;  %s12331_s5 = inlined_call_operand.hbm [shape: bf16[512,128], index: 5, kind: input, shape index: {}]   ;;  %s12332_s6 = inlined_call_operand.hbm [shape: f32[1,128], index: 6, kind: input, shape index: {}]   ;;  %s12333_s7 = inlined_call_operand.hbm [shape: f32[8,128], index: 7, kind: output, shape index: {}]  }
   0x1   :  { %13 = vsyncpa [#allocation6], 0 }
   0x2   :  { %14 = vsyncpa [#allocation9], 0 }
   0x3   :  { %15 = vsyncpa [#allocation12], 0 }
   0x4   :  { %16 = vsyncpa [#allocation4], 0  ;;  %s11941_s24 = smov [#allocation5]  }
   0x5   :  { %s32_s25 = sshll.u32 %s11941_s24, 4  ;;  %s33_s25 = int_to_ptr.vmem [resolvable:$true] %s32_s25 }
   0x6   :  { %s11779_s26 = scalar_lea.vmem %s33_s25, 131072  ;;  %p11784_p1 = scmp.lt.s32.totalorder %s33_s25, %s33_s25 }
   0x7   :  { %p11780_p0 = scmp.ne.s32.totalorder %s33_s25, %s11779_s26  ;;  %p11785_p2 = scmp.lt.s32.totalorder %s11779_s26, %s11779_s26 }
   0x9   :  { %p11786_p3 = por %p11785_p2, %p11784_p1 }
   0xb   :  { %p11787_p4 = pnand %p11786_p3, %p11780_p0 }
   0xd   :  { %11790 = shalt.err (!%p11787_p4)
}
   0xe   :  { %s11942_s27 = smov 512   ;;  %s11943_s28 = smov 32  }
   0xf   :  { %38 = dma.hbm_to_vmem [thread:$0]  %s12327_s1, 131072, %s33_s25, [#allocation6], %s11942_s27, %s11942_s27, %s11943_s28  }
  0x10   :  { %s11944_s8 = smov [#allocation8]  }
  0x11   :  { %s54_s9 = sshll.u32 %s11944_s8, 4  ;;  %s55_s9 = int_to_ptr.vmem [resolvable:$true] %s54_s9 }
  0x12   :  { %s11799_s10 = scalar_lea.vmem %s55_s9, 32768  ;;  %p11804_p6 = scmp.lt.s32.totalorder %s55_s9, %s55_s9 }
  0x13   :  { %p11800_p5 = scmp.ne.s32.totalorder %s55_s9, %s11799_s10  ;;  %p11805_p7 = scmp.lt.s32.totalorder %s11799_s10, %s11799_s10 }
  0x15   :  { %p11806_p8 = por %p11805_p7, %p11804_p6 }
  0x17   :  { %p11807_p9 = pnand %p11806_p8, %p11800_p5 }
  0x19   :  { %11810 = shalt.err (!%p11807_p9)
}
  0x1a   :  { %s11945_s11 = smov 256   ;;  %s11946_s12 = smov 16  }
  0x1b   :  { %60 = dma.hbm_to_vmem [thread:$0]  %s12329_s3, 32768, %s55_s9, [#allocation9], %s11945_s11, %s11945_s11, %s11946_s12  }
  0x1c   :  { %s11947_s15 = smov [#allocation11]  }
  0x1d   :  { %s76_s16 = sshll.u32 %s11947_s15, 4  ;;  %s77_s16 = int_to_ptr.vmem [resolvable:$true] %s76_s16 }
  0x1e   :  { %s11819_s1 = scalar_lea.vmem %s77_s16, 4096  ;;  %p11824_p11 = scmp.lt.s32.totalorder %s77_s16, %s77_s16 }
  0x1f   :  { %p11820_p10 = scmp.ne.s32.totalorder %s77_s16, %s11819_s1  ;;  %p11825_p12 = scmp.lt.s32.totalorder %s11819_s1, %s11819_s1 }
  0x21   :  { %p11826_p13 = por %p11825_p12, %p11824_p11 }
  0x23   :  { %p11827_p0 = pnand %p11826_p13, %p11820_p10 }
  0x25   :  { %11830 = shalt.err (!%p11827_p0)
}
  0x26   :  { %s11948_s17 = smov 64   ;;  %s11949_s18 = smov 4  }
  0x27   :  { %82 = dma.hbm_to_vmem [thread:$0]  %s12331_s5, 4096, %s77_s16, [#allocation12], %s11948_s17, %s11948_s17, %s11949_s18  }
  0x28   :  { %s11950_s21 = smov [#allocation2]   ;;  %s11951_s3 = smov [#allocation7]  }
  0x29   :  { %s23_s22 = sshll.u32 %s11950_s21, 4  ;;  %s45_s23 = sshll.u32 %s11951_s3, 4  ;;  %s24_s22 = int_to_ptr.vmem [resolvable:$true] %s23_s22  ;;  %s46_s23 = int_to_ptr.vmem [resolvable:$true] %s45_s23 }
  0x2a   :  { %s11839_s24 = scalar_lea.vmem %s24_s22, 1024  ;;  %p11844_p2 = scmp.lt.s32.totalorder %s24_s22, %s24_s22 }
  0x2b   :  { %p11840_p1 = scmp.ne.s32.totalorder %s24_s22, %s11839_s24  ;;  %p11845_p3 = scmp.lt.s32.totalorder %s11839_s24, %s11839_s24 }
  0x2d   :  { %p11846_p4 = por %p11845_p3, %p11844_p2 }
  0x2f   :  { %p11847_p5 = pnand %p11846_p4, %p11840_p1 }
  0x31   :  { %11850 = shalt.err (!%p11847_p5)
}
  0x32   :  { %26 = dma.hbm_to_vmem [thread:$0]  %s12326_s0, 1024, %s24_s22, [#allocation3]  }
  0x33   :  { %s11859_s27 = scalar_lea.vmem %s46_s23, 128  ;;  %p11864_p7 = scmp.lt.s32.totalorder %s46_s23, %s46_s23 }
  0x34   :  { %p11860_p6 = scmp.ne.s32.totalorder %s46_s23, %s11859_s27  ;;  %p11865_p8 = scmp.lt.s32.totalorder %s11859_s27, %s11859_s27 }
  0x36   :  { %p11866_p9 = por %p11865_p8, %p11864_p7 }
  0x38   :  { %p11867_p10 = pnand %p11866_p9, %p11860_p6 }
  0x3a   :  { %11870 = shalt.err (!%p11867_p10)
}
  0x3b   :  { %48 = dma.hbm_to_vmem [thread:$0]  %s12328_s2, 128, %s46_s23, [#allocation6]  }
  0x3c   :  { %s11952_s29 = smov [#allocation10]   ;;  %s11953_s8 = smov [#allocation13]  }
  0x3d   :  { %s67_s30 = sshll.u32 %s11952_s29, 4  ;;  %s89_s9 = sshll.u32 %s11953_s8, 4  ;;  %s68_s30 = int_to_ptr.vmem [resolvable:$true] %s67_s30  ;;  %s90_s9 = int_to_ptr.vmem [resolvable:$true] %s89_s9 }
  0x3e   :  { %s11879_s10 = scalar_lea.vmem %s68_s30, 64  ;;  %p11884_p12 = scmp.lt.s32.totalorder %s68_s30, %s68_s30 }
  0x3f   :  { %p11880_p11 = scmp.ne.s32.totalorder %s68_s30, %s11879_s10  ;;  %p11885_p13 = scmp.lt.s32.totalorder %s11879_s10, %s11879_s10 }
  0x41   :  { %p11886_p0 = por %p11885_p13, %p11884_p12 }
  0x43   :  { %p11887_p1 = pnand %p11886_p0, %p11880_p11 }
  0x45   :  { %11890 = shalt.err (!%p11887_p1)
}
  0x46   :  { %70 = dma.hbm_to_vmem [thread:$0]  %s12330_s4, 64, %s68_s30, [#allocation9]  }
  0x47   :  { %s11899_s12 = scalar_lea.vmem %s90_s9, 16  ;;  %s11903_s2 = scalar_lea.vmem %s90_s9, 32 }
  0x48   :  { %p11900_p2 = scmp.ne.s32.totalorder %s90_s9, %s11899_s12  ;;  %p11904_p3 = scmp.lt.s32.totalorder %s90_s9, %s90_s9 }
  0x49   :  { %p11905_p4 = scmp.lt.s32.totalorder %s11903_s2, %s11899_s12 }
  0x4b   :  { %p11906_p5 = por %p11905_p4, %p11904_p3 }
  0x4d   :  { %p11907_p6 = pnand %p11906_p5, %p11900_p2 }
  0x4f   :  { %11910 = shalt.err (!%p11907_p6)
}
  0x50   :  { %92 = dma.hbm_to_vmem [thread:$0]  %s12332_s6, 16, %s90_s9, [#allocation12]  }
  0x51   :  { %11931 = dma.done.wait [#allocation3], 1024  }
  0x52   :  { %11932 = vsyncadd [#allocation3], 4294966272 }
  0x53   :  { %11933 = dma.done.wait [#allocation6], 131200  }
  0x54   :  { %11934 = vsyncadd [#allocation6], 4294836096 }
  0x55   :  { %11935 = dma.done.wait [#allocation9], 32832  }
  0x56   :  { %11936 = vsyncadd [#allocation9], 4294934464 }
  0x57   :  { %11937 = dma.done.wait [#allocation12], 4112  }
  0x58   :  { %11938 = vsyncadd [#allocation12], 4294963184  ;;  %v179_v0 = vld [vmem:[#allocation5 + $0x1c0] sm:$0xff]  ;;  %v12018_v54 = vld [vmem:[#allocation2 + $0x8] sm:$0xff]  ;;  %s11954_s4 = smov [#allocation14]  }
  0x59   :  { %v183_v1 = vld [vmem:[#allocation5 + $0x1e0] sm:$0xff]  ;;  %v12026_v59 = vcombine.high %v12018_v54, %v12018_v54  ;;  %s9937_s6 = sshll.u32 %s11954_s4, 4  ;;  %s9938_s6 = int_to_ptr.vmem [resolvable:$true] %s9937_s6 }
  0x5a   :  { %v307_v2 = vld [vmem:[#allocation5 + $0x5c0] sm:$0xff]  ;;  %v10022_v3 = vcombine.high %v179_v0, %v183_v1  ;;  %v10021_v5 = vcombine.low %v179_v0, %v183_v1  ;;  %s11911_s15 = scalar_lea.vmem %s9938_s6, 128  ;;  %p11916_p8 = scmp.lt.s32.totalorder %s9938_s6, %s9938_s6 }
  0x5b   :  { %v311_v4 = vld [vmem:[#allocation5 + $0x5e0] sm:$0xff]  ;;  %6438 = vmatprep.mubr.bf16.mxu1 %v12026_v59  ;;  %p11912_p7 = scmp.ne.s32.totalorder %s9938_s6, %s11911_s15  ;;  %p11917_p9 = scmp.lt.s32.totalorder %s11911_s15, %s11911_s15 }
  0x5c   :  { %v171_v6 = vld [vmem:[#allocation5 + $0x180] sm:$0xff]  ;;  %v10150_v8 = vcombine.high %v307_v2, %v311_v4  ;;  %v10149_v9 = vcombine.low %v307_v2, %v311_v4  ;;  %6365 = vmatprep.subr.bf16.mxu0 %v10022_v3 }
  0x5d   :  { %v175_v7 = vld [vmem:[#allocation5 + $0x1a0] sm:$0xff]  ;;  %6366 = vmatpush1.bf16.msra.mxu0 %v10021_v5  ;;  %p11918_p10 = por %p11917_p9, %p11916_p8 }
  0x5e   :  { %v10014_v10 = vcombine.high %v171_v6, %v175_v7  ;;  %v299_v11 = vld [vmem:[#allocation5 + $0x580] sm:$0xff]  ;;  %6406 = vmatprep.subr.bf16.mxu1 %v10150_v8  ;;  %v10013_v18 = vcombine.low %v171_v6, %v175_v7 }
  0x5f   :  { %v303_v12 = vld [vmem:[#allocation5 + $0x5a0] sm:$0xff]  ;;  %6407 = vmatpush1.bf16.msra.mxu1 %v10149_v9  ;;  %p11919_p11 = pnand %p11918_p10, %p11912_p7 }
  0x60   :  { %v163_v13 = vld [vmem:[#allocation5 + $0x140] sm:$0xff]  ;;  %v10142_v14 = vcombine.high %v299_v11, %v303_v12  ;;  %6367 = vmatprep.subr.bf16.mxu0 %v10014_v10  ;;  %v10141_v19 = vcombine.low %v299_v11, %v303_v12 }
  0x61   :  { %v167_v15 = vld [vmem:[#allocation5 + $0x160] sm:$0xff]  ;;  %6368 = vmatpush1.bf16.msra.mxu0 %v10013_v18 }
  0x62   :  { %v291_v16 = vld [vmem:[#allocation5 + $0x540] sm:$0xff]  ;;  %v10006_v20 = vcombine.high %v163_v13, %v167_v15  ;;  %6408 = vmatprep.subr.bf16.mxu1 %v10142_v14  ;;  %v10005_v26 = vcombine.low %v163_v13, %v167_v15 }
  0x63   :  { %v295_v17 = vld [vmem:[#allocation5 + $0x560] sm:$0xff]  ;;  %6409 = vmatpush1.bf16.msra.mxu1 %v10141_v19 }
  0x64   :  { %v10134_v21 = vcombine.high %v291_v16, %v295_v17  ;;  %v155_v22 = vld [vmem:[#allocation5 + $0x100] sm:$0xff]  ;;  %6369 = vmatprep.subr.bf16.mxu0 %v10006_v20  ;;  %v10133_v27 = vcombine.low %v291_v16, %v295_v17 }
  0x65   :  { %v159_v23 = vld [vmem:[#allocation5 + $0x120] sm:$0xff]  ;;  %6370 = vmatpush1.bf16.msra.mxu0 %v10005_v26 }
  0x66   :  { %v283_v24 = vld [vmem:[#allocation5 + $0x500] sm:$0xff]  ;;  %v9998_v28 = vcombine.high %v155_v22, %v159_v23  ;;  %6410 = vmatprep.subr.bf16.mxu1 %v10134_v21  ;;  %v9997_v34 = vcombine.low %v155_v22, %v159_v23 }
  0x67   :  { %v287_v25 = vld [vmem:[#allocation5 + $0x520] sm:$0xff]  ;;  %6411 = vmatpush1.bf16.msra.mxu1 %v10133_v27 }
  0x68   :  { %v10126_v29 = vcombine.high %v283_v24, %v287_v25  ;;  %v147_v30 = vld [vmem:[#allocation5 + $0xc0] sm:$0xff]  ;;  %6371 = vmatprep.subr.bf16.mxu0 %v9998_v28  ;;  %v10125_v35 = vcombine.low %v283_v24, %v287_v25 }
  0x69   :  { %v151_v31 = vld [vmem:[#allocation5 + $0xe0] sm:$0xff]  ;;  %6372 = vmatpush1.bf16.msra.mxu0 %v9997_v34 }
  0x6a   :  { %v275_v32 = vld [vmem:[#allocation5 + $0x4c0] sm:$0xff]  ;;  %v9990_v36 = vcombine.high %v147_v30, %v151_v31  ;;  %6412 = vmatprep.subr.bf16.mxu1 %v10126_v29  ;;  %v9989_v42 = vcombine.low %v147_v30, %v151_v31 }
  0x6b   :  { %v279_v33 = vld [vmem:[#allocation5 + $0x4e0] sm:$0xff]  ;;  %6413 = vmatpush1.bf16.msra.mxu1 %v10125_v35 }
  0x6c   :  { %v10118_v37 = vcombine.high %v275_v32, %v279_v33  ;;  %v139_v38 = vld [vmem:[#allocation5 + $0x80] sm:$0xff]  ;;  %6373 = vmatprep.subr.bf16.mxu0 %v9990_v36  ;;  %v10117_v43 = vcombine.low %v275_v32, %v279_v33 }
  0x6d   :  { %v143_v39 = vld [vmem:[#allocation5 + $0xa0] sm:$0xff]  ;;  %6374 = vmatpush1.bf16.msra.mxu0 %v9989_v42 }
  0x6e   :  { %v267_v40 = vld [vmem:[#allocation5 + $0x480] sm:$0xff]  ;;  %v9982_v44 = vcombine.high %v139_v38, %v143_v39  ;;  %6414 = vmatprep.subr.bf16.mxu1 %v10118_v37  ;;  %v9981_v50 = vcombine.low %v139_v38, %v143_v39 }
  0x6f   :  { %v271_v41 = vld [vmem:[#allocation5 + $0x4a0] sm:$0xff]  ;;  %6415 = vmatpush1.bf16.msra.mxu1 %v10117_v43 }
  0x70   :  { %v10110_v45 = vcombine.high %v267_v40, %v271_v41  ;;  %v131_v46 = vld [vmem:[#allocation5 + $0x40] sm:$0xff]  ;;  %6375 = vmatprep.subr.bf16.mxu0 %v9982_v44  ;;  %v10109_v51 = vcombine.low %v267_v40, %v271_v41 }
  0x71   :  { %v135_v47 = vld [vmem:[#allocation5 + $0x60] sm:$0xff]  ;;  %6376 = vmatpush1.bf16.msra.mxu0 %v9981_v50 }
  0x72   :  { %v259_v48 = vld [vmem:[#allocation5 + $0x440] sm:$0xff]  ;;  %v9974_v52 = vcombine.high %v131_v46, %v135_v47  ;;  %6416 = vmatprep.subr.bf16.mxu1 %v10110_v45  ;;  %v9973_v62 = vcombine.low %v131_v46, %v135_v47 }
  0x73   :  { %v263_v49 = vld [vmem:[#allocation5 + $0x460] sm:$0xff]  ;;  %6417 = vmatpush1.bf16.msra.mxu1 %v10109_v51 }
  0x74   :  { %v12016_v53 = vld [vmem:[#allocation2] sm:$0xff]  ;;  %v10102_v55 = vcombine.high %v259_v48, %v263_v49  ;;  %6377 = vmatprep.subr.bf16.mxu0 %v9974_v52  ;;  %v10101_v63 = vcombine.low %v259_v48, %v263_v49 }
  0x75   :  { %v123_v56 = vld [vmem:[#allocation5] sm:$0xff]  ;;  %v12022_v58 = vcombine.high %v12016_v53, %v12016_v53  ;;  %6378 = vmatpush1.bf16.msra.mxu0 %v9973_v62 }
  0x76   :  { %v127_v57 = vld [vmem:[#allocation5 + $0x20] sm:$0xff]  ;;  %6418 = vmatprep.subr.bf16.mxu1 %v10102_v55 }
  0x77   :  { %v251_v60 = vld [vmem:[#allocation5 + $0x400] sm:$0xff]  ;;  %6397 = vmatprep.mubr.bf16.mxu0 %v12022_v58  ;;  %v9966_v0 = vcombine.high %v123_v56, %v127_v57  ;;  %v9965_v6 = vcombine.low %v123_v56, %v127_v57  ;;  %6419 = vmatpush1.bf16.msra.mxu1 %v10101_v63 }
  0x78   :  { %v255_v61 = vld [vmem:[#allocation5 + $0x420] sm:$0xff] }
  0x79   :  { %v10094_v1 = vcombine.high %v251_v60, %v255_v61  ;;  %v243_v2 = vld [vmem:[#allocation5 + $0x3c0] sm:$0xff]  ;;  %6379 = vmatprep.subr.bf16.mxu0 %v9966_v0  ;;  %v10093_v7 = vcombine.low %v251_v60, %v255_v61 }
  0x7a   :  { %v247_v3 = vld [vmem:[#allocation5 + $0x3e0] sm:$0xff]  ;;  %6380 = vmatpush1.bf16.msra.mxu0 %v9965_v6 }
  0x7b   :  { %v371_v4 = vld [vmem:[#allocation5 + $0x7c0] sm:$0xff]  ;;  %v10086_v8 = vcombine.high %v243_v2, %v247_v3  ;;  %6420 = vmatprep.subr.bf16.mxu1 %v10094_v1  ;;  %v10085_v14 = vcombine.low %v243_v2, %v247_v3 }
  0x7c   :  { %v375_v5 = vld [vmem:[#allocation5 + $0x7e0] sm:$0xff]  ;;  %6421 = vmatpush1.bf16.msra.mxu1 %v10093_v7 }
  0x7d   :  { %v10214_v9 = vcombine.high %v371_v4, %v375_v5  ;;  %v235_v10 = vld [vmem:[#allocation5 + $0x380] sm:$0xff]  ;;  %6381 = vmatprep.subr.bf16.mxu0 %v10086_v8  ;;  %v10213_v15 = vcombine.low %v371_v4, %v375_v5 }
  0x7e   :  { %v239_v11 = vld [vmem:[#allocation5 + $0x3a0] sm:$0xff]  ;;  %6382 = vmatpush2.bf16.msra.mxu0 %v10085_v14 }
  0x7f   :  { %v363_v12 = vld [vmem:[#allocation5 + $0x780] sm:$0xff]  ;;  %v10078_v16 = vcombine.high %v235_v10, %v239_v11  ;;  %6422 = vmatprep.subr.bf16.mxu1 %v10214_v9  ;;  %v10077_v22 = vcombine.low %v235_v10, %v239_v11 }
  0x80   :  { %v367_v13 = vld [vmem:[#allocation5 + $0x7a0] sm:$0xff]  ;;  %6423 = vmatpush2.bf16.msra.mxu1 %v10213_v15 }
  0x81   :  { %v10206_v17 = vcombine.high %v363_v12, %v367_v13  ;;  %v227_v18 = vld [vmem:[#allocation5 + $0x340] sm:$0xff]  ;;  %6383 = vmatprep.subr.bf16.mxu0 %v10078_v16  ;;  %v10205_v23 = vcombine.low %v363_v12, %v367_v13  ;;  %v12032_v16 = vcombine.low %v12016_v53, %v12016_v53 }
  0x82   :  { %v231_v19 = vld [vmem:[#allocation5 + $0x360] sm:$0xff]  ;;  %6384 = vmatpush2.bf16.msra.mxu0 %v10077_v22  ;;  %v12040_v22 = vld [vmem:[#allocation2 + $0x18] sm:$0xff] }
  0x83   :  { %v355_v20 = vld [vmem:[#allocation5 + $0x740] sm:$0xff]  ;;  %v10070_v24 = vcombine.high %v227_v18, %v231_v19  ;;  %6424 = vmatprep.subr.bf16.mxu1 %v10206_v17  ;;  %v10069_v30 = vcombine.low %v227_v18, %v231_v19  ;;  %v12034_v19 = vld [vmem:[#allocation2 + $0x10] sm:$0xff] }
  0x84   :  { %v359_v21 = vld [vmem:[#allocation5 + $0x760] sm:$0xff]  ;;  %6425 = vmatpush2.bf16.msra.mxu1 %v10205_v23 }
  0x85   :  { %v10198_v25 = vcombine.high %v355_v20, %v359_v21  ;;  %v219_v26 = vld [vmem:[#allocation5 + $0x300] sm:$0xff]  ;;  %6385 = vmatprep.subr.bf16.mxu0 %v10070_v24  ;;  %v10197_v31 = vcombine.low %v355_v20, %v359_v21  ;;  %v12038_v20 = vcombine.low %v12018_v54, %v12018_v54 }
  0x86   :  { %v223_v27 = vld [vmem:[#allocation5 + $0x320] sm:$0xff]  ;;  %6386 = vmatpush2.bf16.msra.mxu0 %v10069_v30 }
  0x87   :  { %v347_v28 = vld [vmem:[#allocation5 + $0x700] sm:$0xff]  ;;  %v10062_v32 = vcombine.high %v219_v26, %v223_v27  ;;  %6426 = vmatprep.subr.bf16.mxu1 %v10198_v25  ;;  %v10061_v38 = vcombine.low %v219_v26, %v223_v27 }
  0x88   :  { %v351_v29 = vld [vmem:[#allocation5 + $0x720] sm:$0xff]  ;;  %6427 = vmatpush2.bf16.msra.mxu1 %v10197_v31 }
  0x89   :  { %v10190_v33 = vcombine.high %v347_v28, %v351_v29  ;;  %v211_v34 = vld [vmem:[#allocation5 + $0x2c0] sm:$0xff]  ;;  %6387 = vmatprep.subr.bf16.mxu0 %v10062_v32  ;;  %v10189_v39 = vcombine.low %v347_v28, %v351_v29  ;;  %v12044_v28 = vcombine.high %v12034_v19, %v12034_v19  ;;  %v12049_v29 = vcombine.high %v12040_v22, %v12040_v22 }
  0x8a   :  { %v215_v35 = vld [vmem:[#allocation5 + $0x2e0] sm:$0xff]  ;;  %6388 = vmatpush2.bf16.msra.mxu0 %v10061_v38 }
  0x8b   :  { %v339_v36 = vld [vmem:[#allocation5 + $0x6c0] sm:$0xff]  ;;  %v10054_v40 = vcombine.high %v211_v34, %v215_v35  ;;  %6428 = vmatprep.subr.bf16.mxu1 %v10190_v33  ;;  %v10053_v46 = vcombine.low %v211_v34, %v215_v35 }
  0x8c   :  { %v343_v37 = vld [vmem:[#allocation5 + $0x6e0] sm:$0xff]  ;;  %6429 = vmatpush2.bf16.msra.mxu1 %v10189_v39 }
  0x8d   :  { %v10182_v41 = vcombine.high %v339_v36, %v343_v37  ;;  %v203_v42 = vld [vmem:[#allocation5 + $0x280] sm:$0xff]  ;;  %6389 = vmatprep.subr.bf16.mxu0 %v10054_v40  ;;  %v10181_v47 = vcombine.low %v339_v36, %v343_v37 }
  0x8e   :  { %v207_v43 = vld [vmem:[#allocation5 + $0x2a0] sm:$0xff]  ;;  %6390 = vmatpush2.bf16.msra.mxu0 %v10053_v46 }
  0x8f   :  { %v331_v44 = vld [vmem:[#allocation5 + $0x680] sm:$0xff]  ;;  %v10046_v48 = vcombine.high %v203_v42, %v207_v43  ;;  %6430 = vmatprep.subr.bf16.mxu1 %v10182_v41  ;;  %v10045_v56 = vcombine.low %v203_v42, %v207_v43 }
  0x90   :  { %v335_v45 = vld [vmem:[#allocation5 + $0x6a0] sm:$0xff]  ;;  %6431 = vmatpush2.bf16.msra.mxu1 %v10181_v47 }
  0x91   :  { %v10174_v49 = vcombine.high %v331_v44, %v335_v45  ;;  %v195_v50 = vld [vmem:[#allocation5 + $0x240] sm:$0xff]  ;;  %6391 = vmatprep.subr.bf16.mxu0 %v10046_v48  ;;  %v10173_v57 = vcombine.low %v331_v44, %v335_v45 }
  0x92   :  { %v199_v51 = vld [vmem:[#allocation5 + $0x260] sm:$0xff]  ;;  %6392 = vmatpush2.bf16.msra.mxu0 %v10045_v56 }
  0x93   :  { %v323_v52 = vld [vmem:[#allocation5 + $0x640] sm:$0xff]  ;;  %v10038_v60 = vcombine.high %v195_v50, %v199_v51  ;;  %6432 = vmatprep.subr.bf16.mxu1 %v10174_v49  ;;  %v10037_v2 = vcombine.low %v195_v50, %v199_v51 }
  0x94   :  { %v327_v55 = vld [vmem:[#allocation5 + $0x660] sm:$0xff]  ;;  %6433 = vmatpush2.bf16.msra.mxu1 %v10173_v57 }
  0x95   :  { %v10166_v61 = vcombine.high %v323_v52, %v327_v55  ;;  %v187_v62 = vld [vmem:[#allocation5 + $0x200] sm:$0xff]  ;;  %6393 = vmatprep.subr.bf16.mxu0 %v10038_v60  ;;  %v10165_v3 = vcombine.low %v323_v52, %v327_v55 }
  0x96   :  { %v191_v63 = vld [vmem:[#allocation5 + $0x220] sm:$0xff]  ;;  %6394 = vmatpush2.bf16.msra.mxu0 %v10037_v2 }
  0x97   :  { %v315_v0 = vld [vmem:[#allocation5 + $0x600] sm:$0xff]  ;;  %v10030_v4 = vcombine.high %v187_v62, %v191_v63  ;;  %6434 = vmatprep.subr.bf16.mxu1 %v10166_v61  ;;  %v10029_v10 = vcombine.low %v187_v62, %v191_v63 }
  0x98   :  { %v319_v1 = vld [vmem:[#allocation5 + $0x620] sm:$0xff]  ;;  %6435 = vmatpush2.bf16.msra.mxu1 %v10165_v3 }
  0x99   :  { %v10158_v5 = vcombine.high %v315_v0, %v319_v1  ;;  %v435_v6 = vld [vmem:[#allocation5 + $0x9c0] sm:$0xff]  ;;  %6395 = vmatprep.subr.bf16.mxu0 %v10030_v4  ;;  %v10157_v11 = vcombine.low %v315_v0, %v319_v1 }
  0x9a   :  { %v439_v7 = vld [vmem:[#allocation5 + $0x9e0] sm:$0xff]  ;;  %6396 = vmatpush2.bf16.msra.mxu0 %v10029_v10 }
  0x9b   :  { %v563_v8 = vld [vmem:[#allocation5 + $0xdc0] sm:$0xff]  ;;  %v10278_v12 = vcombine.high %v435_v6, %v439_v7  ;;  %6436 = vmatprep.subr.bf16.mxu1 %v10158_v5  ;;  %v10277_v21 = vcombine.low %v435_v6, %v439_v7 }
  0x9c   :  { %v567_v9 = vld [vmem:[#allocation5 + $0xde0] sm:$0xff]  ;;  %6437 = vmatpush2.bf16.msra.mxu1 %v10157_v11 }
  0x9d   :  { %v10406_v13 = vcombine.high %v563_v8, %v567_v9  ;;  %v427_v14 = vld [vmem:[#allocation5 + $0x980] sm:$0xff]  ;;  %6447 = vmatprep.subr.bf16.mxu0 %v10278_v12  ;;  %v10405_v23 = vcombine.low %v563_v8, %v567_v9  ;;  %6398 = vmatmul.mubr.bf16.vlgmr.msra.gmra.mxu0 %v12032_v16 }
  0x9e   :  { %v431_v15 = vld [vmem:[#allocation5 + $0x9a0] sm:$0xff]  ;;  %6448 = vmatpush1.bf16.msra.mxu0 %v10277_v21  ;;  %6479 = vmatprep.mubr.bf16.mxu0 %v12044_v28 }
  0x9f   :  { %v555_v17 = vld [vmem:[#allocation5 + $0xd80] sm:$0xff]  ;;  %v10270_v24 = vcombine.high %v427_v14, %v431_v15  ;;  %6488 = vmatprep.subr.bf16.mxu1 %v10406_v13  ;;  %6439 = vmatmul.mubr.bf16.vlgmr.msra.gmra.mxu1 %v12038_v20  ;;  %v10269_v30 = vcombine.low %v427_v14, %v431_v15 }
  0xa0   :  { %v559_v18 = vld [vmem:[#allocation5 + $0xda0] sm:$0xff]  ;;  %6489 = vmatpush1.bf16.msra.mxu1 %v10405_v23  ;;  %6520 = vmatprep.mubr.bf16.mxu1 %v12049_v29 }
  0xa1   :  { %v10398_v25 = vcombine.high %v555_v17, %v559_v18  ;;  %v419_v53 = vld [vmem:[#allocation5 + $0x940] sm:$0xff]  ;;  %6449 = vmatprep.subr.bf16.mxu0 %v10270_v24  ;;  %v10397_v31 = vcombine.low %v555_v17, %v559_v18 }
  0xa2   :  { %v423_v26 = vld [vmem:[#allocation5 + $0x960] sm:$0xff]  ;;  %6450 = vmatpush1.bf16.msra.mxu0 %v10269_v30 }
  0xa3   :  { %v547_v27 = vld [vmem:[#allocation5 + $0xd40] sm:$0xff]  ;;  %v10262_v32 = vcombine.high %v419_v53, %v423_v26  ;;  %6490 = vmatprep.subr.bf16.mxu1 %v10398_v25  ;;  %v10261_v38 = vcombine.low %v419_v53, %v423_v26 }
  0xa4   :  { %v551_v54 = vld [vmem:[#allocation5 + $0xd60] sm:$0xff]  ;;  %6491 = vmatpush1.bf16.msra.mxu1 %v10397_v31 }
  0xa5   :  { %v411_v33 = vld [vmem:[#allocation5 + $0x900] sm:$0xff]  ;;  %v10390_v36 = vcombine.high %v547_v27, %v551_v54  ;;  %6451 = vmatprep.subr.bf16.mxu0 %v10262_v32  ;;  %v10389_v39 = vcombine.low %v547_v27, %v551_v54 }
  0xa6   :  { %v415_v34 = vld [vmem:[#allocation5 + $0x920] sm:$0xff]  ;;  %6452 = vmatpush1.bf16.msra.mxu0 %v10261_v38 }
  0xa7   :  { %v539_v35 = vld [vmem:[#allocation5 + $0xd00] sm:$0xff]  ;;  %v10254_v40 = vcombine.high %v411_v33, %v415_v34  ;;  %6492 = vmatprep.subr.bf16.mxu1 %v10390_v36  ;;  %v10253_v46 = vcombine.low %v411_v33, %v415_v34 }
  0xa8   :  { %v543_v37 = vld [vmem:[#allocation5 + $0xd20] sm:$0xff]  ;;  %6493 = vmatpush1.bf16.msra.mxu1 %v10389_v39 }
  0xa9   :  { %v403_v41 = vld [vmem:[#allocation5 + $0x8c0] sm:$0xff]  ;;  %v10382_v44 = vcombine.high %v539_v35, %v543_v37  ;;  %6453 = vmatprep.subr.bf16.mxu0 %v10254_v40  ;;  %v10381_v47 = vcombine.low %v539_v35, %v543_v37 }
  0xaa   :  { %v407_v42 = vld [vmem:[#allocation5 + $0x8e0] sm:$0xff]  ;;  %6454 = vmatpush1.bf16.msra.mxu0 %v10253_v46 }
  0xab   :  { %v531_v43 = vld [vmem:[#allocation5 + $0xcc0] sm:$0xff]  ;;  %v10246_v48 = vcombine.high %v403_v41, %v407_v42  ;;  %6494 = vmatprep.subr.bf16.mxu1 %v10382_v44  ;;  %v10245_v56 = vcombine.low %v403_v41, %v407_v42 }
  0xac   :  { %v535_v45 = vld [vmem:[#allocation5 + $0xce0] sm:$0xff]  ;;  %6495 = vmatpush1.bf16.msra.mxu1 %v10381_v47 }
  0xad   :  { %v395_v49 = vld [vmem:[#allocation5 + $0x880] sm:$0xff]  ;;  %v10374_v52 = vcombine.high %v531_v43, %v535_v45  ;;  %6455 = vmatprep.subr.bf16.mxu0 %v10246_v48  ;;  %v10373_v57 = vcombine.low %v531_v43, %v535_v45 }
  0xae   :  { %v399_v50 = vld [vmem:[#allocation5 + $0x8a0] sm:$0xff]  ;;  %6456 = vmatpush1.bf16.msra.mxu0 %v10245_v56 }
  0xaf   :  { %v523_v51 = vld [vmem:[#allocation5 + $0xc80] sm:$0xff]  ;;  %v10238_v60 = vcombine.high %v395_v49, %v399_v50  ;;  %6496 = vmatprep.subr.bf16.mxu1 %v10374_v52  ;;  %v10237_v2 = vcombine.low %v395_v49, %v399_v50 }
  0xb0   :  { %v527_v55 = vld [vmem:[#allocation5 + $0xca0] sm:$0xff]  ;;  %6497 = vmatpush1.bf16.msra.mxu1 %v10373_v57 }
  0xb1   :  { %v387_v61 = vld [vmem:[#allocation5 + $0x840] sm:$0xff]  ;;  %v10366_v0 = vcombine.high %v523_v51, %v527_v55  ;;  %6457 = vmatprep.subr.bf16.mxu0 %v10238_v60  ;;  %v10365_v3 = vcombine.low %v523_v51, %v527_v55 }
  0xb2   :  { %v391_v62 = vld [vmem:[#allocation5 + $0x860] sm:$0xff]  ;;  %6458 = vmatpush1.bf16.msra.mxu0 %v10237_v2 }
  0xb3   :  { %v515_v63 = vld [vmem:[#allocation5 + $0xc40] sm:$0xff]  ;;  %v10230_v4 = vcombine.high %v387_v61, %v391_v62  ;;  %6498 = vmatprep.subr.bf16.mxu1 %v10366_v0  ;;  %v10229_v10 = vcombine.low %v387_v61, %v391_v62 }
  0xb4   :  { %v519_v1 = vld [vmem:[#allocation5 + $0xc60] sm:$0xff]  ;;  %6499 = vmatpush1.bf16.msra.mxu1 %v10365_v3 }
  0xb5   :  { %v379_v5 = vld [vmem:[#allocation5 + $0x800] sm:$0xff]  ;;  %v10358_v8 = vcombine.high %v515_v63, %v519_v1  ;;  %6459 = vmatprep.subr.bf16.mxu0 %v10230_v4  ;;  %v10357_v11 = vcombine.low %v515_v63, %v519_v1 }
  0xb6   :  { %v383_v6 = vld [vmem:[#allocation5 + $0x820] sm:$0xff]  ;;  %6460 = vmatpush1.bf16.msra.mxu0 %v10229_v10 }
  0xb7   :  { %v507_v7 = vld [vmem:[#allocation5 + $0xc00] sm:$0xff]  ;;  %v10222_v12 = vcombine.high %v379_v5, %v383_v6  ;;  %6500 = vmatprep.subr.bf16.mxu1 %v10358_v8  ;;  %v10221_v21 = vcombine.low %v379_v5, %v383_v6 }
  0xb8   :  { %v511_v9 = vld [vmem:[#allocation5 + $0xc20] sm:$0xff]  ;;  %6501 = vmatpush1.bf16.msra.mxu1 %v10357_v11 }
  0xb9   :  { %v499_v13 = vld [vmem:[#allocation5 + $0xbc0] sm:$0xff]  ;;  %v10350_v17 = vcombine.high %v507_v7, %v511_v9  ;;  %6461 = vmatprep.subr.bf16.mxu0 %v10222_v12  ;;  %v10349_v23 = vcombine.low %v507_v7, %v511_v9 }
  0xba   :  { %v503_v14 = vld [vmem:[#allocation5 + $0xbe0] sm:$0xff]  ;;  %6462 = vmatpush1.bf16.msra.mxu0 %v10221_v21 }
  0xbb   :  { %v627_v15 = vld [vmem:[#allocation5 + $0xfc0] sm:$0xff]  ;;  %v10342_v24 = vcombine.high %v499_v13, %v503_v14  ;;  %6502 = vmatprep.subr.bf16.mxu1 %v10350_v17  ;;  %v10341_v30 = vcombine.low %v499_v13, %v503_v14 }
  0xbc   :  { %v631_v18 = vld [vmem:[#allocation5 + $0xfe0] sm:$0xff]  ;;  %6503 = vmatpush1.bf16.msra.mxu1 %v10349_v23 }
  0xbd   :  { %v491_v25 = vld [vmem:[#allocation5 + $0xb80] sm:$0xff]  ;;  %v10470_v27 = vcombine.high %v627_v15, %v631_v18  ;;  %6463 = vmatprep.subr.bf16.mxu0 %v10342_v24  ;;  %v10469_v31 = vcombine.low %v627_v15, %v631_v18 }
  0xbe   :  { %v495_v53 = vld [vmem:[#allocation5 + $0xba0] sm:$0xff]  ;;  %6464 = vmatpush2.bf16.msra.mxu0 %v10341_v30 }
  0xbf   :  { %v619_v26 = vld [vmem:[#allocation5 + $0xf80] sm:$0xff]  ;;  %v10334_v32 = vcombine.high %v491_v25, %v495_v53  ;;  %6504 = vmatprep.subr.bf16.mxu1 %v10470_v27  ;;  %v10333_v38 = vcombine.low %v491_v25, %v495_v53 }
  0xc0   :  { %v623_v54 = vld [vmem:[#allocation5 + $0xfa0] sm:$0xff]  ;;  %6505 = vmatpush2.bf16.msra.mxu1 %v10469_v31 }
  0xc1   :  { %v483_v33 = vld [vmem:[#allocation5 + $0xb40] sm:$0xff]  ;;  %v10462_v36 = vcombine.high %v619_v26, %v623_v54  ;;  %6465 = vmatprep.subr.bf16.mxu0 %v10334_v32  ;;  %v10461_v39 = vcombine.low %v619_v26, %v623_v54 }
  0xc2   :  { %v487_v34 = vld [vmem:[#allocation5 + $0xb60] sm:$0xff]  ;;  %6466 = vmatpush2.bf16.msra.mxu0 %v10333_v38 }
  0xc3   :  { %v611_v35 = vld [vmem:[#allocation5 + $0xf40] sm:$0xff]  ;;  %v10326_v40 = vcombine.high %v483_v33, %v487_v34  ;;  %6506 = vmatprep.subr.bf16.mxu1 %v10462_v36  ;;  %v10325_v46 = vcombine.low %v483_v33, %v487_v34 }
  0xc4   :  { %v615_v37 = vld [vmem:[#allocation5 + $0xf60] sm:$0xff]  ;;  %6507 = vmatpush2.bf16.msra.mxu1 %v10461_v39  ;;  %v12058_v39 = vcombine.low %v12034_v19, %v12034_v19 }
  0xc5   :  { %v475_v41 = vld [vmem:[#allocation5 + $0xb00] sm:$0xff]  ;;  %v10454_v44 = vcombine.high %v611_v35, %v615_v37  ;;  %6467 = vmatprep.subr.bf16.mxu0 %v10326_v40  ;;  %v10453_v47 = vcombine.low %v611_v35, %v615_v37  ;;  %v12062_v40 = vcombine.low %v12040_v22, %v12040_v22 }
  0xc6   :  { %v479_v42 = vld [vmem:[#allocation5 + $0xb20] sm:$0xff]  ;;  %6468 = vmatpush2.bf16.msra.mxu0 %v10325_v46 }
  0xc7   :  { %v603_v43 = vld [vmem:[#allocation5 + $0xf00] sm:$0xff]  ;;  %v10318_v48 = vcombine.high %v475_v41, %v479_v42  ;;  %6508 = vmatprep.subr.bf16.mxu1 %v10454_v44  ;;  %v10317_v56 = vcombine.low %v475_v41, %v479_v42  ;;  %v12064_v42 = vld [vmem:[#allocation2 + $0x28] sm:$0xff] }
  0xc8   :  { %v607_v45 = vld [vmem:[#allocation5 + $0xf20] sm:$0xff]  ;;  %6509 = vmatpush2.bf16.msra.mxu1 %v10453_v47  ;;  %v12073_v22 = vcombine.high %v12064_v42, %v12064_v42 }
  0xc9   :  { %v467_v49 = vld [vmem:[#allocation5 + $0xac0] sm:$0xff]  ;;  %v10446_v52 = vcombine.high %v603_v43, %v607_v45  ;;  %6469 = vmatprep.subr.bf16.mxu0 %v10318_v48  ;;  %v10445_v57 = vcombine.low %v603_v43, %v607_v45 }
  0xca   :  { %v471_v50 = vld [vmem:[#allocation5 + $0xae0] sm:$0xff]  ;;  %6470 = vmatpush2.bf16.msra.mxu0 %v10317_v56 }
  0xcb   :  { %v595_v51 = vld [vmem:[#allocation5 + $0xec0] sm:$0xff]  ;;  %v10310_v60 = vcombine.high %v467_v49, %v471_v50  ;;  %6510 = vmatprep.subr.bf16.mxu1 %v10446_v52  ;;  %v10309_v2 = vcombine.low %v467_v49, %v471_v50 }
  0xcc   :  { %v599_v55 = vld [vmem:[#allocation5 + $0xee0] sm:$0xff]  ;;  %6511 = vmatpush2.bf16.msra.mxu1 %v10445_v57 }
  0xcd   :  { %v459_v61 = vld [vmem:[#allocation5 + $0xa80] sm:$0xff]  ;;  %v10438_v0 = vcombine.high %v595_v51, %v599_v55  ;;  %6471 = vmatprep.subr.bf16.mxu0 %v10310_v60  ;;  %v10437_v3 = vcombine.low %v595_v51, %v599_v55 }
  0xce   :  { %v463_v62 = vld [vmem:[#allocation5 + $0xaa0] sm:$0xff]  ;;  %6472 = vmatpush2.bf16.msra.mxu0 %v10309_v2 }
  0xcf   :  { %v587_v63 = vld [vmem:[#allocation5 + $0xe80] sm:$0xff]  ;;  %v10302_v4 = vcombine.high %v459_v61, %v463_v62  ;;  %6512 = vmatprep.subr.bf16.mxu1 %v10438_v0  ;;  %v10301_v10 = vcombine.low %v459_v61, %v463_v62 }
  0xd0   :  { %v591_v1 = vld [vmem:[#allocation5 + $0xea0] sm:$0xff]  ;;  %6513 = vmatpush2.bf16.msra.mxu1 %v10437_v3 }
  0xd1   :  { %v451_v5 = vld [vmem:[#allocation5 + $0xa40] sm:$0xff]  ;;  %v10430_v8 = vcombine.high %v587_v63, %v591_v1  ;;  %6473 = vmatprep.subr.bf16.mxu0 %v10302_v4  ;;  %v10429_v11 = vcombine.low %v587_v63, %v591_v1 }
  0xd2   :  { %v455_v6 = vld [vmem:[#allocation5 + $0xa60] sm:$0xff]  ;;  %6474 = vmatpush2.bf16.msra.mxu0 %v10301_v10 }
  0xd3   :  { %v579_v7 = vld [vmem:[#allocation5 + $0xe40] sm:$0xff]  ;;  %v10294_v12 = vcombine.high %v451_v5, %v455_v6  ;;  %6514 = vmatprep.subr.bf16.mxu1 %v10430_v8  ;;  %v10293_v21 = vcombine.low %v451_v5, %v455_v6 }
  0xd4   :  { %v583_v9 = vld [vmem:[#allocation5 + $0xe60] sm:$0xff]  ;;  %6515 = vmatpush2.bf16.msra.mxu1 %v10429_v11 }
  0xd5   :  { %v443_v13 = vld [vmem:[#allocation5 + $0xa00] sm:$0xff]  ;;  %v10422_v17 = vcombine.high %v579_v7, %v583_v9  ;;  %6475 = vmatprep.subr.bf16.mxu0 %v10294_v12  ;;  %v10421_v23 = vcombine.low %v579_v7, %v583_v9 }
  0xd6   :  { %v447_v14 = vld [vmem:[#allocation5 + $0xa20] sm:$0xff]  ;;  %6476 = vmatpush2.bf16.msra.mxu0 %v10293_v21 }
  0xd7   :  { %v571_v15 = vld [vmem:[#allocation5 + $0xe00] sm:$0xff]  ;;  %v10286_v24 = vcombine.high %v443_v13, %v447_v14  ;;  %6516 = vmatprep.subr.bf16.mxu1 %v10422_v17  ;;  %v10285_v30 = vcombine.low %v443_v13, %v447_v14 }
  0xd8   :  { %v575_v18 = vld [vmem:[#allocation5 + $0xe20] sm:$0xff]  ;;  %6517 = vmatpush2.bf16.msra.mxu1 %v10421_v23 }
  0xd9   :  { %v691_v25 = vld [vmem:[#allocation5 + $0x11c0] sm:$0xff]  ;;  %v10414_v27 = vcombine.high %v571_v15, %v575_v18  ;;  %6477 = vmatprep.subr.bf16.mxu0 %v10286_v24  ;;  %v10413_v32 = vcombine.low %v571_v15, %v575_v18 }
  0xda   :  { %v695_v53 = vld [vmem:[#allocation5 + $0x11e0] sm:$0xff]  ;;  %6478 = vmatpush2.bf16.msra.mxu0 %v10285_v30 }
  0xdb   :  { %v819_v26 = vld [vmem:[#allocation5 + $0x15c0] sm:$0xff]  ;;  %v10534_v33 = vcombine.high %v691_v25, %v695_v53  ;;  %6518 = vmatprep.subr.bf16.mxu1 %v10414_v27  ;;  %v10533_v41 = vcombine.low %v691_v25, %v695_v53 }
  0xdc   :  { %v823_v54 = vld [vmem:[#allocation5 + $0x15e0] sm:$0xff]  ;;  %6519 = vmatpush2.bf16.msra.mxu1 %v10413_v32 }
  0xdd   :  { %v683_v31 = vld [vmem:[#allocation5 + $0x1180] sm:$0xff]  ;;  %v10662_v37 = vcombine.high %v819_v26, %v823_v54  ;;  %6529 = vmatprep.subr.bf16.mxu0 %v10534_v33  ;;  %v10661_v43 = vcombine.low %v819_v26, %v823_v54  ;;  %6480 = vmatmul.mubr.bf16.vlgmr.msra.gmra.mxu0 %v12058_v39 }
  0xde   :  { %v687_v34 = vld [vmem:[#allocation5 + $0x11a0] sm:$0xff]  ;;  %6530 = vmatpush1.bf16.msra.mxu0 %v10533_v41 }
  0xdf   :  { %v811_v35 = vld [vmem:[#allocation5 + $0x1580] sm:$0xff]  ;;  %v10526_v44 = vcombine.high %v683_v31, %v687_v34  ;;  %6570 = vmatprep.subr.bf16.mxu1 %v10662_v37  ;;  %6521 = vmatmul.mubr.bf16.vlgmr.msra.gmra.mxu1 %v12062_v40  ;;  %v10525_v50 = vcombine.low %v683_v31, %v687_v34 }
  0xe0   :  { %v815_v36 = vld [vmem:[#allocation5 + $0x15a0] sm:$0xff]  ;;  %6571 = vmatpush1.bf16.msra.mxu1 %v10661_v43  ;;  %6602 = vmatprep.mubr.bf16.mxu1 %v12073_v22 }
  0xe1   :  { %v12054_v38 = vld [vmem:[#allocation2 + $0x20] sm:$0xff]  ;;  %v10654_v47 = vcombine.high %v811_v35, %v815_v36  ;;  %6531 = vmatprep.subr.bf16.mxu0 %v10526_v44  ;;  %v10653_v51 = vcombine.low %v811_v35, %v815_v36 }
  0xe2   :  { %v675_v45 = vld [vmem:[#allocation5 + $0x1140] sm:$0xff]  ;;  %v12068_v19 = vcombine.high %v12054_v38, %v12054_v38  ;;  %6532 = vmatpush1.bf16.msra.mxu0 %v10525_v50 }
  0xe3   :  { %v679_v46 = vld [vmem:[#allocation5 + $0x1160] sm:$0xff]  ;;  %6572 = vmatprep.subr.bf16.mxu1 %v10654_v47 }
  0xe4   :  { %v803_v48 = vld [vmem:[#allocation5 + $0x1540] sm:$0xff]  ;;  %v10518_v52 = vcombine.high %v675_v45, %v679_v46  ;;  %6561 = vmatprep.mubr.bf16.mxu0 %v12068_v19  ;;  %v10517_v62 = vcombine.low %v675_v45, %v679_v46  ;;  %6573 = vmatpush1.bf16.msra.mxu1 %v10653_v51 }
  0xe5   :  { %v807_v49 = vld [vmem:[#allocation5 + $0x1560] sm:$0xff] }
  0xe6   :  { %v667_v55 = vld [vmem:[#allocation5 + $0x1100] sm:$0xff]  ;;  %v10646_v60 = vcombine.high %v803_v48, %v807_v49  ;;  %6533 = vmatprep.subr.bf16.mxu0 %v10518_v52  ;;  %v10645_v63 = vcombine.low %v803_v48, %v807_v49 }
  0xe7   :  { %v671_v56 = vld [vmem:[#allocation5 + $0x1120] sm:$0xff]  ;;  %6534 = vmatpush1.bf16.msra.mxu0 %v10517_v62 }
  0xe8   :  { %v795_v57 = vld [vmem:[#allocation5 + $0x1500] sm:$0xff]  ;;  %v10510_v0 = vcombine.high %v667_v55, %v671_v56  ;;  %6574 = vmatprep.subr.bf16.mxu1 %v10646_v60  ;;  %v10509_v6 = vcombine.low %v667_v55, %v671_v56 }
  0xe9   :  { %v799_v61 = vld [vmem:[#allocation5 + $0x1520] sm:$0xff]  ;;  %6575 = vmatpush1.bf16.msra.mxu1 %v10645_v63 }
  0xea   :  { %v659_v1 = vld [vmem:[#allocation5 + $0x10c0] sm:$0xff]  ;;  %v10638_v4 = vcombine.high %v795_v57, %v799_v61  ;;  %6535 = vmatprep.subr.bf16.mxu0 %v10510_v0  ;;  %v10637_v7 = vcombine.low %v795_v57, %v799_v61 }
  0xeb   :  { %v663_v2 = vld [vmem:[#allocation5 + $0x10e0] sm:$0xff]  ;;  %6536 = vmatpush1.bf16.msra.mxu0 %v10509_v6 }
  0xec   :  { %v787_v3 = vld [vmem:[#allocation5 + $0x14c0] sm:$0xff]  ;;  %v10502_v8 = vcombine.high %v659_v1, %v663_v2  ;;  %6576 = vmatprep.subr.bf16.mxu1 %v10638_v4  ;;  %v10501_v14 = vcombine.low %v659_v1, %v663_v2 }
  0xed   :  { %v791_v5 = vld [vmem:[#allocation5 + $0x14e0] sm:$0xff]  ;;  %6577 = vmatpush1.bf16.msra.mxu1 %v10637_v7 }
  0xee   :  { %v651_v9 = vld [vmem:[#allocation5 + $0x1080] sm:$0xff]  ;;  %v10630_v12 = vcombine.high %v787_v3, %v791_v5  ;;  %6537 = vmatprep.subr.bf16.mxu0 %v10502_v8  ;;  %v10629_v15 = vcombine.low %v787_v3, %v791_v5 }
  0xef   :  { %v655_v10 = vld [vmem:[#allocation5 + $0x10a0] sm:$0xff]  ;;  %6538 = vmatpush1.bf16.msra.mxu0 %v10501_v14 }
  0xf0   :  { %v779_v11 = vld [vmem:[#allocation5 + $0x1480] sm:$0xff]  ;;  %v10494_v17 = vcombine.high %v651_v9, %v655_v10  ;;  %6578 = vmatprep.subr.bf16.mxu1 %v10630_v12  ;;  %v10493_v53 = vcombine.low %v651_v9, %v655_v10 }
  0xf1   :  { %v783_v13 = vld [vmem:[#allocation5 + $0x14a0] sm:$0xff]  ;;  %6579 = vmatpush1.bf16.msra.mxu1 %v10629_v15 }
  0xf2   :  { %v643_v18 = vld [vmem:[#allocation5 + $0x1040] sm:$0xff]  ;;  %v10622_v24 = vcombine.high %v779_v11, %v783_v13  ;;  %6539 = vmatprep.subr.bf16.mxu0 %v10494_v17  ;;  %v10621_v26 = vcombine.low %v779_v11, %v783_v13 }
  0xf3   :  { %v647_v21 = vld [vmem:[#allocation5 + $0x1060] sm:$0xff]  ;;  %6540 = vmatpush1.bf16.msra.mxu0 %v10493_v53 }
  0xf4   :  { %v771_v23 = vld [vmem:[#allocation5 + $0x1440] sm:$0xff]  ;;  %v10486_v27 = vcombine.high %v643_v18, %v647_v21  ;;  %6580 = vmatprep.subr.bf16.mxu1 %v10622_v24  ;;  %v10485_v34 = vcombine.low %v643_v18, %v647_v21 }
  0xf5   :  { %v775_v25 = vld [vmem:[#allocation5 + $0x1460] sm:$0xff]  ;;  %6581 = vmatpush1.bf16.msra.mxu1 %v10621_v26 }
  0xf6   :  { %v635_v54 = vld [vmem:[#allocation5 + $0x1000] sm:$0xff]  ;;  %v10614_v32 = vcombine.high %v771_v23, %v775_v25  ;;  %6541 = vmatprep.subr.bf16.mxu0 %v10486_v27  ;;  %v10613_v35 = vcombine.low %v771_v23, %v775_v25 }
  0xf7   :  { %v639_v30 = vld [vmem:[#allocation5 + $0x1020] sm:$0xff]  ;;  %6542 = vmatpush1.bf16.msra.mxu0 %v10485_v34 }
  0xf8   :  { %v763_v31 = vld [vmem:[#allocation5 + $0x1400] sm:$0xff]  ;;  %v10478_v36 = vcombine.high %v635_v54, %v639_v30  ;;  %6582 = vmatprep.subr.bf16.mxu1 %v10614_v32  ;;  %v10477_v46 = vcombine.low %v635_v54, %v639_v30 }
  0xf9   :  { %v767_v33 = vld [vmem:[#allocation5 + $0x1420] sm:$0xff]  ;;  %6583 = vmatpush1.bf16.msra.mxu1 %v10613_v35 }
  0xfa   :  { %v755_v37 = vld [vmem:[#allocation5 + $0x13c0] sm:$0xff]  ;;  %v10606_v44 = vcombine.high %v763_v31, %v767_v33  ;;  %6543 = vmatprep.subr.bf16.mxu0 %v10478_v36  ;;  %v10605_v47 = vcombine.low %v763_v31, %v767_v33 }
  0xfb   :  { %v759_v41 = vld [vmem:[#allocation5 + $0x13e0] sm:$0xff]  ;;  %6544 = vmatpush1.bf16.msra.mxu0 %v10477_v46 }
  0xfc   :  { %v883_v43 = vld [vmem:[#allocation5 + $0x17c0] sm:$0xff]  ;;  %v10598_v48 = vcombine.high %v755_v37, %v759_v41  ;;  %6584 = vmatprep.subr.bf16.mxu1 %v10606_v44  ;;  %v10597_v56 = vcombine.low %v755_v37, %v759_v41 }
  0xfd   :  { %v887_v45 = vld [vmem:[#allocation5 + $0x17e0] sm:$0xff]  ;;  %6585 = vmatpush1.bf16.msra.mxu1 %v10605_v47 }
  0xfe   :  { %v747_v49 = vld [vmem:[#allocation5 + $0x1380] sm:$0xff]  ;;  %v10726_v52 = vcombine.high %v883_v43, %v887_v45  ;;  %6545 = vmatprep.subr.bf16.mxu0 %v10598_v48  ;;  %v10725_v57 = vcombine.low %v883_v43, %v887_v45 }
  0xff   :  { %v751_v50 = vld [vmem:[#allocation5 + $0x13a0] sm:$0xff]  ;;  %6546 = vmatpush2.bf16.msra.mxu0 %v10597_v56 }
 0x100   :  { %v875_v51 = vld [vmem:[#allocation5 + $0x1780] sm:$0xff]  ;;  %v10590_v60 = vcombine.high %v747_v49, %v751_v50  ;;  %6586 = vmatprep.subr.bf16.mxu1 %v10726_v52  ;;  %v10589_v2 = vcombine.low %v747_v49, %v751_v50 }
 0x101   :  { %v879_v55 = vld [vmem:[#allocation5 + $0x17a0] sm:$0xff]  ;;  %6587 = vmatpush2.bf16.msra.mxu1 %v10725_v57 }
 0x102   :  { %v739_v61 = vld [vmem:[#allocation5 + $0x1340] sm:$0xff]  ;;  %v10718_v0 = vcombine.high %v875_v51, %v879_v55  ;;  %6547 = vmatprep.subr.bf16.mxu0 %v10590_v60  ;;  %v10717_v3 = vcombine.low %v875_v51, %v879_v55 }
 0x103   :  { %v743_v62 = vld [vmem:[#allocation5 + $0x1360] sm:$0xff]  ;;  %6548 = vmatpush2.bf16.msra.mxu0 %v10589_v2 }
 0x104   :  { %v867_v63 = vld [vmem:[#allocation5 + $0x1740] sm:$0xff]  ;;  %v10582_v4 = vcombine.high %v739_v61, %v743_v62  ;;  %6588 = vmatprep.subr.bf16.mxu1 %v10718_v0  ;;  %v10581_v10 = vcombine.low %v739_v61, %v743_v62 }
 0x105   :  { %v871_v1 = vld [vmem:[#allocation5 + $0x1760] sm:$0xff]  ;;  %6589 = vmatpush2.bf16.msra.mxu1 %v10717_v3 }
 0x106   :  { %v731_v5 = vld [vmem:[#allocation5 + $0x1300] sm:$0xff]  ;;  %v10710_v8 = vcombine.high %v867_v63, %v871_v1  ;;  %6549 = vmatprep.subr.bf16.mxu0 %v10582_v4  ;;  %v10709_v11 = vcombine.low %v867_v63, %v871_v1 }
 0x107   :  { %v735_v6 = vld [vmem:[#allocation5 + $0x1320] sm:$0xff]  ;;  %6550 = vmatpush2.bf16.msra.mxu0 %v10581_v10 }
 0x108   :  { %v859_v7 = vld [vmem:[#allocation5 + $0x1700] sm:$0xff]  ;;  %v10574_v12 = vcombine.high %v731_v5, %v735_v6  ;;  %6590 = vmatprep.subr.bf16.mxu1 %v10710_v8  ;;  %v10573_v21 = vcombine.low %v731_v5, %v735_v6  ;;  %v12078_v5 = vld [vmem:[#allocation2 + $0x30] sm:$0xff]  ;;  %v12084_v8 = vcombine.low %v12054_v38, %v12054_v38 }
 0x109   :  { %v863_v9 = vld [vmem:[#allocation5 + $0x1720] sm:$0xff]  ;;  %6591 = vmatpush2.bf16.msra.mxu1 %v10709_v11  ;;  %v12092_v38 = vcombine.high %v12078_v5, %v12078_v5 }
 0x10a   :  { %v723_v13 = vld [vmem:[#allocation5 + $0x12c0] sm:$0xff]  ;;  %v10702_v17 = vcombine.high %v859_v7, %v863_v9  ;;  %6551 = vmatprep.subr.bf16.mxu0 %v10574_v12  ;;  %v10701_v23 = vcombine.low %v859_v7, %v863_v9  ;;  %v12080_v7 = vld [vmem:[#allocation2 + $0x38] sm:$0xff]  ;;  %v12088_v9 = vcombine.low %v12064_v42, %v12064_v42 }
 0x10b   :  { %v727_v14 = vld [vmem:[#allocation5 + $0x12e0] sm:$0xff]  ;;  %6552 = vmatpush2.bf16.msra.mxu0 %v10573_v21  ;;  %v12097_v42 = vcombine.high %v12080_v7, %v12080_v7 }
 0x10c   :  { %v851_v15 = vld [vmem:[#allocation5 + $0x16c0] sm:$0xff]  ;;  %v10566_v24 = vcombine.high %v723_v13, %v727_v14  ;;  %6592 = vmatprep.subr.bf16.mxu1 %v10702_v17  ;;  %v10565_v30 = vcombine.low %v723_v13, %v727_v14 }
 0x10d   :  { %v855_v18 = vld [vmem:[#allocation5 + $0x16e0] sm:$0xff]  ;;  %6593 = vmatpush2.bf16.msra.mxu1 %v10701_v23 }
 0x10e   :  { %v715_v25 = vld [vmem:[#allocation5 + $0x1280] sm:$0xff]  ;;  %v10694_v27 = vcombine.high %v851_v15, %v855_v18  ;;  %6553 = vmatprep.subr.bf16.mxu0 %v10566_v24  ;;  %v10693_v31 = vcombine.low %v851_v15, %v855_v18 }
 0x10f   :  { %v719_v53 = vld [vmem:[#allocation5 + $0x12a0] sm:$0xff]  ;;  %6554 = vmatpush2.bf16.msra.mxu0 %v10565_v30 }
 0x110   :  { %v843_v26 = vld [vmem:[#allocation5 + $0x1680] sm:$0xff]  ;;  %v10558_v32 = vcombine.high %v715_v25, %v719_v53  ;;  %6594 = vmatprep.subr.bf16.mxu1 %v10694_v27  ;;  %v10557_v41 = vcombine.low %v715_v25, %v719_v53 }
 0x111   :  { %v847_v54 = vld [vmem:[#allocation5 + $0x16a0] sm:$0xff]  ;;  %6595 = vmatpush2.bf16.msra.mxu1 %v10693_v31 }
 0x112   :  { %v707_v33 = vld [vmem:[#allocation5 + $0x1240] sm:$0xff]  ;;  %v10686_v36 = vcombine.high %v843_v26, %v847_v54  ;;  %6555 = vmatprep.subr.bf16.mxu0 %v10558_v32  ;;  %v10685_v43 = vcombine.low %v843_v26, %v847_v54 }
 0x113   :  { %v711_v34 = vld [vmem:[#allocation5 + $0x1260] sm:$0xff]  ;;  %6556 = vmatpush2.bf16.msra.mxu0 %v10557_v41 }
 0x114   :  { %v835_v35 = vld [vmem:[#allocation5 + $0x1640] sm:$0xff]  ;;  %v10550_v44 = vcombine.high %v707_v33, %v711_v34  ;;  %6596 = vmatprep.subr.bf16.mxu1 %v10686_v36  ;;  %v10549_v50 = vcombine.low %v707_v33, %v711_v34 }
 0x115   :  { %v839_v37 = vld [vmem:[#allocation5 + $0x1660] sm:$0xff]  ;;  %6597 = vmatpush2.bf16.msra.mxu1 %v10685_v43 }
 0x116   :  { %v699_v45 = vld [vmem:[#allocation5 + $0x1200] sm:$0xff]  ;;  %v10678_v48 = vcombine.high %v835_v35, %v839_v37  ;;  %6557 = vmatprep.subr.bf16.mxu0 %v10550_v44  ;;  %v10677_v51 = vcombine.low %v835_v35, %v839_v37 }
 0x117   :  { %v703_v46 = vld [vmem:[#allocation5 + $0x1220] sm:$0xff]  ;;  %6558 = vmatpush2.bf16.msra.mxu0 %v10549_v50 }
 0x118   :  { %v827_v47 = vld [vmem:[#allocation5 + $0x1600] sm:$0xff]  ;;  %v10542_v52 = vcombine.high %v699_v45, %v703_v46  ;;  %6598 = vmatprep.subr.bf16.mxu1 %v10678_v48  ;;  %v10541_v62 = vcombine.low %v699_v45, %v703_v46 }
 0x119   :  { %v831_v49 = vld [vmem:[#allocation5 + $0x1620] sm:$0xff]  ;;  %6599 = vmatpush2.bf16.msra.mxu1 %v10677_v51 }
 0x11a   :  { %v947_v55 = vld [vmem:[#allocation5 + $0x19c0] sm:$0xff]  ;;  %v10670_v60 = vcombine.high %v827_v47, %v831_v49  ;;  %6559 = vmatprep.subr.bf16.mxu0 %v10542_v52  ;;  %v10669_v1 = vcombine.low %v827_v47, %v831_v49 }
 0x11b   :  { %v951_v56 = vld [vmem:[#allocation5 + $0x19e0] sm:$0xff]  ;;  %6560 = vmatpush2.bf16.msra.mxu0 %v10541_v62 }
 0x11c   :  { %v1075_v57 = vld [vmem:[#allocation5 + $0x1dc0] sm:$0xff]  ;;  %v10790_v2 = vcombine.high %v947_v55, %v951_v56  ;;  %6600 = vmatprep.subr.bf16.mxu1 %v10670_v60  ;;  %v10789_v10 = vcombine.low %v947_v55, %v951_v56 }
 0x11d   :  { %v1079_v61 = vld [vmem:[#allocation5 + $0x1de0] sm:$0xff]  ;;  %6601 = vmatpush2.bf16.msra.mxu1 %v10669_v1 }
 0x11e   :  { %v939_v63 = vld [vmem:[#allocation5 + $0x1980] sm:$0xff]  ;;  %v10918_v6 = vcombine.high %v1075_v57, %v1079_v61  ;;  %6611 = vmatprep.subr.bf16.mxu0 %v10790_v2  ;;  %v10917_v11 = vcombine.low %v1075_v57, %v1079_v61  ;;  %6562 = vmatmul.mubr.bf16.vlgmr.msra.gmra.mxu0 %v12084_v8 }
 0x11f   :  { %v943_v0 = vld [vmem:[#allocation5 + $0x19a0] sm:$0xff]  ;;  %6612 = vmatpush1.bf16.msra.mxu0 %v10789_v10  ;;  %6643 = vmatprep.mubr.bf16.mxu0 %v12092_v38 }
 0x120   :  { %v1067_v3 = vld [vmem:[#allocation5 + $0x1d80] sm:$0xff]  ;;  %v10782_v12 = vcombine.high %v939_v63, %v943_v0  ;;  %6652 = vmatprep.subr.bf16.mxu1 %v10918_v6  ;;  %6603 = vmatmul.mubr.bf16.vlgmr.msra.gmra.mxu1 %v12088_v9  ;;  %v10781_v21 = vcombine.low %v939_v63, %v943_v0 }
 0x121   :  { %v1071_v4 = vld [vmem:[#allocation5 + $0x1da0] sm:$0xff]  ;;  %6653 = vmatpush1.bf16.msra.mxu1 %v10917_v11  ;;  %6684 = vmatprep.mubr.bf16.mxu1 %v12097_v42 }
 0x122   :  { %v931_v13 = vld [vmem:[#allocation5 + $0x1940] sm:$0xff]  ;;  %v10910_v17 = vcombine.high %v1067_v3, %v1071_v4  ;;  %6613 = vmatprep.subr.bf16.mxu0 %v10782_v12  ;;  %v10909_v23 = vcombine.low %v1067_v3, %v1071_v4 }
 0x123   :  { %v935_v14 = vld [vmem:[#allocation5 + $0x1960] sm:$0xff]  ;;  %6614 = vmatpush1.bf16.msra.mxu0 %v10781_v21 }
 0x124   :  { %v1059_v15 = vld [vmem:[#allocation5 + $0x1d40] sm:$0xff]  ;;  %v10774_v24 = vcombine.high %v931_v13, %v935_v14  ;;  %6654 = vmatprep.subr.bf16.mxu1 %v10910_v17  ;;  %v10773_v30 = vcombine.low %v931_v13, %v935_v14 }
 0x125   :  { %v1063_v18 = vld [vmem:[#allocation5 + $0x1d60] sm:$0xff]  ;;  %6655 = vmatpush1.bf16.msra.mxu1 %v10909_v23 }
 0x126   :  { %v923_v25 = vld [vmem:[#allocation5 + $0x1900] sm:$0xff]  ;;  %v10902_v27 = vcombine.high %v1059_v15, %v1063_v18  ;;  %6615 = vmatprep.subr.bf16.mxu0 %v10774_v24  ;;  %v10901_v31 = vcombine.low %v1059_v15, %v1063_v18 }
 0x127   :  { %v927_v53 = vld [vmem:[#allocation5 + $0x1920] sm:$0xff]  ;;  %6616 = vmatpush1.bf16.msra.mxu0 %v10773_v30 }
 0x128   :  { %v1051_v26 = vld [vmem:[#allocation5 + $0x1d00] sm:$0xff]  ;;  %v10766_v32 = vcombine.high %v923_v25, %v927_v53  ;;  %6656 = vmatprep.subr.bf16.mxu1 %v10902_v27  ;;  %v10765_v41 = vcombine.low %v923_v25, %v927_v53 }
 0x129   :  { %v1055_v54 = vld [vmem:[#allocation5 + $0x1d20] sm:$0xff]  ;;  %6657 = vmatpush1.bf16.msra.mxu1 %v10901_v31 }
 0x12a   :  { %v915_v33 = vld [vmem:[#allocation5 + $0x18c0] sm:$0xff]  ;;  %v10894_v36 = vcombine.high %v1051_v26, %v1055_v54  ;;  %6617 = vmatprep.subr.bf16.mxu0 %v10766_v32  ;;  %v10893_v43 = vcombine.low %v1051_v26, %v1055_v54 }
 0x12b   :  { %v919_v34 = vld [vmem:[#allocation5 + $0x18e0] sm:$0xff]  ;;  %6618 = vmatpush1.bf16.msra.mxu0 %v10765_v41 }
 0x12c   :  { %v1043_v35 = vld [vmem:[#allocation5 + $0x1cc0] sm:$0xff]  ;;  %v10758_v44 = vcombine.high %v915_v33, %v919_v34  ;;  %6658 = vmatprep.subr.bf16.mxu1 %v10894_v36  ;;  %v10757_v50 = vcombine.low %v915_v33, %v919_v34 }
 0x12d   :  { %v1047_v37 = vld [vmem:[#allocation5 + $0x1ce0] sm:$0xff]  ;;  %6659 = vmatpush1.bf16.msra.mxu1 %v10893_v43 }
 0x12e   :  { %v907_v45 = vld [vmem:[#allocation5 + $0x1880] sm:$0xff]  ;;  %v10886_v48 = vcombine.high %v1043_v35, %v1047_v37  ;;  %6619 = vmatprep.subr.bf16.mxu0 %v10758_v44  ;;  %v10885_v51 = vcombine.low %v1043_v35, %v1047_v37 }
 0x12f   :  { %v911_v46 = vld [vmem:[#allocation5 + $0x18a0] sm:$0xff]  ;;  %6620 = vmatpush1.bf16.msra.mxu0 %v10757_v50 }
 0x130   :  { %v1035_v47 = vld [vmem:[#allocation5 + $0x1c80] sm:$0xff]  ;;  %v10750_v52 = vcombine.high %v907_v45, %v911_v46  ;;  %6660 = vmatprep.subr.bf16.mxu1 %v10886_v48  ;;  %v10749_v62 = vcombine.low %v907_v45, %v911_v46 }
 0x131   :  { %v1039_v49 = vld [vmem:[#allocation5 + $0x1ca0] sm:$0xff]  ;;  %6661 = vmatpush1.bf16.msra.mxu1 %v10885_v51 }
 0x132   :  { %v899_v55 = vld [vmem:[#allocation5 + $0x1840] sm:$0xff]  ;;  %v10878_v60 = vcombine.high %v1035_v47, %v1039_v49  ;;  %6621 = vmatprep.subr.bf16.mxu0 %v10750_v52  ;;  %v10877_v63 = vcombine.low %v1035_v47, %v1039_v49 }
 0x133   :  { %v903_v56 = vld [vmem:[#allocation5 + $0x1860] sm:$0xff]  ;;  %6622 = vmatpush1.bf16.msra.mxu0 %v10749_v62 }
 0x134   :  { %v1027_v57 = vld [vmem:[#allocation5 + $0x1c40] sm:$0xff]  ;;  %v10742_v0 = vcombine.high %v899_v55, %v903_v56  ;;  %6662 = vmatprep.subr.bf16.mxu1 %v10878_v60  ;;  %v10741_v10 = vcombine.low %v899_v55, %v903_v56 }
 0x135   :  { %v1031_v61 = vld [vmem:[#allocation5 + $0x1c60] sm:$0xff]  ;;  %6663 = vmatpush1.bf16.msra.mxu1 %v10877_v63 }
 0x136   :  { %v891_v1 = vld [vmem:[#allocation5 + $0x1800] sm:$0xff]  ;;  %v10870_v4 = vcombine.high %v1027_v57, %v1031_v61  ;;  %6623 = vmatprep.subr.bf16.mxu0 %v10742_v0  ;;  %v10869_v11 = vcombine.low %v1027_v57, %v1031_v61 }
 0x137   :  { %v895_v2 = vld [vmem:[#allocation5 + $0x1820] sm:$0xff]  ;;  %6624 = vmatpush1.bf16.msra.mxu0 %v10741_v10 }
 0x138   :  { %v1019_v3 = vld [vmem:[#allocation5 + $0x1c00] sm:$0xff]  ;;  %v10734_v12 = vcombine.high %v891_v1, %v895_v2  ;;  %6664 = vmatprep.subr.bf16.mxu1 %v10870_v4  ;;  %v10733_v21 = vcombine.low %v891_v1, %v895_v2 }
 0x139   :  { %v1023_v6 = vld [vmem:[#allocation5 + $0x1c20] sm:$0xff]  ;;  %6665 = vmatpush1.bf16.msra.mxu1 %v10869_v11 }
 0x13a   :  { %v1011_v13 = vld [vmem:[#allocation5 + $0x1bc0] sm:$0xff]  ;;  %v10862_v17 = vcombine.high %v1019_v3, %v1023_v6  ;;  %6625 = vmatprep.subr.bf16.mxu0 %v10734_v12  ;;  %v10861_v23 = vcombine.low %v1019_v3, %v1023_v6 }
 0x13b   :  { %v1015_v14 = vld [vmem:[#allocation5 + $0x1be0] sm:$0xff]  ;;  %6626 = vmatpush1.bf16.msra.mxu0 %v10733_v21 }
 0x13c   :  { %v1139_v15 = vld [vmem:[#allocation5 + $0x1fc0] sm:$0xff]  ;;  %v10854_v24 = vcombine.high %v1011_v13, %v1015_v14  ;;  %6666 = vmatprep.subr.bf16.mxu1 %v10862_v17  ;;  %v10853_v30 = vcombine.low %v1011_v13, %v1015_v14 }
 0x13d   :  { %v1143_v18 = vld [vmem:[#allocation5 + $0x1fe0] sm:$0xff]  ;;  %6667 = vmatpush1.bf16.msra.mxu1 %v10861_v23  ;;  %v1149_v23 = vlaneseq }
 0x13e   :  { %v1003_v25 = vld [vmem:[#allocation5 + $0x1b80] sm:$0xff]  ;;  %v10982_v27 = vcombine.high %v1139_v15, %v1143_v18  ;;  %6627 = vmatprep.subr.bf16.mxu0 %v10854_v24  ;;  %v10981_v31 = vcombine.low %v1139_v15, %v1143_v18 }
 0x13f   :  { %v1007_v53 = vld [vmem:[#allocation5 + $0x1ba0] sm:$0xff]  ;;  %6628 = vmatpush2.bf16.msra.mxu0 %v10853_v30 }
 0x140   :  { %v1131_v26 = vld [vmem:[#allocation5 + $0x1f80] sm:$0xff]  ;;  %v10846_v32 = vcombine.high %v1003_v25, %v1007_v53  ;;  %6668 = vmatprep.subr.bf16.mxu1 %v10982_v27  ;;  %v10845_v41 = vcombine.low %v1003_v25, %v1007_v53 }
 0x141   :  { %v1135_v54 = vld [vmem:[#allocation5 + $0x1fa0] sm:$0xff]  ;;  %6669 = vmatpush2.bf16.msra.mxu1 %v10981_v31 }
 0x142   :  { %v995_v33 = vld [vmem:[#allocation5 + $0x1b40] sm:$0xff]  ;;  %v10974_v36 = vcombine.high %v1131_v26, %v1135_v54  ;;  %6629 = vmatprep.subr.bf16.mxu0 %v10846_v32  ;;  %v10973_v43 = vcombine.low %v1131_v26, %v1135_v54  ;;  %v12102_v32 = vshrl.u32 %v1149_v23, 7 }
 0x143   :  { %v999_v34 = vld [vmem:[#allocation5 + $0x1b60] sm:$0xff]  ;;  %6630 = vmatpush2.bf16.msra.mxu0 %v10845_v41  ;;  %v308_v41 = vld [vmem:[#allocation5 + $0x5c8] sm:$0xff] }
 0x144   :  { %v1123_v35 = vld [vmem:[#allocation5 + $0x1f40] sm:$0xff]  ;;  %v10838_v44 = vcombine.high %v995_v33, %v999_v34  ;;  %6670 = vmatprep.subr.bf16.mxu1 %v10974_v36  ;;  %v10837_v50 = vcombine.low %v995_v33, %v999_v34  ;;  %v180_v36 = vld [vmem:[#allocation5 + $0x1c8] sm:$0xff] }
 0x145   :  { %v1127_v37 = vld [vmem:[#allocation5 + $0x1f60] sm:$0xff]  ;;  %6671 = vmatpush2.bf16.msra.mxu1 %v10973_v43  ;;  %v312_v43 = vld [vmem:[#allocation5 + $0x5e8] sm:$0xff] }
 0x146   :  { %v10966_v45 = vcombine.high %v1123_v35, %v1127_v37  ;;  %v987_v46 = vld [vmem:[#allocation5 + $0x1b00] sm:$0xff]  ;;  %6631 = vmatprep.subr.bf16.mxu0 %v10838_v44  ;;  %v10965_v51 = vcombine.low %v1123_v35, %v1127_v37  ;;  %v184_v37 = vld [vmem:[#allocation5 + $0x1e8] sm:$0xff] }
 0x147   :  { %v991_v47 = vld [vmem:[#allocation5 + $0x1b20] sm:$0xff]  ;;  %6632 = vmatpush2.bf16.msra.mxu0 %v10837_v50  ;;  %v1155_v50 = vsub.s32 1, %v12102_v32 }
 0x148   :  { %v1115_v48 = vld [vmem:[#allocation5 + $0x1f00] sm:$0xff]  ;;  %v10830_v52 = vcombine.high %v987_v46, %v991_v47  ;;  %6672 = vmatprep.subr.bf16.mxu1 %v10966_v45  ;;  %v10829_v62 = vcombine.low %v987_v46, %v991_v47  ;;  %v1151_v45 = vsub.s32 0, %v12102_v32 }
 0x149   :  { %v1119_v49 = vld [vmem:[#allocation5 + $0x1f20] sm:$0xff]  ;;  %6673 = vmatpush2.bf16.msra.mxu1 %v10965_v51  ;;  %v172_v51 = vld [vmem:[#allocation5 + $0x188] sm:$0xff] }
 0x14a   :  { %v10958_v55 = vcombine.high %v1115_v48, %v1119_v49  ;;  %v979_v56 = vld [vmem:[#allocation5 + $0x1ac0] sm:$0xff]  ;;  %6633 = vmatprep.subr.bf16.mxu0 %v10830_v52  ;;  %v10957_v63 = vcombine.low %v1115_v48, %v1119_v49  ;;  %v10024_v48 = vcombine.high %v180_v36, %v184_v37  ;;  %v10152_v49 = vcombine.high %v308_v41, %v312_v43  ;;  %v176_v52 = vld [vmem:[#allocation5 + $0x1a8] sm:$0xff] }
 0x14b   :  { %v983_v57 = vld [vmem:[#allocation5 + $0x1ae0] sm:$0xff]  ;;  %6634 = vmatpush2.bf16.msra.mxu0 %v10829_v62  ;;  %v10023_v62 = vcombine.low %v180_v36, %v184_v37 }
 0x14c   :  { %v1107_v60 = vld [vmem:[#allocation5 + $0x1ec0] sm:$0xff]  ;;  %v10822_v0 = vcombine.high %v979_v56, %v983_v57  ;;  %6674 = vmatprep.subr.bf16.mxu1 %v10958_v55  ;;  %v10821_v10 = vcombine.low %v979_v56, %v983_v57  ;;  %v12108_v55 = vcombine.low %v12078_v5, %v12078_v5  ;;  %v300_v56 = vld [vmem:[#allocation5 + $0x588] sm:$0xff] }
 0x14d   :  { %v1111_v61 = vld [vmem:[#allocation5 + $0x1ee0] sm:$0xff]  ;;  %6675 = vmatpush2.bf16.msra.mxu1 %v10957_v63  ;;  %v304_v57 = vld [vmem:[#allocation5 + $0x5a8] sm:$0xff]  ;;  %v10151_v63 = vcombine.low %v308_v41, %v312_v43 }
 0x14e   :  { %v10950_v1 = vcombine.high %v1107_v60, %v1111_v61  ;;  %v971_v2 = vld [vmem:[#allocation5 + $0x1a80] sm:$0xff]  ;;  %6635 = vmatprep.subr.bf16.mxu0 %v10822_v0  ;;  %v10949_v11 = vcombine.low %v1107_v60, %v1111_v61  ;;  %v12114_v61 = vcombine.low %v12080_v7, %v12080_v7  ;;  %v10016_v0 = vcombine.high %v172_v51, %v176_v52  ;;  %v148_v41 = vld [vmem:[#allocation5 + $0xc8] sm:$0xff] }
 0x14f   :  { %v975_v3 = vld [vmem:[#allocation5 + $0x1aa0] sm:$0xff]  ;;  %6636 = vmatpush2.bf16.msra.mxu0 %v10821_v10  ;;  %v296_v10 = vld [vmem:[#allocation5 + $0x568] sm:$0xff] }
 0x150   :  { %v1099_v4 = vld [vmem:[#allocation5 + $0x1e80] sm:$0xff]  ;;  %v10814_v12 = vcombine.high %v971_v2, %v975_v3  ;;  %6676 = vmatprep.subr.bf16.mxu1 %v10950_v1  ;;  %v10813_v21 = vcombine.low %v971_v2, %v975_v3  ;;  %v10144_v1 = vcombine.high %v300_v56, %v304_v57  ;;  %v164_v2 = vld [vmem:[#allocation5 + $0x148] sm:$0xff] }
 0x151   :  { %v1103_v6 = vld [vmem:[#allocation5 + $0x1ea0] sm:$0xff]  ;;  %6677 = vmatpush2.bf16.msra.mxu1 %v10949_v11  ;;  %v168_v3 = vld [vmem:[#allocation5 + $0x168] sm:$0xff] }
 0x152   :  { %v10942_v13 = vcombine.high %v1099_v4, %v1103_v6  ;;  %v963_v14 = vld [vmem:[#allocation5 + $0x1a40] sm:$0xff]  ;;  %6637 = vmatprep.subr.bf16.mxu0 %v10814_v12  ;;  %v10941_v24 = vcombine.low %v1099_v4, %v1103_v6  ;;  %v292_v6 = vld [vmem:[#allocation5 + $0x548] sm:$0xff]  ;;  %v10015_v12 = vcombine.low %v172_v51, %v176_v52 }
 0x153   :  { %v967_v15 = vld [vmem:[#allocation5 + $0x1a60] sm:$0xff]  ;;  %6638 = vmatpush2.bf16.msra.mxu0 %v10813_v21  ;;  %v10136_v23 = vcombine.high %v292_v6, %v296_v10  ;;  %v152_v43 = vld [vmem:[#allocation5 + $0xe8] sm:$0xff] }
 0x154   :  { %v1091_v17 = vld [vmem:[#allocation5 + $0x1e40] sm:$0xff]  ;;  %v10806_v25 = vcombine.high %v963_v14, %v967_v15  ;;  %6678 = vmatprep.subr.bf16.mxu1 %v10942_v13  ;;  %v10805_v31 = vcombine.low %v963_v14, %v967_v15  ;;  %v10143_v14 = vcombine.low %v300_v56, %v304_v57  ;;  %v10008_v15 = vcombine.high %v164_v2, %v168_v3  ;;  %v140_v52 = vld [vmem:[#allocation5 + $0x88] sm:$0xff] }
 0x155   :  { %v1095_v18 = vld [vmem:[#allocation5 + $0x1e60] sm:$0xff]  ;;  %6679 = vmatpush2.bf16.msra.mxu1 %v10941_v24  ;;  %v156_v24 = vld [vmem:[#allocation5 + $0x108] sm:$0xff] }
 0x156   :  { %v10934_v53 = vcombine.high %v1091_v17, %v1095_v18  ;;  %v955_v26 = vld [vmem:[#allocation5 + $0x1a00] sm:$0xff]  ;;  %6639 = vmatprep.subr.bf16.mxu0 %v10806_v25  ;;  %v10933_v33 = vcombine.low %v1091_v17, %v1095_v18  ;;  %v160_v25 = vld [vmem:[#allocation5 + $0x128] sm:$0xff] }
 0x157   :  { %v959_v27 = vld [vmem:[#allocation5 + $0x1a20] sm:$0xff]  ;;  %6640 = vmatpush2.bf16.msra.mxu0 %v10805_v31  ;;  %v10007_v31 = vcombine.low %v164_v2, %v168_v3  ;;  %v144_v56 = vld [vmem:[#allocation5 + $0xa8] sm:$0xff] }
 0x158   :  { %v1083_v54 = vld [vmem:[#allocation5 + $0x1e00] sm:$0xff]  ;;  %v10798_v34 = vcombine.high %v955_v26, %v959_v27  ;;  %6680 = vmatprep.subr.bf16.mxu1 %v10934_v53  ;;  %v10797_v44 = vcombine.low %v955_v26, %v959_v27  ;;  %v284_v26 = vld [vmem:[#allocation5 + $0x508] sm:$0xff] }
 0x159   :  { %v1087_v30 = vld [vmem:[#allocation5 + $0x1e20] sm:$0xff]  ;;  %6681 = vmatpush2.bf16.msra.mxu1 %v10933_v33  ;;  %v288_v27 = vld [vmem:[#allocation5 + $0x528] sm:$0xff] }
 0x15a   :  { %v10926_v35 = vcombine.high %v1083_v54, %v1087_v30  ;;  %6641 = vmatprep.subr.bf16.mxu0 %v10798_v34  ;;  %v10925_v46 = vcombine.low %v1083_v54, %v1087_v30  ;;  %v1147_v47 = vld [vmem:[#allocation7] sm:$0xff]  ;;  %v10135_v34 = vcombine.low %v292_v6, %v296_v10  ;;  %v10128_v37 = vcombine.high %v284_v26, %v288_v27  ;;  %v268_v57 = vld [vmem:[#allocation5 + $0x488] sm:$0xff] }
 0x15b   :  { %6642 = vmatpush2.bf16.msra.mxu0 %v10797_v44  ;;  %v1152_v60 = vrot.slane %v1147_v47, %v1151_v45  ;;  %v1156_v5 = vrot.slane %v1147_v47, %v1155_v50  ;;  %v276_v44 = vld [vmem:[#allocation5 + $0x4c8] sm:$0xff]  ;;  %v9999_v47 = vcombine.low %v156_v24, %v160_v25  ;;  %v9983_v6 = vcombine.low %v140_v52, %v144_v56 }
 0x15c   :  { %6682 = vmatprep.subr.bf16.mxu1 %v10926_v35  ;;  %6693 = vmatprep.subr.bf16.mxu0 %v10024_v48  ;;  %v10000_v35 = vcombine.high %v156_v24, %v160_v25  ;;  %v10127_v48 = vcombine.low %v284_v26, %v288_v27  ;;  %v136_v2 = vld [vmem:[#allocation5 + $0x68] sm:$0xff] }
 0x15d   :  { %6683 = vmatpush2.bf16.msra.mxu1 %v10925_v46  ;;  %v6399_v4 = vpop.f32.mrf.mxu0  ;;  %v280_v46 = vld [vmem:[#allocation5 + $0x4e8] sm:$0xff] }
 0x15e   :  { %6734 = vmatprep.subr.bf16.mxu1 %v10152_v49  ;;  %6644 = vmatmul.mubr.bf16.vlgmr.msra.gmra.mxu0 %v12108_v55  ;;  %v6400_v11 = vadd.f32 %v6399_v4, %v1152_v60  ;;  %v9992_v49 = vcombine.high %v148_v41, %v152_v43  ;;  %v10120_v51 = vcombine.high %v276_v44, %v280_v46  ;;  %v272_v60 = vld [vmem:[#allocation5 + $0x4a8] sm:$0xff] }
 0x15f   :  { %v6440_v7 = vpop.f32.mrf.mxu1  ;;  %6694 = vmatpush1.bf16.msra.mxu0 %v10023_v62  ;;  %v6401_v13 = vpop.f32.mrf.mxu0  ;;  %6725 = vmatprep.mubr.bf16.mxu0 %v12022_v58  ;;  %v9991_v62 = vcombine.low %v148_v41, %v152_v43  ;;  %v260_v3 = vld [vmem:[#allocation5 + $0x448] sm:$0xff]  ;;  %v10111_v10 = vcombine.low %v268_v57, %v272_v60 }
 0x160   :  { %6685 = vmatmul.mubr.bf16.vlgmr.msra.gmra.mxu1 %v12114_v61  ;;  %6695 = vmatprep.subr.bf16.mxu0 %v10016_v0  ;;  %v12120_v17 = vadd.f32 %v6440_v7, %v6400_v11  ;;  %v6402_v18 = vadd.f32 %v6401_v13, %v1156_v5  ;;  %v9984_v0 = vcombine.high %v140_v52, %v144_v56  ;;  %v264_v4 = vld [vmem:[#allocation5 + $0x468] sm:$0xff] }
 0x161   :  { %6735 = vmatpush1.bf16.msra.mxu1 %v10151_v63  ;;  %v6442_v21 = vpop.f32.mrf.mxu1  ;;  %v6403_v53 = vpop.f32.mrf.mxu0  ;;  %6766 = vmatprep.mubr.bf16.mxu1 %v12026_v59  ;;  %v10119_v63 = vcombine.low %v276_v44, %v280_v46  ;;  %v10112_v5 = vcombine.high %v268_v57, %v272_v60  ;;  %v10104_v7 = vcombine.high %v260_v3, %v264_v4  ;;  %v128_v13 = vld [vmem:[#allocation5 + $0x28] sm:$0xff] }
 0x162   :  { %6736 = vmatprep.subr.bf16.mxu1 %v10144_v1  ;;  %v12124_v54 = vadd.f32 %v6442_v21, %v6402_v18  ;;  %v132_v1 = vld [vmem:[#allocation5 + $0x48] sm:$0xff]  ;;  %v10103_v21 = vcombine.low %v260_v3, %v264_v4 }
 0x163   :  { %v6444_v30 = vpop.f32.mrf.mxu1  ;;  %6696 = vmatpush1.bf16.msra.mxu0 %v10015_v12  ;;  %v6404_v33 = vpop.f32.mrf.mxu0  ;;  %v9976_v11 = vcombine.high %v132_v1, %v136_v2  ;;  %v124_v12 = vld [vmem:[#allocation5 + $0x8] sm:$0xff]  ;;  %v9975_v18 = vcombine.low %v132_v1, %v136_v2 }
 0x164   :  { %6697 = vmatprep.subr.bf16.mxu0 %v10008_v15  ;;  %v256_v15 = vld [vmem:[#allocation5 + $0x428] sm:$0xff]  ;;  %v9967_v30 = vcombine.low %v124_v12, %v128_v13 }
 0x165   :  { %6737 = vmatpush1.bf16.msra.mxu1 %v10143_v14  ;;  %v6445_v36 = vpop.f32.mrf.mxu1  ;;  %v252_v14 = vld [vmem:[#allocation5 + $0x408] sm:$0xff] }
 0x166   :  { %6738 = vmatprep.subr.bf16.mxu1 %v10136_v23  ;;  %v9968_v23 = vcombine.high %v124_v12, %v128_v13  ;;  %v10096_v24 = vcombine.high %v252_v14, %v256_v15  ;;  %v244_v25 = vld [vmem:[#allocation5 + $0x3c8] sm:$0xff] }
 0x167   :  { %6698 = vmatpush1.bf16.msra.mxu0 %v10007_v31  ;;  %v248_v53 = vld [vmem:[#allocation5 + $0x3e8] sm:$0xff]  ;;  %v10095_v31 = vcombine.low %v252_v14, %v256_v15 }
 0x168   :  { %6699 = vmatprep.subr.bf16.mxu0 %v10000_v35  ;;  %v372_v26 = vld [vmem:[#allocation5 + $0x7c8] sm:$0xff]  ;;  %v10088_v33 = vcombine.high %v244_v25, %v248_v53  ;;  %v10087_v43 = vcombine.low %v244_v25, %v248_v53 }
 0x169   :  { %6739 = vmatpush1.bf16.msra.mxu1 %v10135_v34  ;;  %v376_v27 = vld [vmem:[#allocation5 + $0x7e8] sm:$0xff] }
 0x16a   :  { %6740 = vmatprep.subr.bf16.mxu1 %v10128_v37  ;;  %v10216_v34 = vcombine.high %v372_v26, %v376_v27  ;;  %v236_v35 = vld [vmem:[#allocation5 + $0x388] sm:$0xff]  ;;  %v10215_v44 = vcombine.low %v372_v26, %v376_v27 }
 0x16b   :  { %6700 = vmatpush1.bf16.msra.mxu0 %v9999_v47  ;;  %v240_v36 = vld [vmem:[#allocation5 + $0x3a8] sm:$0xff] }
 0x16c   :  { %6701 = vmatprep.subr.bf16.mxu0 %v9992_v49  ;;  %v364_v37 = vld [vmem:[#allocation5 + $0x788] sm:$0xff]  ;;  %v10080_v46 = vcombine.high %v236_v35, %v240_v36  ;;  %v10079_v56 = vcombine.low %v236_v35, %v240_v36 }
 0x16d   :  { %6741 = vmatpush1.bf16.msra.mxu1 %v10127_v48  ;;  %v368_v41 = vld [vmem:[#allocation5 + $0x7a8] sm:$0xff] }
 0x16e   :  { %6742 = vmatprep.subr.bf16.mxu1 %v10120_v51  ;;  %v10208_v47 = vcombine.high %v364_v37, %v368_v41  ;;  %v228_v48 = vld [vmem:[#allocation5 + $0x348] sm:$0xff]  ;;  %v10207_v57 = vcombine.low %v364_v37, %v368_v41 }
 0x16f   :  { %6702 = vmatpush1.bf16.msra.mxu0 %v9991_v62  ;;  %v232_v49 = vld [vmem:[#allocation5 + $0x368] sm:$0xff] }
 0x170   :  { %6703 = vmatprep.subr.bf16.mxu0 %v9984_v0  ;;  %v356_v51 = vld [vmem:[#allocation5 + $0x748] sm:$0xff]  ;;  %v10072_v60 = vcombine.high %v228_v48, %v232_v49  ;;  %v10071_v2 = vcombine.low %v228_v48, %v232_v49 }
 0x171   :  { %6743 = vmatpush1.bf16.msra.mxu1 %v10119_v63  ;;  %v360_v52 = vld [vmem:[#allocation5 + $0x768] sm:$0xff] }
 0x172   :  { %6744 = vmatprep.subr.bf16.mxu1 %v10112_v5  ;;  %v10200_v62 = vcombine.high %v356_v51, %v360_v52  ;;  %v220_v63 = vld [vmem:[#allocation5 + $0x308] sm:$0xff]  ;;  %v10199_v3 = vcombine.low %v356_v51, %v360_v52 }
 0x173   :  { %6704 = vmatpush1.bf16.msra.mxu0 %v9983_v6  ;;  %v224_v0 = vld [vmem:[#allocation5 + $0x328] sm:$0xff] }
 0x174   :  { %6705 = vmatprep.subr.bf16.mxu0 %v9976_v11  ;;  %v348_v5 = vld [vmem:[#allocation5 + $0x708] sm:$0xff]  ;;  %v10064_v4 = vcombine.high %v220_v63, %v224_v0  ;;  %v10063_v13 = vcombine.low %v220_v63, %v224_v0 }
 0x175   :  { %6745 = vmatpush1.bf16.msra.mxu1 %v10111_v10  ;;  %v352_v1 = vld [vmem:[#allocation5 + $0x728] sm:$0xff] }
 0x176   :  { %6746 = vmatprep.subr.bf16.mxu1 %v10104_v7  ;;  %v10192_v6 = vcombine.high %v348_v5, %v352_v1  ;;  %v212_v10 = vld [vmem:[#allocation5 + $0x2c8] sm:$0xff]  ;;  %v10191_v14 = vcombine.low %v348_v5, %v352_v1 }
 0x177   :  { %6706 = vmatpush1.bf16.msra.mxu0 %v9975_v18  ;;  %v216_v11 = vld [vmem:[#allocation5 + $0x2e8] sm:$0xff] }
 0x178   :  { %6707 = vmatprep.subr.bf16.mxu0 %v9968_v23  ;;  %v340_v7 = vld [vmem:[#allocation5 + $0x6c8] sm:$0xff]  ;;  %v10056_v15 = vcombine.high %v212_v10, %v216_v11  ;;  %v10055_v53 = vcombine.low %v212_v10, %v216_v11 }
 0x179   :  { %6747 = vmatpush1.bf16.msra.mxu1 %v10103_v21  ;;  %v344_v12 = vld [vmem:[#allocation5 + $0x6e8] sm:$0xff] }
 0x17a   :  { %6748 = vmatprep.subr.bf16.mxu1 %v10096_v24  ;;  %v10184_v18 = vcombine.high %v340_v7, %v344_v12  ;;  %v204_v21 = vld [vmem:[#allocation5 + $0x288] sm:$0xff]  ;;  %v10183_v26 = vcombine.low %v340_v7, %v344_v12 }
 0x17b   :  { %6708 = vmatpush1.bf16.msra.mxu0 %v9967_v30  ;;  %v208_v23 = vld [vmem:[#allocation5 + $0x2a8] sm:$0xff] }
 0x17c   :  { %6709 = vmatprep.subr.bf16.mxu0 %v10088_v33  ;;  %v332_v24 = vld [vmem:[#allocation5 + $0x688] sm:$0xff]  ;;  %v10048_v27 = vcombine.high %v204_v21, %v208_v23  ;;  %v10047_v36 = vcombine.low %v204_v21, %v208_v23 }
 0x17d   :  { %6749 = vmatpush1.bf16.msra.mxu1 %v10095_v31  ;;  %v336_v25 = vld [vmem:[#allocation5 + $0x6a8] sm:$0xff] }
 0x17e   :  { %6750 = vmatprep.subr.bf16.mxu1 %v10216_v34  ;;  %v10176_v30 = vcombine.high %v332_v24, %v336_v25  ;;  %v196_v31 = vld [vmem:[#allocation5 + $0x248] sm:$0xff]  ;;  %v10175_v37 = vcombine.low %v332_v24, %v336_v25 }
 0x17f   :  { %6710 = vmatpush2.bf16.msra.mxu0 %v10087_v43  ;;  %v200_v33 = vld [vmem:[#allocation5 + $0x268] sm:$0xff] }
 0x180   :  { %6711 = vmatprep.subr.bf16.mxu0 %v10080_v46  ;;  %v324_v34 = vld [vmem:[#allocation5 + $0x648] sm:$0xff]  ;;  %v10040_v41 = vcombine.high %v196_v31, %v200_v33  ;;  %v10039_v49 = vcombine.low %v196_v31, %v200_v33 }
 0x181   :  { %6751 = vmatpush2.bf16.msra.mxu1 %v10215_v44  ;;  %v328_v35 = vld [vmem:[#allocation5 + $0x668] sm:$0xff] }
 0x182   :  { %6752 = vmatprep.subr.bf16.mxu1 %v10208_v47  ;;  %v10168_v43 = vcombine.high %v324_v34, %v328_v35  ;;  %v188_v44 = vld [vmem:[#allocation5 + $0x208] sm:$0xff]  ;;  %v10167_v51 = vcombine.low %v324_v34, %v328_v35 }
 0x183   :  { %6712 = vmatpush2.bf16.msra.mxu0 %v10079_v56  ;;  %v192_v46 = vld [vmem:[#allocation5 + $0x228] sm:$0xff] }
 0x184   :  { %6713 = vmatprep.subr.bf16.mxu0 %v10072_v60  ;;  %v316_v47 = vld [vmem:[#allocation5 + $0x608] sm:$0xff]  ;;  %v10032_v52 = vcombine.high %v188_v44, %v192_v46  ;;  %v10031_v0 = vcombine.low %v188_v44, %v192_v46 }
 0x185   :  { %6753 = vmatpush2.bf16.msra.mxu1 %v10207_v57  ;;  %v320_v48 = vld [vmem:[#allocation5 + $0x628] sm:$0xff] }
 0x186   :  { %6754 = vmatprep.subr.bf16.mxu1 %v10200_v62  ;;  %v10160_v56 = vcombine.high %v316_v47, %v320_v48  ;;  %v436_v57 = vld [vmem:[#allocation5 + $0x9c8] sm:$0xff]  ;;  %v10159_v5 = vcombine.low %v316_v47, %v320_v48 }
 0x187   :  { %6714 = vmatpush2.bf16.msra.mxu0 %v10071_v2  ;;  %v440_v60 = vld [vmem:[#allocation5 + $0x9e8] sm:$0xff] }
 0x188   :  { %6715 = vmatprep.subr.bf16.mxu0 %v10064_v4  ;;  %v564_v62 = vld [vmem:[#allocation5 + $0xdc8] sm:$0xff]  ;;  %v10280_v1 = vcombine.high %v436_v57, %v440_v60  ;;  %v10279_v11 = vcombine.low %v436_v57, %v440_v60 }
 0x189   :  { %6755 = vmatpush2.bf16.msra.mxu1 %v10199_v3  ;;  %v568_v63 = vld [vmem:[#allocation5 + $0xde8] sm:$0xff] }
 0x18a   :  { %6756 = vmatprep.subr.bf16.mxu1 %v10192_v6  ;;  %v10408_v2 = vcombine.high %v564_v62, %v568_v63  ;;  %v428_v3 = vld [vmem:[#allocation5 + $0x988] sm:$0xff]  ;;  %v10407_v7 = vcombine.low %v564_v62, %v568_v63 }
 0x18b   :  { %6716 = vmatpush2.bf16.msra.mxu0 %v10063_v13  ;;  %v432_v4 = vld [vmem:[#allocation5 + $0x9a8] sm:$0xff] }
 0x18c   :  { %6717 = vmatprep.subr.bf16.mxu0 %v10056_v15  ;;  %v556_v6 = vld [vmem:[#allocation5 + $0xd88] sm:$0xff]  ;;  %v10272_v12 = vcombine.high %v428_v3, %v432_v4 }
 0x18d   :  { %6757 = vmatpush2.bf16.msra.mxu1 %v10191_v14  ;;  %v560_v10 = vld [vmem:[#allocation5 + $0xda8] sm:$0xff] }
 0x18e   :  { %6758 = vmatprep.subr.bf16.mxu1 %v10184_v18  ;;  %v10400_v13 = vcombine.high %v556_v6, %v560_v10  ;;  %v420_v14 = vld [vmem:[#allocation5 + $0x948] sm:$0xff] }
 0x18f   :  { %6718 = vmatpush2.bf16.msra.mxu0 %v10055_v53  ;;  %v424_v15 = vld [vmem:[#allocation5 + $0x968] sm:$0xff]  ;;  %v10271_v53 = vcombine.low %v428_v3, %v432_v4 }
 0x190   :  { %6719 = vmatprep.subr.bf16.mxu0 %v10048_v27  ;;  %v548_v21 = vld [vmem:[#allocation5 + $0xd48] sm:$0xff]  ;;  %v10399_v27 = vcombine.low %v556_v6, %v560_v10  ;;  %v10263_v47 = vcombine.low %v420_v14, %v424_v15 }
 0x191   :  { %6759 = vmatpush2.bf16.msra.mxu1 %v10183_v26  ;;  %v552_v23 = vld [vmem:[#allocation5 + $0xd68] sm:$0xff] }
 0x192   :  { %6760 = vmatprep.subr.bf16.mxu1 %v10176_v30  ;;  %v10264_v30 = vcombine.high %v420_v14, %v424_v15  ;;  %v10392_v35 = vcombine.high %v548_v21, %v552_v23  ;;  %v408_v57 = vld [vmem:[#allocation5 + $0x8e8] sm:$0xff] }
 0x193   :  { %6720 = vmatpush2.bf16.msra.mxu0 %v10047_v36  ;;  %v412_v36 = vld [vmem:[#allocation5 + $0x908] sm:$0xff] }
 0x194   :  { %6721 = vmatprep.subr.bf16.mxu0 %v10040_v41  ;;  %v540_v41 = vld [vmem:[#allocation5 + $0xd08] sm:$0xff] }
 0x195   :  { %6761 = vmatpush2.bf16.msra.mxu1 %v10175_v37  ;;  %v416_v37 = vld [vmem:[#allocation5 + $0x928] sm:$0xff] }
 0x196   :  { %6762 = vmatprep.subr.bf16.mxu1 %v10168_v43  ;;  %v544_v43 = vld [vmem:[#allocation5 + $0xd28] sm:$0xff]  ;;  %v10255_v63 = vcombine.low %v412_v36, %v416_v37 }
 0x197   :  { %6722 = vmatpush2.bf16.msra.mxu0 %v10039_v49  ;;  %v10256_v49 = vcombine.high %v412_v36, %v416_v37  ;;  %v532_v60 = vld [vmem:[#allocation5 + $0xcc8] sm:$0xff] }
 0x198   :  { %6723 = vmatprep.subr.bf16.mxu0 %v10032_v52  ;;  %v10384_v52 = vcombine.high %v540_v41, %v544_v43  ;;  %v536_v62 = vld [vmem:[#allocation5 + $0xce8] sm:$0xff] }
 0x199   :  { %6763 = vmatpush2.bf16.msra.mxu1 %v10167_v51  ;;  %v400_v3 = vld [vmem:[#allocation5 + $0x8a8] sm:$0xff] }
 0x19a   :  { %6764 = vmatprep.subr.bf16.mxu1 %v10160_v56  ;;  %v404_v56 = vld [vmem:[#allocation5 + $0x8c8] sm:$0xff] }
 0x19b   :  { %6724 = vmatpush2.bf16.msra.mxu0 %v10031_v0  ;;  %v10383_v0 = vcombine.low %v540_v41, %v544_v43  ;;  %v524_v4 = vld [vmem:[#allocation5 + $0xc88] sm:$0xff]  ;;  %v10247_v10 = vcombine.low %v404_v56, %v408_v57 }
 0x19c   :  { %6775 = vmatprep.subr.bf16.mxu0 %v10280_v1  ;;  %v10376_v1 = vcombine.high %v532_v60, %v536_v62  ;;  %v528_v6 = vld [vmem:[#allocation5 + $0xca8] sm:$0xff] }
 0x19d   :  { %6765 = vmatpush2.bf16.msra.mxu1 %v10159_v5  ;;  %v6481_v18 = vpop.f32.mrf.mxu0  ;;  %v10248_v5 = vcombine.high %v404_v56, %v408_v57  ;;  %v392_v14 = vld [vmem:[#allocation5 + $0x868] sm:$0xff] }
 0x19e   :  { %6816 = vmatprep.subr.bf16.mxu1 %v10408_v2  ;;  %6726 = vmatmul.mubr.bf16.vlgmr.msra.gmra.mxu0 %v12032_v16  ;;  %v6482_v24 = vadd.f32 %v6481_v18, %v12120_v17  ;;  %v396_v2 = vld [vmem:[#allocation5 + $0x888] sm:$0xff] }
 0x19f   :  { %v6522_v25 = vpop.f32.mrf.mxu1  ;;  %6776 = vmatpush1.bf16.msra.mxu0 %v10279_v11  ;;  %v6483_v26 = vpop.f32.mrf.mxu0  ;;  %6807 = vmatprep.mubr.bf16.mxu0 %v12044_v28  ;;  %v10375_v11 = vcombine.low %v532_v60, %v536_v62  ;;  %v516_v15 = vld [vmem:[#allocation5 + $0xc48] sm:$0xff] }
 0x1a0   :  { %6767 = vmatmul.mubr.bf16.vlgmr.msra.gmra.mxu1 %v12038_v20  ;;  %6777 = vmatprep.subr.bf16.mxu0 %v10272_v12  ;;  %v12129_v31 = vadd.f32 %v6522_v25, %v6482_v24  ;;  %v6484_v33 = vadd.f32 %v6483_v26, %v12124_v54  ;;  %v10391_v54 = vcombine.low %v548_v21, %v552_v23  ;;  %v520_v18 = vld [vmem:[#allocation5 + $0xc68] sm:$0xff] }
 0x1a1   :  { %6817 = vmatpush1.bf16.msra.mxu1 %v10407_v7  ;;  %v6524_v34 = vpop.f32.mrf.mxu1  ;;  %v6485_v17 = vpop.f32.mrf.mxu0  ;;  %6848 = vmatprep.mubr.bf16.mxu1 %v12049_v29  ;;  %v10240_v7 = vcombine.high %v396_v2, %v400_v3  ;;  %v10368_v12 = vcombine.high %v524_v4, %v528_v6  ;;  %v10239_v21 = vcombine.low %v396_v2, %v400_v3  ;;  %v384_v26 = vld [vmem:[#allocation5 + $0x828] sm:$0xff] }
 0x1a2   :  { %6818 = vmatprep.subr.bf16.mxu1 %v10400_v13  ;;  %v12134_v44 = vadd.f32 %v6524_v34, %v6484_v33  ;;  %v388_v13 = vld [vmem:[#allocation5 + $0x848] sm:$0xff]  ;;  %v10367_v23 = vcombine.low %v524_v4, %v528_v6  ;;  %v10360_v25 = vcombine.high %v516_v15, %v520_v18  ;;  %v10359_v34 = vcombine.low %v516_v15, %v520_v18 }
 0x1a3   :  { %v6526_v46 = vpop.f32.mrf.mxu1  ;;  %6778 = vmatpush1.bf16.msra.mxu0 %v10271_v53  ;;  %v6486_v48 = vpop.f32.mrf.mxu0  ;;  %v10232_v24 = vcombine.high %v388_v13, %v392_v14  ;;  %v380_v53 = vld [vmem:[#allocation5 + $0x808] sm:$0xff]  ;;  %v10231_v33 = vcombine.low %v388_v13, %v392_v14 }
 0x1a4   :  { %6779 = vmatprep.subr.bf16.mxu0 %v10264_v30  ;;  %v512_v30 = vld [vmem:[#allocation5 + $0xc28] sm:$0xff]  ;;  %v10223_v46 = vcombine.low %v380_v53, %v384_v26 }
 0x1a5   :  { %6819 = vmatpush1.bf16.msra.mxu1 %v10399_v27  ;;  %v6527_v51 = vpop.f32.mrf.mxu1  ;;  %v508_v27 = vld [vmem:[#allocation5 + $0xc08] sm:$0xff] }
 0x1a6   :  { %6820 = vmatprep.subr.bf16.mxu1 %v10392_v35  ;;  %v10224_v35 = vcombine.high %v380_v53, %v384_v26  ;;  %v10352_v36 = vcombine.high %v508_v27, %v512_v30  ;;  %v500_v37 = vld [vmem:[#allocation5 + $0xbc8] sm:$0xff] }
 0x1a7   :  { %6780 = vmatpush1.bf16.msra.mxu0 %v10263_v47  ;;  %v504_v17 = vld [vmem:[#allocation5 + $0xbe8] sm:$0xff]  ;;  %v10351_v47 = vcombine.low %v508_v27, %v512_v30 }
 0x1a8   :  { %6781 = vmatprep.subr.bf16.mxu0 %v10256_v49  ;;  %v628_v41 = vld [vmem:[#allocation5 + $0xfc8] sm:$0xff]  ;;  %v10344_v48 = vcombine.high %v500_v37, %v504_v17  ;;  %v10343_v57 = vcombine.low %v500_v37, %v504_v17 }
 0x1a9   :  { %6821 = vmatpush1.bf16.msra.mxu1 %v10391_v54  ;;  %v632_v43 = vld [vmem:[#allocation5 + $0xfe8] sm:$0xff] }
 0x1aa   :  { %6822 = vmatprep.subr.bf16.mxu1 %v10384_v52  ;;  %v10472_v54 = vcombine.high %v628_v41, %v632_v43  ;;  %v492_v49 = vld [vmem:[#allocation5 + $0xb88] sm:$0xff]  ;;  %v10471_v60 = vcombine.low %v628_v41, %v632_v43 }
 0x1ab   :  { %6782 = vmatpush1.bf16.msra.mxu0 %v10255_v63  ;;  %v496_v51 = vld [vmem:[#allocation5 + $0xba8] sm:$0xff] }
 0x1ac   :  { %6783 = vmatprep.subr.bf16.mxu0 %v10248_v5  ;;  %v620_v52 = vld [vmem:[#allocation5 + $0xf88] sm:$0xff]  ;;  %v10336_v62 = vcombine.high %v492_v49, %v496_v51  ;;  %v10335_v3 = vcombine.low %v492_v49, %v496_v51 }
 0x1ad   :  { %6823 = vmatpush1.bf16.msra.mxu1 %v10383_v0  ;;  %v624_v56 = vld [vmem:[#allocation5 + $0xfa8] sm:$0xff] }
 0x1ae   :  { %6824 = vmatprep.subr.bf16.mxu1 %v10376_v1  ;;  %v10464_v63 = vcombine.high %v620_v52, %v624_v56  ;;  %v484_v0 = vld [vmem:[#allocation5 + $0xb48] sm:$0xff]  ;;  %v10463_v4 = vcombine.low %v620_v52, %v624_v56 }
 0x1af   :  { %6784 = vmatpush1.bf16.msra.mxu0 %v10247_v10  ;;  %v488_v5 = vld [vmem:[#allocation5 + $0xb68] sm:$0xff] }
 0x1b0   :  { %6785 = vmatprep.subr.bf16.mxu0 %v10240_v7  ;;  %v612_v1 = vld [vmem:[#allocation5 + $0xf48] sm:$0xff]  ;;  %v10328_v6 = vcombine.high %v484_v0, %v488_v5  ;;  %v10327_v14 = vcombine.low %v484_v0, %v488_v5 }
 0x1b1   :  { %6825 = vmatpush1.bf16.msra.mxu1 %v10375_v11  ;;  %v616_v2 = vld [vmem:[#allocation5 + $0xf68] sm:$0xff] }
 0x1b2   :  { %6826 = vmatprep.subr.bf16.mxu1 %v10368_v12  ;;  %v10456_v10 = vcombine.high %v612_v1, %v616_v2  ;;  %v476_v11 = vld [vmem:[#allocation5 + $0xb08] sm:$0xff]  ;;  %v10455_v15 = vcombine.low %v612_v1, %v616_v2 }
 0x1b3   :  { %6786 = vmatpush1.bf16.msra.mxu0 %v10239_v21  ;;  %v480_v7 = vld [vmem:[#allocation5 + $0xb28] sm:$0xff] }
 0x1b4   :  { %6787 = vmatprep.subr.bf16.mxu0 %v10232_v24  ;;  %v604_v12 = vld [vmem:[#allocation5 + $0xf08] sm:$0xff]  ;;  %v10320_v18 = vcombine.high %v476_v11, %v480_v7  ;;  %v10319_v26 = vcombine.low %v476_v11, %v480_v7 }
 0x1b5   :  { %6827 = vmatpush1.bf16.msra.mxu1 %v10367_v23  ;;  %v608_v13 = vld [vmem:[#allocation5 + $0xf28] sm:$0xff] }
 0x1b6   :  { %6828 = vmatprep.subr.bf16.mxu1 %v10360_v25  ;;  %v10448_v21 = vcombine.high %v604_v12, %v608_v13  ;;  %v468_v23 = vld [vmem:[#allocation5 + $0xac8] sm:$0xff]  ;;  %v10447_v27 = vcombine.low %v604_v12, %v608_v13 }
 0x1b7   :  { %6788 = vmatpush1.bf16.msra.mxu0 %v10231_v33  ;;  %v472_v24 = vld [vmem:[#allocation5 + $0xae8] sm:$0xff] }
 0x1b8   :  { %6789 = vmatprep.subr.bf16.mxu0 %v10224_v35  ;;  %v596_v25 = vld [vmem:[#allocation5 + $0xec8] sm:$0xff]  ;;  %v10312_v30 = vcombine.high %v468_v23, %v472_v24  ;;  %v10311_v17 = vcombine.low %v468_v23, %v472_v24 }
 0x1b9   :  { %6829 = vmatpush1.bf16.msra.mxu1 %v10359_v34  ;;  %v600_v53 = vld [vmem:[#allocation5 + $0xee8] sm:$0xff] }
 0x1ba   :  { %6830 = vmatprep.subr.bf16.mxu1 %v10352_v36  ;;  %v10440_v33 = vcombine.high %v596_v25, %v600_v53  ;;  %v460_v34 = vld [vmem:[#allocation5 + $0xa88] sm:$0xff]  ;;  %v10439_v41 = vcombine.low %v596_v25, %v600_v53 }
 0x1bb   :  { %6790 = vmatpush1.bf16.msra.mxu0 %v10223_v46  ;;  %v464_v35 = vld [vmem:[#allocation5 + $0xaa8] sm:$0xff] }
 0x1bc   :  { %6791 = vmatprep.subr.bf16.mxu0 %v10344_v48  ;;  %v588_v36 = vld [vmem:[#allocation5 + $0xe88] sm:$0xff]  ;;  %v10304_v43 = vcombine.high %v460_v34, %v464_v35  ;;  %v10303_v51 = vcombine.low %v460_v34, %v464_v35 }
 0x1bd   :  { %6831 = vmatpush1.bf16.msra.mxu1 %v10351_v47  ;;  %v592_v37 = vld [vmem:[#allocation5 + $0xea8] sm:$0xff] }
 0x1be   :  { %6832 = vmatprep.subr.bf16.mxu1 %v10472_v54  ;;  %v10432_v46 = vcombine.high %v588_v36, %v592_v37  ;;  %v452_v47 = vld [vmem:[#allocation5 + $0xa48] sm:$0xff]  ;;  %v10431_v52 = vcombine.low %v588_v36, %v592_v37 }
 0x1bf   :  { %6792 = vmatpush2.bf16.msra.mxu0 %v10343_v57  ;;  %v456_v48 = vld [vmem:[#allocation5 + $0xa68] sm:$0xff] }
 0x1c0   :  { %6793 = vmatprep.subr.bf16.mxu0 %v10336_v62  ;;  %v580_v54 = vld [vmem:[#allocation5 + $0xe48] sm:$0xff]  ;;  %v10296_v56 = vcombine.high %v452_v47, %v456_v48  ;;  %v10295_v5 = vcombine.low %v452_v47, %v456_v48 }
 0x1c1   :  { %6833 = vmatpush2.bf16.msra.mxu1 %v10471_v60  ;;  %v584_v49 = vld [vmem:[#allocation5 + $0xe68] sm:$0xff] }
 0x1c2   :  { %6834 = vmatprep.subr.bf16.mxu1 %v10464_v63  ;;  %v10424_v57 = vcombine.high %v580_v54, %v584_v49  ;;  %v444_v60 = vld [vmem:[#allocation5 + $0xa08] sm:$0xff]  ;;  %v10423_v1 = vcombine.low %v580_v54, %v584_v49 }
 0x1c3   :  { %6794 = vmatpush2.bf16.msra.mxu0 %v10335_v3  ;;  %v448_v62 = vld [vmem:[#allocation5 + $0xa28] sm:$0xff] }
 0x1c4   :  { %6795 = vmatprep.subr.bf16.mxu0 %v10328_v6  ;;  %v572_v63 = vld [vmem:[#allocation5 + $0xe08] sm:$0xff]  ;;  %v10288_v2 = vcombine.high %v444_v60, %v448_v62  ;;  %v10287_v7 = vcombine.low %v444_v60, %v448_v62 }
 0x1c5   :  { %6835 = vmatpush2.bf16.msra.mxu1 %v10463_v4  ;;  %v576_v0 = vld [vmem:[#allocation5 + $0xe28] sm:$0xff] }
 0x1c6   :  { %6836 = vmatprep.subr.bf16.mxu1 %v10456_v10  ;;  %v10416_v3 = vcombine.high %v572_v63, %v576_v0  ;;  %v692_v4 = vld [vmem:[#allocation5 + $0x11c8] sm:$0xff]  ;;  %v10415_v12 = vcombine.low %v572_v63, %v576_v0 }
 0x1c7   :  { %6796 = vmatpush2.bf16.msra.mxu0 %v10327_v14  ;;  %v696_v6 = vld [vmem:[#allocation5 + $0x11e8] sm:$0xff] }
 0x1c8   :  { %6797 = vmatprep.subr.bf16.mxu0 %v10320_v18  ;;  %v820_v10 = vld [vmem:[#allocation5 + $0x15c8] sm:$0xff]  ;;  %v10536_v13 = vcombine.high %v692_v4, %v696_v6  ;;  %v10535_v24 = vcombine.low %v692_v4, %v696_v6 }
 0x1c9   :  { %6837 = vmatpush2.bf16.msra.mxu1 %v10455_v15  ;;  %v824_v11 = vld [vmem:[#allocation5 + $0x15e8] sm:$0xff] }
 0x1ca   :  { %6838 = vmatprep.subr.bf16.mxu1 %v10448_v21  ;;  %v10664_v14 = vcombine.high %v820_v10, %v824_v11  ;;  %v684_v15 = vld [vmem:[#allocation5 + $0x1188] sm:$0xff]  ;;  %v10663_v25 = vcombine.low %v820_v10, %v824_v11 }
 0x1cb   :  { %6798 = vmatpush2.bf16.msra.mxu0 %v10319_v26  ;;  %v688_v18 = vld [vmem:[#allocation5 + $0x11a8] sm:$0xff] }
 0x1cc   :  { %6799 = vmatprep.subr.bf16.mxu0 %v10312_v30  ;;  %v812_v21 = vld [vmem:[#allocation5 + $0x1588] sm:$0xff]  ;;  %v10528_v53 = vcombine.high %v684_v15, %v688_v18 }
 0x1cd   :  { %6839 = vmatpush2.bf16.msra.mxu1 %v10447_v27  ;;  %v816_v23 = vld [vmem:[#allocation5 + $0x15a8] sm:$0xff] }
 0x1ce   :  { %6840 = vmatprep.subr.bf16.mxu1 %v10440_v33  ;;  %v10656_v26 = vcombine.high %v812_v21, %v816_v23  ;;  %v676_v27 = vld [vmem:[#allocation5 + $0x1148] sm:$0xff] }
 0x1cf   :  { %6800 = vmatpush2.bf16.msra.mxu0 %v10311_v17  ;;  %v680_v30 = vld [vmem:[#allocation5 + $0x1168] sm:$0xff]  ;;  %v10527_v17 = vcombine.low %v684_v15, %v688_v18 }
 0x1d0   :  { %6801 = vmatprep.subr.bf16.mxu0 %v10304_v43  ;;  %v804_v34 = vld [vmem:[#allocation5 + $0x1548] sm:$0xff]  ;;  %v10655_v43 = vcombine.low %v812_v21, %v816_v23  ;;  %v10519_v63 = vcombine.low %v676_v27, %v680_v30 }
 0x1d1   :  { %6841 = vmatpush2.bf16.msra.mxu1 %v10439_v41  ;;  %v808_v35 = vld [vmem:[#allocation5 + $0x1568] sm:$0xff] }
 0x1d2   :  { %6842 = vmatprep.subr.bf16.mxu1 %v10432_v46  ;;  %v10520_v46 = vcombine.high %v676_v27, %v680_v30  ;;  %v10648_v49 = vcombine.high %v804_v34, %v808_v35  ;;  %v664_v4 = vld [vmem:[#allocation5 + $0x10e8] sm:$0xff] }
 0x1d3   :  { %6802 = vmatpush2.bf16.msra.mxu0 %v10303_v51  ;;  %v668_v51 = vld [vmem:[#allocation5 + $0x1108] sm:$0xff] }
 0x1d4   :  { %6803 = vmatprep.subr.bf16.mxu0 %v10296_v56  ;;  %v796_v56 = vld [vmem:[#allocation5 + $0x1508] sm:$0xff] }
 0x1d5   :  { %6843 = vmatpush2.bf16.msra.mxu1 %v10431_v52  ;;  %v672_v52 = vld [vmem:[#allocation5 + $0x1128] sm:$0xff] }
 0x1d6   :  { %6844 = vmatprep.subr.bf16.mxu1 %v10424_v57  ;;  %v800_v57 = vld [vmem:[#allocation5 + $0x1528] sm:$0xff]  ;;  %v10511_v11 = vcombine.low %v668_v51, %v672_v52 }
 0x1d7   :  { %6804 = vmatpush2.bf16.msra.mxu0 %v10295_v5  ;;  %v10512_v5 = vcombine.high %v668_v51, %v672_v52  ;;  %v788_v6 = vld [vmem:[#allocation5 + $0x14c8] sm:$0xff] }
 0x1d8   :  { %6805 = vmatprep.subr.bf16.mxu0 %v10288_v2  ;;  %v10640_v2 = vcombine.high %v796_v56, %v800_v57  ;;  %v792_v10 = vld [vmem:[#allocation5 + $0x14e8] sm:$0xff] }
 0x1d9   :  { %6845 = vmatpush2.bf16.msra.mxu1 %v10423_v1  ;;  %v656_v15 = vld [vmem:[#allocation5 + $0x10a8] sm:$0xff] }
 0x1da   :  { %6846 = vmatprep.subr.bf16.mxu1 %v10416_v3  ;;  %v660_v3 = vld [vmem:[#allocation5 + $0x10c8] sm:$0xff] }
 0x1db   :  { %6806 = vmatpush2.bf16.msra.mxu0 %v10287_v7  ;;  %v10639_v7 = vcombine.low %v796_v56, %v800_v57  ;;  %v780_v18 = vld [vmem:[#allocation5 + $0x1488] sm:$0xff]  ;;  %v10503_v23 = vcombine.low %v660_v3, %v664_v4 }
 0x1dc   :  { %6857 = vmatprep.subr.bf16.mxu0 %v10536_v13  ;;  %v10632_v13 = vcombine.high %v788_v6, %v792_v10  ;;  %v784_v21 = vld [vmem:[#allocation5 + $0x14a8] sm:$0xff] }
 0x1dd   :  { %6847 = vmatpush2.bf16.msra.mxu1 %v10415_v12  ;;  %v10504_v12 = vcombine.high %v660_v3, %v664_v4  ;;  %v648_v27 = vld [vmem:[#allocation5 + $0x1068] sm:$0xff] }
 0x1de   :  { %6898 = vmatprep.subr.bf16.mxu1 %v10664_v14  ;;  %v6563_v33 = vpop.f32.mrf.mxu0  ;;  %6808 = vmatmul.mubr.bf16.vlgmr.msra.gmra.mxu0 %v12058_v39  ;;  %v652_v14 = vld [vmem:[#allocation5 + $0x1088] sm:$0xff] }
 0x1df   :  { %v6564_v36 = vadd.f32 %v6563_v33, %v12129_v31  ;;  %6858 = vmatpush1.bf16.msra.mxu0 %v10535_v24  ;;  %6889 = vmatprep.mubr.bf16.mxu0 %v12068_v19  ;;  %v10631_v24 = vcombine.low %v788_v6, %v792_v10  ;;  %v772_v30 = vld [vmem:[#allocation5 + $0x1448] sm:$0xff] }
 0x1e0   :  { %v6604_v37 = vpop.f32.mrf.mxu1  ;;  %6849 = vmatmul.mubr.bf16.vlgmr.msra.gmra.mxu1 %v12062_v40  ;;  %v6565_v41 = vpop.f32.mrf.mxu0  ;;  %6859 = vmatprep.subr.bf16.mxu0 %v10528_v53  ;;  %v10624_v53 = vcombine.high %v780_v18, %v784_v21  ;;  %v776_v33 = vld [vmem:[#allocation5 + $0x1468] sm:$0xff] }
 0x1e1   :  { %6899 = vmatpush1.bf16.msra.mxu1 %v10663_v25  ;;  %v12139_v47 = vadd.f32 %v6604_v37, %v6564_v36  ;;  %v6566_v48 = vadd.f32 %v6565_v41, %v12134_v44  ;;  %6930 = vmatprep.mubr.bf16.mxu1 %v12073_v22  ;;  %v10647_v44 = vcombine.low %v804_v34, %v808_v35  ;;  %v640_v41 = vld [vmem:[#allocation5 + $0x1028] sm:$0xff] }
 0x1e2   :  { %v6606_v54 = vpop.f32.mrf.mxu1  ;;  %6900 = vmatprep.subr.bf16.mxu1 %v10656_v26  ;;  %v6567_v31 = vpop.f32.mrf.mxu0  ;;  %v10496_v25 = vcombine.high %v652_v14, %v656_v15  ;;  %v644_v26 = vld [vmem:[#allocation5 + $0x1048] sm:$0xff]  ;;  %v10495_v34 = vcombine.low %v652_v14, %v656_v15  ;;  %v10623_v35 = vcombine.low %v780_v18, %v784_v21  ;;  %v10616_v37 = vcombine.high %v772_v30, %v776_v33 }
 0x1e3   :  { %v12144_v60 = vadd.f32 %v6606_v54, %v6566_v48  ;;  %6860 = vmatpush1.bf16.msra.mxu0 %v10527_v17  ;;  %v10488_v36 = vcombine.high %v644_v26, %v648_v27  ;;  %v636_v17 = vld [vmem:[#allocation5 + $0x1008] sm:$0xff]  ;;  %v10487_v48 = vcombine.low %v644_v26, %v648_v27  ;;  %v10615_v54 = vcombine.low %v772_v30, %v776_v33 }
 0x1e4   :  { %v6608_v62 = vpop.f32.mrf.mxu1  ;;  %v6568_v0 = vpop.f32.mrf.mxu0  ;;  %6861 = vmatprep.subr.bf16.mxu0 %v10520_v46  ;;  %v768_v46 = vld [vmem:[#allocation5 + $0x1428] sm:$0xff] }
 0x1e5   :  { %6901 = vmatpush1.bf16.msra.mxu1 %v10655_v43  ;;  %v764_v43 = vld [vmem:[#allocation5 + $0x1408] sm:$0xff]  ;;  %v10479_v62 = vcombine.low %v636_v17, %v640_v41 }
 0x1e6   :  { %v6609_v1 = vpop.f32.mrf.mxu1  ;;  %6902 = vmatprep.subr.bf16.mxu1 %v10648_v49  ;;  %v10480_v49 = vcombine.high %v636_v17, %v640_v41  ;;  %v10608_v51 = vcombine.high %v764_v43, %v768_v46  ;;  %v756_v52 = vld [vmem:[#allocation5 + $0x13c8] sm:$0xff] }
 0x1e7   :  { %6862 = vmatpush1.bf16.msra.mxu0 %v10519_v63  ;;  %v760_v31 = vld [vmem:[#allocation5 + $0x13e8] sm:$0xff]  ;;  %v10607_v63 = vcombine.low %v764_v43, %v768_v46 }
 0x1e8   :  { %6863 = vmatprep.subr.bf16.mxu0 %v10512_v5  ;;  %v884_v56 = vld [vmem:[#allocation5 + $0x17c8] sm:$0xff]  ;;  %v10600_v0 = vcombine.high %v756_v52, %v760_v31  ;;  %v10599_v4 = vcombine.low %v756_v52, %v760_v31 }
 0x1e9   :  { %6903 = vmatpush1.bf16.msra.mxu1 %v10647_v44  ;;  %v888_v57 = vld [vmem:[#allocation5 + $0x17e8] sm:$0xff] }
 0x1ea   :  { %6904 = vmatprep.subr.bf16.mxu1 %v10640_v2  ;;  %v10728_v44 = vcombine.high %v884_v56, %v888_v57  ;;  %v748_v5 = vld [vmem:[#allocation5 + $0x1388] sm:$0xff]  ;;  %v10727_v6 = vcombine.low %v884_v56, %v888_v57 }
 0x1eb   :  { %6864 = vmatpush1.bf16.msra.mxu0 %v10511_v11  ;;  %v752_v1 = vld [vmem:[#allocation5 + $0x13a8] sm:$0xff] }
 0x1ec   :  { %6865 = vmatprep.subr.bf16.mxu0 %v10504_v12  ;;  %v876_v2 = vld [vmem:[#allocation5 + $0x1788] sm:$0xff]  ;;  %v10592_v10 = vcombine.high %v748_v5, %v752_v1  ;;  %v10591_v15 = vcombine.low %v748_v5, %v752_v1 }
 0x1ed   :  { %6905 = vmatpush1.bf16.msra.mxu1 %v10639_v7  ;;  %v880_v3 = vld [vmem:[#allocation5 + $0x17a8] sm:$0xff] }
 0x1ee   :  { %6906 = vmatprep.subr.bf16.mxu1 %v10632_v13  ;;  %v10720_v11 = vcombine.high %v876_v2, %v880_v3  ;;  %v740_v7 = vld [vmem:[#allocation5 + $0x1348] sm:$0xff]  ;;  %v10719_v18 = vcombine.low %v876_v2, %v880_v3 }
 0x1ef   :  { %6866 = vmatpush1.bf16.msra.mxu0 %v10503_v23  ;;  %v744_v12 = vld [vmem:[#allocation5 + $0x1368] sm:$0xff] }
 0x1f0   :  { %6867 = vmatprep.subr.bf16.mxu0 %v10496_v25  ;;  %v868_v13 = vld [vmem:[#allocation5 + $0x1748] sm:$0xff]  ;;  %v10584_v21 = vcombine.high %v740_v7, %v744_v12  ;;  %v10583_v27 = vcombine.low %v740_v7, %v744_v12 }
 0x1f1   :  { %6907 = vmatpush1.bf16.msra.mxu1 %v10631_v24  ;;  %v872_v14 = vld [vmem:[#allocation5 + $0x1768] sm:$0xff] }
 0x1f2   :  { %6908 = vmatprep.subr.bf16.mxu1 %v10624_v53  ;;  %v10712_v23 = vcombine.high %v868_v13, %v872_v14  ;;  %v732_v24 = vld [vmem:[#allocation5 + $0x1308] sm:$0xff]  ;;  %v10711_v30 = vcombine.low %v868_v13, %v872_v14 }
 0x1f3   :  { %6868 = vmatpush1.bf16.msra.mxu0 %v10495_v34  ;;  %v736_v25 = vld [vmem:[#allocation5 + $0x1328] sm:$0xff] }
 0x1f4   :  { %6869 = vmatprep.subr.bf16.mxu0 %v10488_v36  ;;  %v860_v53 = vld [vmem:[#allocation5 + $0x1708] sm:$0xff]  ;;  %v10576_v33 = vcombine.high %v732_v24, %v736_v25  ;;  %v10575_v41 = vcombine.low %v732_v24, %v736_v25 }
 0x1f5   :  { %6909 = vmatpush1.bf16.msra.mxu1 %v10623_v35  ;;  %v864_v26 = vld [vmem:[#allocation5 + $0x1728] sm:$0xff] }
 0x1f6   :  { %6910 = vmatprep.subr.bf16.mxu1 %v10616_v37  ;;  %v10704_v34 = vcombine.high %v860_v53, %v864_v26  ;;  %v724_v35 = vld [vmem:[#allocation5 + $0x12c8] sm:$0xff]  ;;  %v10703_v43 = vcombine.low %v860_v53, %v864_v26 }
 0x1f7   :  { %6870 = vmatpush1.bf16.msra.mxu0 %v10487_v48  ;;  %v728_v36 = vld [vmem:[#allocation5 + $0x12e8] sm:$0xff] }
 0x1f8   :  { %6871 = vmatprep.subr.bf16.mxu0 %v10480_v49  ;;  %v852_v37 = vld [vmem:[#allocation5 + $0x16c8] sm:$0xff]  ;;  %v10568_v46 = vcombine.high %v724_v35, %v728_v36  ;;  %v10567_v31 = vcombine.low %v724_v35, %v728_v36 }
 0x1f9   :  { %6911 = vmatpush1.bf16.msra.mxu1 %v10615_v54  ;;  %v856_v17 = vld [vmem:[#allocation5 + $0x16e8] sm:$0xff] }
 0x1fa   :  { %6912 = vmatprep.subr.bf16.mxu1 %v10608_v51  ;;  %v10696_v48 = vcombine.high %v852_v37, %v856_v17  ;;  %v716_v54 = vld [vmem:[#allocation5 + $0x1288] sm:$0xff]  ;;  %v10695_v56 = vcombine.low %v852_v37, %v856_v17 }
 0x1fb   :  { %6872 = vmatpush1.bf16.msra.mxu0 %v10479_v62  ;;  %v720_v49 = vld [vmem:[#allocation5 + $0x12a8] sm:$0xff] }
 0x1fc   :  { %6873 = vmatprep.subr.bf16.mxu0 %v10600_v0  ;;  %v844_v51 = vld [vmem:[#allocation5 + $0x1688] sm:$0xff]  ;;  %v10560_v57 = vcombine.high %v716_v54, %v720_v49  ;;  %v10559_v1 = vcombine.low %v716_v54, %v720_v49 }
 0x1fd   :  { %6913 = vmatpush1.bf16.msra.mxu1 %v10607_v63  ;;  %v848_v52 = vld [vmem:[#allocation5 + $0x16a8] sm:$0xff] }
 0x1fe   :  { %6914 = vmatprep.subr.bf16.mxu1 %v10728_v44  ;;  %v10688_v62 = vcombine.high %v844_v51, %v848_v52  ;;  %v708_v63 = vld [vmem:[#allocation5 + $0x1248] sm:$0xff]  ;;  %v10687_v2 = vcombine.low %v844_v51, %v848_v52 }
 0x1ff   :  { %6874 = vmatpush2.bf16.msra.mxu0 %v10599_v4  ;;  %v712_v0 = vld [vmem:[#allocation5 + $0x1268] sm:$0xff] }
 0x200   :  { %6875 = vmatprep.subr.bf16.mxu0 %v10592_v10  ;;  %v836_v44 = vld [vmem:[#allocation5 + $0x1648] sm:$0xff]  ;;  %v10552_v3 = vcombine.high %v708_v63, %v712_v0  ;;  %v10551_v12 = vcombine.low %v708_v63, %v712_v0 }
 0x201   :  { %6915 = vmatpush2.bf16.msra.mxu1 %v10727_v6  ;;  %v840_v5 = vld [vmem:[#allocation5 + $0x1668] sm:$0xff] }
 0x202   :  { %6916 = vmatprep.subr.bf16.mxu1 %v10720_v11  ;;  %v10680_v4 = vcombine.high %v836_v44, %v840_v5  ;;  %v700_v6 = vld [vmem:[#allocation5 + $0x1208] sm:$0xff]  ;;  %v10679_v13 = vcombine.low %v836_v44, %v840_v5 }
 0x203   :  { %6876 = vmatpush2.bf16.msra.mxu0 %v10591_v15  ;;  %v704_v10 = vld [vmem:[#allocation5 + $0x1228] sm:$0xff] }
 0x204   :  { %6877 = vmatprep.subr.bf16.mxu0 %v10584_v21  ;;  %v828_v11 = vld [vmem:[#allocation5 + $0x1608] sm:$0xff]  ;;  %v10544_v14 = vcombine.high %v700_v6, %v704_v10  ;;  %v10543_v25 = vcombine.low %v700_v6, %v704_v10 }
 0x205   :  { %6917 = vmatpush2.bf16.msra.mxu1 %v10719_v18  ;;  %v832_v7 = vld [vmem:[#allocation5 + $0x1628] sm:$0xff] }
 0x206   :  { %6918 = vmatprep.subr.bf16.mxu1 %v10712_v23  ;;  %v10672_v15 = vcombine.high %v828_v11, %v832_v7  ;;  %v948_v18 = vld [vmem:[#allocation5 + $0x19c8] sm:$0xff]  ;;  %v10671_v53 = vcombine.low %v828_v11, %v832_v7 }
 0x207   :  { %6878 = vmatpush2.bf16.msra.mxu0 %v10583_v27  ;;  %v952_v21 = vld [vmem:[#allocation5 + $0x19e8] sm:$0xff] }
 0x208   :  { %6879 = vmatprep.subr.bf16.mxu0 %v10576_v33  ;;  %v1076_v23 = vld [vmem:[#allocation5 + $0x1dc8] sm:$0xff]  ;;  %v10792_v26 = vcombine.high %v948_v18, %v952_v21  ;;  %v10791_v36 = vcombine.low %v948_v18, %v952_v21 }
 0x209   :  { %6919 = vmatpush2.bf16.msra.mxu1 %v10711_v30  ;;  %v1080_v24 = vld [vmem:[#allocation5 + $0x1de8] sm:$0xff] }
 0x20a   :  { %6920 = vmatprep.subr.bf16.mxu1 %v10704_v34  ;;  %v10920_v27 = vcombine.high %v1076_v23, %v1080_v24  ;;  %v940_v30 = vld [vmem:[#allocation5 + $0x1988] sm:$0xff]  ;;  %v10919_v37 = vcombine.low %v1076_v23, %v1080_v24 }
 0x20b   :  { %6880 = vmatpush2.bf16.msra.mxu0 %v10575_v41  ;;  %v944_v33 = vld [vmem:[#allocation5 + $0x19a8] sm:$0xff] }
 0x20c   :  { %6881 = vmatprep.subr.bf16.mxu0 %v10568_v46  ;;  %v1068_v34 = vld [vmem:[#allocation5 + $0x1d88] sm:$0xff]  ;;  %v10784_v17 = vcombine.high %v940_v30, %v944_v33 }
 0x20d   :  { %6921 = vmatpush2.bf16.msra.mxu1 %v10703_v43  ;;  %v1072_v35 = vld [vmem:[#allocation5 + $0x1da8] sm:$0xff] }
 0x20e   :  { %6922 = vmatprep.subr.bf16.mxu1 %v10696_v48  ;;  %v10912_v41 = vcombine.high %v1068_v34, %v1072_v35  ;;  %v932_v43 = vld [vmem:[#allocation5 + $0x1948] sm:$0xff] }
 0x20f   :  { %6882 = vmatpush2.bf16.msra.mxu0 %v10567_v31  ;;  %v936_v46 = vld [vmem:[#allocation5 + $0x1968] sm:$0xff]  ;;  %v10783_v31 = vcombine.low %v940_v30, %v944_v33 }
 0x210   :  { %6883 = vmatprep.subr.bf16.mxu0 %v10560_v57  ;;  %v1060_v54 = vld [vmem:[#allocation5 + $0x1d48] sm:$0xff]  ;;  %v10911_v57 = vcombine.low %v1068_v34, %v1072_v35  ;;  %v10775_v11 = vcombine.low %v932_v43, %v936_v46 }
 0x211   :  { %6923 = vmatpush2.bf16.msra.mxu1 %v10695_v56  ;;  %v1064_v49 = vld [vmem:[#allocation5 + $0x1d68] sm:$0xff] }
 0x212   :  { %6924 = vmatprep.subr.bf16.mxu1 %v10688_v62  ;;  %v10776_v62 = vcombine.high %v932_v43, %v936_v46  ;;  %v10904_v5 = vcombine.high %v1060_v54, %v1064_v49  ;;  %v920_v18 = vld [vmem:[#allocation5 + $0x18e8] sm:$0xff] }
 0x213   :  { %6884 = vmatpush2.bf16.msra.mxu0 %v10559_v1  ;;  %v924_v1 = vld [vmem:[#allocation5 + $0x1908] sm:$0xff] }
 0x214   :  { %6885 = vmatprep.subr.bf16.mxu0 %v10552_v3  ;;  %v1052_v3 = vld [vmem:[#allocation5 + $0x1d08] sm:$0xff] }
 0x215   :  { %6925 = vmatpush2.bf16.msra.mxu1 %v10687_v2  ;;  %v928_v2 = vld [vmem:[#allocation5 + $0x1928] sm:$0xff] }
 0x216   :  { %6926 = vmatprep.subr.bf16.mxu1 %v10680_v4  ;;  %v1056_v4 = vld [vmem:[#allocation5 + $0x1d28] sm:$0xff]  ;;  %v10767_v24 = vcombine.low %v924_v1, %v928_v2 }
 0x217   :  { %6886 = vmatpush2.bf16.msra.mxu0 %v10551_v12  ;;  %v10768_v12 = vcombine.high %v924_v1, %v928_v2  ;;  %v1044_v21 = vld [vmem:[#allocation5 + $0x1cc8] sm:$0xff] }
 0x218   :  { %6887 = vmatprep.subr.bf16.mxu0 %v10544_v14  ;;  %v10896_v14 = vcombine.high %v1052_v3, %v1056_v4  ;;  %v1048_v23 = vld [vmem:[#allocation5 + $0x1ce8] sm:$0xff] }
 0x219   :  { %6927 = vmatpush2.bf16.msra.mxu1 %v10679_v13  ;;  %v912_v30 = vld [vmem:[#allocation5 + $0x18a8] sm:$0xff] }
 0x21a   :  { %6928 = vmatprep.subr.bf16.mxu1 %v10672_v15  ;;  %v916_v15 = vld [vmem:[#allocation5 + $0x18c8] sm:$0xff] }
 0x21b   :  { %6888 = vmatpush2.bf16.msra.mxu0 %v10543_v25  ;;  %v10895_v25 = vcombine.low %v1052_v3, %v1056_v4  ;;  %v1036_v33 = vld [vmem:[#allocation5 + $0x1c88] sm:$0xff]  ;;  %v10759_v35 = vcombine.low %v916_v15, %v920_v18 }
 0x21c   :  { %6939 = vmatprep.subr.bf16.mxu0 %v10792_v26  ;;  %v10888_v26 = vcombine.high %v1044_v21, %v1048_v23  ;;  %v1040_v34 = vld [vmem:[#allocation5 + $0x1ca8] sm:$0xff] }
 0x21d   :  { %6929 = vmatpush2.bf16.msra.mxu1 %v10671_v53  ;;  %v10760_v53 = vcombine.high %v916_v15, %v920_v18  ;;  %v904_v43 = vld [vmem:[#allocation5 + $0x1868] sm:$0xff] }
 0x21e   :  { %6980 = vmatprep.subr.bf16.mxu1 %v10920_v27  ;;  %v6645_v48 = vpop.f32.mrf.mxu0  ;;  %6890 = vmatmul.mubr.bf16.vlgmr.msra.gmra.mxu0 %v12084_v8  ;;  %v908_v27 = vld [vmem:[#allocation5 + $0x1888] sm:$0xff] }
 0x21f   :  { %v6646_v51 = vadd.f32 %v6645_v48, %v12139_v47  ;;  %6940 = vmatpush1.bf16.msra.mxu0 %v10791_v36  ;;  %6971 = vmatprep.mubr.bf16.mxu0 %v12092_v38  ;;  %v10887_v36 = vcombine.low %v1044_v21, %v1048_v23  ;;  %v1028_v46 = vld [vmem:[#allocation5 + $0x1c48] sm:$0xff] }
 0x220   :  { %v6686_v52 = vpop.f32.mrf.mxu1  ;;  %6931 = vmatmul.mubr.bf16.vlgmr.msra.gmra.mxu1 %v12088_v9  ;;  %v6647_v56 = vpop.f32.mrf.mxu0  ;;  %6941 = vmatprep.subr.bf16.mxu0 %v10784_v17  ;;  %v10880_v17 = vcombine.high %v1036_v33, %v1040_v34  ;;  %v1032_v48 = vld [vmem:[#allocation5 + $0x1c68] sm:$0xff] }
 0x221   :  { %6981 = vmatpush1.bf16.msra.mxu1 %v10919_v37  ;;  %v12149_v63 = vadd.f32 %v6686_v52, %v6646_v51  ;;  %v6648_v0 = vadd.f32 %v6647_v56, %v12144_v60  ;;  %7012 = vmatprep.mubr.bf16.mxu1 %v12097_v42  ;;  %v10903_v60 = vcombine.low %v1060_v54, %v1064_v49  ;;  %v896_v56 = vld [vmem:[#allocation5 + $0x1828] sm:$0xff] }
 0x222   :  { %v6688_v44 = vpop.f32.mrf.mxu1  ;;  %6982 = vmatprep.subr.bf16.mxu1 %v10912_v41  ;;  %v6649_v47 = vpop.f32.mrf.mxu0  ;;  %v10752_v37 = vcombine.high %v908_v27, %v912_v30  ;;  %v900_v41 = vld [vmem:[#allocation5 + $0x1848] sm:$0xff]  ;;  %v10751_v54 = vcombine.low %v908_v27, %v912_v30  ;;  %v10879_v49 = vcombine.low %v1036_v33, %v1040_v34  ;;  %v10872_v52 = vcombine.high %v1028_v46, %v1032_v48 }
 0x223   :  { %v12154_v6 = vadd.f32 %v6688_v44, %v6648_v0  ;;  %6942 = vmatpush1.bf16.msra.mxu0 %v10783_v31  ;;  %v10744_v51 = vcombine.high %v900_v41, %v904_v43  ;;  %v892_v31 = vld [vmem:[#allocation5 + $0x1808] sm:$0xff]  ;;  %v10743_v0 = vcombine.low %v900_v41, %v904_v43  ;;  %v10871_v44 = vcombine.low %v1028_v46, %v1032_v48 }
 0x224   :  { %v6690_v10 = vpop.f32.mrf.mxu1  ;;  %v6650_v7 = vpop.f32.mrf.mxu0  ;;  %6943 = vmatprep.subr.bf16.mxu0 %v10776_v62  ;;  %v1024_v62 = vld [vmem:[#allocation5 + $0x1c28] sm:$0xff] }
 0x225   :  { %6983 = vmatpush1.bf16.msra.mxu1 %v10911_v57  ;;  %v1020_v57 = vld [vmem:[#allocation5 + $0x1c08] sm:$0xff]  ;;  %v10735_v10 = vcombine.low %v892_v31, %v896_v56 }
 0x226   :  { %v6691_v13 = vpop.f32.mrf.mxu1  ;;  %6984 = vmatprep.subr.bf16.mxu1 %v10904_v5  ;;  %v10736_v5 = vcombine.high %v892_v31, %v896_v56  ;;  %v10864_v1 = vcombine.high %v1020_v57, %v1024_v62  ;;  %v1012_v2 = vld [vmem:[#allocation5 + $0x1bc8] sm:$0xff] }
 0x227   :  { %6944 = vmatpush1.bf16.msra.mxu0 %v10775_v11  ;;  %v1016_v47 = vld [vmem:[#allocation5 + $0x1be8] sm:$0xff]  ;;  %v10863_v11 = vcombine.low %v1020_v57, %v1024_v62 }
 0x228   :  { %6945 = vmatprep.subr.bf16.mxu0 %v10768_v12  ;;  %v1140_v3 = vld [vmem:[#allocation5 + $0x1fc8] sm:$0xff]  ;;  %v10856_v7 = vcombine.high %v1012_v2, %v1016_v47  ;;  %v10855_v18 = vcombine.low %v1012_v2, %v1016_v47 }
 0x229   :  { %6985 = vmatpush1.bf16.msra.mxu1 %v10903_v60  ;;  %v1144_v4 = vld [vmem:[#allocation5 + $0x1fe8] sm:$0xff] }
 0x22a   :  { %6986 = vmatprep.subr.bf16.mxu1 %v10896_v14  ;;  %v10984_v60 = vcombine.high %v1140_v3, %v1144_v4  ;;  %v1004_v12 = vld [vmem:[#allocation5 + $0x1b88] sm:$0xff]  ;;  %v10983_v21 = vcombine.low %v1140_v3, %v1144_v4 }
 0x22b   :  { %6946 = vmatpush1.bf16.msra.mxu0 %v10767_v24  ;;  %v1008_v13 = vld [vmem:[#allocation5 + $0x1ba8] sm:$0xff] }
 0x22c   :  { %6947 = vmatprep.subr.bf16.mxu0 %v10760_v53  ;;  %v1132_v14 = vld [vmem:[#allocation5 + $0x1f88] sm:$0xff]  ;;  %v10848_v23 = vcombine.high %v1004_v12, %v1008_v13  ;;  %v10847_v30 = vcombine.low %v1004_v12, %v1008_v13 }
 0x22d   :  { %6987 = vmatpush1.bf16.msra.mxu1 %v10895_v25  ;;  %v1136_v15 = vld [vmem:[#allocation5 + $0x1fa8] sm:$0xff] }
 0x22e   :  { %6988 = vmatprep.subr.bf16.mxu1 %v10888_v26  ;;  %v10976_v24 = vcombine.high %v1132_v14, %v1136_v15  ;;  %v996_v25 = vld [vmem:[#allocation5 + $0x1b48] sm:$0xff]  ;;  %v10975_v33 = vcombine.low %v1132_v14, %v1136_v15 }
 0x22f   :  { %6948 = vmatpush1.bf16.msra.mxu0 %v10759_v35  ;;  %v1000_v53 = vld [vmem:[#allocation5 + $0x1b68] sm:$0xff] }
 0x230   :  { %6949 = vmatprep.subr.bf16.mxu0 %v10752_v37  ;;  %v1124_v26 = vld [vmem:[#allocation5 + $0x1f48] sm:$0xff]  ;;  %v10840_v34 = vcombine.high %v996_v25, %v1000_v53  ;;  %v10839_v43 = vcombine.low %v996_v25, %v1000_v53 }
 0x231   :  { %6989 = vmatpush1.bf16.msra.mxu1 %v10887_v36  ;;  %v1128_v27 = vld [vmem:[#allocation5 + $0x1f68] sm:$0xff] }
 0x232   :  { %6990 = vmatprep.subr.bf16.mxu1 %v10880_v17  ;;  %v10968_v35 = vcombine.high %v1124_v26, %v1128_v27  ;;  %v988_v36 = vld [vmem:[#allocation5 + $0x1b08] sm:$0xff]  ;;  %v10967_v46 = vcombine.low %v1124_v26, %v1128_v27 }
 0x233   :  { %6950 = vmatpush1.bf16.msra.mxu0 %v10751_v54  ;;  %v992_v37 = vld [vmem:[#allocation5 + $0x1b28] sm:$0xff] }
 0x234   :  { %6951 = vmatprep.subr.bf16.mxu0 %v10744_v51  ;;  %v1116_v17 = vld [vmem:[#allocation5 + $0x1f08] sm:$0xff]  ;;  %v10832_v48 = vcombine.high %v988_v36, %v992_v37  ;;  %v10831_v56 = vcombine.low %v988_v36, %v992_v37  ;;  %v313_v36 = vld [vmem:[#allocation5 + $0x5f0] sm:$0xff] }
 0x235   :  { %6991 = vmatpush1.bf16.msra.mxu1 %v10879_v49  ;;  %v1120_v41 = vld [vmem:[#allocation5 + $0x1f28] sm:$0xff] }
 0x236   :  { %6992 = vmatprep.subr.bf16.mxu1 %v10872_v52  ;;  %v10960_v54 = vcombine.high %v1116_v17, %v1120_v41  ;;  %v980_v49 = vld [vmem:[#allocation5 + $0x1ac8] sm:$0xff]  ;;  %v10959_v57 = vcombine.low %v1116_v17, %v1120_v41  ;;  %v1159_v17 = vsub.s32 2, %v12102_v32 }
 0x237   :  { %6952 = vmatpush1.bf16.msra.mxu0 %v10743_v0  ;;  %v984_v51 = vld [vmem:[#allocation5 + $0x1ae8] sm:$0xff] }
 0x238   :  { %6953 = vmatprep.subr.bf16.mxu0 %v10736_v5  ;;  %v1108_v52 = vld [vmem:[#allocation5 + $0x1ec8] sm:$0xff]  ;;  %v10824_v62 = vcombine.high %v980_v49, %v984_v51  ;;  %v10823_v47 = vcombine.low %v980_v49, %v984_v51  ;;  %v177_v49 = vld [vmem:[#allocation5 + $0x1b0] sm:$0xff] }
 0x239   :  { %6993 = vmatpush1.bf16.msra.mxu1 %v10871_v44  ;;  %v1112_v31 = vld [vmem:[#allocation5 + $0x1ee8] sm:$0xff]  ;;  %v301_v51 = vld [vmem:[#allocation5 + $0x590] sm:$0xff] }
 0x23a   :  { %6994 = vmatprep.subr.bf16.mxu1 %v10864_v1  ;;  %v10952_v0 = vcombine.high %v1108_v52, %v1112_v31  ;;  %v972_v44 = vld [vmem:[#allocation5 + $0x1a88] sm:$0xff]  ;;  %v10951_v3 = vcombine.low %v1108_v52, %v1112_v31  ;;  %v305_v52 = vld [vmem:[#allocation5 + $0x5b0] sm:$0xff]  ;;  %v11768_v31 = vld [vmem:[#allocation7] sm:$0xff] }
 0x23b   :  { %6954 = vmatpush1.bf16.msra.mxu0 %v10735_v10  ;;  %v976_v5 = vld [vmem:[#allocation5 + $0x1aa8] sm:$0xff] }
 0x23c   :  { %6955 = vmatprep.subr.bf16.mxu0 %v10856_v7  ;;  %v1100_v1 = vld [vmem:[#allocation5 + $0x1e88] sm:$0xff]  ;;  %v10816_v4 = vcombine.high %v972_v44, %v976_v5  ;;  %v10815_v13 = vcombine.low %v972_v44, %v976_v5  ;;  %v10146_v5 = vcombine.high %v301_v51, %v305_v52 }
 0x23d   :  { %6995 = vmatpush1.bf16.msra.mxu1 %v10863_v11  ;;  %v1104_v2 = vld [vmem:[#allocation5 + $0x1ea8] sm:$0xff] }
 0x23e   :  { %6996 = vmatprep.subr.bf16.mxu1 %v10984_v60  ;;  %v10944_v10 = vcombine.high %v1100_v1, %v1104_v2  ;;  %v964_v11 = vld [vmem:[#allocation5 + $0x1a48] sm:$0xff]  ;;  %v10943_v14 = vcombine.low %v1100_v1, %v1104_v2  ;;  %v165_v1 = vld [vmem:[#allocation5 + $0x150] sm:$0xff] }
 0x23f   :  { %6956 = vmatpush2.bf16.msra.mxu0 %v10855_v18  ;;  %v968_v7 = vld [vmem:[#allocation5 + $0x1a68] sm:$0xff]  ;;  %v169_v2 = vld [vmem:[#allocation5 + $0x170] sm:$0xff] }
 0x240   :  { %6957 = vmatprep.subr.bf16.mxu0 %v10848_v23  ;;  %v1092_v60 = vld [vmem:[#allocation5 + $0x1e48] sm:$0xff]  ;;  %v10808_v15 = vcombine.high %v964_v11, %v968_v7  ;;  %v10807_v53 = vcombine.low %v964_v11, %v968_v7 }
 0x241   :  { %6997 = vmatpush2.bf16.msra.mxu1 %v10983_v21  ;;  %v1096_v12 = vld [vmem:[#allocation5 + $0x1e68] sm:$0xff] }
 0x242   :  { %6998 = vmatprep.subr.bf16.mxu1 %v10976_v24  ;;  %v10936_v18 = vcombine.high %v1092_v60, %v1096_v12  ;;  %v956_v21 = vld [vmem:[#allocation5 + $0x1a08] sm:$0xff]  ;;  %v10935_v26 = vcombine.low %v1092_v60, %v1096_v12  ;;  %v10145_v12 = vcombine.low %v301_v51, %v305_v52 }
 0x243   :  { %6958 = vmatpush2.bf16.msra.mxu0 %v10847_v30  ;;  %v960_v23 = vld [vmem:[#allocation5 + $0x1a28] sm:$0xff] }
 0x244   :  { %6959 = vmatprep.subr.bf16.mxu0 %v10840_v34  ;;  %v1084_v24 = vld [vmem:[#allocation5 + $0x1e08] sm:$0xff]  ;;  %v10800_v27 = vcombine.high %v956_v21, %v960_v23  ;;  %v185_v34 = vld [vmem:[#allocation5 + $0x1f0] sm:$0xff]  ;;  %v10799_v37 = vcombine.low %v956_v21, %v960_v23 }
 0x245   :  { %6999 = vmatpush2.bf16.msra.mxu1 %v10975_v33  ;;  %v1088_v25 = vld [vmem:[#allocation5 + $0x1e28] sm:$0xff]  ;;  %v181_v33 = vld [vmem:[#allocation5 + $0x1d0] sm:$0xff] }
 0x246   :  { %7000 = vmatprep.subr.bf16.mxu1 %v10968_v35  ;;  %v10928_v30 = vcombine.high %v1084_v24, %v1088_v25  ;;  %v309_v35 = vld [vmem:[#allocation5 + $0x5d0] sm:$0xff]  ;;  %v10927_v41 = vcombine.low %v1084_v24, %v1088_v25 }
 0x247   :  { %6960 = vmatpush2.bf16.msra.mxu0 %v10839_v43  ;;  %v10026_v43 = vcombine.high %v181_v33, %v185_v34  ;;  %v157_v23 = vld [vmem:[#allocation5 + $0x110] sm:$0xff] }
 0x248   :  { %6961 = vmatprep.subr.bf16.mxu0 %v10832_v48  ;;  %v1163_v48 = vsub.s32 3, %v12102_v32  ;;  %v161_v24 = vld [vmem:[#allocation5 + $0x130] sm:$0xff] }
 0x249   :  { %7001 = vmatpush2.bf16.msra.mxu1 %v10967_v46  ;;  %v10154_v46 = vcombine.high %v309_v35, %v313_v36  ;;  %v10001_v51 = vcombine.low %v157_v23, %v161_v24 }
 0x24a   :  { %7002 = vmatprep.subr.bf16.mxu1 %v10960_v54  ;;  %v173_v54 = vld [vmem:[#allocation5 + $0x190] sm:$0xff]  ;;  %v1164_v44 = vrot.slane %v11768_v31, %v1163_v48 }
 0x24b   :  { %6962 = vmatpush2.bf16.msra.mxu0 %v10831_v56  ;;  %v1160_v56 = vrot.slane %v11768_v31, %v1159_v17  ;;  %v10017_v7 = vcombine.low %v173_v54, %v177_v49 }
 0x24c   :  { %6963 = vmatprep.subr.bf16.mxu0 %v10824_v62  ;;  %v10153_v62 = vcombine.low %v309_v35, %v313_v36  ;;  %v10002_v36 = vcombine.high %v157_v23, %v161_v24  ;;  %v257_v23 = vld [vmem:[#allocation5 + $0x430] sm:$0xff] }
 0x24d   :  { %7003 = vmatpush2.bf16.msra.mxu1 %v10959_v57  ;;  %v10025_v57 = vcombine.low %v181_v33, %v185_v34  ;;  %v10009_v33 = vcombine.low %v165_v1, %v169_v2 }
 0x24e   :  { %7004 = vmatprep.subr.bf16.mxu1 %v10952_v0  ;;  %v10018_v0 = vcombine.high %v173_v54, %v177_v49  ;;  %v277_v54 = vld [vmem:[#allocation5 + $0x4d0] sm:$0xff] }
 0x24f   :  { %6964 = vmatpush2.bf16.msra.mxu0 %v10823_v47  ;;  %v281_v49 = vld [vmem:[#allocation5 + $0x4f0] sm:$0xff] }
 0x250   :  { %6965 = vmatprep.subr.bf16.mxu0 %v10816_v4  ;;  %v297_v4 = vld [vmem:[#allocation5 + $0x570] sm:$0xff] }
 0x251   :  { %7005 = vmatpush2.bf16.msra.mxu1 %v10951_v3  ;;  %v293_v3 = vld [vmem:[#allocation5 + $0x550] sm:$0xff] }
 0x252   :  { %7006 = vmatprep.subr.bf16.mxu1 %v10944_v10  ;;  %v10138_v21 = vcombine.high %v293_v3, %v297_v4  ;;  %v10137_v35 = vcombine.low %v293_v3, %v297_v4  ;;  %v133_v3 = vld [vmem:[#allocation5 + $0x50] sm:$0xff] }
 0x253   :  { %6966 = vmatpush2.bf16.msra.mxu0 %v10815_v13  ;;  %v10010_v13 = vcombine.high %v165_v1, %v169_v2  ;;  %v10121_v1 = vcombine.low %v277_v54, %v281_v49  ;;  %v137_v4 = vld [vmem:[#allocation5 + $0x70] sm:$0xff] }
 0x254   :  { %6967 = vmatprep.subr.bf16.mxu0 %v10808_v15  ;;  %v9977_v24 = vcombine.low %v133_v3, %v137_v4 }
 0x255   :  { %7007 = vmatpush2.bf16.msra.mxu1 %v10943_v14 }
 0x256   :  { %7008 = vmatprep.subr.bf16.mxu1 %v10936_v18 }
 0x257   :  { %6968 = vmatpush2.bf16.msra.mxu0 %v10807_v53  ;;  %v285_v53 = vld [vmem:[#allocation5 + $0x510] sm:$0xff] }
 0x258   :  { %6969 = vmatprep.subr.bf16.mxu0 %v10800_v27 }
 0x259   :  { %7009 = vmatpush2.bf16.msra.mxu1 %v10935_v26  ;;  %v289_v26 = vld [vmem:[#allocation5 + $0x530] sm:$0xff] }
 0x25a   :  { %7010 = vmatprep.subr.bf16.mxu1 %v10928_v30  ;;  %v10129_v52 = vcombine.low %v285_v53, %v289_v26 }
 0x25b   :  { %6970 = vmatpush2.bf16.msra.mxu0 %v10799_v37 }
 0x25c   :  { %7021 = vmatprep.subr.bf16.mxu0 %v10026_v43  ;;  %v149_v43 = vld [vmem:[#allocation5 + $0xd0] sm:$0xff] }
 0x25d   :  { %7011 = vmatpush2.bf16.msra.mxu1 %v10927_v41  ;;  %v10130_v41 = vcombine.high %v285_v53, %v289_v26 }
 0x25e   :  { %7062 = vmatprep.subr.bf16.mxu1 %v10154_v46  ;;  %v6727_v47 = vpop.f32.mrf.mxu0  ;;  %6972 = vmatmul.mubr.bf16.vlgmr.msra.gmra.mxu0 %v12108_v55  ;;  %v153_v46 = vld [vmem:[#allocation5 + $0xf0] sm:$0xff] }
 0x25f   :  { %v6728_v10 = vadd.f32 %v6727_v47, %v1160_v56  ;;  %7022 = vmatpush1.bf16.msra.mxu0 %v10025_v57  ;;  %7053 = vmatprep.mubr.bf16.mxu0 %v12022_v58  ;;  %v9994_v31 = vcombine.high %v149_v43, %v153_v46  ;;  %v10122_v56 = vcombine.high %v277_v54, %v281_v49  ;;  %v141_v57 = vld [vmem:[#allocation5 + $0x90] sm:$0xff] }
 0x260   :  { %v6768_v11 = vpop.f32.mrf.mxu1  ;;  %7013 = vmatmul.mubr.bf16.vlgmr.msra.gmra.mxu1 %v12114_v61  ;;  %v6729_v60 = vpop.f32.mrf.mxu0  ;;  %7023 = vmatprep.subr.bf16.mxu0 %v10018_v0  ;;  %v269_v0 = vld [vmem:[#allocation5 + $0x490] sm:$0xff] }
 0x261   :  { %7063 = vmatpush1.bf16.msra.mxu1 %v10153_v62  ;;  %v12164_v14 = vadd.f32 %v6768_v11, %v6728_v10  ;;  %v6730_v15 = vadd.f32 %v6729_v60, %v1164_v44  ;;  %7094 = vmatprep.mubr.bf16.mxu1 %v12026_v59  ;;  %v145_v62 = vld [vmem:[#allocation5 + $0xb0] sm:$0xff] }
 0x262   :  { %v6770_v18 = vpop.f32.mrf.mxu1  ;;  %7064 = vmatprep.subr.bf16.mxu1 %v10146_v5  ;;  %v6731_v25 = vpop.f32.mrf.mxu0  ;;  %v273_v44 = vld [vmem:[#allocation5 + $0x4b0] sm:$0xff]  ;;  %v9993_v5 = vcombine.low %v149_v43, %v153_v46  ;;  %v9986_v2 = vcombine.high %v141_v57, %v145_v62 }
 0x263   :  { %v12168_v27 = vadd.f32 %v6770_v18, %v6730_v15  ;;  %7024 = vmatpush1.bf16.msra.mxu0 %v10017_v7  ;;  %v10114_v47 = vcombine.high %v269_v0, %v273_v44  ;;  %v261_v10 = vld [vmem:[#allocation5 + $0x450] sm:$0xff]  ;;  %v9985_v7 = vcombine.low %v141_v57, %v145_v62  ;;  %v10113_v60 = vcombine.low %v269_v0, %v273_v44 }
 0x264   :  { %v6772_v30 = vpop.f32.mrf.mxu1  ;;  %v6732_v34 = vpop.f32.mrf.mxu0  ;;  %7025 = vmatprep.subr.bf16.mxu0 %v10010_v13  ;;  %v265_v11 = vld [vmem:[#allocation5 + $0x470] sm:$0xff] }
 0x265   :  { %7065 = vmatpush1.bf16.msra.mxu1 %v10145_v12  ;;  %v9978_v12 = vcombine.high %v133_v3, %v137_v4  ;;  %v10106_v13 = vcombine.high %v261_v10, %v265_v11  ;;  %v125_v15 = vld [vmem:[#allocation5 + $0x10] sm:$0xff]  ;;  %v10105_v25 = vcombine.low %v261_v10, %v265_v11 }
 0x266   :  { %v6773_v37 = vpop.f32.mrf.mxu1  ;;  %7066 = vmatprep.subr.bf16.mxu1 %v10138_v21  ;;  %v129_v18 = vld [vmem:[#allocation5 + $0x30] sm:$0xff] }
 0x267   :  { %7026 = vmatpush1.bf16.msra.mxu0 %v10009_v33  ;;  %v253_v21 = vld [vmem:[#allocation5 + $0x410] sm:$0xff]  ;;  %v9970_v53 = vcombine.high %v125_v15, %v129_v18 }
 0x268   :  { %7027 = vmatprep.subr.bf16.mxu0 %v10002_v36  ;;  %v10098_v26 = vcombine.high %v253_v21, %v257_v23  ;;  %v245_v30 = vld [vmem:[#allocation5 + $0x3d0] sm:$0xff]  ;;  %v9969_v36 = vcombine.low %v125_v15, %v129_v18  ;;  %v10097_v37 = vcombine.low %v253_v21, %v257_v23 }
 0x269   :  { %7067 = vmatpush1.bf16.msra.mxu1 %v10137_v35  ;;  %v249_v33 = vld [vmem:[#allocation5 + $0x3f0] sm:$0xff] }
 0x26a   :  { %7068 = vmatprep.subr.bf16.mxu1 %v10130_v41  ;;  %v373_v34 = vld [vmem:[#allocation5 + $0x7d0] sm:$0xff]  ;;  %v10090_v41 = vcombine.high %v245_v30, %v249_v33 }
 0x26b   :  { %7028 = vmatpush1.bf16.msra.mxu0 %v10001_v51  ;;  %v377_v35 = vld [vmem:[#allocation5 + $0x7f0] sm:$0xff] }
 0x26c   :  { %7029 = vmatprep.subr.bf16.mxu0 %v9994_v31  ;;  %v10218_v43 = vcombine.high %v373_v34, %v377_v35  ;;  %v237_v46 = vld [vmem:[#allocation5 + $0x390] sm:$0xff]  ;;  %v10217_v31 = vcombine.low %v373_v34, %v377_v35 }
 0x26d   :  { %7069 = vmatpush1.bf16.msra.mxu1 %v10129_v52  ;;  %v241_v54 = vld [vmem:[#allocation5 + $0x3b0] sm:$0xff]  ;;  %v10089_v52 = vcombine.low %v245_v30, %v249_v33 }
 0x26e   :  { %7070 = vmatprep.subr.bf16.mxu1 %v10122_v56  ;;  %v365_v49 = vld [vmem:[#allocation5 + $0x790] sm:$0xff]  ;;  %v10082_v56 = vcombine.high %v237_v46, %v241_v54 }
 0x26f   :  { %7030 = vmatpush1.bf16.msra.mxu0 %v9993_v5  ;;  %v369_v51 = vld [vmem:[#allocation5 + $0x7b0] sm:$0xff] }
 0x270   :  { %7031 = vmatprep.subr.bf16.mxu0 %v9986_v2  ;;  %v10210_v57 = vcombine.high %v365_v49, %v369_v51  ;;  %v229_v62 = vld [vmem:[#allocation5 + $0x350] sm:$0xff]  ;;  %v10209_v2 = vcombine.low %v365_v49, %v369_v51 }
 0x271   :  { %7071 = vmatpush1.bf16.msra.mxu1 %v10121_v1  ;;  %v233_v0 = vld [vmem:[#allocation5 + $0x370] sm:$0xff]  ;;  %v10081_v1 = vcombine.low %v237_v46, %v241_v54 }
 0x272   :  { %7072 = vmatprep.subr.bf16.mxu1 %v10114_v47  ;;  %v357_v44 = vld [vmem:[#allocation5 + $0x750] sm:$0xff]  ;;  %v10074_v47 = vcombine.high %v229_v62, %v233_v0 }
 0x273   :  { %7032 = vmatpush1.bf16.msra.mxu0 %v9985_v7  ;;  %v361_v5 = vld [vmem:[#allocation5 + $0x770] sm:$0xff] }
 0x274   :  { %7033 = vmatprep.subr.bf16.mxu0 %v9978_v12  ;;  %v10202_v3 = vcombine.high %v357_v44, %v361_v5  ;;  %v221_v4 = vld [vmem:[#allocation5 + $0x310] sm:$0xff]  ;;  %v10201_v12 = vcombine.low %v357_v44, %v361_v5 }
 0x275   :  { %7073 = vmatpush1.bf16.msra.mxu1 %v10113_v60  ;;  %v225_v10 = vld [vmem:[#allocation5 + $0x330] sm:$0xff]  ;;  %v10073_v60 = vcombine.low %v229_v62, %v233_v0 }
 0x276   :  { %7074 = vmatprep.subr.bf16.mxu1 %v10106_v13  ;;  %v349_v11 = vld [vmem:[#allocation5 + $0x710] sm:$0xff]  ;;  %v10066_v13 = vcombine.high %v221_v4, %v225_v10 }
 0x277   :  { %7034 = vmatpush1.bf16.msra.mxu0 %v9977_v24  ;;  %v353_v7 = vld [vmem:[#allocation5 + $0x730] sm:$0xff] }
 0x278   :  { %7035 = vmatprep.subr.bf16.mxu0 %v9970_v53  ;;  %v10194_v15 = vcombine.high %v349_v11, %v353_v7  ;;  %v213_v18 = vld [vmem:[#allocation5 + $0x2d0] sm:$0xff]  ;;  %v10193_v53 = vcombine.low %v349_v11, %v353_v7 }
 0x279   :  { %7075 = vmatpush1.bf16.msra.mxu1 %v10105_v25  ;;  %v217_v21 = vld [vmem:[#allocation5 + $0x2f0] sm:$0xff]  ;;  %v10065_v25 = vcombine.low %v221_v4, %v225_v10 }
 0x27a   :  { %7076 = vmatprep.subr.bf16.mxu1 %v10098_v26  ;;  %v341_v23 = vld [vmem:[#allocation5 + $0x6d0] sm:$0xff]  ;;  %v10058_v26 = vcombine.high %v213_v18, %v217_v21 }
 0x27b   :  { %7036 = vmatpush1.bf16.msra.mxu0 %v9969_v36  ;;  %v345_v24 = vld [vmem:[#allocation5 + $0x6f0] sm:$0xff] }
 0x27c   :  { %7037 = vmatprep.subr.bf16.mxu0 %v10090_v41  ;;  %v10186_v30 = vcombine.high %v341_v23, %v345_v24  ;;  %v205_v33 = vld [vmem:[#allocation5 + $0x290] sm:$0xff]  ;;  %v10185_v41 = vcombine.low %v341_v23, %v345_v24 }
 0x27d   :  { %7077 = vmatpush1.bf16.msra.mxu1 %v10097_v37  ;;  %v209_v34 = vld [vmem:[#allocation5 + $0x2b0] sm:$0xff]  ;;  %v10057_v37 = vcombine.low %v213_v18, %v217_v21 }
 0x27e   :  { %7078 = vmatprep.subr.bf16.mxu1 %v10218_v43  ;;  %v333_v35 = vld [vmem:[#allocation5 + $0x690] sm:$0xff]  ;;  %v10050_v43 = vcombine.high %v205_v33, %v209_v34 }
 0x27f   :  { %7038 = vmatpush2.bf16.msra.mxu0 %v10089_v52  ;;  %v337_v36 = vld [vmem:[#allocation5 + $0x6b0] sm:$0xff] }
 0x280   :  { %7039 = vmatprep.subr.bf16.mxu0 %v10082_v56  ;;  %v10178_v46 = vcombine.high %v333_v35, %v337_v36  ;;  %v197_v54 = vld [vmem:[#allocation5 + $0x250] sm:$0xff]  ;;  %v10177_v56 = vcombine.low %v333_v35, %v337_v36 }
 0x281   :  { %7079 = vmatpush2.bf16.msra.mxu1 %v10217_v31  ;;  %v201_v49 = vld [vmem:[#allocation5 + $0x270] sm:$0xff]  ;;  %v10049_v31 = vcombine.low %v205_v33, %v209_v34 }
 0x282   :  { %7080 = vmatprep.subr.bf16.mxu1 %v10210_v57  ;;  %v325_v51 = vld [vmem:[#allocation5 + $0x650] sm:$0xff]  ;;  %v10042_v57 = vcombine.high %v197_v54, %v201_v49 }
 0x283   :  { %7040 = vmatpush2.bf16.msra.mxu0 %v10081_v1  ;;  %v329_v52 = vld [vmem:[#allocation5 + $0x670] sm:$0xff] }
 0x284   :  { %7041 = vmatprep.subr.bf16.mxu0 %v10074_v47  ;;  %v10170_v62 = vcombine.high %v325_v51, %v329_v52  ;;  %v189_v0 = vld [vmem:[#allocation5 + $0x210] sm:$0xff]  ;;  %v10169_v47 = vcombine.low %v325_v51, %v329_v52 }
 0x285   :  { %7081 = vmatpush2.bf16.msra.mxu1 %v10209_v2  ;;  %v193_v44 = vld [vmem:[#allocation5 + $0x230] sm:$0xff]  ;;  %v10041_v2 = vcombine.low %v197_v54, %v201_v49 }
 0x286   :  { %7082 = vmatprep.subr.bf16.mxu1 %v10202_v3  ;;  %v317_v5 = vld [vmem:[#allocation5 + $0x610] sm:$0xff]  ;;  %v10034_v3 = vcombine.high %v189_v0, %v193_v44 }
 0x287   :  { %7042 = vmatpush2.bf16.msra.mxu0 %v10073_v60  ;;  %v321_v1 = vld [vmem:[#allocation5 + $0x630] sm:$0xff] }
 0x288   :  { %7043 = vmatprep.subr.bf16.mxu0 %v10066_v13  ;;  %v10162_v4 = vcombine.high %v317_v5, %v321_v1  ;;  %v437_v10 = vld [vmem:[#allocation5 + $0x9d0] sm:$0xff]  ;;  %v10161_v13 = vcombine.low %v317_v5, %v321_v1 }
 0x289   :  { %7083 = vmatpush2.bf16.msra.mxu1 %v10201_v12  ;;  %v441_v11 = vld [vmem:[#allocation5 + $0x9f0] sm:$0xff]  ;;  %v10033_v12 = vcombine.low %v189_v0, %v193_v44 }
 0x28a   :  { %7084 = vmatprep.subr.bf16.mxu1 %v10194_v15  ;;  %v565_v7 = vld [vmem:[#allocation5 + $0xdd0] sm:$0xff]  ;;  %v10282_v15 = vcombine.high %v437_v10, %v441_v11 }
 0x28b   :  { %7044 = vmatpush2.bf16.msra.mxu0 %v10065_v25  ;;  %v569_v60 = vld [vmem:[#allocation5 + $0xdf0] sm:$0xff] }
 0x28c   :  { %7045 = vmatprep.subr.bf16.mxu0 %v10058_v26  ;;  %v10410_v18 = vcombine.high %v565_v7, %v569_v60  ;;  %v429_v21 = vld [vmem:[#allocation5 + $0x990] sm:$0xff]  ;;  %v10409_v26 = vcombine.low %v565_v7, %v569_v60 }
 0x28d   :  { %7085 = vmatpush2.bf16.msra.mxu1 %v10193_v53  ;;  %v433_v23 = vld [vmem:[#allocation5 + $0x9b0] sm:$0xff]  ;;  %v10281_v53 = vcombine.low %v437_v10, %v441_v11 }
 0x28e   :  { %7086 = vmatprep.subr.bf16.mxu1 %v10186_v30  ;;  %v557_v24 = vld [vmem:[#allocation5 + $0xd90] sm:$0xff]  ;;  %v10274_v30 = vcombine.high %v429_v21, %v433_v23  ;;  %v10273_v54 = vcombine.low %v429_v21, %v433_v23 }
 0x28f   :  { %7046 = vmatpush2.bf16.msra.mxu0 %v10057_v37  ;;  %v561_v25 = vld [vmem:[#allocation5 + $0xdb0] sm:$0xff] }
 0x290   :  { %7047 = vmatprep.subr.bf16.mxu0 %v10050_v43  ;;  %v10402_v33 = vcombine.high %v557_v24, %v561_v25  ;;  %v421_v34 = vld [vmem:[#allocation5 + $0x950] sm:$0xff]  ;;  %v10401_v51 = vcombine.low %v557_v24, %v561_v25 }
 0x291   :  { %7087 = vmatpush2.bf16.msra.mxu1 %v10185_v41  ;;  %v425_v35 = vld [vmem:[#allocation5 + $0x970] sm:$0xff] }
 0x292   :  { %7088 = vmatprep.subr.bf16.mxu1 %v10178_v46  ;;  %v549_v37 = vld [vmem:[#allocation5 + $0xd50] sm:$0xff]  ;;  %v10266_v52 = vcombine.high %v421_v34, %v425_v35 }
 0x293   :  { %7048 = vmatpush2.bf16.msra.mxu0 %v10049_v31  ;;  %v553_v41 = vld [vmem:[#allocation5 + $0xd70] sm:$0xff] }
 0x294   :  { %7049 = vmatprep.subr.bf16.mxu0 %v10042_v57  ;;  %v413_v0 = vld [vmem:[#allocation5 + $0x910] sm:$0xff] }
 0x295   :  { %7089 = vmatpush2.bf16.msra.mxu1 %v10177_v56  ;;  %v417_v44 = vld [vmem:[#allocation5 + $0x930] sm:$0xff] }
 0x296   :  { %7090 = vmatprep.subr.bf16.mxu1 %v10170_v62  ;;  %v10394_v62 = vcombine.high %v549_v37, %v553_v41  ;;  %v541_v5 = vld [vmem:[#allocation5 + $0xd10] sm:$0xff]  ;;  %v10258_v10 = vcombine.high %v413_v0, %v417_v44 }
 0x297   :  { %7050 = vmatpush2.bf16.msra.mxu0 %v10041_v2  ;;  %v545_v1 = vld [vmem:[#allocation5 + $0xd30] sm:$0xff] }
 0x298   :  { %7051 = vmatprep.subr.bf16.mxu0 %v10034_v3  ;;  %v10265_v3 = vcombine.low %v421_v34, %v425_v35  ;;  %v10386_v7 = vcombine.high %v541_v5, %v545_v1  ;;  %v405_v60 = vld [vmem:[#allocation5 + $0x8d0] sm:$0xff]  ;;  %v10385_v21 = vcombine.low %v541_v5, %v545_v1 }
 0x299   :  { %7091 = vmatpush2.bf16.msra.mxu1 %v10169_v47  ;;  %v397_v25 = vld [vmem:[#allocation5 + $0x890] sm:$0xff] }
 0x29a   :  { %7092 = vmatprep.subr.bf16.mxu1 %v10162_v4 }
 0x29b   :  { %7052 = vmatpush2.bf16.msra.mxu0 %v10033_v12  ;;  %v409_v12 = vld [vmem:[#allocation5 + $0x8f0] sm:$0xff] }
 0x29c   :  { %7103 = vmatprep.subr.bf16.mxu0 %v10282_v15  ;;  %v537_v15 = vld [vmem:[#allocation5 + $0xcf0] sm:$0xff]  ;;  %v10250_v23 = vcombine.high %v405_v60, %v409_v12 }
 0x29d   :  { %7093 = vmatpush2.bf16.msra.mxu1 %v10161_v13  ;;  %v533_v13 = vld [vmem:[#allocation5 + $0xcd0] sm:$0xff] }
 0x29e   :  { %7144 = vmatprep.subr.bf16.mxu1 %v10410_v18  ;;  %v6809_v36 = vpop.f32.mrf.mxu0  ;;  %7054 = vmatmul.mubr.bf16.vlgmr.msra.gmra.mxu0 %v12032_v16  ;;  %v10257_v18 = vcombine.low %v413_v0, %v417_v44  ;;  %v10378_v24 = vcombine.high %v533_v13, %v537_v15  ;;  %v10377_v34 = vcombine.low %v533_v13, %v537_v15  ;;  %v513_v0 = vld [vmem:[#allocation5 + $0xc30] sm:$0xff] }
 0x29f   :  { %v6810_v43 = vadd.f32 %v6809_v36, %v12164_v14  ;;  %7104 = vmatpush1.bf16.msra.mxu0 %v10281_v53  ;;  %7135 = vmatprep.mubr.bf16.mxu0 %v12044_v28  ;;  %v401_v53 = vld [vmem:[#allocation5 + $0x8b0] sm:$0xff] }
 0x2a0   :  { %v6850_v46 = vpop.f32.mrf.mxu1  ;;  %7095 = vmatmul.mubr.bf16.vlgmr.msra.gmra.mxu1 %v12038_v20  ;;  %v6811_v49 = vpop.f32.mrf.mxu0  ;;  %7105 = vmatprep.subr.bf16.mxu0 %v10274_v30  ;;  %v529_v30 = vld [vmem:[#allocation5 + $0xcb0] sm:$0xff]  ;;  %v10242_v35 = vcombine.high %v397_v25, %v401_v53 }
 0x2a1   :  { %7145 = vmatpush1.bf16.msra.mxu1 %v10409_v26  ;;  %v12173_v31 = vadd.f32 %v6850_v46, %v6810_v43  ;;  %v6812_v56 = vadd.f32 %v6811_v49, %v12168_v27  ;;  %7176 = vmatprep.mubr.bf16.mxu1 %v12049_v29  ;;  %v10393_v27 = vcombine.low %v549_v37, %v553_v41  ;;  %v525_v26 = vld [vmem:[#allocation5 + $0xc90] sm:$0xff] }
 0x2a2   :  { %v6852_v57 = vpop.f32.mrf.mxu1  ;;  %7146 = vmatprep.subr.bf16.mxu1 %v10402_v33  ;;  %v6813_v14 = vpop.f32.mrf.mxu0  ;;  %v10249_v33 = vcombine.low %v405_v60, %v409_v12  ;;  %v10370_v36 = vcombine.high %v525_v26, %v529_v30  ;;  %v389_v37 = vld [vmem:[#allocation5 + $0x850] sm:$0xff]  ;;  %v10369_v49 = vcombine.low %v525_v26, %v529_v30 }
 0x2a3   :  { %v12178_v2 = vadd.f32 %v6852_v57, %v6812_v56  ;;  %7106 = vmatpush1.bf16.msra.mxu0 %v10273_v54  ;;  %v393_v41 = vld [vmem:[#allocation5 + $0x870] sm:$0xff]  ;;  %v10241_v54 = vcombine.low %v397_v25, %v401_v53 }
 0x2a4   :  { %v6854_v47 = vpop.f32.mrf.mxu1  ;;  %v6814_v4 = vpop.f32.mrf.mxu0  ;;  %7107 = vmatprep.subr.bf16.mxu0 %v10266_v52  ;;  %v517_v43 = vld [vmem:[#allocation5 + $0xc50] sm:$0xff]  ;;  %v10233_v44 = vcombine.low %v389_v37, %v393_v41 }
 0x2a5   :  { %7147 = vmatpush1.bf16.msra.mxu1 %v10401_v51  ;;  %v521_v46 = vld [vmem:[#allocation5 + $0xc70] sm:$0xff]  ;;  %v10234_v51 = vcombine.high %v389_v37, %v393_v41 }
 0x2a6   :  { %v6855_v11 = vpop.f32.mrf.mxu1  ;;  %7148 = vmatprep.subr.bf16.mxu1 %v10394_v62  ;;  %v10362_v52 = vcombine.high %v517_v43, %v521_v46  ;;  %v381_v56 = vld [vmem:[#allocation5 + $0x810] sm:$0xff]  ;;  %v10361_v14 = vcombine.low %v517_v43, %v521_v46 }
 0x2a7   :  { %7108 = vmatpush1.bf16.msra.mxu0 %v10265_v3  ;;  %v385_v57 = vld [vmem:[#allocation5 + $0x830] sm:$0xff] }
 0x2a8   :  { %7109 = vmatprep.subr.bf16.mxu0 %v10258_v10  ;;  %v509_v62 = vld [vmem:[#allocation5 + $0xc10] sm:$0xff]  ;;  %v10226_v5 = vcombine.high %v381_v56, %v385_v57  ;;  %v10225_v10 = vcombine.low %v381_v56, %v385_v57 }
 0x2a9   :  { %7149 = vmatpush1.bf16.msra.mxu1 %v10393_v27  ;;  %v10354_v1 = vcombine.high %v509_v62, %v513_v0  ;;  %v501_v47 = vld [vmem:[#allocation5 + $0xbd0] sm:$0xff]  ;;  %v10353_v11 = vcombine.low %v509_v62, %v513_v0 }
 0x2aa   :  { %7150 = vmatprep.subr.bf16.mxu1 %v10386_v7  ;;  %v505_v3 = vld [vmem:[#allocation5 + $0xbf0] sm:$0xff] }
 0x2ab   :  { %7110 = vmatpush1.bf16.msra.mxu0 %v10257_v18  ;;  %v629_v4 = vld [vmem:[#allocation5 + $0xfd0] sm:$0xff]  ;;  %v10346_v7 = vcombine.high %v501_v47, %v505_v3 }
 0x2ac   :  { %7111 = vmatprep.subr.bf16.mxu0 %v10250_v23  ;;  %v633_v27 = vld [vmem:[#allocation5 + $0xff0] sm:$0xff] }
 0x2ad   :  { %7151 = vmatpush1.bf16.msra.mxu1 %v10385_v21  ;;  %v10474_v60 = vcombine.high %v629_v4, %v633_v27  ;;  %v493_v12 = vld [vmem:[#allocation5 + $0xb90] sm:$0xff]  ;;  %v10345_v21 = vcombine.low %v501_v47, %v505_v3  ;;  %v10473_v23 = vcombine.low %v629_v4, %v633_v27 }
 0x2ae   :  { %7152 = vmatprep.subr.bf16.mxu1 %v10378_v24  ;;  %v497_v13 = vld [vmem:[#allocation5 + $0xbb0] sm:$0xff] }
 0x2af   :  { %7112 = vmatpush1.bf16.msra.mxu0 %v10249_v33  ;;  %v621_v15 = vld [vmem:[#allocation5 + $0xf90] sm:$0xff]  ;;  %v10338_v24 = vcombine.high %v493_v12, %v497_v13 }
 0x2b0   :  { %7113 = vmatprep.subr.bf16.mxu0 %v10242_v35  ;;  %v625_v18 = vld [vmem:[#allocation5 + $0xfb0] sm:$0xff] }
 0x2b1   :  { %7153 = vmatpush1.bf16.msra.mxu1 %v10377_v34  ;;  %v10466_v25 = vcombine.high %v621_v15, %v625_v18  ;;  %v485_v53 = vld [vmem:[#allocation5 + $0xb50] sm:$0xff]  ;;  %v10337_v34 = vcombine.low %v493_v12, %v497_v13  ;;  %v10465_v35 = vcombine.low %v621_v15, %v625_v18 }
 0x2b2   :  { %7154 = vmatprep.subr.bf16.mxu1 %v10370_v36  ;;  %v489_v26 = vld [vmem:[#allocation5 + $0xb70] sm:$0xff] }
 0x2b3   :  { %7114 = vmatpush1.bf16.msra.mxu0 %v10241_v54  ;;  %v613_v30 = vld [vmem:[#allocation5 + $0xf50] sm:$0xff]  ;;  %v10330_v36 = vcombine.high %v485_v53, %v489_v26 }
 0x2b4   :  { %7115 = vmatprep.subr.bf16.mxu0 %v10234_v51  ;;  %v617_v33 = vld [vmem:[#allocation5 + $0xf70] sm:$0xff] }
 0x2b5   :  { %7155 = vmatpush1.bf16.msra.mxu1 %v10369_v49  ;;  %v10458_v37 = vcombine.high %v613_v30, %v617_v33  ;;  %v477_v41 = vld [vmem:[#allocation5 + $0xb10] sm:$0xff]  ;;  %v10329_v49 = vcombine.low %v485_v53, %v489_v26  ;;  %v10457_v51 = vcombine.low %v613_v30, %v617_v33 }
 0x2b6   :  { %7156 = vmatprep.subr.bf16.mxu1 %v10362_v52  ;;  %v481_v43 = vld [vmem:[#allocation5 + $0xb30] sm:$0xff] }
 0x2b7   :  { %7116 = vmatpush1.bf16.msra.mxu0 %v10233_v44  ;;  %v605_v46 = vld [vmem:[#allocation5 + $0xf10] sm:$0xff]  ;;  %v10322_v52 = vcombine.high %v477_v41, %v481_v43 }
 0x2b8   :  { %7117 = vmatprep.subr.bf16.mxu0 %v10226_v5  ;;  %v609_v54 = vld [vmem:[#allocation5 + $0xf30] sm:$0xff] }
 0x2b9   :  { %7157 = vmatpush1.bf16.msra.mxu1 %v10361_v14  ;;  %v10450_v56 = vcombine.high %v605_v46, %v609_v54  ;;  %v469_v57 = vld [vmem:[#allocation5 + $0xad0] sm:$0xff]  ;;  %v10321_v14 = vcombine.low %v477_v41, %v481_v43  ;;  %v10449_v5 = vcombine.low %v605_v46, %v609_v54 }
 0x2ba   :  { %7158 = vmatprep.subr.bf16.mxu1 %v10354_v1  ;;  %v473_v62 = vld [vmem:[#allocation5 + $0xaf0] sm:$0xff] }
 0x2bb   :  { %7118 = vmatpush1.bf16.msra.mxu0 %v10225_v10  ;;  %v597_v0 = vld [vmem:[#allocation5 + $0xed0] sm:$0xff]  ;;  %v10314_v1 = vcombine.high %v469_v57, %v473_v62 }
 0x2bc   :  { %7119 = vmatprep.subr.bf16.mxu0 %v10346_v7  ;;  %v601_v44 = vld [vmem:[#allocation5 + $0xef0] sm:$0xff] }
 0x2bd   :  { %7159 = vmatpush1.bf16.msra.mxu1 %v10353_v11  ;;  %v10442_v47 = vcombine.high %v597_v0, %v601_v44  ;;  %v461_v3 = vld [vmem:[#allocation5 + $0xa90] sm:$0xff]  ;;  %v10313_v11 = vcombine.low %v469_v57, %v473_v62  ;;  %v10441_v7 = vcombine.low %v597_v0, %v601_v44 }
 0x2be   :  { %7160 = vmatprep.subr.bf16.mxu1 %v10474_v60  ;;  %v465_v4 = vld [vmem:[#allocation5 + $0xab0] sm:$0xff] }
 0x2bf   :  { %7120 = vmatpush2.bf16.msra.mxu0 %v10345_v21  ;;  %v589_v27 = vld [vmem:[#allocation5 + $0xe90] sm:$0xff]  ;;  %v10306_v60 = vcombine.high %v461_v3, %v465_v4 }
 0x2c0   :  { %7121 = vmatprep.subr.bf16.mxu0 %v10338_v24  ;;  %v593_v10 = vld [vmem:[#allocation5 + $0xeb0] sm:$0xff] }
 0x2c1   :  { %7161 = vmatpush2.bf16.msra.mxu1 %v10473_v23  ;;  %v10434_v12 = vcombine.high %v589_v27, %v593_v10  ;;  %v453_v13 = vld [vmem:[#allocation5 + $0xa50] sm:$0xff]  ;;  %v10305_v23 = vcombine.low %v461_v3, %v465_v4  ;;  %v10433_v24 = vcombine.low %v589_v27, %v593_v10 }
 0x2c2   :  { %7162 = vmatprep.subr.bf16.mxu1 %v10466_v25  ;;  %v457_v15 = vld [vmem:[#allocation5 + $0xa70] sm:$0xff] }
 0x2c3   :  { %7122 = vmatpush2.bf16.msra.mxu0 %v10337_v34  ;;  %v581_v18 = vld [vmem:[#allocation5 + $0xe50] sm:$0xff]  ;;  %v10298_v25 = vcombine.high %v453_v13, %v457_v15 }
 0x2c4   :  { %7123 = vmatprep.subr.bf16.mxu0 %v10330_v36  ;;  %v585_v21 = vld [vmem:[#allocation5 + $0xe70] sm:$0xff] }
 0x2c5   :  { %7163 = vmatpush2.bf16.msra.mxu1 %v10465_v35  ;;  %v10426_v53 = vcombine.high %v581_v18, %v585_v21  ;;  %v445_v26 = vld [vmem:[#allocation5 + $0xa10] sm:$0xff]  ;;  %v10297_v35 = vcombine.low %v453_v13, %v457_v15  ;;  %v10425_v36 = vcombine.low %v581_v18, %v585_v21 }
 0x2c6   :  { %7164 = vmatprep.subr.bf16.mxu1 %v10458_v37  ;;  %v449_v30 = vld [vmem:[#allocation5 + $0xa30] sm:$0xff] }
 0x2c7   :  { %7124 = vmatpush2.bf16.msra.mxu0 %v10329_v49  ;;  %v573_v33 = vld [vmem:[#allocation5 + $0xe10] sm:$0xff]  ;;  %v10290_v37 = vcombine.high %v445_v26, %v449_v30 }
 0x2c8   :  { %7125 = vmatprep.subr.bf16.mxu0 %v10322_v52  ;;  %v577_v34 = vld [vmem:[#allocation5 + $0xe30] sm:$0xff] }
 0x2c9   :  { %7165 = vmatpush2.bf16.msra.mxu1 %v10457_v51  ;;  %v10418_v41 = vcombine.high %v573_v33, %v577_v34  ;;  %v693_v43 = vld [vmem:[#allocation5 + $0x11d0] sm:$0xff]  ;;  %v10289_v51 = vcombine.low %v445_v26, %v449_v30  ;;  %v10417_v52 = vcombine.low %v573_v33, %v577_v34 }
 0x2ca   :  { %7166 = vmatprep.subr.bf16.mxu1 %v10450_v56  ;;  %v697_v46 = vld [vmem:[#allocation5 + $0x11f0] sm:$0xff] }
 0x2cb   :  { %7126 = vmatpush2.bf16.msra.mxu0 %v10321_v14  ;;  %v821_v54 = vld [vmem:[#allocation5 + $0x15d0] sm:$0xff]  ;;  %v10538_v56 = vcombine.high %v693_v43, %v697_v46 }
 0x2cc   :  { %7127 = vmatprep.subr.bf16.mxu0 %v10314_v1  ;;  %v825_v49 = vld [vmem:[#allocation5 + $0x15f0] sm:$0xff] }
 0x2cd   :  { %7167 = vmatpush2.bf16.msra.mxu1 %v10449_v5  ;;  %v10666_v57 = vcombine.high %v821_v54, %v825_v49  ;;  %v685_v62 = vld [vmem:[#allocation5 + $0x1190] sm:$0xff]  ;;  %v10537_v5 = vcombine.low %v693_v43, %v697_v46  ;;  %v10665_v1 = vcombine.low %v821_v54, %v825_v49 }
 0x2ce   :  { %7168 = vmatprep.subr.bf16.mxu1 %v10442_v47  ;;  %v689_v0 = vld [vmem:[#allocation5 + $0x11b0] sm:$0xff] }
 0x2cf   :  { %7128 = vmatpush2.bf16.msra.mxu0 %v10313_v11  ;;  %v813_v44 = vld [vmem:[#allocation5 + $0x1590] sm:$0xff]  ;;  %v10530_v47 = vcombine.high %v685_v62, %v689_v0  ;;  %v10529_v13 = vcombine.low %v685_v62, %v689_v0 }
 0x2d0   :  { %7129 = vmatprep.subr.bf16.mxu0 %v10306_v60  ;;  %v817_v14 = vld [vmem:[#allocation5 + $0x15b0] sm:$0xff] }
 0x2d1   :  { %7169 = vmatpush2.bf16.msra.mxu1 %v10441_v7  ;;  %v10658_v3 = vcombine.high %v813_v44, %v817_v14  ;;  %v677_v4 = vld [vmem:[#allocation5 + $0x1150] sm:$0xff]  ;;  %v10657_v18 = vcombine.low %v813_v44, %v817_v14 }
 0x2d2   :  { %7170 = vmatprep.subr.bf16.mxu1 %v10434_v12  ;;  %v681_v27 = vld [vmem:[#allocation5 + $0x1170] sm:$0xff] }
 0x2d3   :  { %7130 = vmatpush2.bf16.msra.mxu0 %v10305_v23  ;;  %v805_v11 = vld [vmem:[#allocation5 + $0x1550] sm:$0xff]  ;;  %v10522_v21 = vcombine.high %v677_v4, %v681_v27 }
 0x2d4   :  { %7131 = vmatprep.subr.bf16.mxu0 %v10298_v25  ;;  %v809_v7 = vld [vmem:[#allocation5 + $0x1570] sm:$0xff] }
 0x2d5   :  { %7171 = vmatpush2.bf16.msra.mxu1 %v10433_v24  ;;  %v669_v26 = vld [vmem:[#allocation5 + $0x1110] sm:$0xff] }
 0x2d6   :  { %7172 = vmatprep.subr.bf16.mxu1 %v10426_v53  ;;  %v10650_v53 = vcombine.high %v805_v11, %v809_v7  ;;  %v673_v30 = vld [vmem:[#allocation5 + $0x1130] sm:$0xff] }
 0x2d7   :  { %7132 = vmatpush2.bf16.msra.mxu0 %v10297_v35  ;;  %v797_v33 = vld [vmem:[#allocation5 + $0x1510] sm:$0xff]  ;;  %v10514_v43 = vcombine.high %v669_v26, %v673_v30 }
 0x2d8   :  { %7133 = vmatprep.subr.bf16.mxu0 %v10290_v37  ;;  %v801_v34 = vld [vmem:[#allocation5 + $0x1530] sm:$0xff]  ;;  %v10521_v37 = vcombine.low %v677_v4, %v681_v27 }
 0x2d9   :  { %7173 = vmatpush2.bf16.msra.mxu1 %v10425_v36  ;;  %v10642_v54 = vcombine.high %v797_v33, %v801_v34  ;;  %v661_v49 = vld [vmem:[#allocation5 + $0x10d0] sm:$0xff]  ;;  %v10641_v62 = vcombine.low %v797_v33, %v801_v34 }
 0x2da   :  { %7174 = vmatprep.subr.bf16.mxu1 %v10418_v41  ;;  %v653_v14 = vld [vmem:[#allocation5 + $0x1090] sm:$0xff] }
 0x2db   :  { %7134 = vmatpush2.bf16.msra.mxu0 %v10289_v51  ;;  %v665_v51 = vld [vmem:[#allocation5 + $0x10f0] sm:$0xff] }
 0x2dc   :  { %7185 = vmatprep.subr.bf16.mxu0 %v10538_v56  ;;  %v793_v56 = vld [vmem:[#allocation5 + $0x14f0] sm:$0xff]  ;;  %v10506_v0 = vcombine.high %v661_v49, %v665_v51 }
 0x2dd   :  { %7175 = vmatpush2.bf16.msra.mxu1 %v10417_v52  ;;  %v789_v52 = vld [vmem:[#allocation5 + $0x14d0] sm:$0xff] }
 0x2de   :  { %7226 = vmatprep.subr.bf16.mxu1 %v10666_v57  ;;  %v6891_v10 = vpop.f32.mrf.mxu0  ;;  %7136 = vmatmul.mubr.bf16.vlgmr.msra.gmra.mxu0 %v12058_v39  ;;  %v10513_v57 = vcombine.low %v669_v26, %v673_v30  ;;  %v10634_v44 = vcombine.high %v789_v52, %v793_v56  ;;  %v10633_v4 = vcombine.low %v789_v52, %v793_v56  ;;  %v769_v26 = vld [vmem:[#allocation5 + $0x1430] sm:$0xff] }
 0x2df   :  { %v6892_v60 = vadd.f32 %v6891_v10, %v12173_v31  ;;  %7186 = vmatpush1.bf16.msra.mxu0 %v10537_v5  ;;  %7217 = vmatprep.mubr.bf16.mxu0 %v12068_v19  ;;  %v657_v5 = vld [vmem:[#allocation5 + $0x10b0] sm:$0xff] }
 0x2e0   :  { %v6932_v12 = vpop.f32.mrf.mxu1  ;;  %7177 = vmatmul.mubr.bf16.vlgmr.msra.gmra.mxu1 %v12062_v40  ;;  %v6893_v15 = vpop.f32.mrf.mxu0  ;;  %7187 = vmatprep.subr.bf16.mxu0 %v10530_v47  ;;  %v785_v47 = vld [vmem:[#allocation5 + $0x14b0] sm:$0xff]  ;;  %v10498_v27 = vcombine.high %v653_v14, %v657_v5 }
 0x2e1   :  { %7227 = vmatpush1.bf16.msra.mxu1 %v10665_v1  ;;  %v12183_v23 = vadd.f32 %v6932_v12, %v6892_v60  ;;  %v6894_v24 = vadd.f32 %v6893_v15, %v12178_v2  ;;  %7258 = vmatprep.mubr.bf16.mxu1 %v12073_v22  ;;  %v10649_v2 = vcombine.low %v805_v11, %v809_v7  ;;  %v781_v1 = vld [vmem:[#allocation5 + $0x1490] sm:$0xff] }
 0x2e2   :  { %v6934_v25 = vpop.f32.mrf.mxu1  ;;  %7228 = vmatprep.subr.bf16.mxu1 %v10658_v3  ;;  %v6895_v31 = vpop.f32.mrf.mxu0  ;;  %v10505_v3 = vcombine.low %v661_v49, %v665_v51  ;;  %v10626_v10 = vcombine.high %v781_v1, %v785_v47  ;;  %v645_v11 = vld [vmem:[#allocation5 + $0x1050] sm:$0xff]  ;;  %v10625_v15 = vcombine.low %v781_v1, %v785_v47 }
 0x2e3   :  { %v12188_v35 = vadd.f32 %v6934_v25, %v6894_v24  ;;  %7188 = vmatpush1.bf16.msra.mxu0 %v10529_v13  ;;  %v649_v7 = vld [vmem:[#allocation5 + $0x1070] sm:$0xff]  ;;  %v10497_v13 = vcombine.low %v653_v14, %v657_v5 }
 0x2e4   :  { %v6936_v36 = vpop.f32.mrf.mxu1  ;;  %v6896_v41 = vpop.f32.mrf.mxu0  ;;  %7189 = vmatprep.subr.bf16.mxu0 %v10522_v21  ;;  %v773_v60 = vld [vmem:[#allocation5 + $0x1450] sm:$0xff]  ;;  %v10489_v30 = vcombine.low %v645_v11, %v649_v7 }
 0x2e5   :  { %7229 = vmatpush1.bf16.msra.mxu1 %v10657_v18  ;;  %v777_v12 = vld [vmem:[#allocation5 + $0x1470] sm:$0xff]  ;;  %v10490_v18 = vcombine.high %v645_v11, %v649_v7 }
 0x2e6   :  { %v6937_v46 = vpop.f32.mrf.mxu1  ;;  %7230 = vmatprep.subr.bf16.mxu1 %v10650_v53  ;;  %v10618_v21 = vcombine.high %v773_v60, %v777_v12  ;;  %v637_v24 = vld [vmem:[#allocation5 + $0x1010] sm:$0xff]  ;;  %v10617_v31 = vcombine.low %v773_v60, %v777_v12 }
 0x2e7   :  { %7190 = vmatpush1.bf16.msra.mxu0 %v10521_v37  ;;  %v641_v25 = vld [vmem:[#allocation5 + $0x1030] sm:$0xff] }
 0x2e8   :  { %7191 = vmatprep.subr.bf16.mxu0 %v10514_v43  ;;  %v765_v53 = vld [vmem:[#allocation5 + $0x1410] sm:$0xff]  ;;  %v10482_v33 = vcombine.high %v637_v24, %v641_v25  ;;  %v10481_v43 = vcombine.low %v637_v24, %v641_v25 }
 0x2e9   :  { %7231 = vmatpush1.bf16.msra.mxu1 %v10649_v2  ;;  %v10610_v34 = vcombine.high %v765_v53, %v769_v26  ;;  %v757_v36 = vld [vmem:[#allocation5 + $0x13d0] sm:$0xff]  ;;  %v10609_v46 = vcombine.low %v765_v53, %v769_v26 }
 0x2ea   :  { %7232 = vmatprep.subr.bf16.mxu1 %v10642_v54  ;;  %v761_v37 = vld [vmem:[#allocation5 + $0x13f0] sm:$0xff] }
 0x2eb   :  { %7192 = vmatpush1.bf16.msra.mxu0 %v10513_v57  ;;  %v885_v41 = vld [vmem:[#allocation5 + $0x17d0] sm:$0xff]  ;;  %v10602_v54 = vcombine.high %v757_v36, %v761_v37 }
 0x2ec   :  { %7193 = vmatprep.subr.bf16.mxu0 %v10506_v0  ;;  %v889_v2 = vld [vmem:[#allocation5 + $0x17f0] sm:$0xff] }
 0x2ed   :  { %7233 = vmatpush1.bf16.msra.mxu1 %v10641_v62  ;;  %v10730_v49 = vcombine.high %v885_v41, %v889_v2  ;;  %v749_v51 = vld [vmem:[#allocation5 + $0x1390] sm:$0xff]  ;;  %v10601_v62 = vcombine.low %v757_v36, %v761_v37  ;;  %v10729_v0 = vcombine.low %v885_v41, %v889_v2 }
 0x2ee   :  { %7234 = vmatprep.subr.bf16.mxu1 %v10634_v44  ;;  %v753_v52 = vld [vmem:[#allocation5 + $0x13b0] sm:$0xff] }
 0x2ef   :  { %7194 = vmatpush1.bf16.msra.mxu0 %v10505_v3  ;;  %v877_v56 = vld [vmem:[#allocation5 + $0x1790] sm:$0xff]  ;;  %v10594_v44 = vcombine.high %v749_v51, %v753_v52 }
 0x2f0   :  { %7195 = vmatprep.subr.bf16.mxu0 %v10498_v27  ;;  %v881_v57 = vld [vmem:[#allocation5 + $0x17b0] sm:$0xff] }
 0x2f1   :  { %7235 = vmatpush1.bf16.msra.mxu1 %v10633_v4  ;;  %v10722_v14 = vcombine.high %v877_v56, %v881_v57  ;;  %v741_v5 = vld [vmem:[#allocation5 + $0x1350] sm:$0xff]  ;;  %v10593_v4 = vcombine.low %v749_v51, %v753_v52  ;;  %v10721_v27 = vcombine.low %v877_v56, %v881_v57 }
 0x2f2   :  { %7236 = vmatprep.subr.bf16.mxu1 %v10626_v10  ;;  %v745_v1 = vld [vmem:[#allocation5 + $0x1370] sm:$0xff] }
 0x2f3   :  { %7196 = vmatpush1.bf16.msra.mxu0 %v10497_v13  ;;  %v869_v47 = vld [vmem:[#allocation5 + $0x1750] sm:$0xff]  ;;  %v10586_v10 = vcombine.high %v741_v5, %v745_v1 }
 0x2f4   :  { %7197 = vmatprep.subr.bf16.mxu0 %v10490_v18  ;;  %v873_v3 = vld [vmem:[#allocation5 + $0x1770] sm:$0xff] }
 0x2f5   :  { %7237 = vmatpush1.bf16.msra.mxu1 %v10625_v15  ;;  %v10714_v11 = vcombine.high %v869_v47, %v873_v3  ;;  %v733_v7 = vld [vmem:[#allocation5 + $0x1310] sm:$0xff]  ;;  %v10585_v15 = vcombine.low %v741_v5, %v745_v1  ;;  %v10713_v18 = vcombine.low %v869_v47, %v873_v3 }
 0x2f6   :  { %7238 = vmatprep.subr.bf16.mxu1 %v10618_v21  ;;  %v737_v60 = vld [vmem:[#allocation5 + $0x1330] sm:$0xff] }
 0x2f7   :  { %7198 = vmatpush1.bf16.msra.mxu0 %v10489_v30  ;;  %v861_v12 = vld [vmem:[#allocation5 + $0x1710] sm:$0xff]  ;;  %v10578_v21 = vcombine.high %v733_v7, %v737_v60 }
 0x2f8   :  { %7199 = vmatprep.subr.bf16.mxu0 %v10482_v33  ;;  %v865_v13 = vld [vmem:[#allocation5 + $0x1730] sm:$0xff] }
 0x2f9   :  { %7239 = vmatpush1.bf16.msra.mxu1 %v10617_v31  ;;  %v10706_v24 = vcombine.high %v861_v12, %v865_v13  ;;  %v725_v25 = vld [vmem:[#allocation5 + $0x12d0] sm:$0xff]  ;;  %v10577_v31 = vcombine.low %v733_v7, %v737_v60  ;;  %v10705_v33 = vcombine.low %v861_v12, %v865_v13 }
 0x2fa   :  { %7240 = vmatprep.subr.bf16.mxu1 %v10610_v34  ;;  %v729_v53 = vld [vmem:[#allocation5 + $0x12f0] sm:$0xff] }
 0x2fb   :  { %7200 = vmatpush1.bf16.msra.mxu0 %v10481_v43  ;;  %v853_v26 = vld [vmem:[#allocation5 + $0x16d0] sm:$0xff]  ;;  %v10570_v34 = vcombine.high %v725_v25, %v729_v53 }
 0x2fc   :  { %7201 = vmatprep.subr.bf16.mxu0 %v10602_v54  ;;  %v857_v30 = vld [vmem:[#allocation5 + $0x16f0] sm:$0xff] }
 0x2fd   :  { %7241 = vmatpush1.bf16.msra.mxu1 %v10609_v46  ;;  %v10698_v36 = vcombine.high %v853_v26, %v857_v30  ;;  %v717_v37 = vld [vmem:[#allocation5 + $0x1290] sm:$0xff]  ;;  %v10569_v46 = vcombine.low %v725_v25, %v729_v53  ;;  %v10697_v54 = vcombine.low %v853_v26, %v857_v30 }
 0x2fe   :  { %7242 = vmatprep.subr.bf16.mxu1 %v10730_v49  ;;  %v721_v41 = vld [vmem:[#allocation5 + $0x12b0] sm:$0xff] }
 0x2ff   :  { %7202 = vmatpush2.bf16.msra.mxu0 %v10601_v62  ;;  %v845_v2 = vld [vmem:[#allocation5 + $0x1690] sm:$0xff]  ;;  %v10562_v49 = vcombine.high %v717_v37, %v721_v41 }
 0x300   :  { %7203 = vmatprep.subr.bf16.mxu0 %v10594_v44  ;;  %v849_v43 = vld [vmem:[#allocation5 + $0x16b0] sm:$0xff] }
 0x301   :  { %7243 = vmatpush2.bf16.msra.mxu1 %v10729_v0  ;;  %v10690_v51 = vcombine.high %v845_v2, %v849_v43  ;;  %v709_v52 = vld [vmem:[#allocation5 + $0x1250] sm:$0xff]  ;;  %v10561_v0 = vcombine.low %v717_v37, %v721_v41  ;;  %v10689_v44 = vcombine.low %v845_v2, %v849_v43 }
 0x302   :  { %7244 = vmatprep.subr.bf16.mxu1 %v10722_v14  ;;  %v713_v56 = vld [vmem:[#allocation5 + $0x1270] sm:$0xff] }
 0x303   :  { %7204 = vmatpush2.bf16.msra.mxu0 %v10593_v4  ;;  %v837_v57 = vld [vmem:[#allocation5 + $0x1650] sm:$0xff]  ;;  %v10554_v14 = vcombine.high %v709_v52, %v713_v56 }
 0x304   :  { %7205 = vmatprep.subr.bf16.mxu0 %v10586_v10  ;;  %v841_v62 = vld [vmem:[#allocation5 + $0x1670] sm:$0xff] }
 0x305   :  { %7245 = vmatpush2.bf16.msra.mxu1 %v10721_v27  ;;  %v10682_v5 = vcombine.high %v837_v57, %v841_v62  ;;  %v701_v1 = vld [vmem:[#allocation5 + $0x1210] sm:$0xff]  ;;  %v10553_v27 = vcombine.low %v709_v52, %v713_v56  ;;  %v10681_v10 = vcombine.low %v837_v57, %v841_v62 }
 0x306   :  { %7246 = vmatprep.subr.bf16.mxu1 %v10714_v11  ;;  %v705_v47 = vld [vmem:[#allocation5 + $0x1230] sm:$0xff] }
 0x307   :  { %7206 = vmatpush2.bf16.msra.mxu0 %v10585_v15  ;;  %v829_v3 = vld [vmem:[#allocation5 + $0x1610] sm:$0xff]  ;;  %v10546_v11 = vcombine.high %v701_v1, %v705_v47 }
 0x308   :  { %7207 = vmatprep.subr.bf16.mxu0 %v10578_v21  ;;  %v833_v4 = vld [vmem:[#allocation5 + $0x1630] sm:$0xff] }
 0x309   :  { %7247 = vmatpush2.bf16.msra.mxu1 %v10713_v18  ;;  %v10674_v7 = vcombine.high %v829_v3, %v833_v4  ;;  %v949_v60 = vld [vmem:[#allocation5 + $0x19d0] sm:$0xff]  ;;  %v10545_v18 = vcombine.low %v701_v1, %v705_v47  ;;  %v10673_v21 = vcombine.low %v829_v3, %v833_v4 }
 0x30a   :  { %7248 = vmatprep.subr.bf16.mxu1 %v10706_v24  ;;  %v953_v12 = vld [vmem:[#allocation5 + $0x19f0] sm:$0xff] }
 0x30b   :  { %7208 = vmatpush2.bf16.msra.mxu0 %v10577_v31  ;;  %v1077_v13 = vld [vmem:[#allocation5 + $0x1dd0] sm:$0xff]  ;;  %v10794_v24 = vcombine.high %v949_v60, %v953_v12 }
 0x30c   :  { %7209 = vmatprep.subr.bf16.mxu0 %v10570_v34  ;;  %v1081_v15 = vld [vmem:[#allocation5 + $0x1df0] sm:$0xff] }
 0x30d   :  { %7249 = vmatpush2.bf16.msra.mxu1 %v10705_v33  ;;  %v10922_v25 = vcombine.high %v1077_v13, %v1081_v15  ;;  %v941_v53 = vld [vmem:[#allocation5 + $0x1990] sm:$0xff]  ;;  %v10793_v33 = vcombine.low %v949_v60, %v953_v12  ;;  %v10921_v34 = vcombine.low %v1077_v13, %v1081_v15 }
 0x30e   :  { %7250 = vmatprep.subr.bf16.mxu1 %v10698_v36  ;;  %v945_v26 = vld [vmem:[#allocation5 + $0x19b0] sm:$0xff] }
 0x30f   :  { %7210 = vmatpush2.bf16.msra.mxu0 %v10569_v46  ;;  %v1069_v30 = vld [vmem:[#allocation5 + $0x1d90] sm:$0xff]  ;;  %v10786_v36 = vcombine.high %v941_v53, %v945_v26  ;;  %v10785_v52 = vcombine.low %v941_v53, %v945_v26 }
 0x310   :  { %7211 = vmatprep.subr.bf16.mxu0 %v10562_v49  ;;  %v1073_v31 = vld [vmem:[#allocation5 + $0x1db0] sm:$0xff] }
 0x311   :  { %7251 = vmatpush2.bf16.msra.mxu1 %v10697_v54  ;;  %v10914_v37 = vcombine.high %v1069_v30, %v1073_v31  ;;  %v933_v41 = vld [vmem:[#allocation5 + $0x1950] sm:$0xff]  ;;  %v10913_v57 = vcombine.low %v1069_v30, %v1073_v31 }
 0x312   :  { %7252 = vmatprep.subr.bf16.mxu1 %v10690_v51  ;;  %v937_v2 = vld [vmem:[#allocation5 + $0x1970] sm:$0xff] }
 0x313   :  { %7212 = vmatpush2.bf16.msra.mxu0 %v10561_v0  ;;  %v1061_v46 = vld [vmem:[#allocation5 + $0x1d50] sm:$0xff]  ;;  %v10778_v62 = vcombine.high %v933_v41, %v937_v2 }
 0x314   :  { %7213 = vmatprep.subr.bf16.mxu0 %v10554_v14  ;;  %v1065_v54 = vld [vmem:[#allocation5 + $0x1d70] sm:$0xff] }
 0x315   :  { %7253 = vmatpush2.bf16.msra.mxu1 %v10689_v44  ;;  %v925_v1 = vld [vmem:[#allocation5 + $0x1910] sm:$0xff] }
 0x316   :  { %7254 = vmatprep.subr.bf16.mxu1 %v10682_v5  ;;  %v10906_v5 = vcombine.high %v1061_v46, %v1065_v54  ;;  %v929_v47 = vld [vmem:[#allocation5 + $0x1930] sm:$0xff] }
 0x317   :  { %7214 = vmatpush2.bf16.msra.mxu0 %v10553_v27  ;;  %v1053_v3 = vld [vmem:[#allocation5 + $0x1d10] sm:$0xff]  ;;  %v10770_v60 = vcombine.high %v925_v1, %v929_v47 }
 0x318   :  { %7215 = vmatprep.subr.bf16.mxu0 %v10546_v11  ;;  %v1057_v4 = vld [vmem:[#allocation5 + $0x1d30] sm:$0xff]  ;;  %v10777_v11 = vcombine.low %v933_v41, %v937_v2 }
 0x319   :  { %7255 = vmatpush2.bf16.msra.mxu1 %v10681_v10  ;;  %v10898_v13 = vcombine.high %v1053_v3, %v1057_v4  ;;  %v917_v15 = vld [vmem:[#allocation5 + $0x18d0] sm:$0xff]  ;;  %v10897_v53 = vcombine.low %v1053_v3, %v1057_v4 }
 0x31a   :  { %7256 = vmatprep.subr.bf16.mxu1 %v10674_v7  ;;  %v909_v31 = vld [vmem:[#allocation5 + $0x1890] sm:$0xff] }
 0x31b   :  { %7216 = vmatpush2.bf16.msra.mxu0 %v10545_v18  ;;  %v921_v18 = vld [vmem:[#allocation5 + $0x18f0] sm:$0xff] }
 0x31c   :  { %7267 = vmatprep.subr.bf16.mxu0 %v10794_v24  ;;  %v1049_v24 = vld [vmem:[#allocation5 + $0x1cf0] sm:$0xff]  ;;  %v10762_v26 = vcombine.high %v917_v15, %v921_v18 }
 0x31d   :  { %7257 = vmatpush2.bf16.msra.mxu1 %v10673_v21  ;;  %v1045_v21 = vld [vmem:[#allocation5 + $0x1cd0] sm:$0xff] }
 0x31e   :  { %7308 = vmatprep.subr.bf16.mxu1 %v10922_v25  ;;  %v6973_v43 = vpop.f32.mrf.mxu0  ;;  %7218 = vmatmul.mubr.bf16.vlgmr.msra.gmra.mxu0 %v12084_v8  ;;  %v10769_v25 = vcombine.low %v925_v1, %v929_v47  ;;  %v10890_v30 = vcombine.high %v1045_v21, %v1049_v24  ;;  %v10889_v41 = vcombine.low %v1045_v21, %v1049_v24  ;;  %v1025_v1 = vld [vmem:[#allocation5 + $0x1c30] sm:$0xff] }
 0x31f   :  { %v6974_v49 = vadd.f32 %v6973_v43, %v12183_v23  ;;  %7268 = vmatpush1.bf16.msra.mxu0 %v10793_v33  ;;  %7299 = vmatprep.mubr.bf16.mxu0 %v12092_v38  ;;  %v913_v33 = vld [vmem:[#allocation5 + $0x18b0] sm:$0xff] }
 0x320   :  { %v7014_v51 = vpop.f32.mrf.mxu1  ;;  %7259 = vmatmul.mubr.bf16.vlgmr.msra.gmra.mxu1 %v12088_v9  ;;  %v6975_v56 = vpop.f32.mrf.mxu0  ;;  %7269 = vmatprep.subr.bf16.mxu0 %v10786_v36  ;;  %v1041_v36 = vld [vmem:[#allocation5 + $0x1cb0] sm:$0xff]  ;;  %v10754_v2 = vcombine.high %v909_v31, %v913_v33 }
 0x321   :  { %7309 = vmatpush1.bf16.msra.mxu1 %v10921_v34  ;;  %v12193_v0 = vadd.f32 %v7014_v51, %v6974_v49  ;;  %v6976_v44 = vadd.f32 %v6975_v56, %v12188_v35  ;;  %7340 = vmatprep.mubr.bf16.mxu1 %v12097_v42  ;;  %v10905_v35 = vcombine.low %v1061_v46, %v1065_v54  ;;  %v1037_v34 = vld [vmem:[#allocation5 + $0x1c90] sm:$0xff] }
 0x322   :  { %v7016_v14 = vpop.f32.mrf.mxu1  ;;  %7310 = vmatprep.subr.bf16.mxu1 %v10914_v37  ;;  %v6977_v23 = vpop.f32.mrf.mxu0  ;;  %v10761_v37 = vcombine.low %v917_v15, %v921_v18  ;;  %v10882_v43 = vcombine.high %v1037_v34, %v1041_v36  ;;  %v901_v46 = vld [vmem:[#allocation5 + $0x1850] sm:$0xff]  ;;  %v10881_v56 = vcombine.low %v1037_v34, %v1041_v36 }
 0x323   :  { %v12198_v27 = vadd.f32 %v7016_v14, %v6976_v44  ;;  %7270 = vmatpush1.bf16.msra.mxu0 %v10785_v52  ;;  %v905_v54 = vld [vmem:[#allocation5 + $0x1870] sm:$0xff]  ;;  %v10753_v52 = vcombine.low %v909_v31, %v913_v33 }
 0x324   :  { %v7018_v10 = vpop.f32.mrf.mxu1  ;;  %v6978_v7 = vpop.f32.mrf.mxu0  ;;  %7271 = vmatprep.subr.bf16.mxu0 %v10778_v62  ;;  %v1029_v49 = vld [vmem:[#allocation5 + $0x1c50] sm:$0xff]  ;;  %v10745_v47 = vcombine.low %v901_v46, %v905_v54 }
 0x325   :  { %7311 = vmatpush1.bf16.msra.mxu1 %v10913_v57  ;;  %v1033_v51 = vld [vmem:[#allocation5 + $0x1c70] sm:$0xff]  ;;  %v10746_v57 = vcombine.high %v901_v46, %v905_v54 }
 0x326   :  { %v7019_v12 = vpop.f32.mrf.mxu1  ;;  %7312 = vmatprep.subr.bf16.mxu1 %v10906_v5  ;;  %v10874_v62 = vcombine.high %v1029_v49, %v1033_v51  ;;  %v893_v44 = vld [vmem:[#allocation5 + $0x1810] sm:$0xff]  ;;  %v10873_v23 = vcombine.low %v1029_v49, %v1033_v51 }
 0x327   :  { %7272 = vmatpush1.bf16.msra.mxu0 %v10777_v11  ;;  %v897_v14 = vld [vmem:[#allocation5 + $0x1830] sm:$0xff] }
 0x328   :  { %7273 = vmatprep.subr.bf16.mxu0 %v10770_v60  ;;  %v1021_v5 = vld [vmem:[#allocation5 + $0x1c10] sm:$0xff]  ;;  %v10738_v3 = vcombine.high %v893_v44, %v897_v14  ;;  %v10737_v60 = vcombine.low %v893_v44, %v897_v14 }
 0x329   :  { %7313 = vmatpush1.bf16.msra.mxu1 %v10905_v35  ;;  %v10866_v4 = vcombine.high %v1021_v5, %v1025_v1  ;;  %v1013_v10 = vld [vmem:[#allocation5 + $0x1bd0] sm:$0xff]  ;;  %v10865_v12 = vcombine.low %v1021_v5, %v1025_v1 }
 0x32a   :  { %7314 = vmatprep.subr.bf16.mxu1 %v10898_v13  ;;  %v1017_v11 = vld [vmem:[#allocation5 + $0x1bf0] sm:$0xff] }
 0x32b   :  { %7274 = vmatpush1.bf16.msra.mxu0 %v10769_v25  ;;  %v1141_v7 = vld [vmem:[#allocation5 + $0x1fd0] sm:$0xff]  ;;  %v10858_v13 = vcombine.high %v1013_v10, %v1017_v11 }
 0x32c   :  { %7275 = vmatprep.subr.bf16.mxu0 %v10762_v26  ;;  %v1145_v35 = vld [vmem:[#allocation5 + $0x1ff0] sm:$0xff] }
 0x32d   :  { %7315 = vmatpush1.bf16.msra.mxu1 %v10897_v53  ;;  %v10986_v15 = vcombine.high %v1141_v7, %v1145_v35  ;;  %v1005_v18 = vld [vmem:[#allocation5 + $0x1b90] sm:$0xff]  ;;  %v10857_v53 = vcombine.low %v1013_v10, %v1017_v11  ;;  %v10985_v26 = vcombine.low %v1141_v7, %v1145_v35 }
 0x32e   :  { %7316 = vmatprep.subr.bf16.mxu1 %v10890_v30  ;;  %v1009_v21 = vld [vmem:[#allocation5 + $0x1bb0] sm:$0xff] }
 0x32f   :  { %7276 = vmatpush1.bf16.msra.mxu0 %v10761_v37  ;;  %v1133_v24 = vld [vmem:[#allocation5 + $0x1f90] sm:$0xff]  ;;  %v10850_v30 = vcombine.high %v1005_v18, %v1009_v21 }
 0x330   :  { %7277 = vmatprep.subr.bf16.mxu0 %v10754_v2  ;;  %v1137_v25 = vld [vmem:[#allocation5 + $0x1fb0] sm:$0xff] }
 0x331   :  { %7317 = vmatpush1.bf16.msra.mxu1 %v10889_v41  ;;  %v10978_v31 = vcombine.high %v1133_v24, %v1137_v25  ;;  %v997_v33 = vld [vmem:[#allocation5 + $0x1b50] sm:$0xff]  ;;  %v10849_v41 = vcombine.low %v1005_v18, %v1009_v21  ;;  %v10977_v2 = vcombine.low %v1133_v24, %v1137_v25 }
 0x332   :  { %7318 = vmatprep.subr.bf16.mxu1 %v10882_v43  ;;  %v1001_v34 = vld [vmem:[#allocation5 + $0x1b70] sm:$0xff] }
 0x333   :  { %7278 = vmatpush1.bf16.msra.mxu0 %v10753_v52  ;;  %v1125_v36 = vld [vmem:[#allocation5 + $0x1f50] sm:$0xff]  ;;  %v10842_v43 = vcombine.high %v997_v33, %v1001_v34 }
 0x334   :  { %7279 = vmatprep.subr.bf16.mxu0 %v10746_v57  ;;  %v1129_v37 = vld [vmem:[#allocation5 + $0x1f70] sm:$0xff] }
 0x335   :  { %7319 = vmatpush1.bf16.msra.mxu1 %v10881_v56  ;;  %v10970_v46 = vcombine.high %v1125_v36, %v1129_v37  ;;  %v989_v54 = vld [vmem:[#allocation5 + $0x1b10] sm:$0xff]  ;;  %v10841_v56 = vcombine.low %v997_v33, %v1001_v34  ;;  %v10969_v57 = vcombine.low %v1125_v36, %v1129_v37 }
 0x336   :  { %7320 = vmatprep.subr.bf16.mxu1 %v10874_v62  ;;  %v993_v49 = vld [vmem:[#allocation5 + $0x1b30] sm:$0xff] }
 0x337   :  { %7280 = vmatpush1.bf16.msra.mxu0 %v10745_v47  ;;  %v1117_v51 = vld [vmem:[#allocation5 + $0x1f10] sm:$0xff]  ;;  %v10834_v62 = vcombine.high %v989_v54, %v993_v49 }
 0x338   :  { %7281 = vmatprep.subr.bf16.mxu0 %v10738_v3  ;;  %v1121_v52 = vld [vmem:[#allocation5 + $0x1f30] sm:$0xff] }
 0x339   :  { %7321 = vmatpush1.bf16.msra.mxu1 %v10873_v23  ;;  %v10962_v44 = vcombine.high %v1117_v51, %v1121_v52  ;;  %v981_v14 = vld [vmem:[#allocation5 + $0x1ad0] sm:$0xff]  ;;  %v10833_v23 = vcombine.low %v989_v54, %v993_v49  ;;  %v10961_v3 = vcombine.low %v1117_v51, %v1121_v52  ;;  %v182_v49 = vld [vmem:[#allocation5 + $0x1d8] sm:$0xff] }
 0x33a   :  { %7322 = vmatprep.subr.bf16.mxu1 %v10866_v4  ;;  %v985_v5 = vld [vmem:[#allocation5 + $0x1af0] sm:$0xff]  ;;  %v186_v51 = vld [vmem:[#allocation5 + $0x1f8] sm:$0xff] }
 0x33b   :  { %7282 = vmatpush1.bf16.msra.mxu0 %v10737_v60  ;;  %v1109_v1 = vld [vmem:[#allocation5 + $0x1ed0] sm:$0xff]  ;;  %v10826_v4 = vcombine.high %v981_v14, %v985_v5  ;;  %v310_v52 = vld [vmem:[#allocation5 + $0x5d8] sm:$0xff] }
 0x33c   :  { %7283 = vmatprep.subr.bf16.mxu0 %v10858_v13  ;;  %v1113_v47 = vld [vmem:[#allocation5 + $0x1ef0] sm:$0xff] }
 0x33d   :  { %7323 = vmatpush1.bf16.msra.mxu1 %v10865_v12  ;;  %v10954_v10 = vcombine.high %v1109_v1, %v1113_v47  ;;  %v973_v11 = vld [vmem:[#allocation5 + $0x1a90] sm:$0xff]  ;;  %v10825_v12 = vcombine.low %v981_v14, %v985_v5  ;;  %v10953_v13 = vcombine.low %v1109_v1, %v1113_v47  ;;  %v10028_v14 = vcombine.high %v182_v49, %v186_v51  ;;  %v174_v47 = vld [vmem:[#allocation5 + $0x198] sm:$0xff] }
 0x33e   :  { %7324 = vmatprep.subr.bf16.mxu1 %v10986_v15  ;;  %v977_v7 = vld [vmem:[#allocation5 + $0x1ab0] sm:$0xff]  ;;  %v1171_v1 = vsub.s32 5, %v12102_v32 }
 0x33f   :  { %7284 = vmatpush2.bf16.msra.mxu0 %v10857_v53  ;;  %v1101_v35 = vld [vmem:[#allocation5 + $0x1e90] sm:$0xff]  ;;  %v10818_v15 = vcombine.high %v973_v11, %v977_v7 }
 0x340   :  { %7285 = vmatprep.subr.bf16.mxu0 %v10850_v30  ;;  %v1105_v60 = vld [vmem:[#allocation5 + $0x1eb0] sm:$0xff] }
 0x341   :  { %7325 = vmatpush2.bf16.msra.mxu1 %v10985_v26  ;;  %v10946_v18 = vcombine.high %v1101_v35, %v1105_v60  ;;  %v965_v21 = vld [vmem:[#allocation5 + $0x1a50] sm:$0xff]  ;;  %v10817_v26 = vcombine.low %v973_v11, %v977_v7  ;;  %v10945_v30 = vcombine.low %v1101_v35, %v1105_v60  ;;  %v10027_v7 = vcombine.low %v182_v49, %v186_v51  ;;  %v286_v49 = vld [vmem:[#allocation5 + $0x518] sm:$0xff] }
 0x342   :  { %7326 = vmatprep.subr.bf16.mxu1 %v10978_v31  ;;  %v969_v24 = vld [vmem:[#allocation5 + $0x1a70] sm:$0xff]  ;;  %v290_v51 = vld [vmem:[#allocation5 + $0x538] sm:$0xff] }
 0x343   :  { %7286 = vmatpush2.bf16.msra.mxu0 %v10849_v41  ;;  %v1093_v25 = vld [vmem:[#allocation5 + $0x1e50] sm:$0xff]  ;;  %v10810_v31 = vcombine.high %v965_v21, %v969_v24 }
 0x344   :  { %7287 = vmatprep.subr.bf16.mxu0 %v10842_v43  ;;  %v1097_v53 = vld [vmem:[#allocation5 + $0x1e70] sm:$0xff] }
 0x345   :  { %7327 = vmatpush2.bf16.msra.mxu1 %v10977_v2  ;;  %v10938_v33 = vcombine.high %v1093_v25, %v1097_v53  ;;  %v957_v34 = vld [vmem:[#allocation5 + $0x1a10] sm:$0xff]  ;;  %v10809_v2 = vcombine.low %v965_v21, %v969_v24  ;;  %v10937_v43 = vcombine.low %v1093_v25, %v1097_v53  ;;  %v294_v24 = vld [vmem:[#allocation5 + $0x558] sm:$0xff] }
 0x346   :  { %7328 = vmatprep.subr.bf16.mxu1 %v10970_v46  ;;  %v961_v36 = vld [vmem:[#allocation5 + $0x1a30] sm:$0xff]  ;;  %v298_v25 = vld [vmem:[#allocation5 + $0x578] sm:$0xff] }
 0x347   :  { %7288 = vmatpush2.bf16.msra.mxu0 %v10841_v56  ;;  %v1085_v37 = vld [vmem:[#allocation5 + $0x1e10] sm:$0xff]  ;;  %v10802_v46 = vcombine.high %v957_v34, %v961_v36  ;;  %v314_v56 = vld [vmem:[#allocation5 + $0x5f8] sm:$0xff] }
 0x348   :  { %7289 = vmatprep.subr.bf16.mxu0 %v10834_v62  ;;  %v1089_v41 = vld [vmem:[#allocation5 + $0x1e30] sm:$0xff]  ;;  %v1167_v62 = vsub.s32 4, %v12102_v32  ;;  %v10156_v5 = vcombine.high %v310_v52, %v314_v56  ;;  %v10155_v35 = vcombine.low %v310_v52, %v314_v56 }
 0x349   :  { %7329 = vmatpush2.bf16.msra.mxu1 %v10969_v57  ;;  %v10930_v54 = vcombine.high %v1085_v37, %v1089_v41  ;;  %v10801_v57 = vcombine.low %v957_v34, %v961_v36 }
 0x34a   :  { %7330 = vmatprep.subr.bf16.mxu1 %v10962_v44  ;;  %v10929_v44 = vcombine.low %v1085_v37, %v1089_v41 }
 0x34b   :  { %7290 = vmatpush2.bf16.msra.mxu0 %v10833_v23  ;;  %v178_v23 = vld [vmem:[#allocation5 + $0x1b8] sm:$0xff] }
 0x34c   :  { %7291 = vmatprep.subr.bf16.mxu0 %v10826_v4  ;;  %v306_v4 = vld [vmem:[#allocation5 + $0x5b8] sm:$0xff]  ;;  %v10020_v60 = vcombine.high %v174_v47, %v178_v23 }
 0x34d   :  { %7331 = vmatpush2.bf16.msra.mxu1 %v10961_v3  ;;  %v302_v3 = vld [vmem:[#allocation5 + $0x598] sm:$0xff] }
 0x34e   :  { %7332 = vmatprep.subr.bf16.mxu1 %v10954_v10  ;;  %v11769_v10 = vld [vmem:[#allocation7] sm:$0xff] }
 0x34f   :  { %7292 = vmatpush2.bf16.msra.mxu0 %v10825_v12  ;;  %v1168_v11 = vrot.slane %v11769_v10, %v1167_v62  ;;  %v1172_v12 = vrot.slane %v11769_v10, %v1171_v1  ;;  %v10132_v1 = vcombine.high %v286_v49, %v290_v51 }
 0x350   :  { %7293 = vmatprep.subr.bf16.mxu0 %v10818_v15  ;;  %v166_v15 = vld [vmem:[#allocation5 + $0x158] sm:$0xff] }
 0x351   :  { %7333 = vmatpush2.bf16.msra.mxu1 %v10953_v13  ;;  %v10148_v13 = vcombine.high %v302_v3, %v306_v4 }
 0x352   :  { %7334 = vmatprep.subr.bf16.mxu1 %v10946_v18  ;;  %v170_v18 = vld [vmem:[#allocation5 + $0x178] sm:$0xff] }
 0x353   :  { %7294 = vmatpush2.bf16.msra.mxu0 %v10817_v26  ;;  %v10012_v34 = vcombine.high %v166_v15, %v170_v18 }
 0x354   :  { %7295 = vmatprep.subr.bf16.mxu0 %v10810_v31 }
 0x355   :  { %7335 = vmatpush2.bf16.msra.mxu1 %v10945_v30  ;;  %v10019_v30 = vcombine.low %v174_v47, %v178_v23  ;;  %v150_v47 = vld [vmem:[#allocation5 + $0xd8] sm:$0xff] }
 0x356   :  { %7336 = vmatprep.subr.bf16.mxu1 %v10938_v33  ;;  %v10147_v33 = vcombine.low %v302_v3, %v306_v4  ;;  %v278_v23 = vld [vmem:[#allocation5 + $0x4d8] sm:$0xff] }
 0x357   :  { %7296 = vmatpush2.bf16.msra.mxu0 %v10809_v2  ;;  %v10140_v2 = vcombine.high %v294_v24, %v298_v25  ;;  %v282_v3 = vld [vmem:[#allocation5 + $0x4f8] sm:$0xff] }
 0x358   :  { %7297 = vmatprep.subr.bf16.mxu0 %v10802_v46  ;;  %v162_v46 = vld [vmem:[#allocation5 + $0x138] sm:$0xff] }
 0x359   :  { %7337 = vmatpush2.bf16.msra.mxu1 %v10937_v43  ;;  %v158_v43 = vld [vmem:[#allocation5 + $0x118] sm:$0xff] }
 0x35a   :  { %7338 = vmatprep.subr.bf16.mxu1 %v10930_v54  ;;  %v10003_v4 = vcombine.low %v158_v43, %v162_v46 }
 0x35b   :  { %7298 = vmatpush2.bf16.msra.mxu0 %v10801_v57  ;;  %v10011_v57 = vcombine.low %v166_v15, %v170_v18  ;;  %v10123_v15 = vcombine.low %v278_v23, %v282_v3 }
 0x35c   :  { %7349 = vmatprep.subr.bf16.mxu0 %v10028_v14  ;;  %v10004_v14 = vcombine.high %v158_v43, %v162_v46  ;;  %v258_v43 = vld [vmem:[#allocation5 + $0x438] sm:$0xff] }
 0x35d   :  { %7339 = vmatpush2.bf16.msra.mxu1 %v10929_v44  ;;  %v10139_v44 = vcombine.low %v294_v24, %v298_v25  ;;  %v134_v24 = vld [vmem:[#allocation5 + $0x58] sm:$0xff] }
 0x35e   :  { %7390 = vmatprep.subr.bf16.mxu1 %v10156_v5  ;;  %v7055_v21 = vpop.f32.mrf.mxu0  ;;  %7300 = vmatmul.mubr.bf16.vlgmr.msra.gmra.mxu0 %v12108_v55  ;;  %v138_v25 = vld [vmem:[#allocation5 + $0x78] sm:$0xff] }
 0x35f   :  { %v7056_v53 = vadd.f32 %v7055_v21, %v1168_v11  ;;  %7350 = vmatpush1.bf16.msra.mxu0 %v10027_v7  ;;  %7381 = vmatprep.mubr.bf16.mxu0 %v12022_v58  ;;  %v154_v58 = vld [vmem:[#allocation5 + $0xf8] sm:$0xff]  ;;  %v10124_v11 = vcombine.high %v278_v23, %v282_v3  ;;  %v9979_v46 = vcombine.low %v134_v24, %v138_v25 }
 0x360   :  { %v7096_v26 = vpop.f32.mrf.mxu1  ;;  %7341 = vmatmul.mubr.bf16.vlgmr.msra.gmra.mxu1 %v12114_v61  ;;  %v7057_v31 = vpop.f32.mrf.mxu0  ;;  %7351 = vmatprep.subr.bf16.mxu0 %v10020_v60  ;;  %v9996_v10 = vcombine.high %v150_v47, %v154_v58  ;;  %v142_v7 = vld [vmem:[#allocation5 + $0x98] sm:$0xff] }
 0x361   :  { %7391 = vmatpush1.bf16.msra.mxu1 %v10155_v35  ;;  %v12204_v36 = vadd.f32 %v7096_v26, %v7056_v53  ;;  %v7058_v37 = vadd.f32 %v7057_v31, %v1172_v12  ;;  %7422 = vmatprep.mubr.bf16.mxu1 %v12026_v59  ;;  %v10131_v59 = vcombine.low %v286_v49, %v290_v51  ;;  %v146_v35 = vld [vmem:[#allocation5 + $0xb8] sm:$0xff] }
 0x362   :  { %v7098_v41 = vpop.f32.mrf.mxu1  ;;  %7392 = vmatprep.subr.bf16.mxu1 %v10148_v13  ;;  %v7059_v54 = vpop.f32.mrf.mxu0  ;;  %v270_v60 = vld [vmem:[#allocation5 + $0x498] sm:$0xff]  ;;  %v9995_v13 = vcombine.low %v150_v47, %v154_v58  ;;  %v9988_v18 = vcombine.high %v142_v7, %v146_v35 }
 0x363   :  { %v12208_v52 = vadd.f32 %v7098_v41, %v7058_v37  ;;  %7352 = vmatpush1.bf16.msra.mxu0 %v10019_v30  ;;  %v274_v12 = vld [vmem:[#allocation5 + $0x4b8] sm:$0xff]  ;;  %v9987_v30 = vcombine.low %v142_v7, %v146_v35 }
 0x364   :  { %v7100_v56 = vpop.f32.mrf.mxu1  ;;  %v7060_v62 = vpop.f32.mrf.mxu0  ;;  %7353 = vmatprep.subr.bf16.mxu0 %v10012_v34  ;;  %v10116_v21 = vcombine.high %v270_v60, %v274_v12  ;;  %v262_v53 = vld [vmem:[#allocation5 + $0x458] sm:$0xff]  ;;  %v10115_v31 = vcombine.low %v270_v60, %v274_v12 }
 0x365   :  { %7393 = vmatpush1.bf16.msra.mxu1 %v10147_v33  ;;  %v266_v26 = vld [vmem:[#allocation5 + $0x478] sm:$0xff]  ;;  %v9980_v33 = vcombine.high %v134_v24, %v138_v25 }
 0x366   :  { %v7101_v5 = vpop.f32.mrf.mxu1  ;;  %7394 = vmatprep.subr.bf16.mxu1 %v10140_v2  ;;  %v10108_v34 = vcombine.high %v262_v53, %v266_v26  ;;  %v126_v37 = vld [vmem:[#allocation5 + $0x18] sm:$0xff]  ;;  %v10107_v54 = vcombine.low %v262_v53, %v266_v26 }
 0x367   :  { %7354 = vmatpush1.bf16.msra.mxu0 %v10011_v57  ;;  %v130_v41 = vld [vmem:[#allocation5 + $0x38] sm:$0xff] }
 0x368   :  { %7355 = vmatprep.subr.bf16.mxu0 %v10004_v14  ;;  %v254_v2 = vld [vmem:[#allocation5 + $0x418] sm:$0xff]  ;;  %v9972_v49 = vcombine.high %v126_v37, %v130_v41  ;;  %v9971_v14 = vcombine.low %v126_v37, %v130_v41 }
 0x369   :  { %7395 = vmatpush1.bf16.msra.mxu1 %v10139_v44  ;;  %v10100_v51 = vcombine.high %v254_v2, %v258_v43  ;;  %v246_v56 = vld [vmem:[#allocation5 + $0x3d8] sm:$0xff]  ;;  %v10099_v5 = vcombine.low %v254_v2, %v258_v43 }
 0x36a   :  { %7396 = vmatprep.subr.bf16.mxu1 %v10132_v1  ;;  %v250_v57 = vld [vmem:[#allocation5 + $0x3f8] sm:$0xff] }
 0x36b   :  { %7356 = vmatpush1.bf16.msra.mxu0 %v10003_v4  ;;  %v374_v62 = vld [vmem:[#allocation5 + $0x7d8] sm:$0xff]  ;;  %v10092_v1 = vcombine.high %v246_v56, %v250_v57 }
 0x36c   :  { %7357 = vmatprep.subr.bf16.mxu0 %v9996_v10  ;;  %v378_v44 = vld [vmem:[#allocation5 + $0x7f8] sm:$0xff] }
 0x36d   :  { %7397 = vmatpush1.bf16.msra.mxu1 %v10131_v59  ;;  %v10220_v47 = vcombine.high %v374_v62, %v378_v44  ;;  %v238_v58 = vld [vmem:[#allocation5 + $0x398] sm:$0xff]  ;;  %v10091_v59 = vcombine.low %v246_v56, %v250_v57  ;;  %v10219_v10 = vcombine.low %v374_v62, %v378_v44 }
 0x36e   :  { %7398 = vmatprep.subr.bf16.mxu1 %v10124_v11  ;;  %v242_v23 = vld [vmem:[#allocation5 + $0x3b8] sm:$0xff] }
 0x36f   :  { %7358 = vmatpush1.bf16.msra.mxu0 %v9995_v13  ;;  %v366_v3 = vld [vmem:[#allocation5 + $0x798] sm:$0xff]  ;;  %v10084_v11 = vcombine.high %v238_v58, %v242_v23 }
 0x370   :  { %7359 = vmatprep.subr.bf16.mxu0 %v9988_v18  ;;  %v370_v4 = vld [vmem:[#allocation5 + $0x7b8] sm:$0xff] }
 0x371   :  { %7399 = vmatpush1.bf16.msra.mxu1 %v10123_v15  ;;  %v10212_v7 = vcombine.high %v366_v3, %v370_v4  ;;  %v230_v35 = vld [vmem:[#allocation5 + $0x358] sm:$0xff]  ;;  %v10083_v15 = vcombine.low %v238_v58, %v242_v23  ;;  %v10211_v18 = vcombine.low %v366_v3, %v370_v4 }
 0x372   :  { %7400 = vmatprep.subr.bf16.mxu1 %v10116_v21  ;;  %v234_v60 = vld [vmem:[#allocation5 + $0x378] sm:$0xff] }
 0x373   :  { %7360 = vmatpush1.bf16.msra.mxu0 %v9987_v30  ;;  %v358_v12 = vld [vmem:[#allocation5 + $0x758] sm:$0xff]  ;;  %v10076_v21 = vcombine.high %v230_v35, %v234_v60 }
 0x374   :  { %7361 = vmatprep.subr.bf16.mxu0 %v9980_v33  ;;  %v362_v13 = vld [vmem:[#allocation5 + $0x778] sm:$0xff] }
 0x375   :  { %7401 = vmatpush1.bf16.msra.mxu1 %v10115_v31  ;;  %v10204_v24 = vcombine.high %v358_v12, %v362_v13  ;;  %v222_v25 = vld [vmem:[#allocation5 + $0x318] sm:$0xff]  ;;  %v10075_v31 = vcombine.low %v230_v35, %v234_v60  ;;  %v10203_v33 = vcombine.low %v358_v12, %v362_v13 }
 0x376   :  { %7402 = vmatprep.subr.bf16.mxu1 %v10108_v34  ;;  %v226_v53 = vld [vmem:[#allocation5 + $0x338] sm:$0xff] }
 0x377   :  { %7362 = vmatpush1.bf16.msra.mxu0 %v9979_v46  ;;  %v350_v26 = vld [vmem:[#allocation5 + $0x718] sm:$0xff]  ;;  %v10068_v34 = vcombine.high %v222_v25, %v226_v53 }
 0x378   :  { %7363 = vmatprep.subr.bf16.mxu0 %v9972_v49  ;;  %v354_v30 = vld [vmem:[#allocation5 + $0x738] sm:$0xff] }
 0x379   :  { %7403 = vmatpush1.bf16.msra.mxu1 %v10107_v54  ;;  %v10196_v37 = vcombine.high %v350_v26, %v354_v30  ;;  %v214_v41 = vld [vmem:[#allocation5 + $0x2d8] sm:$0xff]  ;;  %v10067_v54 = vcombine.low %v222_v25, %v226_v53  ;;  %v10195_v49 = vcombine.low %v350_v26, %v354_v30 }
 0x37a   :  { %7404 = vmatprep.subr.bf16.mxu1 %v10100_v51  ;;  %v218_v2 = vld [vmem:[#allocation5 + $0x2f8] sm:$0xff] }
 0x37b   :  { %7364 = vmatpush1.bf16.msra.mxu0 %v9971_v14  ;;  %v342_v43 = vld [vmem:[#allocation5 + $0x6d8] sm:$0xff]  ;;  %v10060_v51 = vcombine.high %v214_v41, %v218_v2 }
 0x37c   :  { %7365 = vmatprep.subr.bf16.mxu0 %v10092_v1  ;;  %v346_v46 = vld [vmem:[#allocation5 + $0x6f8] sm:$0xff] }
 0x37d   :  { %7405 = vmatpush1.bf16.msra.mxu1 %v10099_v5  ;;  %v10188_v56 = vcombine.high %v342_v43, %v346_v46  ;;  %v206_v57 = vld [vmem:[#allocation5 + $0x298] sm:$0xff]  ;;  %v10059_v5 = vcombine.low %v214_v41, %v218_v2  ;;  %v10187_v1 = vcombine.low %v342_v43, %v346_v46 }
 0x37e   :  { %7406 = vmatprep.subr.bf16.mxu1 %v10220_v47  ;;  %v210_v62 = vld [vmem:[#allocation5 + $0x2b8] sm:$0xff] }
 0x37f   :  { %7366 = vmatpush2.bf16.msra.mxu0 %v10091_v59  ;;  %v334_v44 = vld [vmem:[#allocation5 + $0x698] sm:$0xff]  ;;  %v10052_v47 = vcombine.high %v206_v57, %v210_v62 }
 0x380   :  { %7367 = vmatprep.subr.bf16.mxu0 %v10084_v11  ;;  %v338_v14 = vld [vmem:[#allocation5 + $0x6b8] sm:$0xff] }
 0x381   :  { %7407 = vmatpush2.bf16.msra.mxu1 %v10219_v10  ;;  %v10180_v58 = vcombine.high %v334_v44, %v338_v14  ;;  %v198_v23 = vld [vmem:[#allocation5 + $0x258] sm:$0xff]  ;;  %v10051_v10 = vcombine.low %v206_v57, %v210_v62  ;;  %v10179_v11 = vcombine.low %v334_v44, %v338_v14 }
 0x382   :  { %7408 = vmatprep.subr.bf16.mxu1 %v10212_v7  ;;  %v202_v3 = vld [vmem:[#allocation5 + $0x278] sm:$0xff] }
 0x383   :  { %7368 = vmatpush2.bf16.msra.mxu0 %v10083_v15  ;;  %v326_v4 = vld [vmem:[#allocation5 + $0x658] sm:$0xff]  ;;  %v10044_v7 = vcombine.high %v198_v23, %v202_v3 }
 0x384   :  { %7369 = vmatprep.subr.bf16.mxu0 %v10076_v21  ;;  %v330_v59 = vld [vmem:[#allocation5 + $0x678] sm:$0xff] }
 0x385   :  { %7409 = vmatpush2.bf16.msra.mxu1 %v10211_v18  ;;  %v10172_v35 = vcombine.high %v326_v4, %v330_v59  ;;  %v190_v60 = vld [vmem:[#allocation5 + $0x218] sm:$0xff]  ;;  %v10043_v18 = vcombine.low %v198_v23, %v202_v3  ;;  %v10171_v21 = vcombine.low %v326_v4, %v330_v59 }
 0x386   :  { %7410 = vmatprep.subr.bf16.mxu1 %v10204_v24  ;;  %v194_v12 = vld [vmem:[#allocation5 + $0x238] sm:$0xff] }
 0x387   :  { %7370 = vmatpush2.bf16.msra.mxu0 %v10075_v31  ;;  %v318_v13 = vld [vmem:[#allocation5 + $0x618] sm:$0xff]  ;;  %v10036_v24 = vcombine.high %v190_v60, %v194_v12 }
 0x388   :  { %7371 = vmatprep.subr.bf16.mxu0 %v10068_v34  ;;  %v322_v15 = vld [vmem:[#allocation5 + $0x638] sm:$0xff] }
 0x389   :  { %7411 = vmatpush2.bf16.msra.mxu1 %v10203_v33  ;;  %v10164_v25 = vcombine.high %v318_v13, %v322_v15  ;;  %v438_v53 = vld [vmem:[#allocation5 + $0x9d8] sm:$0xff]  ;;  %v10035_v33 = vcombine.low %v190_v60, %v194_v12  ;;  %v10163_v34 = vcombine.low %v318_v13, %v322_v15 }
 0x38a   :  { %7412 = vmatprep.subr.bf16.mxu1 %v10196_v37  ;;  %v442_v26 = vld [vmem:[#allocation5 + $0x9f8] sm:$0xff] }
 0x38b   :  { %7372 = vmatpush2.bf16.msra.mxu0 %v10067_v54  ;;  %v566_v30 = vld [vmem:[#allocation5 + $0xdd8] sm:$0xff]  ;;  %v10284_v37 = vcombine.high %v438_v53, %v442_v26 }
 0x38c   :  { %7373 = vmatprep.subr.bf16.mxu0 %v10060_v51  ;;  %v570_v31 = vld [vmem:[#allocation5 + $0xdf8] sm:$0xff] }
 0x38d   :  { %7413 = vmatpush2.bf16.msra.mxu1 %v10195_v49  ;;  %v10412_v41 = vcombine.high %v566_v30, %v570_v31  ;;  %v430_v2 = vld [vmem:[#allocation5 + $0x998] sm:$0xff]  ;;  %v10283_v49 = vcombine.low %v438_v53, %v442_v26  ;;  %v10411_v51 = vcombine.low %v566_v30, %v570_v31 }
 0x38e   :  { %7414 = vmatprep.subr.bf16.mxu1 %v10188_v56  ;;  %v434_v43 = vld [vmem:[#allocation5 + $0x9b8] sm:$0xff] }
 0x38f   :  { %7374 = vmatpush2.bf16.msra.mxu0 %v10059_v5  ;;  %v558_v46 = vld [vmem:[#allocation5 + $0xd98] sm:$0xff]  ;;  %v10276_v56 = vcombine.high %v430_v2, %v434_v43  ;;  %v10275_v23 = vcombine.low %v430_v2, %v434_v43 }
 0x390   :  { %7375 = vmatprep.subr.bf16.mxu0 %v10052_v47  ;;  %v562_v54 = vld [vmem:[#allocation5 + $0xdb8] sm:$0xff] }
 0x391   :  { %7415 = vmatpush2.bf16.msra.mxu1 %v10187_v1  ;;  %v10404_v57 = vcombine.high %v558_v46, %v562_v54  ;;  %v422_v62 = vld [vmem:[#allocation5 + $0x958] sm:$0xff]  ;;  %v10403_v4 = vcombine.low %v558_v46, %v562_v54 }
 0x392   :  { %7416 = vmatprep.subr.bf16.mxu1 %v10180_v58  ;;  %v426_v44 = vld [vmem:[#allocation5 + $0x978] sm:$0xff] }
 0x393   :  { %7376 = vmatpush2.bf16.msra.mxu0 %v10051_v10  ;;  %v550_v5 = vld [vmem:[#allocation5 + $0xd58] sm:$0xff]  ;;  %v10268_v59 = vcombine.high %v422_v62, %v426_v44 }
 0x394   :  { %7377 = vmatprep.subr.bf16.mxu0 %v10044_v7  ;;  %v554_v1 = vld [vmem:[#allocation5 + $0xd78] sm:$0xff] }
 0x395   :  { %7417 = vmatpush2.bf16.msra.mxu1 %v10179_v11  ;;  %v418_v60 = vld [vmem:[#allocation5 + $0x938] sm:$0xff] }
 0x396   :  { %7418 = vmatprep.subr.bf16.mxu1 %v10172_v35  ;;  %v414_v35 = vld [vmem:[#allocation5 + $0x918] sm:$0xff] }
 0x397   :  { %7378 = vmatpush2.bf16.msra.mxu0 %v10043_v18  ;;  %v546_v12 = vld [vmem:[#allocation5 + $0xd38] sm:$0xff]  ;;  %v10267_v18 = vcombine.low %v422_v62, %v426_v44 }
 0x398   :  { %7379 = vmatprep.subr.bf16.mxu0 %v10036_v24  ;;  %v10260_v24 = vcombine.high %v414_v35, %v418_v60  ;;  %v406_v26 = vld [vmem:[#allocation5 + $0x8d8] sm:$0xff] }
 0x399   :  { %7419 = vmatpush2.bf16.msra.mxu1 %v10171_v21  ;;  %v534_v30 = vld [vmem:[#allocation5 + $0xcd8] sm:$0xff] }
 0x39a   :  { %7420 = vmatprep.subr.bf16.mxu1 %v10164_v25  ;;  %v538_v31 = vld [vmem:[#allocation5 + $0xcf8] sm:$0xff] }
 0x39b   :  { %7380 = vmatpush2.bf16.msra.mxu0 %v10035_v33  ;;  %v10259_v33 = vcombine.low %v414_v35, %v418_v60  ;;  %v402_v2 = vld [vmem:[#allocation5 + $0x8b8] sm:$0xff] }
 0x39c   :  { %7431 = vmatprep.subr.bf16.mxu0 %v10284_v37  ;;  %v10380_v37 = vcombine.high %v534_v30, %v538_v31  ;;  %v526_v43 = vld [vmem:[#allocation5 + $0xc98] sm:$0xff] }
 0x39d   :  { %7421 = vmatpush2.bf16.msra.mxu1 %v10163_v34  ;;  %v530_v46 = vld [vmem:[#allocation5 + $0xcb8] sm:$0xff] }
 0x39e   :  { %7472 = vmatprep.subr.bf16.mxu1 %v10412_v41  ;;  %v7137_v14 = vpop.f32.mrf.mxu0  ;;  %7382 = vmatmul.mubr.bf16.vlgmr.msra.gmra.mxu0 %v12032_v16  ;;  %v10396_v16 = vcombine.high %v550_v5, %v554_v1  ;;  %v398_v41 = vld [vmem:[#allocation5 + $0x898] sm:$0xff] }
 0x39f   :  { %v7138_v47 = vadd.f32 %v7137_v14, %v12204_v36  ;;  %7432 = vmatpush1.bf16.msra.mxu0 %v10283_v49  ;;  %7463 = vmatprep.mubr.bf16.mxu0 %v12044_v28  ;;  %v410_v28 = vld [vmem:[#allocation5 + $0x8f8] sm:$0xff]  ;;  %v10379_v49 = vcombine.low %v534_v30, %v538_v31 }
 0x3a0   :  { %v7178_v58 = vpop.f32.mrf.mxu1  ;;  %7423 = vmatmul.mubr.bf16.vlgmr.msra.gmra.mxu1 %v12038_v20  ;;  %v7139_v3 = vpop.f32.mrf.mxu0  ;;  %7433 = vmatprep.subr.bf16.mxu0 %v10276_v56  ;;  %v542_v20 = vld [vmem:[#allocation5 + $0xd18] sm:$0xff]  ;;  %v10252_v34 = vcombine.high %v406_v26, %v410_v28  ;;  %v10251_v54 = vcombine.low %v406_v26, %v410_v28  ;;  %v10372_v56 = vcombine.high %v526_v43, %v530_v46 }
 0x3a1   :  { %7473 = vmatpush1.bf16.msra.mxu1 %v10411_v51  ;;  %v12213_v10 = vadd.f32 %v7178_v58, %v7138_v47  ;;  %v7140_v11 = vadd.f32 %v7139_v3, %v12208_v52  ;;  %7504 = vmatprep.mubr.bf16.mxu1 %v12049_v29  ;;  %v10395_v52 = vcombine.low %v550_v5, %v554_v1  ;;  %v394_v62 = vld [vmem:[#allocation5 + $0x878] sm:$0xff] }
 0x3a2   :  { %v7180_v7 = vpop.f32.mrf.mxu1  ;;  %7474 = vmatprep.subr.bf16.mxu1 %v10404_v57  ;;  %v7141_v36 = vpop.f32.mrf.mxu0  ;;  %v10388_v53 = vcombine.high %v542_v20, %v546_v12  ;;  %v10387_v29 = vcombine.low %v542_v20, %v546_v12  ;;  %v10244_v51 = vcombine.high %v398_v41, %v402_v2  ;;  %v390_v57 = vld [vmem:[#allocation5 + $0x858] sm:$0xff]  ;;  %v10243_v5 = vcombine.low %v398_v41, %v402_v2 }
 0x3a3   :  { %v12218_v13 = vadd.f32 %v7180_v7, %v7140_v11  ;;  %7434 = vmatpush1.bf16.msra.mxu0 %v10275_v23  ;;  %v518_v44 = vld [vmem:[#allocation5 + $0xc58] sm:$0xff]  ;;  %v10371_v1 = vcombine.low %v526_v43, %v530_v46  ;;  %v10236_v47 = vcombine.high %v390_v57, %v394_v62  ;;  %v10235_v11 = vcombine.low %v390_v57, %v394_v62 }
 0x3a4   :  { %v7182_v15 = vpop.f32.mrf.mxu1  ;;  %v7142_v21 = vpop.f32.mrf.mxu0  ;;  %7435 = vmatprep.subr.bf16.mxu0 %v10268_v59  ;;  %v522_v14 = vld [vmem:[#allocation5 + $0xc78] sm:$0xff] }
 0x3a5   :  { %7475 = vmatpush1.bf16.msra.mxu1 %v10403_v4  ;;  %v10364_v58 = vcombine.high %v518_v44, %v522_v14  ;;  %v382_v23 = vld [vmem:[#allocation5 + $0x818] sm:$0xff]  ;;  %v10363_v7 = vcombine.low %v518_v44, %v522_v14 }
 0x3a6   :  { %v7183_v25 = vpop.f32.mrf.mxu1  ;;  %7476 = vmatprep.subr.bf16.mxu1 %v10396_v16  ;;  %v386_v3 = vld [vmem:[#allocation5 + $0x838] sm:$0xff] }
 0x3a7   :  { %7436 = vmatpush1.bf16.msra.mxu0 %v10267_v18  ;;  %v510_v4 = vld [vmem:[#allocation5 + $0xc18] sm:$0xff]  ;;  %v10228_v16 = vcombine.high %v382_v23, %v386_v3  ;;  %v10227_v15 = vcombine.low %v382_v23, %v386_v3 }
 0x3a8   :  { %7437 = vmatprep.subr.bf16.mxu0 %v10260_v24  ;;  %v514_v59 = vld [vmem:[#allocation5 + $0xc38] sm:$0xff] }
 0x3a9   :  { %7477 = vmatpush1.bf16.msra.mxu1 %v10395_v52  ;;  %v10356_v35 = vcombine.high %v510_v4, %v514_v59  ;;  %v502_v60 = vld [vmem:[#allocation5 + $0xbd8] sm:$0xff]  ;;  %v10355_v18 = vcombine.low %v510_v4, %v514_v59 }
 0x3aa   :  { %7478 = vmatprep.subr.bf16.mxu1 %v10388_v53  ;;  %v506_v36 = vld [vmem:[#allocation5 + $0xbf8] sm:$0xff] }
 0x3ab   :  { %7438 = vmatpush1.bf16.msra.mxu0 %v10259_v33  ;;  %v630_v20 = vld [vmem:[#allocation5 + $0xfd8] sm:$0xff]  ;;  %v10348_v21 = vcombine.high %v502_v60, %v506_v36  ;;  %v10347_v28 = vcombine.low %v502_v60, %v506_v36 }
 0x3ac   :  { %7439 = vmatprep.subr.bf16.mxu0 %v10252_v34  ;;  %v634_v12 = vld [vmem:[#allocation5 + $0xff8] sm:$0xff] }
 0x3ad   :  { %7479 = vmatpush1.bf16.msra.mxu1 %v10387_v29  ;;  %v10476_v52 = vcombine.high %v630_v20, %v634_v12  ;;  %v494_v24 = vld [vmem:[#allocation5 + $0xb98] sm:$0xff]  ;;  %v10475_v30 = vcombine.low %v630_v20, %v634_v12 }
 0x3ae   :  { %7480 = vmatprep.subr.bf16.mxu1 %v10380_v37  ;;  %v498_v25 = vld [vmem:[#allocation5 + $0xbb8] sm:$0xff] }
 0x3af   :  { %7440 = vmatpush1.bf16.msra.mxu0 %v10251_v54  ;;  %v622_v53 = vld [vmem:[#allocation5 + $0xf98] sm:$0xff]  ;;  %v10340_v31 = vcombine.high %v494_v24, %v498_v25  ;;  %v10339_v2 = vcombine.low %v494_v24, %v498_v25 }
 0x3b0   :  { %7441 = vmatprep.subr.bf16.mxu0 %v10244_v51  ;;  %v626_v26 = vld [vmem:[#allocation5 + $0xfb8] sm:$0xff] }
 0x3b1   :  { %7481 = vmatpush1.bf16.msra.mxu1 %v10379_v49  ;;  %v10468_v33 = vcombine.high %v622_v53, %v626_v26  ;;  %v486_v29 = vld [vmem:[#allocation5 + $0xb58] sm:$0xff]  ;;  %v10467_v43 = vcombine.low %v622_v53, %v626_v26 }
 0x3b2   :  { %7482 = vmatprep.subr.bf16.mxu1 %v10372_v56  ;;  %v490_v34 = vld [vmem:[#allocation5 + $0xb78] sm:$0xff] }
 0x3b3   :  { %7442 = vmatpush1.bf16.msra.mxu0 %v10243_v5  ;;  %v614_v37 = vld [vmem:[#allocation5 + $0xf58] sm:$0xff]  ;;  %v10332_v46 = vcombine.high %v486_v29, %v490_v34  ;;  %v10331_v62 = vcombine.low %v486_v29, %v490_v34 }
 0x3b4   :  { %7443 = vmatprep.subr.bf16.mxu0 %v10236_v47  ;;  %v618_v41 = vld [vmem:[#allocation5 + $0xf78] sm:$0xff] }
 0x3b5   :  { %7483 = vmatpush1.bf16.msra.mxu1 %v10371_v1  ;;  %v10460_v54 = vcombine.high %v614_v37, %v618_v41  ;;  %v478_v49 = vld [vmem:[#allocation5 + $0xb18] sm:$0xff]  ;;  %v10459_v44 = vcombine.low %v614_v37, %v618_v41 }
 0x3b6   :  { %7484 = vmatprep.subr.bf16.mxu1 %v10364_v58  ;;  %v482_v51 = vld [vmem:[#allocation5 + $0xb38] sm:$0xff] }
 0x3b7   :  { %7444 = vmatpush1.bf16.msra.mxu0 %v10235_v11  ;;  %v606_v56 = vld [vmem:[#allocation5 + $0xf18] sm:$0xff]  ;;  %v10324_v14 = vcombine.high %v478_v49, %v482_v51  ;;  %v10323_v3 = vcombine.low %v478_v49, %v482_v51 }
 0x3b8   :  { %7445 = vmatprep.subr.bf16.mxu0 %v10228_v16  ;;  %v610_v57 = vld [vmem:[#allocation5 + $0xf38] sm:$0xff] }
 0x3b9   :  { %7485 = vmatpush1.bf16.msra.mxu1 %v10363_v7  ;;  %v10452_v5 = vcombine.high %v606_v56, %v610_v57  ;;  %v470_v1 = vld [vmem:[#allocation5 + $0xad8] sm:$0xff]  ;;  %v10451_v4 = vcombine.low %v606_v56, %v610_v57 }
 0x3ba   :  { %7486 = vmatprep.subr.bf16.mxu1 %v10356_v35  ;;  %v474_v47 = vld [vmem:[#allocation5 + $0xaf8] sm:$0xff] }
 0x3bb   :  { %7446 = vmatpush1.bf16.msra.mxu0 %v10227_v15  ;;  %v598_v58 = vld [vmem:[#allocation5 + $0xed8] sm:$0xff]  ;;  %v10316_v59 = vcombine.high %v470_v1, %v474_v47  ;;  %v10315_v36 = vcombine.low %v470_v1, %v474_v47 }
 0x3bc   :  { %7447 = vmatprep.subr.bf16.mxu0 %v10348_v21  ;;  %v602_v23 = vld [vmem:[#allocation5 + $0xef8] sm:$0xff] }
 0x3bd   :  { %7487 = vmatpush1.bf16.msra.mxu1 %v10355_v18  ;;  %v10444_v11 = vcombine.high %v598_v58, %v602_v23  ;;  %v462_v7 = vld [vmem:[#allocation5 + $0xa98] sm:$0xff]  ;;  %v10443_v20 = vcombine.low %v598_v58, %v602_v23 }
 0x3be   :  { %7488 = vmatprep.subr.bf16.mxu1 %v10476_v52  ;;  %v466_v16 = vld [vmem:[#allocation5 + $0xab8] sm:$0xff] }
 0x3bf   :  { %7448 = vmatpush2.bf16.msra.mxu0 %v10347_v28  ;;  %v590_v35 = vld [vmem:[#allocation5 + $0xe98] sm:$0xff]  ;;  %v10308_v12 = vcombine.high %v462_v7, %v466_v16  ;;  %v10307_v25 = vcombine.low %v462_v7, %v466_v16 }
 0x3c0   :  { %7449 = vmatprep.subr.bf16.mxu0 %v10340_v31  ;;  %v594_v60 = vld [vmem:[#allocation5 + $0xeb8] sm:$0xff] }
 0x3c1   :  { %7489 = vmatpush2.bf16.msra.mxu1 %v10475_v30  ;;  %v10436_v15 = vcombine.high %v590_v35, %v594_v60  ;;  %v454_v18 = vld [vmem:[#allocation5 + $0xa58] sm:$0xff]  ;;  %v10435_v53 = vcombine.low %v590_v35, %v594_v60 }
 0x3c2   :  { %7490 = vmatprep.subr.bf16.mxu1 %v10468_v33  ;;  %v458_v21 = vld [vmem:[#allocation5 + $0xa78] sm:$0xff] }
 0x3c3   :  { %7450 = vmatpush2.bf16.msra.mxu0 %v10339_v2  ;;  %v582_v52 = vld [vmem:[#allocation5 + $0xe58] sm:$0xff]  ;;  %v10300_v26 = vcombine.high %v454_v18, %v458_v21  ;;  %v10299_v34 = vcombine.low %v454_v18, %v458_v21 }
 0x3c4   :  { %7451 = vmatprep.subr.bf16.mxu0 %v10332_v46  ;;  %v586_v24 = vld [vmem:[#allocation5 + $0xe78] sm:$0xff] }
 0x3c5   :  { %7491 = vmatpush2.bf16.msra.mxu1 %v10467_v43  ;;  %v10428_v28 = vcombine.high %v582_v52, %v586_v24  ;;  %v446_v30 = vld [vmem:[#allocation5 + $0xa18] sm:$0xff]  ;;  %v10427_v37 = vcombine.low %v582_v52, %v586_v24 }
 0x3c6   :  { %7492 = vmatprep.subr.bf16.mxu1 %v10460_v54  ;;  %v450_v31 = vld [vmem:[#allocation5 + $0xa38] sm:$0xff] }
 0x3c7   :  { %7452 = vmatpush2.bf16.msra.mxu0 %v10331_v62  ;;  %v574_v33 = vld [vmem:[#allocation5 + $0xe18] sm:$0xff]  ;;  %v10292_v41 = vcombine.high %v446_v30, %v450_v31  ;;  %v10291_v51 = vcombine.low %v446_v30, %v450_v31 }
 0x3c8   :  { %7453 = vmatprep.subr.bf16.mxu0 %v10324_v14  ;;  %v578_v29 = vld [vmem:[#allocation5 + $0xe38] sm:$0xff] }
 0x3c9   :  { %7493 = vmatpush2.bf16.msra.mxu1 %v10459_v44  ;;  %v10420_v2 = vcombine.high %v574_v33, %v578_v29  ;;  %v694_v43 = vld [vmem:[#allocation5 + $0x11d8] sm:$0xff]  ;;  %v10419_v56 = vcombine.low %v574_v33, %v578_v29 }
 0x3ca   :  { %7494 = vmatprep.subr.bf16.mxu1 %v10452_v5  ;;  %v698_v46 = vld [vmem:[#allocation5 + $0x11f8] sm:$0xff] }
 0x3cb   :  { %7454 = vmatpush2.bf16.msra.mxu0 %v10323_v3  ;;  %v822_v54 = vld [vmem:[#allocation5 + $0x15d8] sm:$0xff]  ;;  %v10540_v57 = vcombine.high %v694_v43, %v698_v46  ;;  %v10539_v47 = vcombine.low %v694_v43, %v698_v46 }
 0x3cc   :  { %7455 = vmatprep.subr.bf16.mxu0 %v10316_v59  ;;  %v826_v49 = vld [vmem:[#allocation5 + $0x15f8] sm:$0xff] }
 0x3cd   :  { %7495 = vmatpush2.bf16.msra.mxu1 %v10451_v4  ;;  %v10668_v62 = vcombine.high %v822_v54, %v826_v49  ;;  %v686_v44 = vld [vmem:[#allocation5 + $0x1198] sm:$0xff]  ;;  %v10667_v58 = vcombine.low %v822_v54, %v826_v49 }
 0x3ce   :  { %7496 = vmatprep.subr.bf16.mxu1 %v10444_v11  ;;  %v690_v14 = vld [vmem:[#allocation5 + $0x11b8] sm:$0xff] }
 0x3cf   :  { %7456 = vmatpush2.bf16.msra.mxu0 %v10315_v36  ;;  %v814_v5 = vld [vmem:[#allocation5 + $0x1598] sm:$0xff]  ;;  %v10532_v23 = vcombine.high %v686_v44, %v690_v14  ;;  %v10531_v36 = vcombine.low %v686_v44, %v690_v14 }
 0x3d0   :  { %7457 = vmatprep.subr.bf16.mxu0 %v10308_v12  ;;  %v818_v1 = vld [vmem:[#allocation5 + $0x15b8] sm:$0xff] }
 0x3d1   :  { %7497 = vmatpush2.bf16.msra.mxu1 %v10443_v20  ;;  %v10660_v3 = vcombine.high %v814_v5, %v818_v1  ;;  %v678_v4 = vld [vmem:[#allocation5 + $0x1158] sm:$0xff]  ;;  %v10659_v12 = vcombine.low %v814_v5, %v818_v1 }
 0x3d2   :  { %7498 = vmatprep.subr.bf16.mxu1 %v10436_v15  ;;  %v682_v59 = vld [vmem:[#allocation5 + $0x1178] sm:$0xff] }
 0x3d3   :  { %7458 = vmatpush2.bf16.msra.mxu0 %v10307_v25  ;;  %v806_v7 = vld [vmem:[#allocation5 + $0x1558] sm:$0xff]  ;;  %v10524_v15 = vcombine.high %v678_v4, %v682_v59  ;;  %v10523_v30 = vcombine.low %v678_v4, %v682_v59 }
 0x3d4   :  { %7459 = vmatprep.subr.bf16.mxu0 %v10300_v26  ;;  %v810_v16 = vld [vmem:[#allocation5 + $0x1578] sm:$0xff] }
 0x3d5   :  { %7499 = vmatpush2.bf16.msra.mxu1 %v10435_v53  ;;  %v670_v24 = vld [vmem:[#allocation5 + $0x1118] sm:$0xff] }
 0x3d6   :  { %7500 = vmatprep.subr.bf16.mxu1 %v10428_v28  ;;  %v674_v25 = vld [vmem:[#allocation5 + $0x1138] sm:$0xff] }
 0x3d7   :  { %7460 = vmatpush2.bf16.msra.mxu0 %v10299_v34  ;;  %v802_v53 = vld [vmem:[#allocation5 + $0x1538] sm:$0xff]  ;;  %v10516_v33 = vcombine.high %v670_v24, %v674_v25  ;;  %v10515_v43 = vcombine.low %v670_v24, %v674_v25 }
 0x3d8   :  { %7461 = vmatprep.subr.bf16.mxu0 %v10292_v41  ;;  %v790_v41 = vld [vmem:[#allocation5 + $0x14d8] sm:$0xff] }
 0x3d9   :  { %7501 = vmatpush2.bf16.msra.mxu1 %v10427_v37  ;;  %v662_v37 = vld [vmem:[#allocation5 + $0x10d8] sm:$0xff] }
 0x3da   :  { %7502 = vmatprep.subr.bf16.mxu1 %v10420_v2  ;;  %v794_v2 = vld [vmem:[#allocation5 + $0x14f8] sm:$0xff] }
 0x3db   :  { %7462 = vmatpush2.bf16.msra.mxu0 %v10291_v51  ;;  %v10636_v54 = vcombine.high %v790_v41, %v794_v2  ;;  %v654_v49 = vld [vmem:[#allocation5 + $0x1098] sm:$0xff]  ;;  %v10635_v44 = vcombine.low %v790_v41, %v794_v2 }
 0x3dc   :  { %7513 = vmatprep.subr.bf16.mxu0 %v10540_v57  ;;  %v658_v51 = vld [vmem:[#allocation5 + $0x10b8] sm:$0xff] }
 0x3dd   :  { %7503 = vmatpush2.bf16.msra.mxu1 %v10419_v56  ;;  %v782_v56 = vld [vmem:[#allocation5 + $0x1498] sm:$0xff]  ;;  %v10500_v14 = vcombine.high %v654_v49, %v658_v51 }
 0x3de   :  { %7554 = vmatprep.subr.bf16.mxu1 %v10668_v62  ;;  %v7219_v11 = vpop.f32.mrf.mxu0  ;;  %7464 = vmatmul.mubr.bf16.vlgmr.msra.gmra.mxu0 %v12058_v39  ;;  %v10652_v39 = vcombine.high %v806_v7, %v810_v16  ;;  %v786_v57 = vld [vmem:[#allocation5 + $0x14b8] sm:$0xff] }
 0x3df   :  { %v7220_v35 = vadd.f32 %v7219_v11, %v12213_v10  ;;  %7514 = vmatpush1.bf16.msra.mxu0 %v10539_v47  ;;  %7545 = vmatprep.mubr.bf16.mxu0 %v12068_v19  ;;  %v666_v19 = vld [vmem:[#allocation5 + $0x10f8] sm:$0xff]  ;;  %v10628_v5 = vcombine.high %v782_v56, %v786_v57  ;;  %v10627_v4 = vcombine.low %v782_v56, %v786_v57 }
 0x3e0   :  { %v7260_v60 = vpop.f32.mrf.mxu1  ;;  %7505 = vmatmul.mubr.bf16.vlgmr.msra.gmra.mxu1 %v12062_v40  ;;  %v7221_v20 = vpop.f32.mrf.mxu0  ;;  %7515 = vmatprep.subr.bf16.mxu0 %v10532_v23  ;;  %v798_v40 = vld [vmem:[#allocation5 + $0x1518] sm:$0xff]  ;;  %v10508_v46 = vcombine.high %v662_v37, %v666_v19  ;;  %v10507_v62 = vcombine.low %v662_v37, %v666_v19 }
 0x3e1   :  { %7555 = vmatpush1.bf16.msra.mxu1 %v10667_v58  ;;  %v12223_v18 = vadd.f32 %v7260_v60, %v7220_v35  ;;  %v7222_v21 = vadd.f32 %v7221_v20, %v12218_v13  ;;  %7586 = vmatprep.mubr.bf16.mxu1 %v12073_v22  ;;  %v10651_v13 = vcombine.low %v806_v7, %v810_v16  ;;  %v646_v1 = vld [vmem:[#allocation5 + $0x1058] sm:$0xff] }
 0x3e2   :  { %v7262_v52 = vpop.f32.mrf.mxu1  ;;  %7556 = vmatprep.subr.bf16.mxu1 %v10660_v3  ;;  %v7223_v10 = vpop.f32.mrf.mxu0  ;;  %v10644_v34 = vcombine.high %v798_v40, %v802_v53  ;;  %v10643_v22 = vcombine.low %v798_v40, %v802_v53  ;;  %v650_v47 = vld [vmem:[#allocation5 + $0x1078] sm:$0xff]  ;;  %v10499_v3 = vcombine.low %v654_v49, %v658_v51 }
 0x3e3   :  { %v12228_v26 = vadd.f32 %v7262_v52, %v7222_v21  ;;  %7516 = vmatpush1.bf16.msra.mxu0 %v10531_v36  ;;  %v774_v58 = vld [vmem:[#allocation5 + $0x1458] sm:$0xff]  ;;  %v10492_v59 = vcombine.high %v646_v1, %v650_v47  ;;  %v10491_v36 = vcombine.low %v646_v1, %v650_v47 }
 0x3e4   :  { %v7264_v28 = vpop.f32.mrf.mxu1  ;;  %v7224_v31 = vpop.f32.mrf.mxu0  ;;  %7517 = vmatprep.subr.bf16.mxu0 %v10524_v15  ;;  %v778_v23 = vld [vmem:[#allocation5 + $0x1478] sm:$0xff] }
 0x3e5   :  { %7557 = vmatpush1.bf16.msra.mxu1 %v10659_v12  ;;  %v10620_v11 = vcombine.high %v774_v58, %v778_v23  ;;  %v638_v7 = vld [vmem:[#allocation5 + $0x1018] sm:$0xff]  ;;  %v10619_v20 = vcombine.low %v774_v58, %v778_v23 }
 0x3e6   :  { %v7265_v29 = vpop.f32.mrf.mxu1  ;;  %7558 = vmatprep.subr.bf16.mxu1 %v10652_v39  ;;  %v642_v16 = vld [vmem:[#allocation5 + $0x1038] sm:$0xff] }
 0x3e7   :  { %7518 = vmatpush1.bf16.msra.mxu0 %v10523_v30  ;;  %v766_v35 = vld [vmem:[#allocation5 + $0x1418] sm:$0xff]  ;;  %v10484_v12 = vcombine.high %v638_v7, %v642_v16  ;;  %v10483_v25 = vcombine.low %v638_v7, %v642_v16 }
 0x3e8   :  { %7519 = vmatprep.subr.bf16.mxu0 %v10516_v33  ;;  %v770_v60 = vld [vmem:[#allocation5 + $0x1438] sm:$0xff] }
 0x3e9   :  { %7559 = vmatpush1.bf16.msra.mxu1 %v10651_v13  ;;  %v10612_v15 = vcombine.high %v766_v35, %v770_v60  ;;  %v758_v21 = vld [vmem:[#allocation5 + $0x13d8] sm:$0xff]  ;;  %v10611_v10 = vcombine.low %v766_v35, %v770_v60 }
 0x3ea   :  { %7560 = vmatprep.subr.bf16.mxu1 %v10644_v34  ;;  %v762_v52 = vld [vmem:[#allocation5 + $0x13f8] sm:$0xff] }
 0x3eb   :  { %7520 = vmatpush1.bf16.msra.mxu0 %v10515_v43  ;;  %v886_v39 = vld [vmem:[#allocation5 + $0x17d8] sm:$0xff]  ;;  %v10604_v40 = vcombine.high %v758_v21, %v762_v52  ;;  %v10603_v33 = vcombine.low %v758_v21, %v762_v52 }
 0x3ec   :  { %7521 = vmatprep.subr.bf16.mxu0 %v10508_v46  ;;  %v890_v24 = vld [vmem:[#allocation5 + $0x17f8] sm:$0xff] }
 0x3ed   :  { %7561 = vmatpush1.bf16.msra.mxu1 %v10643_v22  ;;  %v10732_v53 = vcombine.high %v886_v39, %v890_v24  ;;  %v750_v28 = vld [vmem:[#allocation5 + $0x1398] sm:$0xff]  ;;  %v10731_v29 = vcombine.low %v886_v39, %v890_v24 }
 0x3ee   :  { %7562 = vmatprep.subr.bf16.mxu1 %v10636_v54  ;;  %v754_v30 = vld [vmem:[#allocation5 + $0x13b8] sm:$0xff] }
 0x3ef   :  { %7522 = vmatpush1.bf16.msra.mxu0 %v10507_v62  ;;  %v878_v31 = vld [vmem:[#allocation5 + $0x1798] sm:$0xff]  ;;  %v10596_v34 = vcombine.high %v750_v28, %v754_v30  ;;  %v10595_v22 = vcombine.low %v750_v28, %v754_v30 }
 0x3f0   :  { %7523 = vmatprep.subr.bf16.mxu0 %v10500_v14  ;;  %v882_v13 = vld [vmem:[#allocation5 + $0x17b8] sm:$0xff] }
 0x3f1   :  { %7563 = vmatpush1.bf16.msra.mxu1 %v10635_v44  ;;  %v10724_v37 = vcombine.high %v878_v31, %v882_v13  ;;  %v742_v19 = vld [vmem:[#allocation5 + $0x1358] sm:$0xff]  ;;  %v10723_v46 = vcombine.low %v878_v31, %v882_v13 }
 0x3f2   :  { %7564 = vmatprep.subr.bf16.mxu1 %v10628_v5  ;;  %v746_v41 = vld [vmem:[#allocation5 + $0x1378] sm:$0xff] }
 0x3f3   :  { %7524 = vmatpush1.bf16.msra.mxu0 %v10499_v3  ;;  %v870_v2 = vld [vmem:[#allocation5 + $0x1758] sm:$0xff]  ;;  %v10588_v54 = vcombine.high %v742_v19, %v746_v41  ;;  %v10587_v44 = vcombine.low %v742_v19, %v746_v41 }
 0x3f4   :  { %7525 = vmatprep.subr.bf16.mxu0 %v10492_v59  ;;  %v874_v43 = vld [vmem:[#allocation5 + $0x1778] sm:$0xff] }
 0x3f5   :  { %7565 = vmatpush1.bf16.msra.mxu1 %v10627_v4  ;;  %v10716_v49 = vcombine.high %v870_v2, %v874_v43  ;;  %v734_v51 = vld [vmem:[#allocation5 + $0x1318] sm:$0xff]  ;;  %v10715_v14 = vcombine.low %v870_v2, %v874_v43 }
 0x3f6   :  { %7566 = vmatprep.subr.bf16.mxu1 %v10620_v11  ;;  %v738_v56 = vld [vmem:[#allocation5 + $0x1338] sm:$0xff] }
 0x3f7   :  { %7526 = vmatpush1.bf16.msra.mxu0 %v10491_v36  ;;  %v862_v57 = vld [vmem:[#allocation5 + $0x1718] sm:$0xff]  ;;  %v10580_v5 = vcombine.high %v734_v51, %v738_v56  ;;  %v10579_v4 = vcombine.low %v734_v51, %v738_v56 }
 0x3f8   :  { %7527 = vmatprep.subr.bf16.mxu0 %v10484_v12  ;;  %v866_v62 = vld [vmem:[#allocation5 + $0x1738] sm:$0xff] }
 0x3f9   :  { %7567 = vmatpush1.bf16.msra.mxu1 %v10619_v20  ;;  %v10708_v1 = vcombine.high %v862_v57, %v866_v62  ;;  %v726_v47 = vld [vmem:[#allocation5 + $0x12d8] sm:$0xff]  ;;  %v10707_v59 = vcombine.low %v862_v57, %v866_v62 }
 0x3fa   :  { %7568 = vmatprep.subr.bf16.mxu1 %v10612_v15  ;;  %v730_v58 = vld [vmem:[#allocation5 + $0x12f8] sm:$0xff] }
 0x3fb   :  { %7528 = vmatpush1.bf16.msra.mxu0 %v10483_v25  ;;  %v854_v23 = vld [vmem:[#allocation5 + $0x16d8] sm:$0xff]  ;;  %v10572_v11 = vcombine.high %v726_v47, %v730_v58  ;;  %v10571_v20 = vcombine.low %v726_v47, %v730_v58 }
 0x3fc   :  { %7529 = vmatprep.subr.bf16.mxu0 %v10604_v40  ;;  %v858_v3 = vld [vmem:[#allocation5 + $0x16f8] sm:$0xff] }
 0x3fd   :  { %7569 = vmatpush1.bf16.msra.mxu1 %v10611_v10  ;;  %v10700_v7 = vcombine.high %v854_v23, %v858_v3  ;;  %v718_v16 = vld [vmem:[#allocation5 + $0x1298] sm:$0xff]  ;;  %v10699_v12 = vcombine.low %v854_v23, %v858_v3 }
 0x3fe   :  { %7570 = vmatprep.subr.bf16.mxu1 %v10732_v53  ;;  %v722_v35 = vld [vmem:[#allocation5 + $0x12b8] sm:$0xff] }
 0x3ff   :  { %7530 = vmatpush2.bf16.msra.mxu0 %v10603_v33  ;;  %v846_v60 = vld [vmem:[#allocation5 + $0x1698] sm:$0xff]  ;;  %v10564_v15 = vcombine.high %v718_v16, %v722_v35  ;;  %v10563_v10 = vcombine.low %v718_v16, %v722_v35 }
 0x400   :  { %7531 = vmatprep.subr.bf16.mxu0 %v10596_v34  ;;  %v850_v36 = vld [vmem:[#allocation5 + $0x16b8] sm:$0xff] }
 0x401   :  { %7571 = vmatpush2.bf16.msra.mxu1 %v10731_v29  ;;  %v10692_v21 = vcombine.high %v846_v60, %v850_v36  ;;  %v710_v52 = vld [vmem:[#allocation5 + $0x1258] sm:$0xff]  ;;  %v10691_v40 = vcombine.low %v846_v60, %v850_v36 }
 0x402   :  { %7572 = vmatprep.subr.bf16.mxu1 %v10724_v37  ;;  %v714_v39 = vld [vmem:[#allocation5 + $0x1278] sm:$0xff] }
 0x403   :  { %7532 = vmatpush2.bf16.msra.mxu0 %v10595_v22  ;;  %v838_v24 = vld [vmem:[#allocation5 + $0x1658] sm:$0xff]  ;;  %v10556_v53 = vcombine.high %v710_v52, %v714_v39  ;;  %v10555_v29 = vcombine.low %v710_v52, %v714_v39 }
 0x404   :  { %7533 = vmatprep.subr.bf16.mxu0 %v10588_v54  ;;  %v842_v25 = vld [vmem:[#allocation5 + $0x1678] sm:$0xff] }
 0x405   :  { %7573 = vmatpush2.bf16.msra.mxu1 %v10723_v46  ;;  %v10684_v28 = vcombine.high %v838_v24, %v842_v25  ;;  %v702_v30 = vld [vmem:[#allocation5 + $0x1218] sm:$0xff]  ;;  %v10683_v34 = vcombine.low %v838_v24, %v842_v25 }
 0x406   :  { %7574 = vmatprep.subr.bf16.mxu1 %v10716_v49  ;;  %v706_v31 = vld [vmem:[#allocation5 + $0x1238] sm:$0xff] }
 0x407   :  { %7534 = vmatpush2.bf16.msra.mxu0 %v10587_v44  ;;  %v830_v13 = vld [vmem:[#allocation5 + $0x1618] sm:$0xff]  ;;  %v10548_v37 = vcombine.high %v702_v30, %v706_v31  ;;  %v10547_v46 = vcombine.low %v702_v30, %v706_v31 }
 0x408   :  { %7535 = vmatprep.subr.bf16.mxu0 %v10580_v5  ;;  %v834_v33 = vld [vmem:[#allocation5 + $0x1638] sm:$0xff] }
 0x409   :  { %7575 = vmatpush2.bf16.msra.mxu1 %v10715_v14  ;;  %v10676_v19 = vcombine.high %v830_v13, %v834_v33  ;;  %v950_v41 = vld [vmem:[#allocation5 + $0x19d8] sm:$0xff]  ;;  %v10675_v54 = vcombine.low %v830_v13, %v834_v33 }
 0x40a   :  { %7576 = vmatprep.subr.bf16.mxu1 %v10708_v1  ;;  %v954_v2 = vld [vmem:[#allocation5 + $0x19f8] sm:$0xff] }
 0x40b   :  { %7536 = vmatpush2.bf16.msra.mxu0 %v10579_v4  ;;  %v1078_v43 = vld [vmem:[#allocation5 + $0x1dd8] sm:$0xff]  ;;  %v10796_v49 = vcombine.high %v950_v41, %v954_v2  ;;  %v10795_v14 = vcombine.low %v950_v41, %v954_v2 }
 0x40c   :  { %7537 = vmatprep.subr.bf16.mxu0 %v10572_v11  ;;  %v1082_v22 = vld [vmem:[#allocation5 + $0x1df8] sm:$0xff] }
 0x40d   :  { %7577 = vmatpush2.bf16.msra.mxu1 %v10707_v59  ;;  %v10924_v51 = vcombine.high %v1078_v43, %v1082_v22  ;;  %v942_v56 = vld [vmem:[#allocation5 + $0x1998] sm:$0xff]  ;;  %v10923_v5 = vcombine.low %v1078_v43, %v1082_v22 }
 0x40e   :  { %7578 = vmatprep.subr.bf16.mxu1 %v10700_v7  ;;  %v946_v57 = vld [vmem:[#allocation5 + $0x19b8] sm:$0xff] }
 0x40f   :  { %7538 = vmatpush2.bf16.msra.mxu0 %v10571_v20  ;;  %v1070_v62 = vld [vmem:[#allocation5 + $0x1d98] sm:$0xff]  ;;  %v10788_v1 = vcombine.high %v942_v56, %v946_v57  ;;  %v10787_v16 = vcombine.low %v942_v56, %v946_v57 }
 0x410   :  { %7539 = vmatprep.subr.bf16.mxu0 %v10564_v15  ;;  %v1074_v44 = vld [vmem:[#allocation5 + $0x1db8] sm:$0xff] }
 0x411   :  { %7579 = vmatpush2.bf16.msra.mxu1 %v10699_v12  ;;  %v10916_v47 = vcombine.high %v1070_v62, %v1074_v44  ;;  %v934_v58 = vld [vmem:[#allocation5 + $0x1958] sm:$0xff]  ;;  %v10915_v60 = vcombine.low %v1070_v62, %v1074_v44 }
 0x412   :  { %7580 = vmatprep.subr.bf16.mxu1 %v10692_v21  ;;  %v938_v23 = vld [vmem:[#allocation5 + $0x1978] sm:$0xff] }
 0x413   :  { %7540 = vmatpush2.bf16.msra.mxu0 %v10563_v10  ;;  %v1062_v4 = vld [vmem:[#allocation5 + $0x1d58] sm:$0xff]  ;;  %v10780_v36 = vcombine.high %v934_v58, %v938_v23  ;;  %v10779_v10 = vcombine.low %v934_v58, %v938_v23 }
 0x414   :  { %7541 = vmatprep.subr.bf16.mxu0 %v10556_v53  ;;  %v1066_v59 = vld [vmem:[#allocation5 + $0x1d78] sm:$0xff] }
 0x415   :  { %7581 = vmatpush2.bf16.msra.mxu1 %v10691_v40  ;;  %v926_v21 = vld [vmem:[#allocation5 + $0x1918] sm:$0xff] }
 0x416   :  { %7582 = vmatprep.subr.bf16.mxu1 %v10684_v28  ;;  %v930_v52 = vld [vmem:[#allocation5 + $0x1938] sm:$0xff] }
 0x417   :  { %7542 = vmatpush2.bf16.msra.mxu0 %v10555_v29  ;;  %v1058_v39 = vld [vmem:[#allocation5 + $0x1d38] sm:$0xff]  ;;  %v10772_v53 = vcombine.high %v926_v21, %v930_v52  ;;  %v10771_v29 = vcombine.low %v926_v21, %v930_v52 }
 0x418   :  { %7543 = vmatprep.subr.bf16.mxu0 %v10548_v37  ;;  %v918_v31 = vld [vmem:[#allocation5 + $0x18d8] sm:$0xff] }
 0x419   :  { %7583 = vmatpush2.bf16.msra.mxu1 %v10683_v34  ;;  %v1046_v13 = vld [vmem:[#allocation5 + $0x1cd8] sm:$0xff] }
 0x41a   :  { %7584 = vmatprep.subr.bf16.mxu1 %v10676_v19  ;;  %v1050_v33 = vld [vmem:[#allocation5 + $0x1cf8] sm:$0xff] }
 0x41b   :  { %7544 = vmatpush2.bf16.msra.mxu0 %v10547_v46  ;;  %v10892_v37 = vcombine.high %v1046_v13, %v1050_v33  ;;  %v910_v19 = vld [vmem:[#allocation5 + $0x1898] sm:$0xff]  ;;  %v10891_v46 = vcombine.low %v1046_v13, %v1050_v33 }
 0x41c   :  { %7595 = vmatprep.subr.bf16.mxu0 %v10796_v49  ;;  %v914_v41 = vld [vmem:[#allocation5 + $0x18b8] sm:$0xff] }
 0x41d   :  { %7585 = vmatpush2.bf16.msra.mxu1 %v10675_v54  ;;  %v1038_v2 = vld [vmem:[#allocation5 + $0x1c98] sm:$0xff]  ;;  %v10756_v54 = vcombine.high %v910_v19, %v914_v41  ;;  %v10755_v44 = vcombine.low %v910_v19, %v914_v41 }
 0x41e   :  { %7636 = vmatprep.subr.bf16.mxu1 %v10924_v51  ;;  %v7301_v3 = vpop.f32.mrf.mxu0  ;;  %7546 = vmatmul.mubr.bf16.vlgmr.msra.gmra.mxu0 %v12084_v8  ;;  %v10908_v8 = vcombine.high %v1062_v4, %v1066_v59  ;;  %v1042_v43 = vld [vmem:[#allocation5 + $0x1cb8] sm:$0xff] }
 0x41f   :  { %v7302_v11 = vadd.f32 %v7301_v3, %v12223_v18  ;;  %7596 = vmatpush1.bf16.msra.mxu0 %v10795_v14  ;;  %7627 = vmatprep.mubr.bf16.mxu0 %v12092_v38  ;;  %v922_v38 = vld [vmem:[#allocation5 + $0x18f8] sm:$0xff]  ;;  %v10884_v49 = vcombine.high %v1038_v2, %v1042_v43  ;;  %v10883_v14 = vcombine.low %v1038_v2, %v1042_v43 }
 0x420   :  { %v7342_v7 = vpop.f32.mrf.mxu1  ;;  %7587 = vmatmul.mubr.bf16.vlgmr.msra.gmra.mxu1 %v12088_v9  ;;  %v7303_v35 = vpop.f32.mrf.mxu0  ;;  %7597 = vmatprep.subr.bf16.mxu0 %v10788_v1  ;;  %v1054_v9 = vld [vmem:[#allocation5 + $0x1d18] sm:$0xff]  ;;  %v10764_v34 = vcombine.high %v918_v31, %v922_v38  ;;  %v10763_v22 = vcombine.low %v918_v31, %v922_v38 }
 0x421   :  { %7637 = vmatpush1.bf16.msra.mxu1 %v10923_v5  ;;  %v12233_v20 = vadd.f32 %v7342_v7, %v7302_v11  ;;  %v7304_v12 = vadd.f32 %v7303_v35, %v12228_v26  ;;  %7668 = vmatprep.mubr.bf16.mxu1 %v12097_v42  ;;  %v10907_v26 = vcombine.low %v1062_v4, %v1066_v59  ;;  %v902_v51 = vld [vmem:[#allocation5 + $0x1858] sm:$0xff] }
 0x422   :  { %v7344_v15 = vpop.f32.mrf.mxu1  ;;  %7638 = vmatprep.subr.bf16.mxu1 %v10916_v47  ;;  %v7305_v18 = vpop.f32.mrf.mxu0  ;;  %v10900_v30 = vcombine.high %v1054_v9, %v1058_v39  ;;  %v10899_v42 = vcombine.low %v1054_v9, %v1058_v39  ;;  %v906_v56 = vld [vmem:[#allocation5 + $0x1878] sm:$0xff] }
 0x423   :  { %v12238_v24 = vadd.f32 %v7344_v15, %v7304_v12  ;;  %7598 = vmatpush1.bf16.msra.mxu0 %v10787_v16  ;;  %v1030_v57 = vld [vmem:[#allocation5 + $0x1c58] sm:$0xff]  ;;  %v10748_v5 = vcombine.high %v902_v51, %v906_v56  ;;  %v10747_v4 = vcombine.low %v902_v51, %v906_v56 }
 0x424   :  { %v7346_v25 = vpop.f32.mrf.mxu1  ;;  %v7306_v40 = vpop.f32.mrf.mxu0  ;;  %7599 = vmatprep.subr.bf16.mxu0 %v10780_v36  ;;  %v1034_v62 = vld [vmem:[#allocation5 + $0x1c78] sm:$0xff] }
 0x425   :  { %7639 = vmatpush1.bf16.msra.mxu1 %v10915_v60  ;;  %v10876_v1 = vcombine.high %v1030_v57, %v1034_v62  ;;  %v894_v47 = vld [vmem:[#allocation5 + $0x1818] sm:$0xff]  ;;  %v10875_v59 = vcombine.low %v1030_v57, %v1034_v62 }
 0x426   :  { %v7347_v28 = vpop.f32.mrf.mxu1  ;;  %7640 = vmatprep.subr.bf16.mxu1 %v10908_v8  ;;  %v898_v58 = vld [vmem:[#allocation5 + $0x1838] sm:$0xff] }
 0x427   :  { %7600 = vmatpush1.bf16.msra.mxu0 %v10779_v10  ;;  %v1022_v23 = vld [vmem:[#allocation5 + $0x1c18] sm:$0xff]  ;;  %v10740_v11 = vcombine.high %v894_v47, %v898_v58  ;;  %v10739_v12 = vcombine.low %v894_v47, %v898_v58 }
 0x428   :  { %7601 = vmatprep.subr.bf16.mxu0 %v10772_v53  ;;  %v1026_v3 = vld [vmem:[#allocation5 + $0x1c38] sm:$0xff] }
 0x429   :  { %7641 = vmatpush1.bf16.msra.mxu1 %v10907_v26  ;;  %v10868_v7 = vcombine.high %v1022_v23, %v1026_v3  ;;  %v1014_v16 = vld [vmem:[#allocation5 + $0x1bd8] sm:$0xff]  ;;  %v10867_v15 = vcombine.low %v1022_v23, %v1026_v3 }
 0x42a   :  { %7642 = vmatprep.subr.bf16.mxu1 %v10900_v30  ;;  %v1018_v35 = vld [vmem:[#allocation5 + $0x1bf8] sm:$0xff] }
 0x42b   :  { %7602 = vmatpush1.bf16.msra.mxu0 %v10771_v29  ;;  %v1142_v60 = vld [vmem:[#allocation5 + $0x1fd8] sm:$0xff]  ;;  %v10860_v8 = vcombine.high %v1014_v16, %v1018_v35  ;;  %v10859_v25 = vcombine.low %v1014_v16, %v1018_v35 }
 0x42c   :  { %7603 = vmatprep.subr.bf16.mxu0 %v10764_v34  ;;  %v1146_v36 = vld [vmem:[#allocation5 + $0x1ff8] sm:$0xff] }
 0x42d   :  { %7643 = vmatpush1.bf16.msra.mxu1 %v10899_v42  ;;  %v10988_v21 = vcombine.high %v1142_v60, %v1146_v36  ;;  %v1006_v52 = vld [vmem:[#allocation5 + $0x1b98] sm:$0xff]  ;;  %v10987_v10 = vcombine.low %v1142_v60, %v1146_v36 }
 0x42e   :  { %7644 = vmatprep.subr.bf16.mxu1 %v10892_v37  ;;  %v1010_v18 = vld [vmem:[#allocation5 + $0x1bb8] sm:$0xff] }
 0x42f   :  { %7604 = vmatpush1.bf16.msra.mxu0 %v10763_v22  ;;  %v1134_v9 = vld [vmem:[#allocation5 + $0x1f98] sm:$0xff]  ;;  %v10852_v40 = vcombine.high %v1006_v52, %v1010_v18  ;;  %v10851_v38 = vcombine.low %v1006_v52, %v1010_v18 }
 0x430   :  { %7605 = vmatprep.subr.bf16.mxu0 %v10756_v54  ;;  %v1138_v39 = vld [vmem:[#allocation5 + $0x1fb8] sm:$0xff] }
 0x431   :  { %7645 = vmatpush1.bf16.msra.mxu1 %v10891_v46  ;;  %v10980_v26 = vcombine.high %v1134_v9, %v1138_v39  ;;  %v998_v53 = vld [vmem:[#allocation5 + $0x1b58] sm:$0xff]  ;;  %v10979_v13 = vcombine.low %v1134_v9, %v1138_v39 }
 0x432   :  { %7646 = vmatprep.subr.bf16.mxu1 %v10884_v49  ;;  %v1002_v28 = vld [vmem:[#allocation5 + $0x1b78] sm:$0xff] }
 0x433   :  { %7606 = vmatpush1.bf16.msra.mxu0 %v10755_v44  ;;  %v1126_v30 = vld [vmem:[#allocation5 + $0x1f58] sm:$0xff]  ;;  %v10844_v33 = vcombine.high %v998_v53, %v1002_v28  ;;  %v10843_v41 = vcombine.low %v998_v53, %v1002_v28 }
 0x434   :  { %7607 = vmatprep.subr.bf16.mxu0 %v10748_v5  ;;  %v1130_v31 = vld [vmem:[#allocation5 + $0x1f78] sm:$0xff] }
 0x435   :  { %7647 = vmatpush1.bf16.msra.mxu1 %v10883_v14  ;;  %v10972_v29 = vcombine.high %v1126_v30, %v1130_v31  ;;  %v990_v42 = vld [vmem:[#allocation5 + $0x1b18] sm:$0xff]  ;;  %v10971_v2 = vcombine.low %v1126_v30, %v1130_v31  ;;  %v1179_v30 = vsub.s32 7, %v12102_v32  ;;  %v7678_v31 = vmax.f32 %v12154_v6, 0.0 }
 0x436   :  { %7648 = vmatprep.subr.bf16.mxu1 %v10876_v1  ;;  %v994_v34 = vld [vmem:[#allocation5 + $0x1b38] sm:$0xff] }
 0x437   :  { %7608 = vmatpush1.bf16.msra.mxu0 %v10747_v4  ;;  %v1118_v37 = vld [vmem:[#allocation5 + $0x1f18] sm:$0xff]  ;;  %v10836_v43 = vcombine.high %v990_v42, %v994_v34  ;;  %v10835_v56 = vcombine.low %v990_v42, %v994_v34 }
 0x438   :  { %7609 = vmatprep.subr.bf16.mxu0 %v10740_v11  ;;  %v1122_v19 = vld [vmem:[#allocation5 + $0x1f38] sm:$0xff] }
 0x439   :  { %7649 = vmatpush1.bf16.msra.mxu1 %v10875_v59  ;;  %v10964_v22 = vcombine.high %v1118_v37, %v1122_v19  ;;  %v982_v46 = vld [vmem:[#allocation5 + $0x1ad8] sm:$0xff]  ;;  %v10963_v57 = vcombine.low %v1118_v37, %v1122_v19  ;;  %v12244_v19 = vpack.c.bf16 %v7678_v31, %v7678_v31 }
 0x43a   :  { %7650 = vmatprep.subr.bf16.mxu1 %v10868_v7  ;;  %v986_v54 = vld [vmem:[#allocation5 + $0x1af8] sm:$0xff] }
 0x43b   :  { %7610 = vmatpush1.bf16.msra.mxu0 %v10739_v12  ;;  %v1110_v49 = vld [vmem:[#allocation5 + $0x1ed8] sm:$0xff]  ;;  %v10828_v62 = vcombine.high %v982_v46, %v986_v54  ;;  %v10827_v58 = vcombine.low %v982_v46, %v986_v54 }
 0x43c   :  { %7611 = vmatprep.subr.bf16.mxu0 %v10860_v8  ;;  %v1114_v51 = vld [vmem:[#allocation5 + $0x1ef8] sm:$0xff] }
 0x43d   :  { %7651 = vmatpush1.bf16.msra.mxu1 %v10867_v15  ;;  %v10956_v44 = vcombine.high %v1110_v49, %v1114_v51  ;;  %v974_v14 = vld [vmem:[#allocation5 + $0x1a98] sm:$0xff]  ;;  %v10955_v23 = vcombine.low %v1110_v49, %v1114_v51 }
 0x43e   :  { %7652 = vmatprep.subr.bf16.mxu1 %v10988_v21  ;;  %v978_v5 = vld [vmem:[#allocation5 + $0x1ab8] sm:$0xff] }
 0x43f   :  { %7612 = vmatpush2.bf16.msra.mxu0 %v10859_v25  ;;  %v1102_v1 = vld [vmem:[#allocation5 + $0x1e98] sm:$0xff]  ;;  %v10820_v3 = vcombine.high %v974_v14, %v978_v5  ;;  %v10819_v35 = vcombine.low %v974_v14, %v978_v5 }
 0x440   :  { %7613 = vmatprep.subr.bf16.mxu0 %v10852_v40  ;;  %v1106_v47 = vld [vmem:[#allocation5 + $0x1eb8] sm:$0xff]  ;;  %v1175_v40 = vsub.s32 6, %v12102_v32 }
 0x441   :  { %7653 = vmatpush2.bf16.msra.mxu1 %v10987_v10  ;;  %v10948_v4 = vcombine.high %v1102_v1, %v1106_v47  ;;  %v966_v59 = vld [vmem:[#allocation5 + $0x1a58] sm:$0xff]  ;;  %v10947_v60 = vcombine.low %v1102_v1, %v1106_v47 }
 0x442   :  { %7654 = vmatprep.subr.bf16.mxu1 %v10980_v26  ;;  %v970_v11 = vld [vmem:[#allocation5 + $0x1a78] sm:$0xff] }
 0x443   :  { %7614 = vmatpush2.bf16.msra.mxu0 %v10851_v38  ;;  %v1094_v7 = vld [vmem:[#allocation5 + $0x1e58] sm:$0xff]  ;;  %v10812_v36 = vcombine.high %v966_v59, %v970_v11  ;;  %v10811_v18 = vcombine.low %v966_v59, %v970_v11  ;;  %v7680_v38 = vmax.f32 %v12198_v27, 0.0 }
 0x444   :  { %7615 = vmatprep.subr.bf16.mxu0 %v10844_v33  ;;  %v1098_v16 = vld [vmem:[#allocation5 + $0x1e78] sm:$0xff] }
 0x445   :  { %7655 = vmatpush2.bf16.msra.mxu1 %v10979_v13  ;;  %v10940_v12 = vcombine.high %v1094_v7, %v1098_v16  ;;  %v958_v15 = vld [vmem:[#allocation5 + $0x1a18] sm:$0xff]  ;;  %v10939_v9 = vcombine.low %v1094_v7, %v1098_v16  ;;  %v11770_v13 = vld [vmem:[#allocation7] sm:$0xff] }
 0x446   :  { %7656 = vmatprep.subr.bf16.mxu1 %v10972_v29  ;;  %v962_v8 = vld [vmem:[#allocation5 + $0x1a38] sm:$0xff]  ;;  %v1176_v33 = vrot.slane %v11770_v13, %v1175_v40  ;;  %v1180_v34 = vrot.slane %v11770_v13, %v1179_v30 }
 0x447   :  { %7616 = vmatpush2.bf16.msra.mxu0 %v10843_v41  ;;  %v1086_v21 = vld [vmem:[#allocation5 + $0x1e18] sm:$0xff]  ;;  %v10804_v39 = vcombine.high %v958_v15, %v962_v8  ;;  %v10803_v10 = vcombine.low %v958_v15, %v962_v8 }
 0x448   :  { %7617 = vmatprep.subr.bf16.mxu0 %v10836_v43  ;;  %v1090_v52 = vld [vmem:[#allocation5 + $0x1e38] sm:$0xff]  ;;  %v12247_v43 = vpack.c.bf16 %v7680_v38, %v7680_v38 }
 0x449   :  { %7657 = vmatpush2.bf16.msra.mxu1 %v10971_v2  ;;  %v10932_v25 = vcombine.high %v1086_v21, %v1090_v52  ;;  %v10931_v26 = vcombine.low %v1086_v21, %v1090_v52  ;;  %v11354_v53 = vld [vmem:[#allocation8 + $0xe4] ss:$16 sps:$4 sm:$0xff]   ;;  %v11352_v29 = vld [vmem:[#allocation8 + $0xe0] ss:$16 sps:$4 sm:$0xff]  }
 0x44a   :  { %7658 = vmatprep.subr.bf16.mxu1 %v10964_v22  ;;  %v11357_v28 = vld [vmem:[#allocation8 + $0x2e4] ss:$16 sps:$4 sm:$0xff]   ;;  %v11355_v42 = vld [vmem:[#allocation8 + $0x2e0] ss:$16 sps:$4 sm:$0xff]  }
 0x44b   :  { %7618 = vmatpush2.bf16.msra.mxu0 %v10835_v56  ;;  %v11360_v37 = vld [vmem:[#allocation8 + $0xc4] ss:$16 sps:$4 sm:$0xff]   ;;  %v11358_v22 = vld [vmem:[#allocation8 + $0xc0] ss:$16 sps:$4 sm:$0xff]  }
 0x44c   :  { %7619 = vmatprep.subr.bf16.mxu0 %v10828_v62  ;;  %v11363_v2 = vld [vmem:[#allocation8 + $0x2c4] ss:$16 sps:$4 sm:$0xff]   ;;  %v11361_v54 = vld [vmem:[#allocation8 + $0x2c0] ss:$16 sps:$4 sm:$0xff]  }
 0x44d   :  { %7659 = vmatpush2.bf16.msra.mxu1 %v10963_v57  ;;  %v11366_v49 = vld [vmem:[#allocation8 + $0xa4] ss:$16 sps:$4 sm:$0xff]   ;;  %v11364_v14 = vld [vmem:[#allocation8 + $0xa0] ss:$16 sps:$4 sm:$0xff]  }
 0x44e   :  { %7660 = vmatprep.subr.bf16.mxu1 %v10956_v44  ;;  %v11369_v57 = vld [vmem:[#allocation8 + $0x2a4] ss:$16 sps:$4 sm:$0xff]   ;;  %v11367_v1 = vld [vmem:[#allocation8 + $0x2a0] ss:$16 sps:$4 sm:$0xff]  }
 0x44f   :  { %7620 = vmatpush2.bf16.msra.mxu0 %v10827_v58  ;;  %v11372_v47 = vld [vmem:[#allocation8 + $0x84] ss:$16 sps:$4 sm:$0xff]   ;;  %v11376_v7 = vld [vmem:[#allocation8 + $0x60] ss:$16 sps:$4 sm:$0xff]  }
 0x450   :  { %7621 = vmatprep.subr.bf16.mxu0 %v10820_v3  ;;  %v11370_v3 = vld [vmem:[#allocation8 + $0x80] ss:$16 sps:$4 sm:$0xff]   ;;  %v11378_v59 = vld [vmem:[#allocation8 + $0x64] ss:$16 sps:$4 sm:$0xff]  }
 0x451   :  { %7661 = vmatpush2.bf16.msra.mxu1 %v10955_v23  ;;  %v11375_v23 = vld [vmem:[#allocation8 + $0x284] ss:$16 sps:$4 sm:$0xff]   ;;  %v11379_v16 = vld [vmem:[#allocation8 + $0x260] ss:$16 sps:$4 sm:$0xff]  }
 0x452   :  { %7662 = vmatprep.subr.bf16.mxu1 %v10948_v4  ;;  %v11373_v4 = vld [vmem:[#allocation8 + $0x280] ss:$16 sps:$4 sm:$0xff]   ;;  %v11381_v11 = vld [vmem:[#allocation8 + $0x264] ss:$16 sps:$4 sm:$0xff]  }
 0x453   :  { %7622 = vmatpush2.bf16.msra.mxu0 %v10819_v35  ;;  %v11384_v35 = vld [vmem:[#allocation8 + $0x44] ss:$16 sps:$4 sm:$0xff]   ;;  %v11388_v21 = vld [vmem:[#allocation8 + $0x20] ss:$16 sps:$4 sm:$0xff]  }
 0x454   :  { %7623 = vmatprep.subr.bf16.mxu0 %v10812_v36  ;;  %v11382_v36 = vld [vmem:[#allocation8 + $0x40] ss:$16 sps:$4 sm:$0xff]   ;;  %v11390_v15 = vld [vmem:[#allocation8 + $0x24] ss:$16 sps:$4 sm:$0xff]  }
 0x455   :  { %7663 = vmatpush2.bf16.msra.mxu1 %v10947_v60  ;;  %v11387_v60 = vld [vmem:[#allocation8 + $0x244] ss:$16 sps:$4 sm:$0xff]   ;;  %v11391_v52 = vld [vmem:[#allocation8 + $0x220] ss:$16 sps:$4 sm:$0xff]  }
 0x456   :  { %7664 = vmatprep.subr.bf16.mxu1 %v10940_v12  ;;  %v11385_v12 = vld [vmem:[#allocation8 + $0x240] ss:$16 sps:$4 sm:$0xff]   ;;  %v11393_v8 = vld [vmem:[#allocation8 + $0x224] ss:$16 sps:$4 sm:$0xff]  }
 0x457   :  { %7624 = vmatpush2.bf16.msra.mxu0 %v10811_v18  ;;  %v11396_v18 = vld [vmem:[#allocation8 + $0x4] ss:$16 sps:$4 sm:$0xff]   ;;  %v11406_v31 = vld [vmem:[#allocation8 + $0x1c0] ss:$16 sps:$4 sm:$0xff]  }
 0x458   :  { %7625 = vmatprep.subr.bf16.mxu0 %v10804_v39  ;;  %v11394_v39 = vld [vmem:[#allocation8] ss:$16 sps:$4 sm:$0xff]   ;;  %v11405_v40 = vld [vmem:[#allocation8 + $0x3e4] ss:$16 sps:$4 sm:$0xff]  }
 0x459   :  { %7665 = vmatpush2.bf16.msra.mxu1 %v10939_v9  ;;  %v11399_v9 = vld [vmem:[#allocation8 + $0x204] ss:$16 sps:$4 sm:$0xff]   ;;  %v11409_v38 = vld [vmem:[#allocation8 + $0x3c0] ss:$16 sps:$4 sm:$0xff]  }
 0x45a   :  { %7666 = vmatprep.subr.bf16.mxu1 %v10932_v25  ;;  %v11397_v25 = vld [vmem:[#allocation8 + $0x200] ss:$16 sps:$4 sm:$0xff]   ;;  %v11411_v30 = vld [vmem:[#allocation8 + $0x3c4] ss:$16 sps:$4 sm:$0xff]  }
 0x45b   :  { %7626 = vmatpush2.bf16.msra.mxu0 %v10803_v10  ;;  %v11402_v10 = vld [vmem:[#allocation8 + $0x1e4] ss:$16 sps:$4 sm:$0xff]  }
 0x45c   :  { %9251 = vmatprep.subr.bf16.mxu0 %v11354_v53  ;;  %v11403_v53 = vld [vmem:[#allocation8 + $0x3e0] ss:$16 sps:$4 sm:$0xff]   ;;  %v11414_v13 = vld [vmem:[#allocation8 + $0x1a4] ss:$16 sps:$4 sm:$0xff]  }
 0x45d   :  { %7667 = vmatpush2.bf16.msra.mxu1 %v10931_v26  ;;  %v11400_v26 = vld [vmem:[#allocation8 + $0x1e0] ss:$16 sps:$4 sm:$0xff]  }
 0x45e   :  { %9292 = vmatprep.subr.bf16.mxu1 %v11357_v28  ;;  %v7383_v41 = vpop.f32.mrf.mxu0  ;;  %7628 = vmatmul.mubr.bf16.vlgmr.msra.gmra.mxu0 %v12108_v55  ;;  %v11408_v28 = vld [vmem:[#allocation8 + $0x1c4] ss:$16 sps:$4 sm:$0xff]  }
 0x45f   :  { %v7384_v6 = vadd.f32 %v7383_v41, %v1176_v33  ;;  %9252 = vmatpush1.bf16.msra.mxu0 %v11352_v29  ;;  %9283 = vmatprep.mubr.bf16.mxu0 %v12244_v19  ;;  %v11417_v33 = vld [vmem:[#allocation8 + $0x3a4] ss:$16 sps:$4 sm:$0xff]   ;;  %v11412_v29 = vld [vmem:[#allocation8 + $0x1a0] ss:$16 sps:$4 sm:$0xff]  }
 0x460   :  { %v7424_v27 = vpop.f32.mrf.mxu1  ;;  %7669 = vmatmul.mubr.bf16.vlgmr.msra.gmra.mxu1 %v12114_v61  ;;  %v7385_v46 = vpop.f32.mrf.mxu0  ;;  %9253 = vmatprep.subr.bf16.mxu0 %v11360_v37  ;;  %v11423_v37 = vld [vmem:[#allocation8 + $0x384] ss:$16 sps:$4 sm:$0xff]   ;;  %v11418_v41 = vld [vmem:[#allocation8 + $0x180] ss:$16 sps:$4 sm:$0xff]  }
 0x461   :  { %9293 = vmatpush1.bf16.msra.mxu1 %v11355_v42  ;;  %v12251_v51 = vadd.f32 %v7424_v27, %v7384_v6  ;;  %9324 = vmatprep.mubr.bf16.mxu1 %v12247_v43  ;;  %v7386_v55 = vadd.f32 %v7385_v46, %v1180_v34  ;;  %v11415_v42 = vld [vmem:[#allocation8 + $0x3a0] ss:$16 sps:$4 sm:$0xff]   ;;  %v11420_v34 = vld [vmem:[#allocation8 + $0x184] ss:$16 sps:$4 sm:$0xff]  }
 0x462   :  { %v7426_v56 = vpop.f32.mrf.mxu1  ;;  %v7387_v62 = vpop.f32.mrf.mxu0  ;;  %9294 = vmatprep.subr.bf16.mxu1 %v11363_v2  ;;  %v11421_v2 = vld [vmem:[#allocation8 + $0x380] ss:$16 sps:$4 sm:$0xff]   ;;  %v11426_v6 = vld [vmem:[#allocation8 + $0x164] ss:$16 sps:$4 sm:$0xff]  }
 0x463   :  { %v12254_v44 = vadd.f32 %v7426_v56, %v7386_v55  ;;  %9254 = vmatpush1.bf16.msra.mxu0 %v11358_v22  ;;  %v11429_v27 = vld [vmem:[#allocation8 + $0x364] ss:$16 sps:$4 sm:$0xff]   ;;  %v11424_v22 = vld [vmem:[#allocation8 + $0x160] ss:$16 sps:$4 sm:$0xff]  }
 0x464   :  { %v7428_v61 = vpop.f32.mrf.mxu1  ;;  %v7388_v5 = vpop.f32.mrf.mxu0  ;;  %9255 = vmatprep.subr.bf16.mxu0 %v11366_v49  ;;  %v11427_v46 = vld [vmem:[#allocation8 + $0x360] ss:$16 sps:$4 sm:$0xff]   ;;  %v11435_v49 = vld [vmem:[#allocation8 + $0x344] ss:$16 sps:$4 sm:$0xff]  }
 0x465   :  { %9295 = vmatpush1.bf16.msra.mxu1 %v11361_v54  ;;  %v11432_v54 = vld [vmem:[#allocation8 + $0x144] ss:$16 sps:$4 sm:$0xff]   ;;  %v11430_v55 = vld [vmem:[#allocation8 + $0x140] ss:$16 sps:$4 sm:$0xff]  }
 0x466   :  { %v7429_v58 = vpop.f32.mrf.mxu1  ;;  %9296 = vmatprep.subr.bf16.mxu1 %v11369_v57  ;;  %v11433_v56 = vld [vmem:[#allocation8 + $0x340] ss:$16 sps:$4 sm:$0xff]   ;;  %v11438_v57 = vld [vmem:[#allocation8 + $0x124] ss:$16 sps:$4 sm:$0xff]  }
 0x467   :  { %9256 = vmatpush1.bf16.msra.mxu0 %v11364_v14  ;;  %v11441_v62 = vld [vmem:[#allocation8 + $0x324] ss:$16 sps:$4 sm:$0xff]   ;;  %v11436_v61 = vld [vmem:[#allocation8 + $0x120] ss:$16 sps:$4 sm:$0xff]   ;;  %v7677_v58 = vmax.f32 %v12149_v63, 0.0 }
 0x468   :  { %9257 = vmatprep.subr.bf16.mxu0 %v11372_v47  ;;  %v11439_v14 = vld [vmem:[#allocation8 + $0x320] ss:$16 sps:$4 sm:$0xff]   ;;  %v11444_v5 = vld [vmem:[#allocation8 + $0x104] ss:$16 sps:$4 sm:$0xff]  }
 0x469   :  { %9297 = vmatpush1.bf16.msra.mxu1 %v11367_v1  ;;  %v11447_v1 = vld [vmem:[#allocation8 + $0x304] ss:$16 sps:$4 sm:$0xff]   ;;  %v11442_v47 = vld [vmem:[#allocation8 + $0x100] ss:$16 sps:$4 sm:$0xff]  }
 0x46a   :  { %9298 = vmatprep.subr.bf16.mxu1 %v11375_v23  ;;  %v11445_v23 = vld [vmem:[#allocation8 + $0x300] ss:$16 sps:$4 sm:$0xff]  }
 0x46b   :  { %9258 = vmatpush1.bf16.msra.mxu0 %v11370_v3  ;;  %v11450_v3 = vld [vmem:[#allocation8 + $0x4e4] ss:$16 sps:$4 sm:$0xff]   ;;  %v11505_v63 = vld [vmem:[#allocation8 + $0x6e0] ss:$16 sps:$4 sm:$0xff]  }
 0x46c   :  { %9259 = vmatprep.subr.bf16.mxu0 %v11378_v59  ;;  %v11507_v59 = vld [vmem:[#allocation8 + $0x6e4] ss:$16 sps:$4 sm:$0xff]  }
 0x46d   :  { %9299 = vmatpush1.bf16.msra.mxu1 %v11373_v4  ;;  %v7679_v4 = vmax.f32 %v12193_v0, 0.0  ;;  %v11513_v0 = vld [vmem:[#allocation8 + $0x6c4] ss:$16 sps:$4 sm:$0xff]  }
 0x46e   :  { %9300 = vmatprep.subr.bf16.mxu1 %v11381_v11  ;;  %v7682_v11 = vmax.f32 %v12238_v24, 0.0 }
 0x46f   :  { %9260 = vmatpush1.bf16.msra.mxu0 %v11376_v7  ;;  %v11448_v7 = vld [vmem:[#allocation8 + $0x4e0] ss:$16 sps:$4 sm:$0xff]  }
 0x470   :  { %9261 = vmatprep.subr.bf16.mxu0 %v11384_v35  ;;  %v11453_v35 = vld [vmem:[#allocation8 + $0x4c4] ss:$16 sps:$4 sm:$0xff]  }
 0x471   :  { %9301 = vmatpush1.bf16.msra.mxu1 %v11379_v16  ;;  %v12259_v16 = vpack.c.bf16 %v7677_v58, %v7677_v58  ;;  %v11561_v58 = vld [vmem:[#allocation8 + $0x7c4] ss:$16 sps:$4 sm:$0xff]  }
 0x472   :  { %9302 = vmatprep.subr.bf16.mxu1 %v11387_v60  ;;  %v12261_v60 = vpack.c.bf16 %v7679_v4, %v7679_v4  ;;  %v11559_v4 = vld [vmem:[#allocation8 + $0x7c0] ss:$16 sps:$4 sm:$0xff]  }
 0x473   :  { %9262 = vmatpush1.bf16.msra.mxu0 %v11382_v36  ;;  %v12263_v36 = vpack.c.bf16 %v7682_v11, %v7682_v11  ;;  %v11478_v11 = vld [vmem:[#allocation8 + $0x5a0] ss:$16 sps:$4 sm:$0xff]  }
 0x474   :  { %9263 = vmatprep.subr.bf16.mxu0 %v11390_v15 }
 0x475   :  { %9303 = vmatpush1.bf16.msra.mxu1 %v11385_v12 }
 0x476   :  { %9304 = vmatprep.subr.bf16.mxu1 %v11393_v8  ;;  %v11451_v8 = vld [vmem:[#allocation8 + $0x4c0] ss:$16 sps:$4 sm:$0xff]  }
 0x477   :  { %9264 = vmatpush1.bf16.msra.mxu0 %v11388_v21 }
 0x478   :  { %9265 = vmatprep.subr.bf16.mxu0 %v11396_v18 }
 0x479   :  { %9305 = vmatpush1.bf16.msra.mxu1 %v11391_v52  ;;  %v11456_v52 = vld [vmem:[#allocation8 + $0x4a4] ss:$16 sps:$4 sm:$0xff]  }
 0x47a   :  { %9306 = vmatprep.subr.bf16.mxu1 %v11399_v9 }
 0x47b   :  { %9266 = vmatpush1.bf16.msra.mxu0 %v11394_v39 }
 0x47c   :  { %9267 = vmatprep.subr.bf16.mxu0 %v11402_v10 }
 0x47d   :  { %9307 = vmatpush1.bf16.msra.mxu1 %v11397_v25  ;;  %v11511_v25 = vld [vmem:[#allocation8 + $0x6c0] ss:$16 sps:$4 sm:$0xff]  }
 0x47e   :  { %9308 = vmatprep.subr.bf16.mxu1 %v11405_v40 }
 0x47f   :  { %9268 = vmatpush2.bf16.msra.mxu0 %v11400_v26 }
 0x480   :  { %9269 = vmatprep.subr.bf16.mxu0 %v11408_v28 }
 0x481   :  { %9309 = vmatpush2.bf16.msra.mxu1 %v11403_v53  ;;  %v11454_v53 = vld [vmem:[#allocation8 + $0x4a0] ss:$16 sps:$4 sm:$0xff]  }
 0x482   :  { %9310 = vmatprep.subr.bf16.mxu1 %v11411_v30  ;;  %v11459_v30 = vld [vmem:[#allocation8 + $0x484] ss:$16 sps:$4 sm:$0xff]  }
 0x483   :  { %9270 = vmatpush2.bf16.msra.mxu0 %v11406_v31 }
 0x484   :  { %9271 = vmatprep.subr.bf16.mxu0 %v11414_v13  ;;  %v11525_v13 = vld [vmem:[#allocation8 + $0x684] ss:$16 sps:$4 sm:$0xff]  }
 0x485   :  { %9311 = vmatpush2.bf16.msra.mxu1 %v11409_v38  ;;  %v11517_v38 = vld [vmem:[#allocation8 + $0x6a0] ss:$16 sps:$4 sm:$0xff]  }
 0x486   :  { %9312 = vmatprep.subr.bf16.mxu1 %v11417_v33  ;;  %v11462_v33 = vld [vmem:[#allocation8 + $0x464] ss:$16 sps:$4 sm:$0xff]  }
 0x487   :  { %9272 = vmatpush2.bf16.msra.mxu0 %v11412_v29  ;;  %v11523_v29 = vld [vmem:[#allocation8 + $0x680] ss:$16 sps:$4 sm:$0xff]  }
 0x488   :  { %9273 = vmatprep.subr.bf16.mxu0 %v11420_v34  ;;  %v11460_v34 = vld [vmem:[#allocation8 + $0x460] ss:$16 sps:$4 sm:$0xff]  }
 0x489   :  { %9313 = vmatpush2.bf16.msra.mxu1 %v11415_v42  ;;  %v11531_v42 = vld [vmem:[#allocation8 + $0x664] ss:$16 sps:$4 sm:$0xff]  }
 0x48a   :  { %9314 = vmatprep.subr.bf16.mxu1 %v11423_v37  ;;  %v11465_v37 = vld [vmem:[#allocation8 + $0x444] ss:$16 sps:$4 sm:$0xff]  }
 0x48b   :  { %9274 = vmatpush2.bf16.msra.mxu0 %v11418_v41  ;;  %v11529_v41 = vld [vmem:[#allocation8 + $0x660] ss:$16 sps:$4 sm:$0xff]  }
 0x48c   :  { %9275 = vmatprep.subr.bf16.mxu0 %v11426_v6  ;;  %v11463_v6 = vld [vmem:[#allocation8 + $0x440] ss:$16 sps:$4 sm:$0xff]  }
 0x48d   :  { %9315 = vmatpush2.bf16.msra.mxu1 %v11421_v2  ;;  %v11537_v2 = vld [vmem:[#allocation8 + $0x644] ss:$16 sps:$4 sm:$0xff]  }
 0x48e   :  { %9316 = vmatprep.subr.bf16.mxu1 %v11429_v27  ;;  %v11468_v27 = vld [vmem:[#allocation8 + $0x424] ss:$16 sps:$4 sm:$0xff]  }
 0x48f   :  { %9276 = vmatpush2.bf16.msra.mxu0 %v11424_v22  ;;  %v11535_v22 = vld [vmem:[#allocation8 + $0x640] ss:$16 sps:$4 sm:$0xff]  }
 0x490   :  { %9277 = vmatprep.subr.bf16.mxu0 %v11432_v54  ;;  %v11466_v54 = vld [vmem:[#allocation8 + $0x420] ss:$16 sps:$4 sm:$0xff]  }
 0x491   :  { %9317 = vmatpush2.bf16.msra.mxu1 %v11427_v46  ;;  %v11543_v46 = vld [vmem:[#allocation8 + $0x624] ss:$16 sps:$4 sm:$0xff]  }
 0x492   :  { %9318 = vmatprep.subr.bf16.mxu1 %v11435_v49  ;;  %v11471_v49 = vld [vmem:[#allocation8 + $0x404] ss:$16 sps:$4 sm:$0xff]  }
 0x493   :  { %9278 = vmatpush2.bf16.msra.mxu0 %v11430_v55  ;;  %v11541_v55 = vld [vmem:[#allocation8 + $0x620] ss:$16 sps:$4 sm:$0xff]  }
 0x494   :  { %9279 = vmatprep.subr.bf16.mxu0 %v11438_v57  ;;  %v11469_v57 = vld [vmem:[#allocation8 + $0x400] ss:$16 sps:$4 sm:$0xff]  }
 0x495   :  { %9319 = vmatpush2.bf16.msra.mxu1 %v11433_v56  ;;  %v11549_v56 = vld [vmem:[#allocation8 + $0x604] ss:$16 sps:$4 sm:$0xff]  }
 0x496   :  { %9320 = vmatprep.subr.bf16.mxu1 %v11441_v62  ;;  %v11474_v62 = vld [vmem:[#allocation8 + $0x5e4] ss:$16 sps:$4 sm:$0xff]  }
 0x497   :  { %9280 = vmatpush2.bf16.msra.mxu0 %v11436_v61  ;;  %v11547_v61 = vld [vmem:[#allocation8 + $0x600] ss:$16 sps:$4 sm:$0xff]  }
 0x498   :  { %9281 = vmatprep.subr.bf16.mxu0 %v11444_v5  ;;  %v11472_v5 = vld [vmem:[#allocation8 + $0x5e0] ss:$16 sps:$4 sm:$0xff]  }
 0x499   :  { %9321 = vmatpush2.bf16.msra.mxu1 %v11439_v14  ;;  %v11555_v14 = vld [vmem:[#allocation8 + $0x7e4] ss:$16 sps:$4 sm:$0xff]  }
 0x49a   :  { %9322 = vmatprep.subr.bf16.mxu1 %v11447_v1  ;;  %v11477_v1 = vld [vmem:[#allocation8 + $0x5c4] ss:$16 sps:$4 sm:$0xff]  }
 0x49b   :  { %9282 = vmatpush2.bf16.msra.mxu0 %v11442_v47  ;;  %v11553_v47 = vld [vmem:[#allocation8 + $0x7e0] ss:$16 sps:$4 sm:$0xff]  }
 0x49c   :  { %9333 = vmatprep.subr.bf16.mxu0 %v11450_v3  ;;  %v11480_v3 = vld [vmem:[#allocation8 + $0x5a4] ss:$16 sps:$4 sm:$0xff]  }
 0x49d   :  { %9323 = vmatpush2.bf16.msra.mxu1 %v11445_v23  ;;  %v11475_v23 = vld [vmem:[#allocation8 + $0x5c0] ss:$16 sps:$4 sm:$0xff]  }
 0x49e   :  { %9374 = vmatprep.subr.bf16.mxu1 %v11507_v59  ;;  %v7465_v12 = vpop.f32.mrf.mxu0  ;;  %9284 = vmatmul.mubr.bf16.vlgmr.msra.gmra.mxu0 %v12259_v16  ;;  %v11567_v59 = vld [vmem:[#allocation8 + $0x7a4] ss:$16 sps:$4 sm:$0xff]  }
 0x49f   :  { %v7466_v15 = vadd.f32 %v7465_v12, %v12251_v51  ;;  %9334 = vmatpush1.bf16.msra.mxu0 %v11448_v7  ;;  %9365 = vmatprep.mubr.bf16.mxu0 %v12263_v36  ;;  %v11519_v51 = vld [vmem:[#allocation8 + $0x6a4] ss:$16 sps:$4 sm:$0xff]   ;;  %v11481_v12 = vld [vmem:[#allocation8 + $0x580] ss:$16 sps:$4 sm:$0xff]  }
 0x4a0   :  { %v7506_v24 = vpop.f32.mrf.mxu1  ;;  %9325 = vmatmul.mubr.bf16.vlgmr.msra.gmra.mxu1 %v12261_v60  ;;  %v7467_v21 = vpop.f32.mrf.mxu0  ;;  %9335 = vmatprep.subr.bf16.mxu0 %v11453_v35  ;;  %v11483_v7 = vld [vmem:[#allocation8 + $0x584] ss:$16 sps:$4 sm:$0xff]   ;;  %v11565_v35 = vld [vmem:[#allocation8 + $0x7a0] ss:$16 sps:$4 sm:$0xff]  }
 0x4a1   :  { %v12269_v18 = vadd.f32 %v7506_v24, %v7466_v15  ;;  %v7468_v9 = vadd.f32 %v7467_v21, %v12254_v44  ;;  %9375 = vmatpush1.bf16.msra.mxu1 %v11505_v63  ;;  %v11457_v44 = vld [vmem:[#allocation8 + $0x480] ss:$16 sps:$4 sm:$0xff]   ;;  %v11573_v63 = vld [vmem:[#allocation8 + $0x784] ss:$16 sps:$4 sm:$0xff]  }
 0x4a2   :  { %v7508_v39 = vpop.f32.mrf.mxu1  ;;  %v7469_v10 = vpop.f32.mrf.mxu0  ;;  %9376 = vmatprep.subr.bf16.mxu1 %v11513_v0  ;;  %v11486_v0 = vld [vmem:[#allocation8 + $0x564] ss:$16 sps:$4 sm:$0xff]   ;;  %v11571_v15 = vld [vmem:[#allocation8 + $0x780] ss:$16 sps:$4 sm:$0xff]  }
 0x4a3   :  { %v12272_v40 = vadd.f32 %v7508_v39, %v7468_v9  ;;  %9336 = vmatpush1.bf16.msra.mxu0 %v11451_v8  ;;  %v11579_v24 = vld [vmem:[#allocation8 + $0x764] ss:$16 sps:$4 sm:$0xff]   ;;  %v11484_v8 = vld [vmem:[#allocation8 + $0x560] ss:$16 sps:$4 sm:$0xff]  }
 0x4a4   :  { %v7510_v26 = vpop.f32.mrf.mxu1  ;;  %v7470_v28 = vpop.f32.mrf.mxu0  ;;  %9337 = vmatprep.subr.bf16.mxu0 %v11456_v52  ;;  %v11489_v21 = vld [vmem:[#allocation8 + $0x544] ss:$16 sps:$4 sm:$0xff]   ;;  %v11577_v52 = vld [vmem:[#allocation8 + $0x760] ss:$16 sps:$4 sm:$0xff]  }
 0x4a5   :  { %9377 = vmatpush1.bf16.msra.mxu1 %v11511_v25  ;;  %v11585_v9 = vld [vmem:[#allocation8 + $0x744] ss:$16 sps:$4 sm:$0xff]   ;;  %v11487_v39 = vld [vmem:[#allocation8 + $0x540] ss:$16 sps:$4 sm:$0xff]  }
 0x4a6   :  { %v7511_v31 = vpop.f32.mrf.mxu1  ;;  %9378 = vmatprep.subr.bf16.mxu1 %v11519_v51  ;;  %v11492_v25 = vld [vmem:[#allocation8 + $0x524] ss:$16 sps:$4 sm:$0xff]   ;;  %v11583_v10 = vld [vmem:[#allocation8 + $0x740] ss:$16 sps:$4 sm:$0xff]  }
 0x4a7   :  { %9338 = vmatpush1.bf16.msra.mxu0 %v11454_v53  ;;  %v11591_v51 = vld [vmem:[#allocation8 + $0x724] ss:$16 sps:$4 sm:$0xff]   ;;  %v11490_v26 = vld [vmem:[#allocation8 + $0x520] ss:$16 sps:$4 sm:$0xff]  }
 0x4a8   :  { %9339 = vmatprep.subr.bf16.mxu0 %v11459_v30  ;;  %v11495_v53 = vld [vmem:[#allocation8 + $0x504] ss:$16 sps:$4 sm:$0xff]   ;;  %v11589_v28 = vld [vmem:[#allocation8 + $0x720] ss:$16 sps:$4 sm:$0xff]  }
 0x4a9   :  { %9379 = vmatpush1.bf16.msra.mxu1 %v11517_v38  ;;  %v11597_v30 = vld [vmem:[#allocation8 + $0x704] ss:$16 sps:$4 sm:$0xff]   ;;  %v11493_v31 = vld [vmem:[#allocation8 + $0x500] ss:$16 sps:$4 sm:$0xff]   ;;  %v7681_v38 = vmax.f32 %v12233_v20, 0.0 }
 0x4aa   :  { %9380 = vmatprep.subr.bf16.mxu1 %v11525_v13  ;;  %v11498_v13 = vld [vmem:[#allocation8 + $0xec] ss:$16 sps:$4 sm:$0xff]  }
 0x4ab   :  { %9340 = vmatpush1.bf16.msra.mxu0 %v11457_v44  ;;  %v11595_v44 = vld [vmem:[#allocation8 + $0x700] ss:$16 sps:$4 sm:$0xff]  }
 0x4ac   :  { %9341 = vmatprep.subr.bf16.mxu0 %v11462_v33  ;;  %v11603_v33 = vld [vmem:[#allocation8 + $0x2ec] ss:$16 sps:$4 sm:$0xff]  }
 0x4ad   :  { %9381 = vmatpush1.bf16.msra.mxu1 %v11523_v29  ;;  %v11496_v29 = vld [vmem:[#allocation8 + $0xe8] ss:$16 sps:$4 sm:$0xff]  }
 0x4ae   :  { %9382 = vmatprep.subr.bf16.mxu1 %v11531_v42  ;;  %v12275_v42 = vpack.c.bf16 %v7681_v38, %v7681_v38  ;;  %v11592_v38 = vld [vmem:[#allocation8 + $0x4c8] ss:$16 sps:$4 sm:$0xff]  }
 0x4af   :  { %9342 = vmatpush1.bf16.msra.mxu0 %v11460_v34  ;;  %v11501_v34 = vld [vmem:[#allocation8 + $0xcc] ss:$16 sps:$4 sm:$0xff]  }
 0x4b0   :  { %9343 = vmatprep.subr.bf16.mxu0 %v11465_v37 }
 0x4b1   :  { %9383 = vmatpush1.bf16.msra.mxu1 %v11529_v41 }
 0x4b2   :  { %9384 = vmatprep.subr.bf16.mxu1 %v11537_v2  ;;  %v11499_v2 = vld [vmem:[#allocation8 + $0xc8] ss:$16 sps:$4 sm:$0xff]  }
 0x4b3   :  { %9344 = vmatpush1.bf16.msra.mxu0 %v11463_v6 }
 0x4b4   :  { %9345 = vmatprep.subr.bf16.mxu0 %v11468_v27  ;;  %v11504_v27 = vld [vmem:[#allocation8 + $0xac] ss:$16 sps:$4 sm:$0xff]  }
 0x4b5   :  { %9385 = vmatpush1.bf16.msra.mxu1 %v11535_v22 }
 0x4b6   :  { %9386 = vmatprep.subr.bf16.mxu1 %v11543_v46 }
 0x4b7   :  { %9346 = vmatpush1.bf16.msra.mxu0 %v11466_v54 }
 0x4b8   :  { %9347 = vmatprep.subr.bf16.mxu0 %v11471_v49 }
 0x4b9   :  { %9387 = vmatpush1.bf16.msra.mxu1 %v11541_v55  ;;  %v11502_v55 = vld [vmem:[#allocation8 + $0xa8] ss:$16 sps:$4 sm:$0xff]  }
 0x4ba   :  { %9388 = vmatprep.subr.bf16.mxu1 %v11549_v56 }
 0x4bb   :  { %9348 = vmatpush1.bf16.msra.mxu0 %v11469_v57 }
 0x4bc   :  { %9349 = vmatprep.subr.bf16.mxu0 %v11474_v62  ;;  %v11508_v62 = vld [vmem:[#allocation8 + $0x88] ss:$16 sps:$4 sm:$0xff]  }
 0x4bd   :  { %9389 = vmatpush1.bf16.msra.mxu1 %v11547_v61  ;;  %v11514_v61 = vld [vmem:[#allocation8 + $0x68] ss:$16 sps:$4 sm:$0xff]  }
 0x4be   :  { %9390 = vmatprep.subr.bf16.mxu1 %v11555_v14  ;;  %v11522_v14 = vld [vmem:[#allocation8 + $0x4c] ss:$16 sps:$4 sm:$0xff]  }
 0x4bf   :  { %9350 = vmatpush2.bf16.msra.mxu0 %v11472_v5  ;;  %v11520_v5 = vld [vmem:[#allocation8 + $0x48] ss:$16 sps:$4 sm:$0xff]  }
 0x4c0   :  { %9351 = vmatprep.subr.bf16.mxu0 %v11477_v1  ;;  %v11528_v1 = vld [vmem:[#allocation8 + $0x2c] ss:$16 sps:$4 sm:$0xff]  }
 0x4c1   :  { %9391 = vmatpush2.bf16.msra.mxu1 %v11553_v47  ;;  %v11526_v47 = vld [vmem:[#allocation8 + $0x28] ss:$16 sps:$4 sm:$0xff]  }
 0x4c2   :  { %9392 = vmatprep.subr.bf16.mxu1 %v11561_v58  ;;  %v11534_v58 = vld [vmem:[#allocation8 + $0xc] ss:$16 sps:$4 sm:$0xff]  }
 0x4c3   :  { %9352 = vmatpush2.bf16.msra.mxu0 %v11475_v23  ;;  %v11532_v23 = vld [vmem:[#allocation8 + $0x8] ss:$16 sps:$4 sm:$0xff]  }
 0x4c4   :  { %9353 = vmatprep.subr.bf16.mxu0 %v11480_v3  ;;  %v11540_v3 = vld [vmem:[#allocation8 + $0x1ec] ss:$16 sps:$4 sm:$0xff]  }
 0x4c5   :  { %9393 = vmatpush2.bf16.msra.mxu1 %v11559_v4  ;;  %v11538_v4 = vld [vmem:[#allocation8 + $0x1e8] ss:$16 sps:$4 sm:$0xff]  }
 0x4c6   :  { %9394 = vmatprep.subr.bf16.mxu1 %v11567_v59  ;;  %v11546_v59 = vld [vmem:[#allocation8 + $0x1cc] ss:$16 sps:$4 sm:$0xff]  }
 0x4c7   :  { %9354 = vmatpush2.bf16.msra.mxu0 %v11478_v11  ;;  %v11544_v11 = vld [vmem:[#allocation8 + $0x1c8] ss:$16 sps:$4 sm:$0xff]  }
 0x4c8   :  { %9355 = vmatprep.subr.bf16.mxu0 %v11483_v7  ;;  %v11552_v7 = vld [vmem:[#allocation8 + $0x1ac] ss:$16 sps:$4 sm:$0xff]  }
 0x4c9   :  { %9395 = vmatpush2.bf16.msra.mxu1 %v11565_v35  ;;  %v11550_v35 = vld [vmem:[#allocation8 + $0x1a8] ss:$16 sps:$4 sm:$0xff]  }
 0x4ca   :  { %9396 = vmatprep.subr.bf16.mxu1 %v11573_v63  ;;  %v11558_v63 = vld [vmem:[#allocation8 + $0x18c] ss:$16 sps:$4 sm:$0xff]  }
 0x4cb   :  { %9356 = vmatpush2.bf16.msra.mxu0 %v11481_v12  ;;  %v11556_v12 = vld [vmem:[#allocation8 + $0x188] ss:$16 sps:$4 sm:$0xff]  }
 0x4cc   :  { %9357 = vmatprep.subr.bf16.mxu0 %v11486_v0  ;;  %v11564_v0 = vld [vmem:[#allocation8 + $0x16c] ss:$16 sps:$4 sm:$0xff]  }
 0x4cd   :  { %9397 = vmatpush2.bf16.msra.mxu1 %v11571_v15  ;;  %v11562_v15 = vld [vmem:[#allocation8 + $0x168] ss:$16 sps:$4 sm:$0xff]  }
 0x4ce   :  { %9398 = vmatprep.subr.bf16.mxu1 %v11579_v24  ;;  %v11570_v24 = vld [vmem:[#allocation8 + $0x14c] ss:$16 sps:$4 sm:$0xff]  }
 0x4cf   :  { %9358 = vmatpush2.bf16.msra.mxu0 %v11484_v8  ;;  %v11568_v8 = vld [vmem:[#allocation8 + $0x148] ss:$16 sps:$4 sm:$0xff]  }
 0x4d0   :  { %9359 = vmatprep.subr.bf16.mxu0 %v11489_v21  ;;  %v11576_v21 = vld [vmem:[#allocation8 + $0x12c] ss:$16 sps:$4 sm:$0xff]  }
 0x4d1   :  { %9399 = vmatpush2.bf16.msra.mxu1 %v11577_v52  ;;  %v11574_v52 = vld [vmem:[#allocation8 + $0x128] ss:$16 sps:$4 sm:$0xff]  }
 0x4d2   :  { %9400 = vmatprep.subr.bf16.mxu1 %v11585_v9  ;;  %v11582_v9 = vld [vmem:[#allocation8 + $0x10c] ss:$16 sps:$4 sm:$0xff]  }
 0x4d3   :  { %9360 = vmatpush2.bf16.msra.mxu0 %v11487_v39  ;;  %v11580_v39 = vld [vmem:[#allocation8 + $0x108] ss:$16 sps:$4 sm:$0xff]  }
 0x4d4   :  { %9361 = vmatprep.subr.bf16.mxu0 %v11492_v25  ;;  %v11588_v25 = vld [vmem:[#allocation8 + $0x4ec] ss:$16 sps:$4 sm:$0xff]  }
 0x4d5   :  { %9401 = vmatpush2.bf16.msra.mxu1 %v11583_v10 }
 0x4d6   :  { %9402 = vmatprep.subr.bf16.mxu1 %v11591_v51  ;;  %v11586_v51 = vld [vmem:[#allocation8 + $0x4e8] ss:$16 sps:$4 sm:$0xff]  }
 0x4d7   :  { %9362 = vmatpush2.bf16.msra.mxu0 %v11490_v26  ;;  %v11594_v26 = vld [vmem:[#allocation8 + $0x4cc] ss:$16 sps:$4 sm:$0xff]  }
 0x4d8   :  { %9363 = vmatprep.subr.bf16.mxu0 %v11495_v53 }
 0x4d9   :  { %9403 = vmatpush2.bf16.msra.mxu1 %v11589_v28 }
 0x4da   :  { %9404 = vmatprep.subr.bf16.mxu1 %v11597_v30 }
 0x4db   :  { %9364 = vmatpush2.bf16.msra.mxu0 %v11493_v31 }
 0x4dc   :  { %9415 = vmatprep.subr.bf16.mxu0 %v11498_v13 }
 0x4dd   :  { %9405 = vmatpush2.bf16.msra.mxu1 %v11595_v44  ;;  %v11600_v44 = vld [vmem:[#allocation8 + $0x4ac] ss:$16 sps:$4 sm:$0xff]  }
 0x4de   :  { %v7547_v37 = vpop.f32.mrf.mxu0  ;;  %9366 = vmatmul.mubr.bf16.vlgmr.msra.gmra.mxu0 %v12275_v42  ;;  %9456 = vmatprep.subr.bf16.mxu1 %v11603_v33 }
 0x4df   :  { %v7548_v41 = vadd.f32 %v7547_v37, %v12269_v18  ;;  %9416 = vmatpush1.bf16.msra.mxu0 %v11496_v29  ;;  %9447 = vmatprep.mubr.bf16.mxu0 %v12244_v19  ;;  %v11510_v18 = vld [vmem:[#allocation8 + $0x8c] ss:$16 sps:$4 sm:$0xff]  }
 0x4e0   :  { %v7588_v20 = vpop.f32.mrf.mxu1  ;;  %v12280_v6 = vpop.f32.mrf.mxu0  ;;  %9417 = vmatprep.subr.bf16.mxu0 %v11501_v34  ;;  %v11516_v19 = vld [vmem:[#allocation8 + $0x6c] ss:$16 sps:$4 sm:$0xff]  }
 0x4e1   :  { %v12282_v22 = vadd.f32 %v7588_v20, %v7548_v41  ;;  %v7550_v10 = vadd.f32 %v12280_v6, %v12272_v40  ;;  %v11606_v6 = vld [vmem:[#allocation8 + $0x48c] ss:$16 sps:$4 sm:$0xff]  }
 0x4e2   :  { %v12284_v46 = vpop.f32.mrf.mxu1  ;;  %v7551_v54 = vpop.f32.mrf.mxu0 }
 0x4e3   :  { %9418 = vmatpush1.bf16.msra.mxu0 %v11499_v2  ;;  %v7591_v28 = vadd.f32 %v12284_v46, %v7550_v10  ;;  %v11652_v10 = vld [vmem:[#allocation8 + $0x588] ss:$16 sps:$4 sm:$0xff]  }
 0x4e4   :  { %v7592_v49 = vpop.f32.mrf.mxu1  ;;  %v7552_v56 = vpop.f32.mrf.mxu0  ;;  %9419 = vmatprep.subr.bf16.mxu0 %v11504_v27 }
 0x4e5   :  { %v11604_v49 = vld [vmem:[#allocation8 + $0x488] ss:$16 sps:$4 sm:$0xff]   ;;  %v11612_v56 = vld [vmem:[#allocation8 + $0x46c] ss:$16 sps:$4 sm:$0xff]  }
 0x4e6   :  { %v7593_v57 = vpop.f32.mrf.mxu1 }
 0x4e7   :  { %9420 = vmatpush1.bf16.msra.mxu0 %v11502_v55  ;;  %v11609_v55 = vld [vmem:[#allocation8 + $0x2cc] ss:$16 sps:$4 sm:$0xff]   ;;  %v11610_v57 = vld [vmem:[#allocation8 + $0x468] ss:$16 sps:$4 sm:$0xff]  }
 0x4e8   :  { %9421 = vmatprep.subr.bf16.mxu0 %v11510_v18  ;;  %v11607_v18 = vld [vmem:[#allocation8 + $0x2c8] ss:$16 sps:$4 sm:$0xff]  }
 0x4eb   :  { %9422 = vmatpush1.bf16.msra.mxu0 %v11508_v62  ;;  %v11615_v62 = vld [vmem:[#allocation8 + $0x2ac] ss:$16 sps:$4 sm:$0xff]  }
 0x4ec   :  { %9423 = vmatprep.subr.bf16.mxu0 %v11516_v19  ;;  %v11618_v19 = vld [vmem:[#allocation8 + $0x44c] ss:$16 sps:$4 sm:$0xff]  }
 0x4ef   :  { %9424 = vmatpush1.bf16.msra.mxu0 %v11514_v61  ;;  %v11613_v61 = vld [vmem:[#allocation8 + $0x2a8] ss:$16 sps:$4 sm:$0xff]  }
 0x4f0   :  { %9425 = vmatprep.subr.bf16.mxu0 %v11522_v14  ;;  %v11616_v14 = vld [vmem:[#allocation8 + $0x448] ss:$16 sps:$4 sm:$0xff]  }
 0x4f3   :  { %9426 = vmatpush1.bf16.msra.mxu0 %v11520_v5  ;;  %v11621_v5 = vld [vmem:[#allocation8 + $0x28c] ss:$16 sps:$4 sm:$0xff]  }
 0x4f4   :  { %9427 = vmatprep.subr.bf16.mxu0 %v11528_v1  ;;  %v11624_v1 = vld [vmem:[#allocation8 + $0x42c] ss:$16 sps:$4 sm:$0xff]  }
 0x4f7   :  { %9428 = vmatpush1.bf16.msra.mxu0 %v11526_v47  ;;  %v11619_v47 = vld [vmem:[#allocation8 + $0x288] ss:$16 sps:$4 sm:$0xff]  }
 0x4f8   :  { %9429 = vmatprep.subr.bf16.mxu0 %v11534_v58  ;;  %v11627_v58 = vld [vmem:[#allocation8 + $0x26c] ss:$16 sps:$4 sm:$0xff]  }
 0x4fb   :  { %9430 = vmatpush1.bf16.msra.mxu0 %v11532_v23  ;;  %v11630_v23 = vld [vmem:[#allocation8 + $0x40c] ss:$16 sps:$4 sm:$0xff]  }
 0x4fc   :  { %9431 = vmatprep.subr.bf16.mxu0 %v11540_v3  ;;  %v11625_v3 = vld [vmem:[#allocation8 + $0x268] ss:$16 sps:$4 sm:$0xff]  }
 0x4ff   :  { %9432 = vmatpush2.bf16.msra.mxu0 %v11538_v4  ;;  %v11628_v4 = vld [vmem:[#allocation8 + $0x408] ss:$16 sps:$4 sm:$0xff]  }
 0x500   :  { %9433 = vmatprep.subr.bf16.mxu0 %v11546_v59  ;;  %v11633_v59 = vld [vmem:[#allocation8 + $0x24c] ss:$16 sps:$4 sm:$0xff]  }
 0x503   :  { %9434 = vmatpush2.bf16.msra.mxu0 %v11544_v11  ;;  %v11636_v11 = vld [vmem:[#allocation8 + $0x5ec] ss:$16 sps:$4 sm:$0xff]  }
 0x504   :  { %9435 = vmatprep.subr.bf16.mxu0 %v11552_v7  ;;  %v11631_v7 = vld [vmem:[#allocation8 + $0x248] ss:$16 sps:$4 sm:$0xff]  }
 0x507   :  { %9436 = vmatpush2.bf16.msra.mxu0 %v11550_v35  ;;  %v11634_v35 = vld [vmem:[#allocation8 + $0x5e8] ss:$16 sps:$4 sm:$0xff]  }
 0x508   :  { %9437 = vmatprep.subr.bf16.mxu0 %v11558_v63  ;;  %v11639_v63 = vld [vmem:[#allocation8 + $0x22c] ss:$16 sps:$4 sm:$0xff]  }
 0x50b   :  { %9438 = vmatpush2.bf16.msra.mxu0 %v11556_v12  ;;  %v11642_v12 = vld [vmem:[#allocation8 + $0x5cc] ss:$16 sps:$4 sm:$0xff]  }
 0x50c   :  { %9439 = vmatprep.subr.bf16.mxu0 %v11564_v0  ;;  %v11637_v0 = vld [vmem:[#allocation8 + $0x228] ss:$16 sps:$4 sm:$0xff]  }
 0x50f   :  { %9440 = vmatpush2.bf16.msra.mxu0 %v11562_v15  ;;  %v11640_v15 = vld [vmem:[#allocation8 + $0x5c8] ss:$16 sps:$4 sm:$0xff]  }
 0x510   :  { %9441 = vmatprep.subr.bf16.mxu0 %v11570_v24  ;;  %v11645_v24 = vld [vmem:[#allocation8 + $0x20c] ss:$16 sps:$4 sm:$0xff]  }
 0x513   :  { %9442 = vmatpush2.bf16.msra.mxu0 %v11568_v8  ;;  %v11648_v8 = vld [vmem:[#allocation8 + $0x5ac] ss:$16 sps:$4 sm:$0xff]  }
 0x514   :  { %9443 = vmatprep.subr.bf16.mxu0 %v11576_v21  ;;  %v11643_v21 = vld [vmem:[#allocation8 + $0x208] ss:$16 sps:$4 sm:$0xff]  }
 0x517   :  { %9444 = vmatpush2.bf16.msra.mxu0 %v11574_v52  ;;  %v11646_v52 = vld [vmem:[#allocation8 + $0x5a8] ss:$16 sps:$4 sm:$0xff]  }
 0x518   :  { %9445 = vmatprep.subr.bf16.mxu0 %v11582_v9  ;;  %v11651_v9 = vld [vmem:[#allocation8 + $0x3ec] ss:$16 sps:$4 sm:$0xff]  }
 0x51b   :  { %9446 = vmatpush2.bf16.msra.mxu0 %v11580_v39  ;;  %v11654_v39 = vld [vmem:[#allocation8 + $0x58c] ss:$16 sps:$4 sm:$0xff]  }
 0x51c   :  { %9497 = vmatprep.subr.bf16.mxu0 %v11588_v25  ;;  %v11649_v25 = vld [vmem:[#allocation8 + $0x3e8] ss:$16 sps:$4 sm:$0xff]  }
 0x51e   :  { %v7629_v53 = vpop.f32.mrf.mxu0  ;;  %9448 = vmatmul.mubr.bf16.vlgmr.msra.gmra.mxu0 %v12259_v16  ;;  %v11598_v16 = vld [vmem:[#allocation8 + $0x4a8] ss:$16 sps:$4 sm:$0xff]  }
 0x51f   :  { %v7630_v30 = vadd.f32 %v7629_v53, %v12282_v22  ;;  %9498 = vmatpush1.bf16.msra.mxu0 %v11586_v51  ;;  %9529 = vmatprep.mubr.bf16.mxu0 %v12263_v36  ;;  %v11601_v36 = vld [vmem:[#allocation8 + $0x2e8] ss:$16 sps:$4 sm:$0xff]   ;;  %v11657_v51 = vld [vmem:[#allocation8 + $0x3cc] ss:$16 sps:$4 sm:$0xff]  }
 0x520   :  { %v7670_v31 = vpop.f32.mrf.mxu1  ;;  %v7631_v13 = vpop.f32.mrf.mxu0  ;;  %9499 = vmatprep.subr.bf16.mxu0 %v11594_v26  ;;  %v11660_v26 = vld [vmem:[#allocation8 + $0x56c] ss:$16 sps:$4 sm:$0xff]   ;;  %v11655_v53 = vld [vmem:[#allocation8 + $0x3c8] ss:$16 sps:$4 sm:$0xff]  }
 0x521   :  { %v7671_v40 = vadd.f32 %v7670_v31, %v7630_v30  ;;  %v7632_v33 = vadd.f32 %v7631_v13, %v7591_v28  ;;  %v11658_v28 = vld [vmem:[#allocation8 + $0x568] ss:$16 sps:$4 sm:$0xff]   ;;  %v11663_v30 = vld [vmem:[#allocation8 + $0x3ac] ss:$16 sps:$4 sm:$0xff]  }
 0x522   :  { %v7672_v29 = vpop.f32.mrf.mxu1  ;;  %v7633_v34 = vpop.f32.mrf.mxu0  ;;  %v11666_v31 = vld [vmem:[#allocation8 + $0x54c] ss:$16 sps:$4 sm:$0xff]   ;;  %v11664_v13 = vld [vmem:[#allocation8 + $0x548] ss:$16 sps:$4 sm:$0xff]  }
 0x523   :  { %v7673_v37 = vadd.f32 %v7672_v29, %v7632_v33  ;;  %9500 = vmatpush1.bf16.msra.mxu0 %v11592_v38  ;;  %v7683_v20 = vmax.f32 %v7671_v40, 0.0  ;;  %v11661_v38 = vld [vmem:[#allocation8 + $0x3a8] ss:$16 sps:$4 sm:$0xff]   ;;  %v11672_v40 = vld [vmem:[#allocation8 + $0x52c] ss:$16 sps:$4 sm:$0xff]  }
 0x524   :  { %v7674_v41 = vpop.f32.mrf.mxu1  ;;  %v7634_v2 = vpop.f32.mrf.mxu0  ;;  %9501 = vmatprep.subr.bf16.mxu0 %v11600_v44  ;;  %v11669_v44 = vld [vmem:[#allocation8 + $0x38c] ss:$16 sps:$4 sm:$0xff]   ;;  %v11667_v33 = vld [vmem:[#allocation8 + $0x388] ss:$16 sps:$4 sm:$0xff]  }
 0x525   :  { %v7684_v27 = vmax.f32 %v7673_v37, 0.0  ;;  %v12294_v54 = vpack.c.bf16 %v7683_v20, %v7683_v20  ;;  %v11670_v29 = vld [vmem:[#allocation8 + $0x528] ss:$16 sps:$4 sm:$0xff]   ;;  %v11675_v34 = vld [vmem:[#allocation8 + $0x36c] ss:$16 sps:$4 sm:$0xff]  }
 0x526   :  { %v7675_v22 = vpop.f32.mrf.mxu1  ;;  %v11678_v37 = vld [vmem:[#allocation8 + $0x50c] ss:$16 sps:$4 sm:$0xff]   ;;  %v11673_v41 = vld [vmem:[#allocation8 + $0x368] ss:$16 sps:$4 sm:$0xff]   ;;  %v12299_v2 = vld [vmem:[#allocation10] sm:$0xf] }
 0x527   :  { %v12292_v46 = vpack.c.bf16 %v7684_v27, %v7684_v27  ;;  %9502 = vmatpush1.bf16.msra.mxu0 %v11598_v16  ;;  %v11676_v16 = vld [vmem:[#allocation8 + $0x508] ss:$16 sps:$4 sm:$0xff]   ;;  %v11681_v20 = vld [vmem:[#allocation8 + $0x34c] ss:$16 sps:$4 sm:$0xff]   ;;  %v7954_v22 = vrot.slane %v12299_v2, %v1151_v45 }
 0x528   :  { %9503 = vmatprep.subr.bf16.mxu0 %v11606_v6  ;;  %v11736_v6 = vld [vmem:[#allocation11 + $0x78] sm:$0xff]   ;;  %v11679_v27 = vld [vmem:[#allocation8 + $0x348] ss:$16 sps:$4 sm:$0xff]  }
 0x529   :  { %9406 = vmatprep.mubr.bf16.mxu1 %v12292_v46  ;;  %v11687_v45 = vld [vmem:[#allocation8 + $0x30c] ss:$16 sps:$4 sm:$0xff]  }
 0x52a   :  { %9407 = vmatmul.mubr.bf16.vlgmr.msra.gmra.mxu1 %v12294_v54 }
 0x52b   :  { %9457 = vmatpush1.bf16.msra.mxu1 %v11601_v36  ;;  %9488 = vmatprep.mubr.bf16.mxu1 %v12247_v43  ;;  %v11622_v43 = vld [vmem:[#allocation8 + $0x428] ss:$16 sps:$4 sm:$0xff]   ;;  %v11684_v36 = vld [vmem:[#allocation8 + $0x32c] ss:$16 sps:$4 sm:$0xff]  }
 0x52c   :  { %9504 = vmatpush1.bf16.msra.mxu0 %v11604_v49  ;;  %9458 = vmatprep.subr.bf16.mxu1 %v11609_v55  ;;  %v11737_v49 = vld [vmem:[#allocation11 + $0x38] sm:$0xff]   ;;  %v7958_v55 = vrot.slane %v12299_v2, %v1155_v50  ;;  %v11740_v50 = vld [vmem:[#allocation11 + $0x68] sm:$0xff]  }
 0x52d   :  { %9505 = vmatprep.subr.bf16.mxu0 %v11612_v56  ;;  %v11738_v56 = vld [vmem:[#allocation11 + $0x70] sm:$0xff]  }
 0x52f   :  { %9459 = vmatpush1.bf16.msra.mxu1 %v11607_v18 }
 0x530   :  { %9506 = vmatpush1.bf16.msra.mxu0 %v11610_v57  ;;  %9460 = vmatprep.subr.bf16.mxu1 %v11615_v62 }
 0x531   :  { %9507 = vmatprep.subr.bf16.mxu0 %v11618_v19  ;;  %v11682_v19 = vld [vmem:[#allocation8 + $0x328] ss:$16 sps:$4 sm:$0xff]  }
 0x533   :  { %9461 = vmatpush1.bf16.msra.mxu1 %v11613_v61 }
 0x534   :  { %9508 = vmatpush1.bf16.msra.mxu0 %v11616_v14  ;;  %9462 = vmatprep.subr.bf16.mxu1 %v11621_v5  ;;  %v11739_v14 = vld [vmem:[#allocation11 + $0x30] sm:$0xff]  }
 0x535   :  { %9509 = vmatprep.subr.bf16.mxu0 %v11624_v1 }
 0x537   :  { %9463 = vmatpush1.bf16.msra.mxu1 %v11619_v47 }
 0x538   :  { %9510 = vmatpush1.bf16.msra.mxu0 %v11622_v43  ;;  %9464 = vmatprep.subr.bf16.mxu1 %v11627_v58 }
 0x539   :  { %9511 = vmatprep.subr.bf16.mxu0 %v11630_v23 }
 0x53b   :  { %9465 = vmatpush1.bf16.msra.mxu1 %v11625_v3  ;;  %v11685_v3 = vld [vmem:[#allocation8 + $0x308] ss:$16 sps:$4 sm:$0xff]  }
 0x53c   :  { %9512 = vmatpush1.bf16.msra.mxu0 %v11628_v4  ;;  %9466 = vmatprep.subr.bf16.mxu1 %v11633_v59  ;;  %v11741_v59 = vld [vmem:[#allocation11 + $0x28] sm:$0xff]  }
 0x53d   :  { %9513 = vmatprep.subr.bf16.mxu0 %v11636_v11 }
 0x53f   :  { %9467 = vmatpush1.bf16.msra.mxu1 %v11631_v7  ;;  %v11742_v7 = vld [vmem:[#allocation11 + $0x60] sm:$0xff]  }
 0x540   :  { %9514 = vmatpush2.bf16.msra.mxu0 %v11634_v35  ;;  %9468 = vmatprep.subr.bf16.mxu1 %v11639_v63  ;;  %v11688_v35 = vld [vmem:[#allocation8 + $0x6e8] ss:$16 sps:$4 sm:$0xff]   ;;  %v11693_v63 = vld [vmem:[#allocation8 + $0x6cc] ss:$16 sps:$4 sm:$0xff]  }
 0x541   :  { %9515 = vmatprep.subr.bf16.mxu0 %v11642_v12  ;;  %v11743_v12 = vld [vmem:[#allocation11 + $0x20] sm:$0xff]  }
 0x543   :  { %9469 = vmatpush1.bf16.msra.mxu1 %v11637_v0  ;;  %v11744_v0 = vld [vmem:[#allocation11 + $0x58] sm:$0xff]  }
 0x544   :  { %9516 = vmatpush2.bf16.msra.mxu0 %v11640_v15  ;;  %9470 = vmatprep.subr.bf16.mxu1 %v11645_v24  ;;  %v11691_v15 = vld [vmem:[#allocation8 + $0x6c8] ss:$16 sps:$4 sm:$0xff]   ;;  %v11696_v24 = vld [vmem:[#allocation8 + $0x6ac] ss:$16 sps:$4 sm:$0xff]  }
 0x545   :  { %9517 = vmatprep.subr.bf16.mxu0 %v11648_v8  ;;  %v11745_v8 = vld [vmem:[#allocation11 + $0x18] sm:$0xff]  }
 0x547   :  { %9471 = vmatpush1.bf16.msra.mxu1 %v11643_v21  ;;  %v11746_v21 = vld [vmem:[#allocation11 + $0x50] sm:$0xff]  }
 0x548   :  { %9518 = vmatpush2.bf16.msra.mxu0 %v11646_v52  ;;  %9472 = vmatprep.subr.bf16.mxu1 %v11651_v9  ;;  %v11694_v52 = vld [vmem:[#allocation8 + $0x6a8] ss:$16 sps:$4 sm:$0xff]   ;;  %v11699_v9 = vld [vmem:[#allocation8 + $0x68c] ss:$16 sps:$4 sm:$0xff]  }
 0x549   :  { %9519 = vmatprep.subr.bf16.mxu0 %v11654_v39  ;;  %v11747_v39 = vld [vmem:[#allocation11 + $0x10] sm:$0xff]  }
 0x54b   :  { %9473 = vmatpush2.bf16.msra.mxu1 %v11649_v25  ;;  %v11748_v25 = vld [vmem:[#allocation11 + $0x48] sm:$0xff]  }
 0x54c   :  { %9520 = vmatpush2.bf16.msra.mxu0 %v11652_v10  ;;  %9474 = vmatprep.subr.bf16.mxu1 %v11657_v51  ;;  %v11702_v10 = vld [vmem:[#allocation8 + $0x66c] ss:$16 sps:$4 sm:$0xff]   ;;  %v11750_v51 = vld [vmem:[#allocation11 + $0x40] sm:$0xff]  }
 0x54d   :  { %9521 = vmatprep.subr.bf16.mxu0 %v11660_v26  ;;  %v11700_v26 = vld [vmem:[#allocation8 + $0x668] ss:$16 sps:$4 sm:$0xff]  }
 0x54f   :  { %9475 = vmatpush2.bf16.msra.mxu1 %v11655_v53  ;;  %v11705_v53 = vld [vmem:[#allocation8 + $0x64c] ss:$16 sps:$4 sm:$0xff]  }
 0x550   :  { %9522 = vmatpush2.bf16.msra.mxu0 %v11658_v28  ;;  %9476 = vmatprep.subr.bf16.mxu1 %v11663_v30  ;;  %v11751_v28 = vld [vmem:[#allocation11] sm:$0xff]  }
 0x551   :  { %9523 = vmatprep.subr.bf16.mxu0 %v11666_v31  ;;  %v11703_v30 = vld [vmem:[#allocation8 + $0x648] ss:$16 sps:$4 sm:$0xff]   ;;  %v11708_v31 = vld [vmem:[#allocation8 + $0x62c] ss:$16 sps:$4 sm:$0xff]  }
 0x553   :  { %9477 = vmatpush2.bf16.msra.mxu1 %v11661_v38  ;;  %v11706_v38 = vld [vmem:[#allocation8 + $0x628] ss:$16 sps:$4 sm:$0xff]  }
 0x554   :  { %9524 = vmatpush2.bf16.msra.mxu0 %v11664_v13  ;;  %9478 = vmatprep.subr.bf16.mxu1 %v11669_v44  ;;  %v11711_v13 = vld [vmem:[#allocation8 + $0x60c] ss:$16 sps:$4 sm:$0xff]   ;;  %v11709_v44 = vld [vmem:[#allocation8 + $0x608] ss:$16 sps:$4 sm:$0xff]  }
 0x555   :  { %9525 = vmatprep.subr.bf16.mxu0 %v11672_v40  ;;  %v11714_v40 = vld [vmem:[#allocation8 + $0x7ec] ss:$16 sps:$4 sm:$0xff]  }
 0x557   :  { %9479 = vmatpush2.bf16.msra.mxu1 %v11667_v33  ;;  %v11712_v33 = vld [vmem:[#allocation8 + $0x7e8] ss:$16 sps:$4 sm:$0xff]  }
 0x558   :  { %9526 = vmatpush2.bf16.msra.mxu0 %v11670_v29  ;;  %9480 = vmatprep.subr.bf16.mxu1 %v11675_v34  ;;  %v11717_v29 = vld [vmem:[#allocation8 + $0x7cc] ss:$16 sps:$4 sm:$0xff]   ;;  %v11715_v34 = vld [vmem:[#allocation8 + $0x7c8] ss:$16 sps:$4 sm:$0xff]  }
 0x559   :  { %9527 = vmatprep.subr.bf16.mxu0 %v11678_v37  ;;  %v11720_v37 = vld [vmem:[#allocation8 + $0x7ac] ss:$16 sps:$4 sm:$0xff]  }
 0x55b   :  { %9481 = vmatpush2.bf16.msra.mxu1 %v11673_v41  ;;  %v11718_v41 = vld [vmem:[#allocation8 + $0x7a8] ss:$16 sps:$4 sm:$0xff]  }
 0x55c   :  { %9528 = vmatpush2.bf16.msra.mxu0 %v11676_v16  ;;  %9482 = vmatprep.subr.bf16.mxu1 %v11681_v20  ;;  %v11723_v16 = vld [vmem:[#allocation8 + $0x78c] ss:$16 sps:$4 sm:$0xff]   ;;  %v11721_v20 = vld [vmem:[#allocation8 + $0x788] ss:$16 sps:$4 sm:$0xff]  }
 0x55d   :  { %11278 = vmatprep.subr.bf16.mxu0 %v11736_v6  ;;  %v11726_v6 = vld [vmem:[#allocation8 + $0x76c] ss:$16 sps:$4 sm:$0xff]  }
 0x55e   :  { %v9285_v18 = vpop.f32.mrf.mxu0 }
 0x55f   :  { %v9286_v57 = vadd.f32 %v9285_v18, %v7954_v22  ;;  %9483 = vmatpush2.bf16.msra.mxu1 %v11679_v27  ;;  %9530 = vmatmul.mubr.bf16.vlgmr.msra.gmra.mxu0 %v12275_v42  ;;  %v11690_v42 = vld [vmem:[#allocation8 + $0x6ec] ss:$16 sps:$4 sm:$0xff]   ;;  %v11724_v27 = vld [vmem:[#allocation8 + $0x768] ss:$16 sps:$4 sm:$0xff]  }
 0x560   :  { %v9326_v62 = vpop.f32.mrf.mxu1  ;;  %v9287_v61 = vpop.f32.mrf.mxu0  ;;  %9484 = vmatprep.subr.bf16.mxu1 %v11684_v36  ;;  %11279 = vmatpush3.bf16.msra.mxu0 %v11737_v49  ;;  %v11729_v22 = vld [vmem:[#allocation8 + $0x74c] ss:$16 sps:$4 sm:$0xff]   ;;  %v11727_v36 = vld [vmem:[#allocation8 + $0x748] ss:$16 sps:$4 sm:$0xff]  }
 0x561   :  { %v12308_v5 = vadd.f32 %v9326_v62, %v9286_v57  ;;  %v9288_v1 = vadd.f32 %v9287_v61, %v7958_v55  ;;  %11280 = vmatprep.subr.bf16.mxu0 %v11738_v56  ;;  %v11732_v49 = vld [vmem:[#allocation8 + $0x72c] ss:$16 sps:$4 sm:$0xff]   ;;  %v11730_v18 = vld [vmem:[#allocation8 + $0x728] ss:$16 sps:$4 sm:$0xff]  }
 0x562   :  { %v9328_v47 = vpop.f32.mrf.mxu1  ;;  %v9289_v43 = vpop.f32.mrf.mxu0  ;;  %v11735_v62 = vld [vmem:[#allocation8 + $0x70c] ss:$16 sps:$4 sm:$0xff]  }
 0x563   :  { %v12310_v58 = vadd.f32 %v9328_v47, %v9288_v1  ;;  %9485 = vmatpush2.bf16.msra.mxu1 %v11682_v19  ;;  %v11752_v1 = vld [vmem:[#allocation11 + $0xf8] sm:$0xff]   ;;  %v11756_v43 = vld [vmem:[#allocation11 + $0xe8] sm:$0xff]  }
 0x564   :  { %v9330_v23 = vpop.f32.mrf.mxu1  ;;  %v9290_v4 = vpop.f32.mrf.mxu0  ;;  %9486 = vmatprep.subr.bf16.mxu1 %v11687_v45  ;;  %11281 = vmatpush3.bf16.msra.mxu0 %v11739_v14  ;;  %v11733_v45 = vld [vmem:[#allocation8 + $0x708] ss:$16 sps:$4 sm:$0xff]   ;;  %v11753_v47 = vld [vmem:[#allocation11 + $0xb8] sm:$0xff]  }
 0x565   :  { %11282 = vmatprep.subr.bf16.mxu0 %v11740_v50  ;;  %v11754_v50 = vld [vmem:[#allocation11 + $0xf0] sm:$0xff]   ;;  %v11757_v23 = vld [vmem:[#allocation11 + $0xa8] sm:$0xff]   ;;  %v11760_v4 = vld [vmem:[#allocation11 + $0xd8] sm:$0xff]  }
 0x566   :  { %v9331_v11 = vpop.f32.mrf.mxu1 }
 0x567   :  { %9487 = vmatpush2.bf16.msra.mxu1 %v11685_v3  ;;  %v11759_v3 = vld [vmem:[#allocation11 + $0xa0] sm:$0xff]  }
 0x568   :  { %9538 = vmatprep.subr.bf16.mxu1 %v11690_v42  ;;  %11283 = vmatpush3.bf16.msra.mxu0 %v11741_v59  ;;  %v11761_v42 = vld [vmem:[#allocation11 + $0x98] sm:$0xff]   ;;  %v11763_v59 = vld [vmem:[#allocation11 + $0x90] sm:$0xff]  }
 0x569   :  { %11284 = vmatprep.subr.bf16.mxu0 %v11742_v7 }
 0x56a   :  { %9489 = vmatmul.mubr.bf16.vlgmr.msra.gmra.mxu1 %v12261_v60  ;;  %v11697_v60 = vld [vmem:[#allocation8 + $0x688] ss:$16 sps:$4 sm:$0xff]  }
 0x56b   :  { %9539 = vmatpush1.bf16.msra.mxu1 %v11688_v35  ;;  %9570 = vmatprep.mubr.bf16.mxu1 %v12292_v46  ;;  %v11749_v46 = vld [vmem:[#allocation11 + $0x8] sm:$0xff]  }
 0x56c   :  { %9540 = vmatprep.subr.bf16.mxu1 %v11693_v63  ;;  %11285 = vmatpush3.bf16.msra.mxu0 %v11743_v12 }
 0x56d   :  { %11286 = vmatprep.subr.bf16.mxu0 %v11744_v0 }
 0x56f   :  { %9541 = vmatpush1.bf16.msra.mxu1 %v11691_v15  ;;  %v11764_v15 = vld [vmem:[#allocation11 + $0xc8] sm:$0xff]  }
 0x570   :  { %9542 = vmatprep.subr.bf16.mxu1 %v11696_v24  ;;  %11287 = vmatpush3.bf16.msra.mxu0 %v11745_v8  ;;  %v11765_v8 = vld [vmem:[#allocation11 + $0x88] sm:$0xff]  }
 0x571   :  { %11288 = vmatprep.subr.bf16.mxu0 %v11746_v21 }
 0x573   :  { %9543 = vmatpush1.bf16.msra.mxu1 %v11694_v52 }
 0x574   :  { %9544 = vmatprep.subr.bf16.mxu1 %v11699_v9  ;;  %11289 = vmatpush3.bf16.msra.mxu0 %v11747_v39 }
 0x575   :  { %11290 = vmatprep.subr.bf16.mxu0 %v11748_v25  ;;  %v11766_v25 = vld [vmem:[#allocation11 + $0xc0] sm:$0xff]  }
 0x577   :  { %9545 = vmatpush1.bf16.msra.mxu1 %v11697_v60 }
 0x578   :  { %9546 = vmatprep.subr.bf16.mxu1 %v11702_v10  ;;  %11291 = vmatpush3.bf16.msra.mxu0 %v11749_v46  ;;  %v11767_v10 = vld [vmem:[#allocation11 + $0x80] sm:$0xff]  }
 0x579   :  { %11292 = vmatprep.subr.bf16.mxu0 %v11750_v51 }
 0x57b   :  { %9547 = vmatpush1.bf16.msra.mxu1 %v11700_v26 }
 0x57c   :  { %9548 = vmatprep.subr.bf16.mxu1 %v11705_v53  ;;  %11293 = vmatpush3.bf16.msra.mxu0 %v11751_v28 }
 0x57f   :  { %9549 = vmatpush1.bf16.msra.mxu1 %v11703_v30  ;;  %v7962_v30 = vrot.slane %v12299_v2, %v1159_v17 }
 0x580   :  { %9550 = vmatprep.subr.bf16.mxu1 %v11708_v31 }
 0x583   :  { %9551 = vmatpush1.bf16.msra.mxu1 %v11706_v38  ;;  %v7966_v38 = vrot.slane %v12299_v2, %v1163_v48 }
 0x584   :  { %9552 = vmatprep.subr.bf16.mxu1 %v11711_v13 }
 0x587   :  { %9553 = vmatpush1.bf16.msra.mxu1 %v11709_v44 }
 0x588   :  { %9554 = vmatprep.subr.bf16.mxu1 %v11714_v40 }
 0x58b   :  { %9555 = vmatpush2.bf16.msra.mxu1 %v11712_v33 }
 0x58c   :  { %9556 = vmatprep.subr.bf16.mxu1 %v11717_v29 }
 0x58f   :  { %9557 = vmatpush2.bf16.msra.mxu1 %v11715_v34 }
 0x590   :  { %9558 = vmatprep.subr.bf16.mxu1 %v11720_v37 }
 0x593   :  { %9559 = vmatpush2.bf16.msra.mxu1 %v11718_v41 }
 0x594   :  { %9560 = vmatprep.subr.bf16.mxu1 %v11723_v16 }
 0x597   :  { %9561 = vmatpush2.bf16.msra.mxu1 %v11721_v20 }
 0x598   :  { %9562 = vmatprep.subr.bf16.mxu1 %v11726_v6 }
 0x59b   :  { %9563 = vmatpush2.bf16.msra.mxu1 %v11724_v27 }
 0x59c   :  { %9564 = vmatprep.subr.bf16.mxu1 %v11729_v22 }
 0x59e   :  { %v9367_v55 = vpop.f32.mrf.mxu0 }
 0x59f   :  { %v9368_v56 = vadd.f32 %v9367_v55, %v12308_v5  ;;  %9565 = vmatpush2.bf16.msra.mxu1 %v11727_v36  ;;  %v11755_v5 = vld [vmem:[#allocation11 + $0xb0] sm:$0xff]  }
 0x5a0   :  { %v9369_v57 = vpop.f32.mrf.mxu0  ;;  %9566 = vmatprep.subr.bf16.mxu1 %v11732_v49 }
 0x5a1   :  { %v9370_v19 = vadd.f32 %v9369_v57, %v12310_v58  ;;  %v11758_v58 = vld [vmem:[#allocation11 + $0xe0] sm:$0xff]  }
 0x5a2   :  { %v9371_v61 = vpop.f32.mrf.mxu0 }
 0x5a3   :  { %9567 = vmatpush2.bf16.msra.mxu1 %v11730_v18  ;;  %v11245_v61 = vld [vmem:[#allocation13] ss:$0 sm:$0xff] }
 0x5a4   :  { %v9372_v14 = vpop.f32.mrf.mxu0  ;;  %9568 = vmatprep.subr.bf16.mxu1 %v11735_v62 }
 0x5a7   :  { %9569 = vmatpush2.bf16.msra.mxu1 %v11733_v45 }
 0x5a8   :  { %11300 = vmatprep.subr.bf16.mxu1 %v11752_v1 }
 0x5aa   :  { %9571 = vmatmul.mubr.bf16.vlgmr.msra.gmra.mxu1 %v12294_v54  ;;  %v11762_v54 = vld [vmem:[#allocation11 + $0xd0] sm:$0xff]  }
 0x5ab   :  { %11301 = vmatpush3.bf16.msra.mxu1 %v11753_v47 }
 0x5ac   :  { %11302 = vmatprep.subr.bf16.mxu1 %v11754_v50 }
 0x5af   :  { %11303 = vmatpush3.bf16.msra.mxu1 %v11755_v5 }
 0x5b0   :  { %11304 = vmatprep.subr.bf16.mxu1 %v11756_v43 }
 0x5b3   :  { %11305 = vmatpush3.bf16.msra.mxu1 %v11757_v23 }
 0x5b4   :  { %11306 = vmatprep.subr.bf16.mxu1 %v11758_v58 }
 0x5b7   :  { %11307 = vmatpush3.bf16.msra.mxu1 %v11759_v3 }
 0x5b8   :  { %11308 = vmatprep.subr.bf16.mxu1 %v11760_v4 }
 0x5bb   :  { %11309 = vmatpush3.bf16.msra.mxu1 %v11761_v42 }
 0x5bc   :  { %11310 = vmatprep.subr.bf16.mxu1 %v11762_v54 }
 0x5bf   :  { %11311 = vmatpush3.bf16.msra.mxu1 %v11763_v59 }
 0x5c0   :  { %11312 = vmatprep.subr.bf16.mxu1 %v11764_v15 }
 0x5c3   :  { %11313 = vmatpush3.bf16.msra.mxu1 %v11765_v8 }
 0x5c4   :  { %11314 = vmatprep.subr.bf16.mxu1 %v11766_v25 }
 0x5c7   :  { %11315 = vmatpush3.bf16.msra.mxu1 %v11767_v10 }
 0x5de   :  { %v9449_v11 = vpop.f32.mrf.mxu0 }
 0x5df   :  { %v9450_v13 = vadd.f32 %v9449_v11, %v7962_v30 }
 0x5e0   :  { %v9451_v7 = vpop.f32.mrf.mxu0 }
 0x5e1   :  { %v9452_v40 = vadd.f32 %v9451_v7, %v7966_v38 }
 0x5e2   :  { %v9453_v35 = vpop.f32.mrf.mxu0 }
 0x5e4   :  { %v9454_v63 = vpop.f32.mrf.mxu0 }
 0x5ea   :  { %v9408_v12 = vpop.f32.mrf.mxu1 }
 0x5eb   :  { %v9409_v0 = vadd.f32 %v9408_v12, %v9368_v56 }
 0x5ec   :  { %v9410_v24 = vpop.f32.mrf.mxu1 }
 0x5ed   :  { %v9411_v21 = vadd.f32 %v9410_v24, %v9370_v19  ;;  %v9579_v52 = vmax.f32 %v9409_v0, 0.0 }
 0x5ee   :  { %v9412_v9 = vpop.f32.mrf.mxu1 }
 0x5ef   :  { %v9580_v39 = vmax.f32 %v9411_v21, 0.0  ;;  %v9583_v51 = vpack.c.bf16 %v9579_v52, %v9579_v52 }
 0x5f0   :  { %v9413_v60 = vpop.f32.mrf.mxu1 }
 0x5f1   :  { %v9584_v46 = vpack.c.bf16 %v9580_v39, %v9580_v39 }
 0x5f3   :  { %9882 = vmatprep.mubr.bf16.mxu0 %v9584_v46 }
 0x5f4   :  { %9883 = vmatmul.mubr.bf16.vlgmr.msra.gmra.mxu0 %v9583_v51 }
 0x61f   :  { %v9531_v26 = vpop.f32.mrf.mxu0 }
 0x621   :  { %v9533_v53 = vpop.f32.mrf.mxu0 }
 0x623   :  { %v9535_v28 = vpop.f32.mrf.mxu0 }
 0x625   :  { %v9536_v31 = vpop.f32.mrf.mxu0 }
 0x62a   :  { %v9490_v44 = vpop.f32.mrf.mxu1 }
 0x62b   :  { %v9491_v33 = vadd.f32 %v9490_v44, %v9450_v13 }
 0x62c   :  { %v9492_v29 = vpop.f32.mrf.mxu1 }
 0x62d   :  { %v9493_v34 = vadd.f32 %v9492_v29, %v9452_v40  ;;  %v9532_v37 = vadd.f32 %v9531_v26, %v9491_v33 }
 0x62e   :  { %v9494_v41 = vpop.f32.mrf.mxu1 }
 0x62f   :  { %v9534_v16 = vadd.f32 %v9533_v53, %v9493_v34 }
 0x630   :  { %v9495_v20 = vpop.f32.mrf.mxu1 }
 0x66a   :  { %v9572_v6 = vpop.f32.mrf.mxu1 }
 0x66b   :  { %v9573_v27 = vadd.f32 %v9572_v6, %v9532_v37 }
 0x66c   :  { %v9574_v22 = vpop.f32.mrf.mxu1 }
 0x66d   :  { %v9575_v36 = vadd.f32 %v9574_v22, %v9534_v16  ;;  %v9581_v17 = vmax.f32 %v9573_v27, 0.0 }
 0x66e   :  { %v9576_v49 = vpop.f32.mrf.mxu1 }
 0x66f   :  { %v9582_v55 = vmax.f32 %v9575_v36, 0.0  ;;  %v9585_v48 = vpack.c.bf16 %v9581_v17, %v9581_v17 }
 0x670   :  { %v9577_v32 = vpop.f32.mrf.mxu1 }
 0x671   :  { %v9586_v56 = vpack.c.bf16 %v9582_v55, %v9582_v55 }
 0x673   :  { %9922 = vmatprep.mubr.bf16.mxu1 %v9586_v56 }
 0x674   :  { %9923 = vmatmul.mubr.bf16.vlgmr.msra.gmra.mxu1 %v9585_v48 }
 0x6b4   :  { %v11294_v2 = vpop.f32.mrf.mxu0 }
 0x6b6   :  { %v11295_v18 = vpop.f32.mrf.mxu0 }
 0x6b7   :  { %v11296_v57 = vadd.f32 %v11295_v18, %v11294_v2 }
 0x6b8   :  { %v11297_v62 = vpop.f32.mrf.mxu0 }
 0x6b9   :  { %v9885_v1 = vadd.f32 %v11296_v57, %v11245_v61 }
 0x6ba   :  { %v11298_v19 = vpop.f32.mrf.mxu0 }
 0x734   :  { %v11316_v45 = vpop.f32.mrf.mxu1 }
 0x736   :  { %v11317_v14 = vpop.f32.mrf.mxu1 }
 0x737   :  { %v11318_v47 = vadd.f32 %v11317_v14, %v11316_v45 }
 0x738   :  { %v11319_v50 = vpop.f32.mrf.mxu1 }
 0x739   :  { %v9925_v5 = vadd.f32 %v11318_v47, %v9885_v1 }
 0x73a   :  { %v11320_v43 = vpop.f32.mrf.mxu1 }
 0x73b   :  { %9930 = vst [vmem:[#allocation14] sm:$0xff] %v9925_v5 }
 0x73c   :  { %11922 = shalt.err (!%p11919_p11)
}
 0x73d   :  { %9940 = dma.vmem_to_hbm [thread:$0]  %s9938_s6, 128, %s12333_s7, [#allocation4]  }
 0x73e   :  { %11939 = dma.done.wait [#allocation4], 128  }
 0x73f   :  { %11940 = vsyncadd [#allocation4], 4294967168 }
 0x740   :  { %9944 = vsyncpa [#allocation3], 1 }
 0x741   :  { %9945 = vsyncpa [#allocation6], 1 }
 0x742   :  { %9946 = vsyncpa [#allocation9], 1 }
 0x743   :  { %9947 = vsyncpa [#allocation12], 1 }
 0x744   :  { %9948 = vsyncpa [#allocation4], 1 }

</bundles_post_ra>
